<compile_context>
chip_gen: v5e
topology: v5e:2x2
jax: 0.10.0
libtpu: 0.0.40
codegen_flags: <defaults>
</compile_context>

<pallas_src>
import functools

import jax
import jax.numpy as jnp
from jax.experimental import pallas as pl
from jax.experimental.pallas import tpu as pltpu

SELU_ALPHA = 1.6732632423543772
SELU_SCALE = 1.0507009873554805
LN_EPS = 1e-5


def _selu(x):
    return SELU_SCALE * jnp.where(x > 0, x, SELU_ALPHA * (jnp.exp(x) - 1.0))


def _layernorm(x, gamma, beta):
    mean = jnp.mean(x, axis=-1, keepdims=True)
    var = jnp.mean((x - mean) ** 2, axis=-1, keepdims=True)
    return (x - mean) * jax.lax.rsqrt(var + LN_EPS) * gamma + beta


# ------------------------------- kernel --------------------------------------
def fused_encoder_kernel(x_ref, wpos_ref, mats_ref, vecs_ref, o_ref, *,
                         n_layers, n_heads, d_k, d_v, b_tile, seq_len,
                         d_model, scale):
    """Whole TSTEncoder (all layers) for a block of B_TILE sequences.

    mats_ref : (n_layers, D, 4D)  = [W_Q | W_K | W_V | W_O] along lanes
    vecs_ref : (n_layers, 8, D)   = rows b_q, b_k, b_v, b_o, g1, b1, g2, b2
    """
    D = d_model
    m = b_tile * seq_len

    # Positional encoding (dropout p=0 => identity), broadcast over sequences.
    x = x_ref[...].reshape(b_tile, seq_len, D) + wpos_ref[...][None]
    src = x.reshape(m, D)                                    # (M, D) tokens

    # TODO(synk): for much deeper stacks switch this static unroll to
    # lax.fori_loop with dynamic mats_ref[li]/vecs_ref[li] indexing so vreg
    # live ranges stay bounded; at n_layers=3 the unroll is cheaper.
    for li in range(n_layers):
        mats = mats_ref[li]                                  # (D, 4D)
        vecs = vecs_ref[li]                                  # (8, D)

        # ---- fused QKV projection: ONE MXU push/pop group per layer -------
        qkv = jnp.dot(src, mats[:, :3 * D],
                      preferred_element_type=jnp.float32)    # (M, 3D)
        q = (qkv[:, 0 * D:1 * D] + vecs[0:1]).reshape(b_tile, seq_len, D)
        k = (qkv[:, 1 * D:2 * D] + vecs[1:2]).reshape(b_tile, seq_len, D)
        v = (qkv[:, 2 * D:3 * D] + vecs[2:3]).reshape(b_tile, seq_len, D)

        # ---- per-head attention, batched over the B_TILE sequences --------
        # Head outputs are concatenated along lanes (cheap XLU selects) so the
        # output projection is ONE (M, D) @ (D, D) matmul instead of n_heads
        # tiny K=d_v matmuls.
        heads = []
        for h in range(n_heads):
            qh = q[:, :, h * d_k:(h + 1) * d_k]              # (B_TILE, L, dk)
            kh = k[:, :, h * d_k:(h + 1) * d_k]
            vh = v[:, :, h * d_v:(h + 1) * d_v]
            s = jnp.einsum('bld,bmd->blm', qh, kh,
                           preferred_element_type=jnp.float32) * scale
            s = s - jnp.max(s, axis=-1, keepdims=True)
            p = jnp.exp(s)
            p = p / jnp.sum(p, axis=-1, keepdims=True)       # exact softmax
            heads.append(jnp.einsum('blm,bmd->bld', p, vh,
                                    preferred_element_type=jnp.float32))
        attn_out = jnp.concatenate(heads, axis=-1).reshape(m, D)

        proj = jnp.dot(attn_out, mats[:, 3 * D:4 * D],
                       preferred_element_type=jnp.float32) + vecs[3:4]

        # SELU + residual (all dropout probabilities are 0 => identity).
        src = src + _selu(proj)

        # TODO(synk): the reference forward calls self.norm_attn2 /
        # self.norm_ffn2 which are never defined in __init__; we apply the
        # defined norm_attn / norm_ffn LayerNorms in their place (the only
        # consistent interpretation).
        src = _layernorm(src, vecs[4:5], vecs[5:6])
        src = _layernorm(src, vecs[6:7], vecs[7:8])

    o_ref[...] = src


# ------------------------- per-generation sizing -----------------------------
def _num_tensorcores():
    """Grid steps should equal the number of TensorCores (1 on v5e/v6e,
    2 on v7x / megacore parts); anything more is pure per-step overhead."""
    try:
        kind = jax.devices()[0].device_kind.lower()
    except Exception:
        return 1
    if "v7" in kind or "7x" in kind:
        return 2
    if "v4" in kind or "v5p" in kind or "v5 p" in kind:
        return 2          # megacore: 2 TCs behind one device
    return 1


def _vmem_capacity_bytes():
    try:
        cap = int(pltpu.get_tpu_info().vmem_capacity_bytes)
        if cap > 0:
            return cap
    except Exception:
        pass
    return 64 * 1024 * 1024   # conservative default (v7x per-core VMEM)


def _kernel_vmem_bytes(b_tile, L, D, n_layers, n_heads):
    """Conservative estimate of VMEM needed: double-buffered activation I/O,
    resident weight slabs (counted double-buffered), and the live
    intermediates of one (unrolled) layer body."""
    f = 4
    rows = b_tile * L
    act_io = 2 * 2 * rows * D * f                       # in + out tiles
    weights = 2 * (n_layers * (4 * D * D + 8 * D) + L * D) * f
    inter = rows * (3 * D + 3 * D + 2 * D) * f \
        + 2 * n_heads * b_tile * L * L * f              # scores + probs
    return act_io + weights + inter


def _pick_b_tile(batch, L, D, n_layers, n_heads, n_cores, budget):
    bt = max(1, batch // max(1, n_cores))
    while bt > 1 and (batch % bt != 0 or
                      _kernel_vmem_bytes(bt, L, D, n_layers, n_heads) > budget):
        bt -= 1
    return bt


# ------------------------------- wrapper --------------------------------------
def tsti_encoder_forward(x, w_pos, layer_params, n_heads):
    """x: (bs, n_vars, d_model, patch_num) -> (bs, n_vars, d_model, patch_num)."""
    bs, n_vars, d_model, patch_num = x.shape
    B, L, D = bs * n_vars, patch_num, d_model
    n_layers = len(layer_params)
    d_k = d_v = D // n_heads
    scale = float(d_k) ** -0.5

    # Pack all per-layer weights into TWO resident slabs (plus W_pos):
    #   mats: (nl, D, 4D) = [W_Q | W_K | W_V | W_O]
    #   vecs: (nl, 8, D)  = b_q, b_k, b_v, b_o, g1, b1, g2, b2
    mats = jnp.stack([jnp.concatenate([p[0], p[2], p[4], p[6]], axis=1)
                      for p in layer_params]).astype(jnp.float32)
    vecs = jnp.stack([jnp.concatenate(
        [p[1], p[3], p[5], p[7], p[8], p[9], p[10], p[11]], axis=0)
        for p in layer_params]).astype(jnp.float32)
    w_pos = w_pos.astype(jnp.float32)

    # Tokens-first layout (B*L, D); permute(0,1,3,2)+reshape as in the module.
    u = jnp.transpose(x, (0, 1, 3, 2)).reshape(B * L, D).astype(jnp.float32)

    vmem_cap = _vmem_capacity_bytes()
    n_cores = _num_tensorcores()
    # Budget ~3/8 of physical VMEM (≈24 MiB on v7x, ≈48 MiB on v5e/v6e).
    b_tile = _pick_b_tile(B, L, D, n_layers, n_heads, n_cores,
                          budget=int(vmem_cap * 0.375))
    grid = (B // b_tile,)
    rows = b_tile * L

    kern = functools.partial(
        fused_encoder_kernel, n_layers=n_layers, n_heads=n_heads, d_k=d_k,
        d_v=d_v, b_tile=b_tile, seq_len=L, d_model=D, scale=scale)

    tok_spec = pl.BlockSpec((rows, D), lambda i: (i, 0))

    out = pl.pallas_call(
        kern,
        out_shape=jax.ShapeDtypeStruct((B * L, D), jnp.float32),
        grid=grid,
        in_specs=[
            tok_spec,
            # Constant block index -> fetched once, VMEM-resident across grid.
            pl.BlockSpec(w_pos.shape, lambda i: (0, 0)),
            pl.BlockSpec(mats.shape, lambda i: (0, 0, 0)),
            pl.BlockSpec(vecs.shape, lambda i: (0, 0, 0)),
        ],
        out_specs=tok_spec,
        compiler_params=pltpu.CompilerParams(
            dimension_semantics=("parallel",),
            vmem_limit_bytes=int(min(vmem_cap // 2, 64 * 1024 * 1024))),
    )(u, w_pos, mats, vecs)

    z = out.reshape(bs, n_vars, L, D)
    return jnp.transpose(z, (0, 1, 3, 2))


# ----------------------- pure-JAX reference (for check) -----------------------
def reference_forward(x, w_pos, layer_params, n_heads):
    bs, n_vars, d_model, patch_num = x.shape
    z = jnp.transpose(x, (0, 1, 3, 2)).reshape(bs * n_vars, patch_num, d_model)
    z = z + w_pos[None]
    d_k = d_model // n_heads
    scale = float(d_k) ** -0.5
    for (wq, bq, wk, bk, wv, bv, wo, bo, g1, b1, g2, b2) in layer_params:
        B, L, _ = z.shape
        q = (z @ wq + bq).reshape(B, L, n_heads, d_k).transpose(0, 2, 1, 3)
        k = (z @ wk + bk).reshape(B, L, n_heads, d_k).transpose(0, 2, 1, 3)
        v = (z @ wv + bv).reshape(B, L, n_heads, d_k).transpose(0, 2, 1, 3)
        s = jnp.einsum('bhqd,bhkd->bhqk', q, k) * scale
        p = jax.nn.softmax(s, axis=-1)
        o = jnp.einsum('bhqk,bhkd->bhqd', p, v)
        o = o.transpose(0, 2, 1, 3).reshape(B, L, d_model) @ wo + bo
        a = SELU_SCALE * jnp.where(o > 0, o, SELU_ALPHA * (jnp.exp(o) - 1.0))
        zz = z + a
        for (g, b_) in ((g1, b1), (g2, b2)):
            m = jnp.mean(zz, -1, keepdims=True)
            var = jnp.mean((zz - m) ** 2, -1, keepdims=True)
            zz = (zz - m) * jax.lax.rsqrt(var + LN_EPS) * g + b_
        z = zz
    z = z.reshape(bs, n_vars, patch_num, d_model)
    return jnp.transpose(z, (0, 1, 3, 2))


# --------------------------- deterministic init -------------------------------
def init_params(key, d_model, n_layers, q_len):
    keys = jax.random.split(key, 1 + n_layers)
    # W_pos: positional_encoding('zeros', ...) -> uniform(-0.02, 0.02)
    w_pos = jax.random.uniform(keys[0], (q_len, d_model), jnp.float32, -0.02, 0.02)
    bound = 1.0 / (d_model ** 0.5)
    layers = []
    for i in range(n_layers):
        k = jax.random.split(keys[1 + i], 8)
        mat = lambda kk: jax.random.uniform(kk, (d_model, d_model), jnp.float32, -bound, bound)
        vec = lambda kk: jax.random.uniform(kk, (1, d_model), jnp.float32, -bound, bound)
        wq, wk, wv, wo = mat(k[0]), mat(k[1]), mat(k[2]), mat(k[3])
        bq, bk, bv, bo = vec(k[4]), vec(k[5]), vec(k[6]), vec(k[7])
        g1 = jnp.ones((1, d_model), jnp.float32)
        b1 = jnp.zeros((1, d_model), jnp.float32)
        g2 = jnp.ones((1, d_model), jnp.float32)
        b2 = jnp.zeros((1, d_model), jnp.float32)
        layers.append((wq, bq, wk, bk, wv, bv, wo, bo, g1, b1, g2, b2))
    return w_pos, layers


if __name__ == "__main__":
    # Small, shape-consistent config: bs=2, c_in(n_vars)=4, d_model=32,
    # patch_num(q_len)=8, n_heads=4, n_layers=3.
    bs, n_vars, d_model, patch_num, n_heads, n_layers = 2, 4, 32, 8, 4, 3

    key = jax.random.PRNGKey(0)
    kx, kp = jax.random.split(key)
    x = jax.random.normal(kx, (bs, n_vars, d_model, patch_num), jnp.float32)
    w_pos, layer_params = init_params(kp, d_model, n_layers, patch_num)

    out = tsti_encoder_forward(x, w_pos, layer_params, n_heads)
    out = jax.block_until_ready(out)

    with jax.default_matmul_precision("float32"):
        ref = reference_forward(x, w_pos, layer_params, n_heads)
    ref = jax.block_until_ready(ref)

    assert out.shape == (bs, n_vars, d_model, patch_num), out.shape
    # Exact softmax reciprocal now -> typical max error ~1e-5; tolerance kept
    # conservative for cross-generation matmul rounding differences.
    assert jnp.allclose(out, ref, rtol=1e-3, atol=1e-3), \
        float(jnp.max(jnp.abs(out - ref)))

    print("KERNEL_OK")
</pallas_src>

<mosaic_0001>
module attributes {stable_mosaic.version = 11 : i64} {
  func.func @fused_encoder_kernel(%arg0: i32, %arg1: memref<64x32xf32, #tpu.memory_space<vmem>>, %arg2: memref<8x32xf32, #tpu.memory_space<vmem>>, %arg3: memref<3x32x128xf32, #tpu.memory_space<vmem>>, %arg4: memref<3x8x32xf32, #tpu.memory_space<vmem>>, %arg5: memref<64x32xf32, #tpu.memory_space<vmem>>) attributes {dimension_semantics = [#tpu.dimension_semantics<parallel>], iteration_bounds = array<i64: 1>, scalar_prefetch = 0 : i64, scratch_operands = 0 : i64, tpu.core_type = #tpu.core_type<tc>, window_params = [{transform_indices = @transform_0, window_bounds = array<i64: 64, 32>}, {pipeline_mode = #tpu.pipeline_mode<synchronous>, transform_indices = @transform_1, window_bounds = array<i64: 8, 32>}, {pipeline_mode = #tpu.pipeline_mode<synchronous>, transform_indices = @transform_2, window_bounds = array<i64: 3, 32, 128>}, {pipeline_mode = #tpu.pipeline_mode<synchronous>, transform_indices = @transform_3, window_bounds = array<i64: 3, 8, 32>}, {transform_indices = @transform_4, window_bounds = array<i64: 64, 32>}]} {
    %c0 = arith.constant 0 : index
    %c0_0 = arith.constant 0 : index
    %0 = vector.load %arg1[%c0, %c0_0] : memref<64x32xf32, #tpu.memory_space<vmem>>, vector<64x32xf32>
    %1 = vector.shape_cast %0 : vector<64x32xf32> to vector<8x8x32xf32>
    %c0_1 = arith.constant 0 : index
    %c0_2 = arith.constant 0 : index
    %2 = vector.load %arg2[%c0_1, %c0_2] : memref<8x32xf32, #tpu.memory_space<vmem>>, vector<8x32xf32>
    %3 = vector.shape_cast %2 : vector<8x32xf32> to vector<1x8x32xf32>
    %4 = vector.broadcast %3 : vector<1x8x32xf32> to vector<8x8x32xf32>
    %5 = arith.addf %1, %4 : vector<8x8x32xf32>
    %6 = vector.shape_cast %5 : vector<8x8x32xf32> to vector<64x32xf32>
    %c0_3 = arith.constant 0 : index
    %c0_4 = arith.constant 0 : index
    %c0_5 = arith.constant 0 : index
    %7 = vector.load %arg3[%c0_3, %c0_4, %c0_5] : memref<3x32x128xf32, #tpu.memory_space<vmem>>, vector<1x32x128xf32>
    %8 = vector.shape_cast %7 : vector<1x32x128xf32> to vector<32x128xf32>
    %c0_6 = arith.constant 0 : index
    %c0_7 = arith.constant 0 : index
    %c0_8 = arith.constant 0 : index
    %9 = vector.load %arg4[%c0_6, %c0_7, %c0_8] : memref<3x8x32xf32, #tpu.memory_space<vmem>>, vector<1x8x32xf32>
    %10 = vector.shape_cast %9 : vector<1x8x32xf32> to vector<8x32xf32>
    %11 = vector.extract_strided_slice %8 {offsets = [0, 0], sizes = [32, 96], strides = [1, 1]} : vector<32x128xf32> to vector<32x96xf32>
    %cst = arith.constant dense<0.000000e+00> : vector<64x96xf32>
    %12 = tpu.matmul %6, %11, %cst {dimension_numbers = #tpu.dot_dimension_numbers<[1], [0], [0], [1], [0, 0, 1, 1], [], []>} : vector<64x32xf32>, vector<32x96xf32>, vector<64x96xf32> -> vector<64x96xf32>
    %13 = vector.extract_strided_slice %12 {offsets = [0, 0], sizes = [64, 32], strides = [1, 1]} : vector<64x96xf32> to vector<64x32xf32>
    %14 = vector.extract_strided_slice %10 {offsets = [0, 0], sizes = [1, 32], strides = [1, 1]} : vector<8x32xf32> to vector<1x32xf32>
    %15 = vector.broadcast %14 : vector<1x32xf32> to vector<64x32xf32>
    %16 = arith.addf %13, %15 : vector<64x32xf32>
    %17 = vector.shape_cast %16 : vector<64x32xf32> to vector<8x8x32xf32>
    %18 = vector.extract_strided_slice %12 {offsets = [0, 32], sizes = [64, 32], strides = [1, 1]} : vector<64x96xf32> to vector<64x32xf32>
    %19 = vector.extract_strided_slice %10 {offsets = [1, 0], sizes = [1, 32], strides = [1, 1]} : vector<8x32xf32> to vector<1x32xf32>
    %20 = vector.broadcast %19 : vector<1x32xf32> to vector<64x32xf32>
    %21 = arith.addf %18, %20 : vector<64x32xf32>
    %22 = vector.shape_cast %21 : vector<64x32xf32> to vector<8x8x32xf32>
    %23 = vector.extract_strided_slice %12 {offsets = [0, 64], sizes = [64, 32], strides = [1, 1]} : vector<64x96xf32> to vector<64x32xf32>
    %24 = vector.extract_strided_slice %10 {offsets = [2, 0], sizes = [1, 32], strides = [1, 1]} : vector<8x32xf32> to vector<1x32xf32>
    %25 = vector.broadcast %24 : vector<1x32xf32> to vector<64x32xf32>
    %26 = arith.addf %23, %25 : vector<64x32xf32>
    %27 = vector.shape_cast %26 : vector<64x32xf32> to vector<8x8x32xf32>
    %28 = vector.extract_strided_slice %17 {offsets = [0, 0, 0], sizes = [8, 8, 8], strides = [1, 1, 1]} : vector<8x8x32xf32> to vector<8x8x8xf32>
    %29 = vector.extract_strided_slice %22 {offsets = [0, 0, 0], sizes = [8, 8, 8], strides = [1, 1, 1]} : vector<8x8x32xf32> to vector<8x8x8xf32>
    %30 = vector.extract_strided_slice %27 {offsets = [0, 0, 0], sizes = [8, 8, 8], strides = [1, 1, 1]} : vector<8x8x32xf32> to vector<8x8x8xf32>
    "tpu.trace_start"() <{level = 10 : i32, message = "bld,bmd->blm"}> : () -> ()
    %cst_9 = arith.constant dense<0.000000e+00> : vector<8x8x8xf32>
    %31 = tpu.matmul %28, %29, %cst_9 {dimension_numbers = #tpu.dot_dimension_numbers<[2], [2], [1], [1], [0, 0, 0, 1, 1, 1], [0], [0]>} : vector<8x8x8xf32>, vector<8x8x8xf32>, vector<8x8x8xf32> -> vector<8x8x8xf32>
    "tpu.trace_stop"() : () -> ()
    %cst_10 = arith.constant 0.353553385 : f32
    %32 = vector.broadcast %cst_10 : f32 to vector<8x8x8xf32>
    %33 = arith.mulf %31, %32 : vector<8x8x8xf32>
    %cst_11 = arith.constant dense<0xFF800000> : vector<8x8xf32>
    %34 = vector.multi_reduction <maximumf>, %33, %cst_11 [2] : vector<8x8x8xf32> to vector<8x8xf32>
    %35 = vector.shape_cast %34 : vector<8x8xf32> to vector<8x8x1xf32>
    %36 = vector.broadcast %35 : vector<8x8x1xf32> to vector<8x8x8xf32>
    %37 = arith.subf %33, %36 : vector<8x8x8xf32>
    %38 = math.exp %37 : vector<8x8x8xf32>
    %cst_12 = arith.constant dense<0.000000e+00> : vector<8x8xf32>
    %39 = vector.multi_reduction <add>, %38, %cst_12 [2] : vector<8x8x8xf32> to vector<8x8xf32>
    %40 = vector.shape_cast %39 : vector<8x8xf32> to vector<8x8x1xf32>
    %41 = vector.broadcast %40 : vector<8x8x1xf32> to vector<8x8x8xf32>
    %42 = arith.divf %38, %41 : vector<8x8x8xf32>
    "tpu.trace_start"() <{level = 10 : i32, message = "blm,bmd->bld"}> : () -> ()
    %cst_13 = arith.constant dense<0.000000e+00> : vector<8x8x8xf32>
    %43 = tpu.matmul %42, %30, %cst_13 {dimension_numbers = #tpu.dot_dimension_numbers<[2], [1], [1], [2], [0, 0, 0, 1, 1, 2], [0], [0]>} : vector<8x8x8xf32>, vector<8x8x8xf32>, vector<8x8x8xf32> -> vector<8x8x8xf32>
    "tpu.trace_stop"() : () -> ()
    %44 = vector.extract_strided_slice %17 {offsets = [0, 0, 8], sizes = [8, 8, 8], strides = [1, 1, 1]} : vector<8x8x32xf32> to vector<8x8x8xf32>
    %45 = vector.extract_strided_slice %22 {offsets = [0, 0, 8], sizes = [8, 8, 8], strides = [1, 1, 1]} : vector<8x8x32xf32> to vector<8x8x8xf32>
    %46 = vector.extract_strided_slice %27 {offsets = [0, 0, 8], sizes = [8, 8, 8], strides = [1, 1, 1]} : vector<8x8x32xf32> to vector<8x8x8xf32>
    "tpu.trace_start"() <{level = 10 : i32, message = "bld,bmd->blm"}> : () -> ()
    %cst_14 = arith.constant dense<0.000000e+00> : vector<8x8x8xf32>
    %47 = tpu.matmul %44, %45, %cst_14 {dimension_numbers = #tpu.dot_dimension_numbers<[2], [2], [1], [1], [0, 0, 0, 1, 1, 1], [0], [0]>} : vector<8x8x8xf32>, vector<8x8x8xf32>, vector<8x8x8xf32> -> vector<8x8x8xf32>
    "tpu.trace_stop"() : () -> ()
    %cst_15 = arith.constant 0.353553385 : f32
    %48 = vector.broadcast %cst_15 : f32 to vector<8x8x8xf32>
    %49 = arith.mulf %47, %48 : vector<8x8x8xf32>
    %cst_16 = arith.constant dense<0xFF800000> : vector<8x8xf32>
    %50 = vector.multi_reduction <maximumf>, %49, %cst_16 [2] : vector<8x8x8xf32> to vector<8x8xf32>
    %51 = vector.shape_cast %50 : vector<8x8xf32> to vector<8x8x1xf32>
    %52 = vector.broadcast %51 : vector<8x8x1xf32> to vector<8x8x8xf32>
    %53 = arith.subf %49, %52 : vector<8x8x8xf32>
    %54 = math.exp %53 : vector<8x8x8xf32>
    %cst_17 = arith.constant dense<0.000000e+00> : vector<8x8xf32>
    %55 = vector.multi_reduction <add>, %54, %cst_17 [2] : vector<8x8x8xf32> to vector<8x8xf32>
    %56 = vector.shape_cast %55 : vector<8x8xf32> to vector<8x8x1xf32>
    %57 = vector.broadcast %56 : vector<8x8x1xf32> to vector<8x8x8xf32>
    %58 = arith.divf %54, %57 : vector<8x8x8xf32>
    "tpu.trace_start"() <{level = 10 : i32, message = "blm,bmd->bld"}> : () -> ()
    %cst_18 = arith.constant dense<0.000000e+00> : vector<8x8x8xf32>
    %59 = tpu.matmul %58, %46, %cst_18 {dimension_numbers = #tpu.dot_dimension_numbers<[2], [1], [1], [2], [0, 0, 0, 1, 1, 2], [0], [0]>} : vector<8x8x8xf32>, vector<8x8x8xf32>, vector<8x8x8xf32> -> vector<8x8x8xf32>
    "tpu.trace_stop"() : () -> ()
    %60 = vector.extract_strided_slice %17 {offsets = [0, 0, 16], sizes = [8, 8, 8], strides = [1, 1, 1]} : vector<8x8x32xf32> to vector<8x8x8xf32>
    %61 = vector.extract_strided_slice %22 {offsets = [0, 0, 16], sizes = [8, 8, 8], strides = [1, 1, 1]} : vector<8x8x32xf32> to vector<8x8x8xf32>
    %62 = vector.extract_strided_slice %27 {offsets = [0, 0, 16], sizes = [8, 8, 8], strides = [1, 1, 1]} : vector<8x8x32xf32> to vector<8x8x8xf32>
    "tpu.trace_start"() <{level = 10 : i32, message = "bld,bmd->blm"}> : () -> ()
    %cst_19 = arith.constant dense<0.000000e+00> : vector<8x8x8xf32>
    %63 = tpu.matmul %60, %61, %cst_19 {dimension_numbers = #tpu.dot_dimension_numbers<[2], [2], [1], [1], [0, 0, 0, 1, 1, 1], [0], [0]>} : vector<8x8x8xf32>, vector<8x8x8xf32>, vector<8x8x8xf32> -> vector<8x8x8xf32>
    "tpu.trace_stop"() : () -> ()
    %cst_20 = arith.constant 0.353553385 : f32
    %64 = vector.broadcast %cst_20 : f32 to vector<8x8x8xf32>
    %65 = arith.mulf %63, %64 : vector<8x8x8xf32>
    %cst_21 = arith.constant dense<0xFF800000> : vector<8x8xf32>
    %66 = vector.multi_reduction <maximumf>, %65, %cst_21 [2] : vector<8x8x8xf32> to vector<8x8xf32>
    %67 = vector.shape_cast %66 : vector<8x8xf32> to vector<8x8x1xf32>
    %68 = vector.broadcast %67 : vector<8x8x1xf32> to vector<8x8x8xf32>
    %69 = arith.subf %65, %68 : vector<8x8x8xf32>
    %70 = math.exp %69 : vector<8x8x8xf32>
    %cst_22 = arith.constant dense<0.000000e+00> : vector<8x8xf32>
    %71 = vector.multi_reduction <add>, %70, %cst_22 [2] : vector<8x8x8xf32> to vector<8x8xf32>
    %72 = vector.shape_cast %71 : vector<8x8xf32> to vector<8x8x1xf32>
    %73 = vector.broadcast %72 : vector<8x8x1xf32> to vector<8x8x8xf32>
    %74 = arith.divf %70, %73 : vector<8x8x8xf32>
    "tpu.trace_start"() <{level = 10 : i32, message = "blm,bmd->bld"}> : () -> ()
    %cst_23 = arith.constant dense<0.000000e+00> : vector<8x8x8xf32>
    %75 = tpu.matmul %74, %62, %cst_23 {dimension_numbers = #tpu.dot_dimension_numbers<[2], [1], [1], [2], [0, 0, 0, 1, 1, 2], [0], [0]>} : vector<8x8x8xf32>, vector<8x8x8xf32>, vector<8x8x8xf32> -> vector<8x8x8xf32>
    "tpu.trace_stop"() : () -> ()
    %76 = vector.extract_strided_slice %17 {offsets = [0, 0, 24], sizes = [8, 8, 8], strides = [1, 1, 1]} : vector<8x8x32xf32> to vector<8x8x8xf32>
    %77 = vector.extract_strided_slice %22 {offsets = [0, 0, 24], sizes = [8, 8, 8], strides = [1, 1, 1]} : vector<8x8x32xf32> to vector<8x8x8xf32>
    %78 = vector.extract_strided_slice %27 {offsets = [0, 0, 24], sizes = [8, 8, 8], strides = [1, 1, 1]} : vector<8x8x32xf32> to vector<8x8x8xf32>
    "tpu.trace_start"() <{level = 10 : i32, message = "bld,bmd->blm"}> : () -> ()
    %cst_24 = arith.constant dense<0.000000e+00> : vector<8x8x8xf32>
    %79 = tpu.matmul %76, %77, %cst_24 {dimension_numbers = #tpu.dot_dimension_numbers<[2], [2], [1], [1], [0, 0, 0, 1, 1, 1], [0], [0]>} : vector<8x8x8xf32>, vector<8x8x8xf32>, vector<8x8x8xf32> -> vector<8x8x8xf32>
    "tpu.trace_stop"() : () -> ()
    %cst_25 = arith.constant 0.353553385 : f32
    %80 = vector.broadcast %cst_25 : f32 to vector<8x8x8xf32>
    %81 = arith.mulf %79, %80 : vector<8x8x8xf32>
    %cst_26 = arith.constant dense<0xFF800000> : vector<8x8xf32>
    %82 = vector.multi_reduction <maximumf>, %81, %cst_26 [2] : vector<8x8x8xf32> to vector<8x8xf32>
    %83 = vector.shape_cast %82 : vector<8x8xf32> to vector<8x8x1xf32>
    %84 = vector.broadcast %83 : vector<8x8x1xf32> to vector<8x8x8xf32>
    %85 = arith.subf %81, %84 : vector<8x8x8xf32>
    %86 = math.exp %85 : vector<8x8x8xf32>
    %cst_27 = arith.constant dense<0.000000e+00> : vector<8x8xf32>
    %87 = vector.multi_reduction <add>, %86, %cst_27 [2] : vector<8x8x8xf32> to vector<8x8xf32>
    %88 = vector.shape_cast %87 : vector<8x8xf32> to vector<8x8x1xf32>
    %89 = vector.broadcast %88 : vector<8x8x1xf32> to vector<8x8x8xf32>
    %90 = arith.divf %86, %89 : vector<8x8x8xf32>
    "tpu.trace_start"() <{level = 10 : i32, message = "blm,bmd->bld"}> : () -> ()
    %cst_28 = arith.constant dense<0.000000e+00> : vector<8x8x8xf32>
    %91 = tpu.matmul %90, %78, %cst_28 {dimension_numbers = #tpu.dot_dimension_numbers<[2], [1], [1], [2], [0, 0, 0, 1, 1, 2], [0], [0]>} : vector<8x8x8xf32>, vector<8x8x8xf32>, vector<8x8x8xf32> -> vector<8x8x8xf32>
    "tpu.trace_stop"() : () -> ()
    %92 = tpu.concatenate %43, %59, %75, %91 in 2 : vector<8x8x8xf32>, vector<8x8x8xf32>, vector<8x8x8xf32>, vector<8x8x8xf32> -> vector<8x8x32xf32>
    %93 = vector.shape_cast %92 : vector<8x8x32xf32> to vector<64x32xf32>
    %94 = vector.extract_strided_slice %8 {offsets = [0, 96], sizes = [32, 32], strides = [1, 1]} : vector<32x128xf32> to vector<32x32xf32>
    %cst_29 = arith.constant dense<0.000000e+00> : vector<64x32xf32>
    %95 = tpu.matmul %93, %94, %cst_29 {dimension_numbers = #tpu.dot_dimension_numbers<[1], [0], [0], [1], [0, 0, 1, 1], [], []>} : vector<64x32xf32>, vector<32x32xf32>, vector<64x32xf32> -> vector<64x32xf32>
    %96 = vector.extract_strided_slice %10 {offsets = [3, 0], sizes = [1, 32], strides = [1, 1]} : vector<8x32xf32> to vector<1x32xf32>
    %97 = vector.broadcast %96 : vector<1x32xf32> to vector<64x32xf32>
    %98 = arith.addf %95, %97 : vector<64x32xf32>
    %cst_30 = arith.constant 0.000000e+00 : f32
    %99 = vector.broadcast %cst_30 : f32 to vector<64x32xf32>
    %100 = arith.cmpf ogt, %98, %99 : vector<64x32xf32>
    %101 = math.exp %98 : vector<64x32xf32>
    %cst_31 = arith.constant 1.000000e+00 : f32
    %102 = vector.broadcast %cst_31 : f32 to vector<64x32xf32>
    %103 = arith.subf %101, %102 : vector<64x32xf32>
    %cst_32 = arith.constant 1.67326319 : f32
    %104 = vector.broadcast %cst_32 : f32 to vector<64x32xf32>
    %105 = arith.mulf %104, %103 : vector<64x32xf32>
    %106 = arith.select %100, %98, %105 : vector<64x32xi1>, vector<64x32xf32>
    %cst_33 = arith.constant 1.05070102 : f32
    %107 = vector.broadcast %cst_33 : f32 to vector<64x32xf32>
    %108 = arith.mulf %107, %106 : vector<64x32xf32>
    %109 = arith.addf %6, %108 : vector<64x32xf32>
    %110 = vector.extract_strided_slice %10 {offsets = [4, 0], sizes = [1, 32], strides = [1, 1]} : vector<8x32xf32> to vector<1x32xf32>
    %111 = vector.extract_strided_slice %10 {offsets = [5, 0], sizes = [1, 32], strides = [1, 1]} : vector<8x32xf32> to vector<1x32xf32>
    %cst_34 = arith.constant dense<0.000000e+00> : vector<64xf32>
    %112 = vector.multi_reduction <add>, %109, %cst_34 [1] : vector<64x32xf32> to vector<64xf32>
    %113 = vector.shape_cast %112 : vector<64xf32> to vector<64x1xf32>
    %cst_35 = arith.constant 3.200000e+01 : f32
    %114 = vector.broadcast %cst_35 : f32 to vector<64x1xf32>
    %115 = arith.divf %113, %114 : vector<64x1xf32>
    %116 = vector.broadcast %115 : vector<64x1xf32> to vector<64x32xf32>
    %117 = arith.subf %109, %116 : vector<64x32xf32>
    %118 = arith.mulf %117, %117 : vector<64x32xf32>
    %cst_36 = arith.constant dense<0.000000e+00> : vector<64xf32>
    %119 = vector.multi_reduction <add>, %118, %cst_36 [1] : vector<64x32xf32> to vector<64xf32>
    %120 = vector.shape_cast %119 : vector<64xf32> to vector<64x1xf32>
    %cst_37 = arith.constant 3.200000e+01 : f32
    %121 = vector.broadcast %cst_37 : f32 to vector<64x1xf32>
    %122 = arith.divf %120, %121 : vector<64x1xf32>
    %123 = vector.broadcast %115 : vector<64x1xf32> to vector<64x32xf32>
    %124 = arith.subf %109, %123 : vector<64x32xf32>
    %cst_38 = arith.constant 9.99999974E-6 : f32
    %125 = vector.broadcast %cst_38 : f32 to vector<64x1xf32>
    %126 = arith.addf %122, %125 : vector<64x1xf32>
    %127 = math.rsqrt %126 : vector<64x1xf32>
    %128 = vector.broadcast %127 : vector<64x1xf32> to vector<64x32xf32>
    %129 = arith.mulf %124, %128 : vector<64x32xf32>
    %130 = vector.broadcast %110 : vector<1x32xf32> to vector<64x32xf32>
    %131 = arith.mulf %129, %130 : vector<64x32xf32>
    %132 = vector.broadcast %111 : vector<1x32xf32> to vector<64x32xf32>
    %133 = arith.addf %131, %132 : vector<64x32xf32>
    %134 = vector.extract_strided_slice %10 {offsets = [6, 0], sizes = [1, 32], strides = [1, 1]} : vector<8x32xf32> to vector<1x32xf32>
    %135 = vector.extract_strided_slice %10 {offsets = [7, 0], sizes = [1, 32], strides = [1, 1]} : vector<8x32xf32> to vector<1x32xf32>
    %cst_39 = arith.constant dense<0.000000e+00> : vector<64xf32>
    %136 = vector.multi_reduction <add>, %133, %cst_39 [1] : vector<64x32xf32> to vector<64xf32>
    %137 = vector.shape_cast %136 : vector<64xf32> to vector<64x1xf32>
    %cst_40 = arith.constant 3.200000e+01 : f32
    %138 = vector.broadcast %cst_40 : f32 to vector<64x1xf32>
    %139 = arith.divf %137, %138 : vector<64x1xf32>
    %140 = vector.broadcast %139 : vector<64x1xf32> to vector<64x32xf32>
    %141 = arith.subf %133, %140 : vector<64x32xf32>
    %142 = arith.mulf %141, %141 : vector<64x32xf32>
    %cst_41 = arith.constant dense<0.000000e+00> : vector<64xf32>
    %143 = vector.multi_reduction <add>, %142, %cst_41 [1] : vector<64x32xf32> to vector<64xf32>
    %144 = vector.shape_cast %143 : vector<64xf32> to vector<64x1xf32>
    %cst_42 = arith.constant 3.200000e+01 : f32
    %145 = vector.broadcast %cst_42 : f32 to vector<64x1xf32>
    %146 = arith.divf %144, %145 : vector<64x1xf32>
    %147 = vector.broadcast %139 : vector<64x1xf32> to vector<64x32xf32>
    %148 = arith.subf %133, %147 : vector<64x32xf32>
    %cst_43 = arith.constant 9.99999974E-6 : f32
    %149 = vector.broadcast %cst_43 : f32 to vector<64x1xf32>
    %150 = arith.addf %146, %149 : vector<64x1xf32>
    %151 = math.rsqrt %150 : vector<64x1xf32>
    %152 = vector.broadcast %151 : vector<64x1xf32> to vector<64x32xf32>
    %153 = arith.mulf %148, %152 : vector<64x32xf32>
    %154 = vector.broadcast %134 : vector<1x32xf32> to vector<64x32xf32>
    %155 = arith.mulf %153, %154 : vector<64x32xf32>
    %156 = vector.broadcast %135 : vector<1x32xf32> to vector<64x32xf32>
    %157 = arith.addf %155, %156 : vector<64x32xf32>
    %c1 = arith.constant 1 : index
    %c0_44 = arith.constant 0 : index
    %c0_45 = arith.constant 0 : index
    %158 = vector.load %arg3[%c1, %c0_44, %c0_45] : memref<3x32x128xf32, #tpu.memory_space<vmem>>, vector<1x32x128xf32>
    %159 = vector.shape_cast %158 : vector<1x32x128xf32> to vector<32x128xf32>
    %c1_46 = arith.constant 1 : index
    %c0_47 = arith.constant 0 : index
    %c0_48 = arith.constant 0 : index
    %160 = vector.load %arg4[%c1_46, %c0_47, %c0_48] : memref<3x8x32xf32, #tpu.memory_space<vmem>>, vector<1x8x32xf32>
    %161 = vector.shape_cast %160 : vector<1x8x32xf32> to vector<8x32xf32>
    %162 = vector.extract_strided_slice %159 {offsets = [0, 0], sizes = [32, 96], strides = [1, 1]} : vector<32x128xf32> to vector<32x96xf32>
    %cst_49 = arith.constant dense<0.000000e+00> : vector<64x96xf32>
    %163 = tpu.matmul %157, %162, %cst_49 {dimension_numbers = #tpu.dot_dimension_numbers<[1], [0], [0], [1], [0, 0, 1, 1], [], []>} : vector<64x32xf32>, vector<32x96xf32>, vector<64x96xf32> -> vector<64x96xf32>
    %164 = vector.extract_strided_slice %163 {offsets = [0, 0], sizes = [64, 32], strides = [1, 1]} : vector<64x96xf32> to vector<64x32xf32>
    %165 = vector.extract_strided_slice %161 {offsets = [0, 0], sizes = [1, 32], strides = [1, 1]} : vector<8x32xf32> to vector<1x32xf32>
    %166 = vector.broadcast %165 : vector<1x32xf32> to vector<64x32xf32>
    %167 = arith.addf %164, %166 : vector<64x32xf32>
    %168 = vector.shape_cast %167 : vector<64x32xf32> to vector<8x8x32xf32>
    %169 = vector.extract_strided_slice %163 {offsets = [0, 32], sizes = [64, 32], strides = [1, 1]} : vector<64x96xf32> to vector<64x32xf32>
    %170 = vector.extract_strided_slice %161 {offsets = [1, 0], sizes = [1, 32], strides = [1, 1]} : vector<8x32xf32> to vector<1x32xf32>
    %171 = vector.broadcast %170 : vector<1x32xf32> to vector<64x32xf32>
    %172 = arith.addf %169, %171 : vector<64x32xf32>
    %173 = vector.shape_cast %172 : vector<64x32xf32> to vector<8x8x32xf32>
    %174 = vector.extract_strided_slice %163 {offsets = [0, 64], sizes = [64, 32], strides = [1, 1]} : vector<64x96xf32> to vector<64x32xf32>
    %175 = vector.extract_strided_slice %161 {offsets = [2, 0], sizes = [1, 32], strides = [1, 1]} : vector<8x32xf32> to vector<1x32xf32>
    %176 = vector.broadcast %175 : vector<1x32xf32> to vector<64x32xf32>
    %177 = arith.addf %174, %176 : vector<64x32xf32>
    %178 = vector.shape_cast %177 : vector<64x32xf32> to vector<8x8x32xf32>
    %179 = vector.extract_strided_slice %168 {offsets = [0, 0, 0], sizes = [8, 8, 8], strides = [1, 1, 1]} : vector<8x8x32xf32> to vector<8x8x8xf32>
    %180 = vector.extract_strided_slice %173 {offsets = [0, 0, 0], sizes = [8, 8, 8], strides = [1, 1, 1]} : vector<8x8x32xf32> to vector<8x8x8xf32>
    %181 = vector.extract_strided_slice %178 {offsets = [0, 0, 0], sizes = [8, 8, 8], strides = [1, 1, 1]} : vector<8x8x32xf32> to vector<8x8x8xf32>
    "tpu.trace_start"() <{level = 10 : i32, message = "bld,bmd->blm"}> : () -> ()
    %cst_50 = arith.constant dense<0.000000e+00> : vector<8x8x8xf32>
    %182 = tpu.matmul %179, %180, %cst_50 {dimension_numbers = #tpu.dot_dimension_numbers<[2], [2], [1], [1], [0, 0, 0, 1, 1, 1], [0], [0]>} : vector<8x8x8xf32>, vector<8x8x8xf32>, vector<8x8x8xf32> -> vector<8x8x8xf32>
    "tpu.trace_stop"() : () -> ()
    %cst_51 = arith.constant 0.353553385 : f32
    %183 = vector.broadcast %cst_51 : f32 to vector<8x8x8xf32>
    %184 = arith.mulf %182, %183 : vector<8x8x8xf32>
    %cst_52 = arith.constant dense<0xFF800000> : vector<8x8xf32>
    %185 = vector.multi_reduction <maximumf>, %184, %cst_52 [2] : vector<8x8x8xf32> to vector<8x8xf32>
    %186 = vector.shape_cast %185 : vector<8x8xf32> to vector<8x8x1xf32>
    %187 = vector.broadcast %186 : vector<8x8x1xf32> to vector<8x8x8xf32>
    %188 = arith.subf %184, %187 : vector<8x8x8xf32>
    %189 = math.exp %188 : vector<8x8x8xf32>
    %cst_53 = arith.constant dense<0.000000e+00> : vector<8x8xf32>
    %190 = vector.multi_reduction <add>, %189, %cst_53 [2] : vector<8x8x8xf32> to vector<8x8xf32>
    %191 = vector.shape_cast %190 : vector<8x8xf32> to vector<8x8x1xf32>
    %192 = vector.broadcast %191 : vector<8x8x1xf32> to vector<8x8x8xf32>
    %193 = arith.divf %189, %192 : vector<8x8x8xf32>
    "tpu.trace_start"() <{level = 10 : i32, message = "blm,bmd->bld"}> : () -> ()
    %cst_54 = arith.constant dense<0.000000e+00> : vector<8x8x8xf32>
    %194 = tpu.matmul %193, %181, %cst_54 {dimension_numbers = #tpu.dot_dimension_numbers<[2], [1], [1], [2], [0, 0, 0, 1, 1, 2], [0], [0]>} : vector<8x8x8xf32>, vector<8x8x8xf32>, vector<8x8x8xf32> -> vector<8x8x8xf32>
    "tpu.trace_stop"() : () -> ()
    %195 = vector.extract_strided_slice %168 {offsets = [0, 0, 8], sizes = [8, 8, 8], strides = [1, 1, 1]} : vector<8x8x32xf32> to vector<8x8x8xf32>
    %196 = vector.extract_strided_slice %173 {offsets = [0, 0, 8], sizes = [8, 8, 8], strides = [1, 1, 1]} : vector<8x8x32xf32> to vector<8x8x8xf32>
    %197 = vector.extract_strided_slice %178 {offsets = [0, 0, 8], sizes = [8, 8, 8], strides = [1, 1, 1]} : vector<8x8x32xf32> to vector<8x8x8xf32>
    "tpu.trace_start"() <{level = 10 : i32, message = "bld,bmd->blm"}> : () -> ()
    %cst_55 = arith.constant dense<0.000000e+00> : vector<8x8x8xf32>
    %198 = tpu.matmul %195, %196, %cst_55 {dimension_numbers = #tpu.dot_dimension_numbers<[2], [2], [1], [1], [0, 0, 0, 1, 1, 1], [0], [0]>} : vector<8x8x8xf32>, vector<8x8x8xf32>, vector<8x8x8xf32> -> vector<8x8x8xf32>
    "tpu.trace_stop"() : () -> ()
    %cst_56 = arith.constant 0.353553385 : f32
    %199 = vector.broadcast %cst_56 : f32 to vector<8x8x8xf32>
    %200 = arith.mulf %198, %199 : vector<8x8x8xf32>
    %cst_57 = arith.constant dense<0xFF800000> : vector<8x8xf32>
    %201 = vector.multi_reduction <maximumf>, %200, %cst_57 [2] : vector<8x8x8xf32> to vector<8x8xf32>
    %202 = vector.shape_cast %201 : vector<8x8xf32> to vector<8x8x1xf32>
    %203 = vector.broadcast %202 : vector<8x8x1xf32> to vector<8x8x8xf32>
    %204 = arith.subf %200, %203 : vector<8x8x8xf32>
    %205 = math.exp %204 : vector<8x8x8xf32>
    %cst_58 = arith.constant dense<0.000000e+00> : vector<8x8xf32>
    %206 = vector.multi_reduction <add>, %205, %cst_58 [2] : vector<8x8x8xf32> to vector<8x8xf32>
    %207 = vector.shape_cast %206 : vector<8x8xf32> to vector<8x8x1xf32>
    %208 = vector.broadcast %207 : vector<8x8x1xf32> to vector<8x8x8xf32>
    %209 = arith.divf %205, %208 : vector<8x8x8xf32>
    "tpu.trace_start"() <{level = 10 : i32, message = "blm,bmd->bld"}> : () -> ()
    %cst_59 = arith.constant dense<0.000000e+00> : vector<8x8x8xf32>
    %210 = tpu.matmul %209, %197, %cst_59 {dimension_numbers = #tpu.dot_dimension_numbers<[2], [1], [1], [2], [0, 0, 0, 1, 1, 2], [0], [0]>} : vector<8x8x8xf32>, vector<8x8x8xf32>, vector<8x8x8xf32> -> vector<8x8x8xf32>
    "tpu.trace_stop"() : () -> ()
    %211 = vector.extract_strided_slice %168 {offsets = [0, 0, 16], sizes = [8, 8, 8], strides = [1, 1, 1]} : vector<8x8x32xf32> to vector<8x8x8xf32>
    %212 = vector.extract_strided_slice %173 {offsets = [0, 0, 16], sizes = [8, 8, 8], strides = [1, 1, 1]} : vector<8x8x32xf32> to vector<8x8x8xf32>
    %213 = vector.extract_strided_slice %178 {offsets = [0, 0, 16], sizes = [8, 8, 8], strides = [1, 1, 1]} : vector<8x8x32xf32> to vector<8x8x8xf32>
    "tpu.trace_start"() <{level = 10 : i32, message = "bld,bmd->blm"}> : () -> ()
    %cst_60 = arith.constant dense<0.000000e+00> : vector<8x8x8xf32>
    %214 = tpu.matmul %211, %212, %cst_60 {dimension_numbers = #tpu.dot_dimension_numbers<[2], [2], [1], [1], [0, 0, 0, 1, 1, 1], [0], [0]>} : vector<8x8x8xf32>, vector<8x8x8xf32>, vector<8x8x8xf32> -> vector<8x8x8xf32>
    "tpu.trace_stop"() : () -> ()
    %cst_61 = arith.constant 0.353553385 : f32
    %215 = vector.broadcast %cst_61 : f32 to vector<8x8x8xf32>
    %216 = arith.mulf %214, %215 : vector<8x8x8xf32>
    %cst_62 = arith.constant dense<0xFF800000> : vector<8x8xf32>
    %217 = vector.multi_reduction <maximumf>, %216, %cst_62 [2] : vector<8x8x8xf32> to vector<8x8xf32>
    %218 = vector.shape_cast %217 : vector<8x8xf32> to vector<8x8x1xf32>
    %219 = vector.broadcast %218 : vector<8x8x1xf32> to vector<8x8x8xf32>
    %220 = arith.subf %216, %219 : vector<8x8x8xf32>
    %221 = math.exp %220 : vector<8x8x8xf32>
    %cst_63 = arith.constant dense<0.000000e+00> : vector<8x8xf32>
    %222 = vector.multi_reduction <add>, %221, %cst_63 [2] : vector<8x8x8xf32> to vector<8x8xf32>
    %223 = vector.shape_cast %222 : vector<8x8xf32> to vector<8x8x1xf32>
    %224 = vector.broadcast %223 : vector<8x8x1xf32> to vector<8x8x8xf32>
    %225 = arith.divf %221, %224 : vector<8x8x8xf32>
    "tpu.trace_start"() <{level = 10 : i32, message = "blm,bmd->bld"}> : () -> ()
    %cst_64 = arith.constant dense<0.000000e+00> : vector<8x8x8xf32>
    %226 = tpu.matmul %225, %213, %cst_64 {dimension_numbers = #tpu.dot_dimension_numbers<[2], [1], [1], [2], [0, 0, 0, 1, 1, 2], [0], [0]>} : vector<8x8x8xf32>, vector<8x8x8xf32>, vector<8x8x8xf32> -> vector<8x8x8xf32>
    "tpu.trace_stop"() : () -> ()
    %227 = vector.extract_strided_slice %168 {offsets = [0, 0, 24], sizes = [8, 8, 8], strides = [1, 1, 1]} : vector<8x8x32xf32> to vector<8x8x8xf32>
    %228 = vector.extract_strided_slice %173 {offsets = [0, 0, 24], sizes = [8, 8, 8], strides = [1, 1, 1]} : vector<8x8x32xf32> to vector<8x8x8xf32>
    %229 = vector.extract_strided_slice %178 {offsets = [0, 0, 24], sizes = [8, 8, 8], strides = [1, 1, 1]} : vector<8x8x32xf32> to vector<8x8x8xf32>
    "tpu.trace_start"() <{level = 10 : i32, message = "bld,bmd->blm"}> : () -> ()
    %cst_65 = arith.constant dense<0.000000e+00> : vector<8x8x8xf32>
    %230 = tpu.matmul %227, %228, %cst_65 {dimension_numbers = #tpu.dot_dimension_numbers<[2], [2], [1], [1], [0, 0, 0, 1, 1, 1], [0], [0]>} : vector<8x8x8xf32>, vector<8x8x8xf32>, vector<8x8x8xf32> -> vector<8x8x8xf32>
    "tpu.trace_stop"() : () -> ()
    %cst_66 = arith.constant 0.353553385 : f32
    %231 = vector.broadcast %cst_66 : f32 to vector<8x8x8xf32>
    %232 = arith.mulf %230, %231 : vector<8x8x8xf32>
    %cst_67 = arith.constant dense<0xFF800000> : vector<8x8xf32>
    %233 = vector.multi_reduction <maximumf>, %232, %cst_67 [2] : vector<8x8x8xf32> to vector<8x8xf32>
    %234 = vector.shape_cast %233 : vector<8x8xf32> to vector<8x8x1xf32>
    %235 = vector.broadcast %234 : vector<8x8x1xf32> to vector<8x8x8xf32>
    %236 = arith.subf %232, %235 : vector<8x8x8xf32>
    %237 = math.exp %236 : vector<8x8x8xf32>
    %cst_68 = arith.constant dense<0.000000e+00> : vector<8x8xf32>
    %238 = vector.multi_reduction <add>, %237, %cst_68 [2] : vector<8x8x8xf32> to vector<8x8xf32>
    %239 = vector.shape_cast %238 : vector<8x8xf32> to vector<8x8x1xf32>
    %240 = vector.broadcast %239 : vector<8x8x1xf32> to vector<8x8x8xf32>
    %241 = arith.divf %237, %240 : vector<8x8x8xf32>
    "tpu.trace_start"() <{level = 10 : i32, message = "blm,bmd->bld"}> : () -> ()
    %cst_69 = arith.constant dense<0.000000e+00> : vector<8x8x8xf32>
    %242 = tpu.matmul %241, %229, %cst_69 {dimension_numbers = #tpu.dot_dimension_numbers<[2], [1], [1], [2], [0, 0, 0, 1, 1, 2], [0], [0]>} : vector<8x8x8xf32>, vector<8x8x8xf32>, vector<8x8x8xf32> -> vector<8x8x8xf32>
    "tpu.trace_stop"() : () -> ()
    %243 = tpu.concatenate %194, %210, %226, %242 in 2 : vector<8x8x8xf32>, vector<8x8x8xf32>, vector<8x8x8xf32>, vector<8x8x8xf32> -> vector<8x8x32xf32>
    %244 = vector.shape_cast %243 : vector<8x8x32xf32> to vector<64x32xf32>
    %245 = vector.extract_strided_slice %159 {offsets = [0, 96], sizes = [32, 32], strides = [1, 1]} : vector<32x128xf32> to vector<32x32xf32>
    %cst_70 = arith.constant dense<0.000000e+00> : vector<64x32xf32>
    %246 = tpu.matmul %244, %245, %cst_70 {dimension_numbers = #tpu.dot_dimension_numbers<[1], [0], [0], [1], [0, 0, 1, 1], [], []>} : vector<64x32xf32>, vector<32x32xf32>, vector<64x32xf32> -> vector<64x32xf32>
    %247 = vector.extract_strided_slice %161 {offsets = [3, 0], sizes = [1, 32], strides = [1, 1]} : vector<8x32xf32> to vector<1x32xf32>
    %248 = vector.broadcast %247 : vector<1x32xf32> to vector<64x32xf32>
    %249 = arith.addf %246, %248 : vector<64x32xf32>
    %cst_71 = arith.constant 0.000000e+00 : f32
    %250 = vector.broadcast %cst_71 : f32 to vector<64x32xf32>
    %251 = arith.cmpf ogt, %249, %250 : vector<64x32xf32>
    %252 = math.exp %249 : vector<64x32xf32>
    %cst_72 = arith.constant 1.000000e+00 : f32
    %253 = vector.broadcast %cst_72 : f32 to vector<64x32xf32>
    %254 = arith.subf %252, %253 : vector<64x32xf32>
    %cst_73 = arith.constant 1.67326319 : f32
    %255 = vector.broadcast %cst_73 : f32 to vector<64x32xf32>
    %256 = arith.mulf %255, %254 : vector<64x32xf32>
    %257 = arith.select %251, %249, %256 : vector<64x32xi1>, vector<64x32xf32>
    %cst_74 = arith.constant 1.05070102 : f32
    %258 = vector.broadcast %cst_74 : f32 to vector<64x32xf32>
    %259 = arith.mulf %258, %257 : vector<64x32xf32>
    %260 = arith.addf %157, %259 : vector<64x32xf32>
    %261 = vector.extract_strided_slice %161 {offsets = [4, 0], sizes = [1, 32], strides = [1, 1]} : vector<8x32xf32> to vector<1x32xf32>
    %262 = vector.extract_strided_slice %161 {offsets = [5, 0], sizes = [1, 32], strides = [1, 1]} : vector<8x32xf32> to vector<1x32xf32>
    %cst_75 = arith.constant dense<0.000000e+00> : vector<64xf32>
    %263 = vector.multi_reduction <add>, %260, %cst_75 [1] : vector<64x32xf32> to vector<64xf32>
    %264 = vector.shape_cast %263 : vector<64xf32> to vector<64x1xf32>
    %cst_76 = arith.constant 3.200000e+01 : f32
    %265 = vector.broadcast %cst_76 : f32 to vector<64x1xf32>
    %266 = arith.divf %264, %265 : vector<64x1xf32>
    %267 = vector.broadcast %266 : vector<64x1xf32> to vector<64x32xf32>
    %268 = arith.subf %260, %267 : vector<64x32xf32>
    %269 = arith.mulf %268, %268 : vector<64x32xf32>
    %cst_77 = arith.constant dense<0.000000e+00> : vector<64xf32>
    %270 = vector.multi_reduction <add>, %269, %cst_77 [1] : vector<64x32xf32> to vector<64xf32>
    %271 = vector.shape_cast %270 : vector<64xf32> to vector<64x1xf32>
    %cst_78 = arith.constant 3.200000e+01 : f32
    %272 = vector.broadcast %cst_78 : f32 to vector<64x1xf32>
    %273 = arith.divf %271, %272 : vector<64x1xf32>
    %274 = vector.broadcast %266 : vector<64x1xf32> to vector<64x32xf32>
    %275 = arith.subf %260, %274 : vector<64x32xf32>
    %cst_79 = arith.constant 9.99999974E-6 : f32
    %276 = vector.broadcast %cst_79 : f32 to vector<64x1xf32>
    %277 = arith.addf %273, %276 : vector<64x1xf32>
    %278 = math.rsqrt %277 : vector<64x1xf32>
    %279 = vector.broadcast %278 : vector<64x1xf32> to vector<64x32xf32>
    %280 = arith.mulf %275, %279 : vector<64x32xf32>
    %281 = vector.broadcast %261 : vector<1x32xf32> to vector<64x32xf32>
    %282 = arith.mulf %280, %281 : vector<64x32xf32>
    %283 = vector.broadcast %262 : vector<1x32xf32> to vector<64x32xf32>
    %284 = arith.addf %282, %283 : vector<64x32xf32>
    %285 = vector.extract_strided_slice %161 {offsets = [6, 0], sizes = [1, 32], strides = [1, 1]} : vector<8x32xf32> to vector<1x32xf32>
    %286 = vector.extract_strided_slice %161 {offsets = [7, 0], sizes = [1, 32], strides = [1, 1]} : vector<8x32xf32> to vector<1x32xf32>
    %cst_80 = arith.constant dense<0.000000e+00> : vector<64xf32>
    %287 = vector.multi_reduction <add>, %284, %cst_80 [1] : vector<64x32xf32> to vector<64xf32>
    %288 = vector.shape_cast %287 : vector<64xf32> to vector<64x1xf32>
    %cst_81 = arith.constant 3.200000e+01 : f32
    %289 = vector.broadcast %cst_81 : f32 to vector<64x1xf32>
    %290 = arith.divf %288, %289 : vector<64x1xf32>
    %291 = vector.broadcast %290 : vector<64x1xf32> to vector<64x32xf32>
    %292 = arith.subf %284, %291 : vector<64x32xf32>
    %293 = arith.mulf %292, %292 : vector<64x32xf32>
    %cst_82 = arith.constant dense<0.000000e+00> : vector<64xf32>
    %294 = vector.multi_reduction <add>, %293, %cst_82 [1] : vector<64x32xf32> to vector<64xf32>
    %295 = vector.shape_cast %294 : vector<64xf32> to vector<64x1xf32>
    %cst_83 = arith.constant 3.200000e+01 : f32
    %296 = vector.broadcast %cst_83 : f32 to vector<64x1xf32>
    %297 = arith.divf %295, %296 : vector<64x1xf32>
    %298 = vector.broadcast %290 : vector<64x1xf32> to vector<64x32xf32>
    %299 = arith.subf %284, %298 : vector<64x32xf32>
    %cst_84 = arith.constant 9.99999974E-6 : f32
    %300 = vector.broadcast %cst_84 : f32 to vector<64x1xf32>
    %301 = arith.addf %297, %300 : vector<64x1xf32>
    %302 = math.rsqrt %301 : vector<64x1xf32>
    %303 = vector.broadcast %302 : vector<64x1xf32> to vector<64x32xf32>
    %304 = arith.mulf %299, %303 : vector<64x32xf32>
    %305 = vector.broadcast %285 : vector<1x32xf32> to vector<64x32xf32>
    %306 = arith.mulf %304, %305 : vector<64x32xf32>
    %307 = vector.broadcast %286 : vector<1x32xf32> to vector<64x32xf32>
    %308 = arith.addf %306, %307 : vector<64x32xf32>
    %c2 = arith.constant 2 : index
    %c0_85 = arith.constant 0 : index
    %c0_86 = arith.constant 0 : index
    %309 = vector.load %arg3[%c2, %c0_85, %c0_86] : memref<3x32x128xf32, #tpu.memory_space<vmem>>, vector<1x32x128xf32>
    %310 = vector.shape_cast %309 : vector<1x32x128xf32> to vector<32x128xf32>
    %c2_87 = arith.constant 2 : index
    %c0_88 = arith.constant 0 : index
    %c0_89 = arith.constant 0 : index
    %311 = vector.load %arg4[%c2_87, %c0_88, %c0_89] : memref<3x8x32xf32, #tpu.memory_space<vmem>>, vector<1x8x32xf32>
    %312 = vector.shape_cast %311 : vector<1x8x32xf32> to vector<8x32xf32>
    %313 = vector.extract_strided_slice %310 {offsets = [0, 0], sizes = [32, 96], strides = [1, 1]} : vector<32x128xf32> to vector<32x96xf32>
    %cst_90 = arith.constant dense<0.000000e+00> : vector<64x96xf32>
    %314 = tpu.matmul %308, %313, %cst_90 {dimension_numbers = #tpu.dot_dimension_numbers<[1], [0], [0], [1], [0, 0, 1, 1], [], []>} : vector<64x32xf32>, vector<32x96xf32>, vector<64x96xf32> -> vector<64x96xf32>
    %315 = vector.extract_strided_slice %314 {offsets = [0, 0], sizes = [64, 32], strides = [1, 1]} : vector<64x96xf32> to vector<64x32xf32>
    %316 = vector.extract_strided_slice %312 {offsets = [0, 0], sizes = [1, 32], strides = [1, 1]} : vector<8x32xf32> to vector<1x32xf32>
    %317 = vector.broadcast %316 : vector<1x32xf32> to vector<64x32xf32>
    %318 = arith.addf %315, %317 : vector<64x32xf32>
    %319 = vector.shape_cast %318 : vector<64x32xf32> to vector<8x8x32xf32>
    %320 = vector.extract_strided_slice %314 {offsets = [0, 32], sizes = [64, 32], strides = [1, 1]} : vector<64x96xf32> to vector<64x32xf32>
    %321 = vector.extract_strided_slice %312 {offsets = [1, 0], sizes = [1, 32], strides = [1, 1]} : vector<8x32xf32> to vector<1x32xf32>
    %322 = vector.broadcast %321 : vector<1x32xf32> to vector<64x32xf32>
    %323 = arith.addf %320, %322 : vector<64x32xf32>
    %324 = vector.shape_cast %323 : vector<64x32xf32> to vector<8x8x32xf32>
    %325 = vector.extract_strided_slice %314 {offsets = [0, 64], sizes = [64, 32], strides = [1, 1]} : vector<64x96xf32> to vector<64x32xf32>
    %326 = vector.extract_strided_slice %312 {offsets = [2, 0], sizes = [1, 32], strides = [1, 1]} : vector<8x32xf32> to vector<1x32xf32>
    %327 = vector.broadcast %326 : vector<1x32xf32> to vector<64x32xf32>
    %328 = arith.addf %325, %327 : vector<64x32xf32>
    %329 = vector.shape_cast %328 : vector<64x32xf32> to vector<8x8x32xf32>
    %330 = vector.extract_strided_slice %319 {offsets = [0, 0, 0], sizes = [8, 8, 8], strides = [1, 1, 1]} : vector<8x8x32xf32> to vector<8x8x8xf32>
    %331 = vector.extract_strided_slice %324 {offsets = [0, 0, 0], sizes = [8, 8, 8], strides = [1, 1, 1]} : vector<8x8x32xf32> to vector<8x8x8xf32>
    %332 = vector.extract_strided_slice %329 {offsets = [0, 0, 0], sizes = [8, 8, 8], strides = [1, 1, 1]} : vector<8x8x32xf32> to vector<8x8x8xf32>
    "tpu.trace_start"() <{level = 10 : i32, message = "bld,bmd->blm"}> : () -> ()
    %cst_91 = arith.constant dense<0.000000e+00> : vector<8x8x8xf32>
    %333 = tpu.matmul %330, %331, %cst_91 {dimension_numbers = #tpu.dot_dimension_numbers<[2], [2], [1], [1], [0, 0, 0, 1, 1, 1], [0], [0]>} : vector<8x8x8xf32>, vector<8x8x8xf32>, vector<8x8x8xf32> -> vector<8x8x8xf32>
    "tpu.trace_stop"() : () -> ()
    %cst_92 = arith.constant 0.353553385 : f32
    %334 = vector.broadcast %cst_92 : f32 to vector<8x8x8xf32>
    %335 = arith.mulf %333, %334 : vector<8x8x8xf32>
    %cst_93 = arith.constant dense<0xFF800000> : vector<8x8xf32>
    %336 = vector.multi_reduction <maximumf>, %335, %cst_93 [2] : vector<8x8x8xf32> to vector<8x8xf32>
    %337 = vector.shape_cast %336 : vector<8x8xf32> to vector<8x8x1xf32>
    %338 = vector.broadcast %337 : vector<8x8x1xf32> to vector<8x8x8xf32>
    %339 = arith.subf %335, %338 : vector<8x8x8xf32>
    %340 = math.exp %339 : vector<8x8x8xf32>
    %cst_94 = arith.constant dense<0.000000e+00> : vector<8x8xf32>
    %341 = vector.multi_reduction <add>, %340, %cst_94 [2] : vector<8x8x8xf32> to vector<8x8xf32>
    %342 = vector.shape_cast %341 : vector<8x8xf32> to vector<8x8x1xf32>
    %343 = vector.broadcast %342 : vector<8x8x1xf32> to vector<8x8x8xf32>
    %344 = arith.divf %340, %343 : vector<8x8x8xf32>
    "tpu.trace_start"() <{level = 10 : i32, message = "blm,bmd->bld"}> : () -> ()
    %cst_95 = arith.constant dense<0.000000e+00> : vector<8x8x8xf32>
    %345 = tpu.matmul %344, %332, %cst_95 {dimension_numbers = #tpu.dot_dimension_numbers<[2], [1], [1], [2], [0, 0, 0, 1, 1, 2], [0], [0]>} : vector<8x8x8xf32>, vector<8x8x8xf32>, vector<8x8x8xf32> -> vector<8x8x8xf32>
    "tpu.trace_stop"() : () -> ()
    %346 = vector.extract_strided_slice %319 {offsets = [0, 0, 8], sizes = [8, 8, 8], strides = [1, 1, 1]} : vector<8x8x32xf32> to vector<8x8x8xf32>
    %347 = vector.extract_strided_slice %324 {offsets = [0, 0, 8], sizes = [8, 8, 8], strides = [1, 1, 1]} : vector<8x8x32xf32> to vector<8x8x8xf32>
    %348 = vector.extract_strided_slice %329 {offsets = [0, 0, 8], sizes = [8, 8, 8], strides = [1, 1, 1]} : vector<8x8x32xf32> to vector<8x8x8xf32>
    "tpu.trace_start"() <{level = 10 : i32, message = "bld,bmd->blm"}> : () -> ()
    %cst_96 = arith.constant dense<0.000000e+00> : vector<8x8x8xf32>
    %349 = tpu.matmul %346, %347, %cst_96 {dimension_numbers = #tpu.dot_dimension_numbers<[2], [2], [1], [1], [0, 0, 0, 1, 1, 1], [0], [0]>} : vector<8x8x8xf32>, vector<8x8x8xf32>, vector<8x8x8xf32> -> vector<8x8x8xf32>
    "tpu.trace_stop"() : () -> ()
    %cst_97 = arith.constant 0.353553385 : f32
    %350 = vector.broadcast %cst_97 : f32 to vector<8x8x8xf32>
    %351 = arith.mulf %349, %350 : vector<8x8x8xf32>
    %cst_98 = arith.constant dense<0xFF800000> : vector<8x8xf32>
    %352 = vector.multi_reduction <maximumf>, %351, %cst_98 [2] : vector<8x8x8xf32> to vector<8x8xf32>
    %353 = vector.shape_cast %352 : vector<8x8xf32> to vector<8x8x1xf32>
    %354 = vector.broadcast %353 : vector<8x8x1xf32> to vector<8x8x8xf32>
    %355 = arith.subf %351, %354 : vector<8x8x8xf32>
    %356 = math.exp %355 : vector<8x8x8xf32>
    %cst_99 = arith.constant dense<0.000000e+00> : vector<8x8xf32>
    %357 = vector.multi_reduction <add>, %356, %cst_99 [2] : vector<8x8x8xf32> to vector<8x8xf32>
    %358 = vector.shape_cast %357 : vector<8x8xf32> to vector<8x8x1xf32>
    %359 = vector.broadcast %358 : vector<8x8x1xf32> to vector<8x8x8xf32>
    %360 = arith.divf %356, %359 : vector<8x8x8xf32>
    "tpu.trace_start"() <{level = 10 : i32, message = "blm,bmd->bld"}> : () -> ()
    %cst_100 = arith.constant dense<0.000000e+00> : vector<8x8x8xf32>
    %361 = tpu.matmul %360, %348, %cst_100 {dimension_numbers = #tpu.dot_dimension_numbers<[2], [1], [1], [2], [0, 0, 0, 1, 1, 2], [0], [0]>} : vector<8x8x8xf32>, vector<8x8x8xf32>, vector<8x8x8xf32> -> vector<8x8x8xf32>
    "tpu.trace_stop"() : () -> ()
    %362 = vector.extract_strided_slice %319 {offsets = [0, 0, 16], sizes = [8, 8, 8], strides = [1, 1, 1]} : vector<8x8x32xf32> to vector<8x8x8xf32>
    %363 = vector.extract_strided_slice %324 {offsets = [0, 0, 16], sizes = [8, 8, 8], strides = [1, 1, 1]} : vector<8x8x32xf32> to vector<8x8x8xf32>
    %364 = vector.extract_strided_slice %329 {offsets = [0, 0, 16], sizes = [8, 8, 8], strides = [1, 1, 1]} : vector<8x8x32xf32> to vector<8x8x8xf32>
    "tpu.trace_start"() <{level = 10 : i32, message = "bld,bmd->blm"}> : () -> ()
    %cst_101 = arith.constant dense<0.000000e+00> : vector<8x8x8xf32>
    %365 = tpu.matmul %362, %363, %cst_101 {dimension_numbers = #tpu.dot_dimension_numbers<[2], [2], [1], [1], [0, 0, 0, 1, 1, 1], [0], [0]>} : vector<8x8x8xf32>, vector<8x8x8xf32>, vector<8x8x8xf32> -> vector<8x8x8xf32>
    "tpu.trace_stop"() : () -> ()
    %cst_102 = arith.constant 0.353553385 : f32
    %366 = vector.broadcast %cst_102 : f32 to vector<8x8x8xf32>
    %367 = arith.mulf %365, %366 : vector<8x8x8xf32>
    %cst_103 = arith.constant dense<0xFF800000> : vector<8x8xf32>
    %368 = vector.multi_reduction <maximumf>, %367, %cst_103 [2] : vector<8x8x8xf32> to vector<8x8xf32>
    %369 = vector.shape_cast %368 : vector<8x8xf32> to vector<8x8x1xf32>
    %370 = vector.broadcast %369 : vector<8x8x1xf32> to vector<8x8x8xf32>
    %371 = arith.subf %367, %370 : vector<8x8x8xf32>
    %372 = math.exp %371 : vector<8x8x8xf32>
    %cst_104 = arith.constant dense<0.000000e+00> : vector<8x8xf32>
    %373 = vector.multi_reduction <add>, %372, %cst_104 [2] : vector<8x8x8xf32> to vector<8x8xf32>
    %374 = vector.shape_cast %373 : vector<8x8xf32> to vector<8x8x1xf32>
    %375 = vector.broadcast %374 : vector<8x8x1xf32> to vector<8x8x8xf32>
    %376 = arith.divf %372, %375 : vector<8x8x8xf32>
    "tpu.trace_start"() <{level = 10 : i32, message = "blm,bmd->bld"}> : () -> ()
    %cst_105 = arith.constant dense<0.000000e+00> : vector<8x8x8xf32>
    %377 = tpu.matmul %376, %364, %cst_105 {dimension_numbers = #tpu.dot_dimension_numbers<[2], [1], [1], [2], [0, 0, 0, 1, 1, 2], [0], [0]>} : vector<8x8x8xf32>, vector<8x8x8xf32>, vector<8x8x8xf32> -> vector<8x8x8xf32>
    "tpu.trace_stop"() : () -> ()
    %378 = vector.extract_strided_slice %319 {offsets = [0, 0, 24], sizes = [8, 8, 8], strides = [1, 1, 1]} : vector<8x8x32xf32> to vector<8x8x8xf32>
    %379 = vector.extract_strided_slice %324 {offsets = [0, 0, 24], sizes = [8, 8, 8], strides = [1, 1, 1]} : vector<8x8x32xf32> to vector<8x8x8xf32>
    %380 = vector.extract_strided_slice %329 {offsets = [0, 0, 24], sizes = [8, 8, 8], strides = [1, 1, 1]} : vector<8x8x32xf32> to vector<8x8x8xf32>
    "tpu.trace_start"() <{level = 10 : i32, message = "bld,bmd->blm"}> : () -> ()
    %cst_106 = arith.constant dense<0.000000e+00> : vector<8x8x8xf32>
    %381 = tpu.matmul %378, %379, %cst_106 {dimension_numbers = #tpu.dot_dimension_numbers<[2], [2], [1], [1], [0, 0, 0, 1, 1, 1], [0], [0]>} : vector<8x8x8xf32>, vector<8x8x8xf32>, vector<8x8x8xf32> -> vector<8x8x8xf32>
    "tpu.trace_stop"() : () -> ()
    %cst_107 = arith.constant 0.353553385 : f32
    %382 = vector.broadcast %cst_107 : f32 to vector<8x8x8xf32>
    %383 = arith.mulf %381, %382 : vector<8x8x8xf32>
    %cst_108 = arith.constant dense<0xFF800000> : vector<8x8xf32>
    %384 = vector.multi_reduction <maximumf>, %383, %cst_108 [2] : vector<8x8x8xf32> to vector<8x8xf32>
    %385 = vector.shape_cast %384 : vector<8x8xf32> to vector<8x8x1xf32>
    %386 = vector.broadcast %385 : vector<8x8x1xf32> to vector<8x8x8xf32>
    %387 = arith.subf %383, %386 : vector<8x8x8xf32>
    %388 = math.exp %387 : vector<8x8x8xf32>
    %cst_109 = arith.constant dense<0.000000e+00> : vector<8x8xf32>
    %389 = vector.multi_reduction <add>, %388, %cst_109 [2] : vector<8x8x8xf32> to vector<8x8xf32>
    %390 = vector.shape_cast %389 : vector<8x8xf32> to vector<8x8x1xf32>
    %391 = vector.broadcast %390 : vector<8x8x1xf32> to vector<8x8x8xf32>
    %392 = arith.divf %388, %391 : vector<8x8x8xf32>
    "tpu.trace_start"() <{level = 10 : i32, message = "blm,bmd->bld"}> : () -> ()
    %cst_110 = arith.constant dense<0.000000e+00> : vector<8x8x8xf32>
    %393 = tpu.matmul %392, %380, %cst_110 {dimension_numbers = #tpu.dot_dimension_numbers<[2], [1], [1], [2], [0, 0, 0, 1, 1, 2], [0], [0]>} : vector<8x8x8xf32>, vector<8x8x8xf32>, vector<8x8x8xf32> -> vector<8x8x8xf32>
    "tpu.trace_stop"() : () -> ()
    %394 = tpu.concatenate %345, %361, %377, %393 in 2 : vector<8x8x8xf32>, vector<8x8x8xf32>, vector<8x8x8xf32>, vector<8x8x8xf32> -> vector<8x8x32xf32>
    %395 = vector.shape_cast %394 : vector<8x8x32xf32> to vector<64x32xf32>
    %396 = vector.extract_strided_slice %310 {offsets = [0, 96], sizes = [32, 32], strides = [1, 1]} : vector<32x128xf32> to vector<32x32xf32>
    %cst_111 = arith.constant dense<0.000000e+00> : vector<64x32xf32>
    %397 = tpu.matmul %395, %396, %cst_111 {dimension_numbers = #tpu.dot_dimension_numbers<[1], [0], [0], [1], [0, 0, 1, 1], [], []>} : vector<64x32xf32>, vector<32x32xf32>, vector<64x32xf32> -> vector<64x32xf32>
    %398 = vector.extract_strided_slice %312 {offsets = [3, 0], sizes = [1, 32], strides = [1, 1]} : vector<8x32xf32> to vector<1x32xf32>
    %399 = vector.broadcast %398 : vector<1x32xf32> to vector<64x32xf32>
    %400 = arith.addf %397, %399 : vector<64x32xf32>
    %cst_112 = arith.constant 0.000000e+00 : f32
    %401 = vector.broadcast %cst_112 : f32 to vector<64x32xf32>
    %402 = arith.cmpf ogt, %400, %401 : vector<64x32xf32>
    %403 = math.exp %400 : vector<64x32xf32>
    %cst_113 = arith.constant 1.000000e+00 : f32
    %404 = vector.broadcast %cst_113 : f32 to vector<64x32xf32>
    %405 = arith.subf %403, %404 : vector<64x32xf32>
    %cst_114 = arith.constant 1.67326319 : f32
    %406 = vector.broadcast %cst_114 : f32 to vector<64x32xf32>
    %407 = arith.mulf %406, %405 : vector<64x32xf32>
    %408 = arith.select %402, %400, %407 : vector<64x32xi1>, vector<64x32xf32>
    %cst_115 = arith.constant 1.05070102 : f32
    %409 = vector.broadcast %cst_115 : f32 to vector<64x32xf32>
    %410 = arith.mulf %409, %408 : vector<64x32xf32>
    %411 = arith.addf %308, %410 : vector<64x32xf32>
    %412 = vector.extract_strided_slice %312 {offsets = [4, 0], sizes = [1, 32], strides = [1, 1]} : vector<8x32xf32> to vector<1x32xf32>
    %413 = vector.extract_strided_slice %312 {offsets = [5, 0], sizes = [1, 32], strides = [1, 1]} : vector<8x32xf32> to vector<1x32xf32>
    %cst_116 = arith.constant dense<0.000000e+00> : vector<64xf32>
    %414 = vector.multi_reduction <add>, %411, %cst_116 [1] : vector<64x32xf32> to vector<64xf32>
    %415 = vector.shape_cast %414 : vector<64xf32> to vector<64x1xf32>
    %cst_117 = arith.constant 3.200000e+01 : f32
    %416 = vector.broadcast %cst_117 : f32 to vector<64x1xf32>
    %417 = arith.divf %415, %416 : vector<64x1xf32>
    %418 = vector.broadcast %417 : vector<64x1xf32> to vector<64x32xf32>
    %419 = arith.subf %411, %418 : vector<64x32xf32>
    %420 = arith.mulf %419, %419 : vector<64x32xf32>
    %cst_118 = arith.constant dense<0.000000e+00> : vector<64xf32>
    %421 = vector.multi_reduction <add>, %420, %cst_118 [1] : vector<64x32xf32> to vector<64xf32>
    %422 = vector.shape_cast %421 : vector<64xf32> to vector<64x1xf32>
    %cst_119 = arith.constant 3.200000e+01 : f32
    %423 = vector.broadcast %cst_119 : f32 to vector<64x1xf32>
    %424 = arith.divf %422, %423 : vector<64x1xf32>
    %425 = vector.broadcast %417 : vector<64x1xf32> to vector<64x32xf32>
    %426 = arith.subf %411, %425 : vector<64x32xf32>
    %cst_120 = arith.constant 9.99999974E-6 : f32
    %427 = vector.broadcast %cst_120 : f32 to vector<64x1xf32>
    %428 = arith.addf %424, %427 : vector<64x1xf32>
    %429 = math.rsqrt %428 : vector<64x1xf32>
    %430 = vector.broadcast %429 : vector<64x1xf32> to vector<64x32xf32>
    %431 = arith.mulf %426, %430 : vector<64x32xf32>
    %432 = vector.broadcast %412 : vector<1x32xf32> to vector<64x32xf32>
    %433 = arith.mulf %431, %432 : vector<64x32xf32>
    %434 = vector.broadcast %413 : vector<1x32xf32> to vector<64x32xf32>
    %435 = arith.addf %433, %434 : vector<64x32xf32>
    %436 = vector.extract_strided_slice %312 {offsets = [6, 0], sizes = [1, 32], strides = [1, 1]} : vector<8x32xf32> to vector<1x32xf32>
    %437 = vector.extract_strided_slice %312 {offsets = [7, 0], sizes = [1, 32], strides = [1, 1]} : vector<8x32xf32> to vector<1x32xf32>
    %cst_121 = arith.constant dense<0.000000e+00> : vector<64xf32>
    %438 = vector.multi_reduction <add>, %435, %cst_121 [1] : vector<64x32xf32> to vector<64xf32>
    %439 = vector.shape_cast %438 : vector<64xf32> to vector<64x1xf32>
    %cst_122 = arith.constant 3.200000e+01 : f32
    %440 = vector.broadcast %cst_122 : f32 to vector<64x1xf32>
    %441 = arith.divf %439, %440 : vector<64x1xf32>
    %442 = vector.broadcast %441 : vector<64x1xf32> to vector<64x32xf32>
    %443 = arith.subf %435, %442 : vector<64x32xf32>
    %444 = arith.mulf %443, %443 : vector<64x32xf32>
    %cst_123 = arith.constant dense<0.000000e+00> : vector<64xf32>
    %445 = vector.multi_reduction <add>, %444, %cst_123 [1] : vector<64x32xf32> to vector<64xf32>
    %446 = vector.shape_cast %445 : vector<64xf32> to vector<64x1xf32>
    %cst_124 = arith.constant 3.200000e+01 : f32
    %447 = vector.broadcast %cst_124 : f32 to vector<64x1xf32>
    %448 = arith.divf %446, %447 : vector<64x1xf32>
    %449 = vector.broadcast %441 : vector<64x1xf32> to vector<64x32xf32>
    %450 = arith.subf %435, %449 : vector<64x32xf32>
    %cst_125 = arith.constant 9.99999974E-6 : f32
    %451 = vector.broadcast %cst_125 : f32 to vector<64x1xf32>
    %452 = arith.addf %448, %451 : vector<64x1xf32>
    %453 = math.rsqrt %452 : vector<64x1xf32>
    %454 = vector.broadcast %453 : vector<64x1xf32> to vector<64x32xf32>
    %455 = arith.mulf %450, %454 : vector<64x32xf32>
    %456 = vector.broadcast %436 : vector<1x32xf32> to vector<64x32xf32>
    %457 = arith.mulf %455, %456 : vector<64x32xf32>
    %458 = vector.broadcast %437 : vector<1x32xf32> to vector<64x32xf32>
    %459 = arith.addf %457, %458 : vector<64x32xf32>
    %c0_126 = arith.constant 0 : index
    %c0_127 = arith.constant 0 : index
    %460 = vector.load %arg5[%c0_126, %c0_127] : memref<64x32xf32, #tpu.memory_space<vmem>>, vector<64x32xf32>
    tpu.vector_store %arg5[%c0_126, %c0_127], %459 {strides = array<i32>} : memref<64x32xf32, #tpu.memory_space<vmem>>, vector<64x32xf32>,
    return
  }
  func.func @transform_0(%arg0: i32) -> (i32, i32) {
    %c0_i32 = arith.constant 0 : i32
    %c0_i32_0 = arith.constant 0 : i32
    return %arg0, %c0_i32 : i32, i32
  }
  func.func @transform_1(%arg0: i32) -> (i32, i32) {
    %c0_i32 = arith.constant 0 : i32
    %c0_i32_0 = arith.constant 0 : i32
    %c0_i32_1 = arith.constant 0 : i32
    return %c0_i32, %c0_i32_0 : i32, i32
  }
  func.func @transform_2(%arg0: i32) -> (i32, i32, i32) {
    %c0_i32 = arith.constant 0 : i32
    %c0_i32_0 = arith.constant 0 : i32
    %c0_i32_1 = arith.constant 0 : i32
    %c0_i32_2 = arith.constant 0 : i32
    return %c0_i32, %c0_i32_0, %c0_i32_1 : i32, i32, i32
  }
  func.func @transform_3(%arg0: i32) -> (i32, i32, i32) {
    %c0_i32 = arith.constant 0 : i32
    %c0_i32_0 = arith.constant 0 : i32
    %c0_i32_1 = arith.constant 0 : i32
    %c0_i32_2 = arith.constant 0 : i32
    return %c0_i32, %c0_i32_0, %c0_i32_1 : i32, i32, i32
  }
  func.func @transform_4(%arg0: i32) -> (i32, i32) {
    %c0_i32 = arith.constant 0 : i32
    %c0_i32_0 = arith.constant 0 : i32
    return %arg0, %c0_i32 : i32, i32
  }
}

</mosaic_0001>

<bundles_post_ra>
// kernel: tpu_custom_call.1
= control target key start
LH: loop header
LB: loop body
LE: loop exit
PB: predicated region body
PF: predicated region fallthrough
CT: control target
= control target key end

     0   :  { %9 = vsyncpa [#allocation3], 0  ;;  %s14859_s0 = inlined_call_operand.vmem [shape: f32[64,32], index: 0, kind: input, shape index: {}]   ;;  %s14860_s1 = inlined_call_operand.hbm [shape: f32[8,32], index: 1, kind: input, shape index: {}]   ;;  %s14861_s2 = inlined_call_operand.vmem [shape: f32[3,32,128], index: 2, kind: input, shape index: {}]   ;;  %s14862_s3 = inlined_call_operand.hbm [shape: f32[3,8,32], index: 3, kind: input, shape index: {}]   ;;  %s14863_s4 = inlined_call_operand.vmem [shape: f32[64,32], index: 4, kind: output, shape index: {}]  }
   0x1   :  { %s18_s17 = sshll.u32 %s14860_s1, 4  ;;  %s19_s17 = int_to_ptr.hbm [resolvable:$true] %s18_s17 }
   0x2   :  { %10 = vsyncpa [#allocation5], 0  ;;  %s11163_s18 = smov [#allocation2]   ;;  %s30_s22 = sshll.u32 %s14862_s3, 4  ;;  %s31_s22 = int_to_ptr.hbm [resolvable:$true] %s30_s22 }
   0x3   :  { %s20_s19 = sshll.u32 %s11163_s18, 4  ;;  %s11164_s23 = smov [#allocation4]   ;;  %s21_s19 = int_to_ptr.vmem [resolvable:$true] %s20_s19 }
   0x4   :  { %23 = dma.hbm_to_vmem [thread:$0]  %s19_s17, 128, %s21_s19, [#allocation3]  }
   0x5   :  { %s32_s24 = sshll.u32 %s11164_s23, 4  ;;  %s11165_s25 = smov 128   ;;  %s33_s24 = int_to_ptr.vmem [resolvable:$true] %s32_s24 }
   0x6   :  { %s11166_s26 = smov 8  }
   0x7   :  { %38 = dma.hbm_to_vmem [thread:$0]  %s31_s22, 384, %s33_s24, [#allocation5], %s11165_s25, %s11165_s25, %s11166_s26  }
   0x8   :  { %11159 = dma.done.wait [#allocation3], 128  }
   0x9   :  { %11160 = vsyncadd [#allocation3], 4294967168 }
   0xa   :  { %11161 = dma.done.wait [#allocation5], 384  }
   0xb   :  { %11162 = vsyncadd [#allocation5], 4294966912  ;;  %v11217_v0 = vld [vmem:[%s14861_s2 + $0x18] sm:$0xff]  ;;  %v11222_v1 = vld [vmem:[%s14861_s2 + $0x10] sm:$0xff]  ;;  %vm69_vm0 = vcmask 261120   ;;  %s11167_s9 = smov 32  }
   0xc   :  { %14897 = vst [vmem:[#allocation8_spill] sm:$0xff] %v11217_v0  ;;  %v11227_v2 = vld [vmem:[%s14861_s2 + $0x8] sm:$0xff]  ;;  %106 = vmatpush.msra.mxu0 %v11217_v0  ;;  %v11235_v4 = vld [vmem:[%s14861_s2] sm:$0xff]  ;;  %v49_v13 = vld [vmem:[%s14859_s0 + $0x10] sm:$0xff]  ;;  %s11168_s24 = smov 96   ;;  %vm173_vm1 = vcmask 64512  }
   0xd   :  { %14898 = vst [vmem:[#allocation9_spill] sm:$0xff] %v11222_v1  ;;  %v47_v5 = vld [vmem:[%s14859_s0] sm:$0xff]  ;;  %v68_v8 = vld [vmem:[#allocation4] sm:$0xff]  ;;  %v50_v15 = vld [vmem:[%s14859_s0 + $0x18] sm:$0xff]  ;;  %s11170_s25 = smov 88   ;;  %s11171_s1 = smov 120  }
   0xe   :  { %14899 = vst [vmem:[#allocation10_spill] sm:$0xff] %v11227_v2  ;;  %v55_v6 = vld [vmem:[#allocation2] sm:$0xff]  ;;  %107 = vmatpush.msra.mxu0 %v11222_v1  ;;  %v144_v9 = vperm.slane %v68_v8, 1  ;;  %v48_v11 = vld [vmem:[%s14859_s0 + $0x8] sm:$0xff]  ;;  %v53_v21 = vld [vmem:[%s14859_s0 + $0x30] sm:$0xff]  ;;  %v157_v40 = vperm.slane %v68_v8, 2 }
   0xf   :  { %14900 = vst [vmem:[#allocation11_spill] sm:$0xff] %v11235_v4  ;;  %v11243_v10 = vadd.f32 %v55_v6, %v47_v5  ;;  %v11253_v12 = vadd.f32 %v55_v6, %v48_v11  ;;  %v11260_v14 = vadd.f32 %v55_v6, %v49_v13  ;;  %v11267_v16 = vadd.f32 %v55_v6, %v50_v15  ;;  %v51_v17 = vld [vmem:[%s14859_s0 + $0x20] sm:$0xff]  ;;  %v52_v19 = vld [vmem:[%s14859_s0 + $0x28] sm:$0xff]  ;;  %v54_v23 = vld [vmem:[%s14859_s0 + $0x38] sm:$0xff]  ;;  %s11169_s0 = smov 64   ;;  %s11172_s27 = smov 56  }
  0x10   :  { %108 = vmatpush.msra.mxu0 %v11227_v2  ;;  %146 = vrot.lane.b32.xlu0 %v144_v9, %s11167_s9  ;;  %v11274_v18 = vadd.f32 %v55_v6, %v51_v17  ;;  %v11281_v20 = vadd.f32 %v55_v6, %v52_v19  ;;  %v11288_v22 = vadd.f32 %v55_v6, %v53_v21  ;;  %v135_v43 = vperm.slane %v68_v8, 0  ;;  %s11173_s28 = smov 80   ;;  %s11174_s3 = smov 112  }
  0x11   :  { %14901 = vst [vmem:[#allocation12_spill] sm:$0xff] %v11243_v10  ;;  %v11295_v24 = vadd.f32 %v55_v6, %v54_v23  ;;  %s11175_s29 = smov 48   ;;  %s11176_s30 = smov 104  }
  0x12   :  { %109 = vmatpush.msra.mxu0 %v11235_v4  ;;  %14902 = vst [vmem:[#allocation13_spill] sm:$0xff] %v11253_v12  ;;  %s11177_s5 = smov 72   ;;  %s11178_s6 = smov 40  }
  0x13   :  { %9978 = vmatmul.msk.f32.vlgmr.msra.gmra.mxu0 %vm69_vm0, %v11243_v10  ;;  %14903 = vst [vmem:[#allocation14_spill] sm:$0xff] %v11260_v14  ;;  %s11179_s7 = smov 16   ;;  %s11180_s8 = smov 24  }
  0x14   :  { %14904 = vst [vmem:[#allocation15_spill] sm:$0xff] %v11267_v16 }
  0x15   :  { %14905 = vst [vmem:[#allocation16_spill] sm:$0xff] %v11274_v18 }
  0x16   :  { %14906 = vst [vmem:[#allocation17_spill] sm:$0xff] %v11281_v20 }
  0x17   :  { %14907 = vst [vmem:[#allocation18_spill] sm:$0xff] %v11288_v22 }
  0x18   :  { %14908 = vst [vmem:[#allocation19_spill] sm:$0xff] %v11295_v24 }
  0x1b   :  { %9979 = vmatmul.msk.f32.gmra.mxu0 %vm69_vm0, %v11253_v12 }
  0x23   :  { %9980 = vmatmul.msk.f32.gmra.mxu0 %vm69_vm0, %v11260_v14 }
  0x2b   :  { %9981 = vmatmul.msk.f32.gmra.mxu0 %vm69_vm0, %v11267_v16 }
  0x33   :  { %9982 = vmatmul.msk.f32.gmra.mxu0 %vm69_vm0, %v11274_v18 }
  0x3b   :  { %9983 = vmatmul.msk.f32.gmra.mxu0 %vm69_vm0, %v11281_v20 }
  0x43   :  { %9984 = vmatmul.msk.f32.gmra.mxu0 %vm69_vm0, %v11288_v22 }
  0x4b   :  { %9985 = vmatmul.msk.f32.gmra.mxu0 %vm69_vm0, %v11295_v24 }
  0x82   :  { %v147_v25 = vpop.permute.xlu0 %146 }
  0x90   :  { %v11299_v26 = vpop.f32.mrf.mxu0 }
  0x91   :  { %v11302_v27 = vadd.f32 %v147_v25, %v11299_v26  ;;  %v11338_v46 = vadd.f32 %v135_v43, %v11299_v26 }
  0x93   :  { %171 = vrot.lane.b32.xlu0 %v11302_v27, %s11168_s24 }
  0x98   :  { %v114_v28 = vpop.f32.mrf.mxu0 }
  0x99   :  { %v11310_v32 = vadd.f32 %v147_v25, %v114_v28  ;;  %v11357_v53 = vadd.f32 %v135_v43, %v114_v28 }
  0xa0   :  { %v117_v29 = vpop.f32.mrf.mxu0 }
  0xa1   :  { %v11306_v30 = vadd.f32 %v147_v25, %v117_v29  ;;  %v11352_v51 = vadd.f32 %v135_v43, %v117_v29 }
  0xa3   :  { %228 = vrot.lane.b32.xlu1 %v11306_v30, %s11168_s24 }
  0xa8   :  { %v120_v31 = vpop.f32.mrf.mxu0 }
  0xa9   :  { %v11312_v33 = vadd.f32 %v147_v25, %v120_v31  ;;  %v11340_v47 = vadd.f32 %v135_v43, %v120_v31 }
  0xab   :  { %200 = vrot.lane.b32.xlu1 %v11310_v32, %s11168_s24  ;;  %256 = vrot.lane.b32.xlu2 %v11312_v33, %s11168_s24 }
  0xb0   :  { %v123_v34 = vpop.f32.mrf.mxu0 }
  0xb1   :  { %v11318_v35 = vadd.f32 %v147_v25, %v123_v34  ;;  %v11347_v49 = vadd.f32 %v135_v43, %v123_v34 }
  0xb3   :  { %284 = vrot.lane.b32.xlu2 %v11318_v35, %s11168_s24 }
  0xb8   :  { %v126_v36 = vpop.f32.mrf.mxu0 }
  0xb9   :  { %v11322_v37 = vadd.f32 %v147_v25, %v126_v36  ;;  %v11367_v57 = vadd.f32 %v135_v43, %v126_v36 }
  0xbb   :  { %312 = vrot.lane.b32.xlu0 %v11322_v37, %s11168_s24 }
  0xc0   :  { %v129_v38 = vpop.f32.mrf.mxu0 }
  0xc1   :  { %v11326_v39 = vadd.f32 %v147_v25, %v129_v38  ;;  %v11372_v59 = vadd.f32 %v135_v43, %v129_v38 }
  0xc3   :  { %340 = vrot.lane.b32.xlu1 %v11326_v39, %s11168_s24 }
  0xc8   :  { %v132_v41 = vpop.f32.mrf.mxu0 }
  0xc9   :  { %v11330_v42 = vadd.f32 %v147_v25, %v132_v41  ;;  %v11362_v55 = vadd.f32 %v135_v43, %v132_v41 }
  0xcb   :  { %159 = vrot.lane.b32.xlu1 %v157_v40, %s11169_s0  ;;  %368 = vrot.lane.b32.xlu2 %v11330_v42, %s11168_s24 }
 0x105   :  { %v172_v44 = vpop.permute.xlu0 %171  ;;  %v257_v45 = vpop.permute.xlu2 %256 }
 0x106   :  { %9986 = vmatpush.xpose.msk.msrb.mxu0 %vm173_vm1, %v172_v44  ;;  %9992 = vmatpush.xpose.msk.msra.mxu1 %vm173_vm1, %v257_v45 }
 0x109   :  { %9987 = vmatmul.msk.f32.vlgmr.msrb.gmra.mxu0 %vm173_vm1, %v11338_v46  ;;  %9993 = vmatmul.msk.f32.vlgmr.msra.gmra.mxu1 %vm173_vm1, %v11340_v47 }
 0x10d   :  { %v285_v48 = vpop.permute.xlu2 %284 }
 0x10e   :  { %9994 = vmatpush.xpose.msk.msra.mxu2 %vm173_vm1, %v285_v48 }
 0x111   :  { %9995 = vmatmul.msk.f32.vlgmr.msra.gmra.mxu2 %vm173_vm1, %v11347_v49 }
 0x115   :  { %v229_v50 = vpop.permute.xlu1 %228 }
 0x116   :  { %9990 = vmatpush.xpose.msk.msra.mxu3 %vm173_vm1, %v229_v50 }
 0x119   :  { %9991 = vmatmul.msk.f32.vlgmr.msra.gmra.mxu3 %vm173_vm1, %v11352_v51 }
 0x11d   :  { %v201_v52 = vpop.permute.xlu1 %200 }
 0x11e   :  { %9988 = vmatpush.xpose.msk.msra.mxu0 %vm173_vm1, %v201_v52 }
 0x121   :  { %9989 = vmatmul.msk.f32.vlgmr.msra.gmra.mxu0 %vm173_vm1, %v11357_v53 }
 0x125   :  { %v369_v54 = vpop.permute.xlu2 %368 }
 0x126   :  { %10000 = vmatpush.xpose.msk.msrb.mxu2 %vm173_vm1, %v369_v54 }
 0x129   :  { %10001 = vmatmul.msk.f32.vlgmr.msrb.gmra.mxu2 %vm173_vm1, %v11362_v55 }
 0x12d   :  { %v313_v56 = vpop.permute.xlu0 %312 }
 0x12e   :  { %9996 = vmatpush.xpose.msk.msrb.mxu3 %vm173_vm1, %v313_v56 }
 0x131   :  { %9997 = vmatmul.msk.f32.vlgmr.msrb.gmra.mxu3 %vm173_vm1, %v11367_v57 }
 0x135   :  { %v341_v58 = vpop.permute.xlu1 %340 }
 0x136   :  { %9998 = vmatpush.xpose.msk.msrb.mxu1 %vm173_vm1, %v341_v58 }
 0x139   :  { %9999 = vmatmul.msk.f32.vlgmr.msrb.gmra.mxu1 %vm173_vm1, %v11372_v59 }
 0x13d   :  { %v160_v60 = vpop.permute.xlu1 %159 }
 0x13e   :  { %v11376_v61 = vadd.f32 %v160_v60, %v117_v29  ;;  %v11378_v62 = vadd.f32 %v160_v60, %v120_v31  ;;  %v11381_v63 = vadd.f32 %v160_v60, %v11299_v26  ;;  %v11383_v5 = vadd.f32 %v160_v60, %v114_v28 }
 0x13f   :  { %v11385_v6 = vadd.f32 %v160_v60, %v123_v34  ;;  %v11387_v8 = vadd.f32 %v160_v60, %v126_v36  ;;  %v11406_v19 = vadd.f32 %v160_v60, %v129_v38  ;;  %v11408_v21 = vadd.f32 %v160_v60, %v132_v41 }
 0x140   :  { %v10378_v9 = vpack.i.bf16 %v11378_v62, %v11376_v61  ;;  %v11393_v11 = vpack.i.bf16 %v11383_v5, %v11381_v63 }
 0x141   :  { %v10398_v15 = vpack.i.bf16 %v11381_v63, %v11387_v8  ;;  %v11404_v17 = vpack.i.bf16 %v11387_v8, %v11385_v6  ;;  %v10388_v23 = vpack.i.bf16 %v11408_v21, %v11406_v19  ;;  %v10403_v14 = vpack.i.bf16 %v11385_v6, %v11406_v19 }
 0x142   :  { %10379 = vrot.lane.b32.xlu0 %v10378_v9, %s11169_s0  ;;  %10374 = vrot.lane.b32.xlu2 %v11393_v11, %s11169_s0 }
 0x143   :  { %14909 = vst [vmem:[#allocation20_spill] sm:$0xff] %v11404_v17 }
 0x14a   :  { %10389 = vrot.lane.b32.xlu0 %v10388_v23, %s11169_s0  ;;  %10384 = vrot.lane.b32.xlu2 %v11404_v17, %s11169_s0 }
 0x152   :  { %813 = vrot.lane.b32.xlu2 %v11302_v27, %s11170_s25 }
 0x186   :  { %v196_v25 = vpop.f32.mrf.mxu0  ;;  %v280_v50 = vpop.f32.mrf.mxu1 }
 0x187   :  { %v11417_v26 = vmul.f32 0.35355338, %v196_v25  ;;  %v398_v54 = vmul.f32 0.35355338, %v280_v50 }
 0x189   :  { %v403_v28 = vsel %vm173_vm1, %v11417_v26, -inf  ;;  %v412_v60 = vsel %vm173_vm1, %v398_v54, -inf }
 0x18a   :  { %404 = vmax.xlane.f32.xlu0 %v403_v28 }
 0x194   :  { %v308_v29 = vpop.f32.mrf.mxu2 }
 0x195   :  { %v11421_v31 = vmul.f32 0.35355338, %v308_v29 }
 0x197   :  { %v415_v34 = vsel %vm173_vm1, %v11421_v31, -inf }
 0x198   :  { %416 = vmax.xlane.f32.xlu0 %v415_v34 }
 0x19c   :  { %v252_v36 = vpop.f32.mrf.mxu3  ;;  %v10375_v38 = vpop.permute.xlu2 %10374 }
 0x19d   :  { %v11425_v40 = vmul.f32 0.35355338, %v252_v36  ;;  %v10377_v41 = vunpack.i.h.bf16 %v10375_v38  ;;  %v10376_v43 = vunpack.i.l.bf16 %v10375_v38 }
 0x19e   :  { %v224_v44 = vpop.f32.mrf.mxu0 }
 0x19f   :  { %v396_v45 = vmul.f32 0.35355338, %v224_v44  ;;  %617 = vmatpush.msra.mxu3 %v10376_v43  ;;  %644 = vmatpush.msra.mxu1 %v10377_v41  ;;  %v409_v48 = vsel %vm173_vm1, %v11425_v40, -inf }
 0x1a0   :  { %410 = vmax.xlane.f32.xlu2 %v409_v48 }
 0x1a1   :  { %v406_v52 = vsel %vm173_vm1, %v396_v45, -inf }
 0x1a2   :  { %407 = vmax.xlane.f32.xlu1 %v406_v52 }
 0x1a4   :  { %v10385_v56 = vpop.permute.xlu2 %10384 }
 0x1a5   :  { %v10386_v58 = vunpack.i.l.bf16 %v10385_v56  ;;  %v10387_v34 = vunpack.i.h.bf16 %v10385_v56 }
 0x1a7   :  { %725 = vmatpush.msrb.mxu1 %v10386_v58 }
 0x1a8   :  { %413 = vmax.xlane.f32.xlu2 %v412_v60 }
 0x1ac   :  { %811 = vrot.lane.b32.xlu0 %v11338_v46, %s11171_s1  ;;  %v392_v38 = vpop.f32.mrf.mxu2  ;;  %v11453_v52 = vpop.permute.xlu2 %813 }
 0x1ad   :  { %v402_v41 = vmul.f32 0.35355338, %v392_v38 }
 0x1af   :  { %v424_v43 = vsel %vm173_vm1, %v402_v41, -inf }
 0x1b4   :  { %v336_v9 = vpop.f32.mrf.mxu3  ;;  %v10380_v23 = vpop.permute.xlu0 %10379  ;;  %869 = vrot.lane.b32.xlu0 %v11306_v30, %s11170_s25 }
 0x1b5   :  { %v400_v25 = vmul.f32 0.35355338, %v336_v9  ;;  %v10382_v28 = vunpack.i.h.bf16 %v10380_v23  ;;  %v10381_v29 = vunpack.i.l.bf16 %v10380_v23 }
 0x1b6   :  { %v364_v44 = vpop.f32.mrf.mxu1 }
 0x1b7   :  { %671 = vmatpush.msra.mxu2 %v10381_v29  ;;  %698 = vmatpush.msrb.mxu3 %v10382_v28  ;;  %v418_v36 = vsel %vm173_vm1, %v400_v25, -inf  ;;  %v11445_v48 = vmul.f32 0.35355338, %v364_v44 }
 0x1b8   :  { %419 = vmax.xlane.f32.xlu1 %v418_v36 }
 0x1b9   :  { %752 = vmatpush.msrb.mxu2 %v10387_v34  ;;  %v421_v50 = vsel %vm173_vm1, %v11445_v48, -inf }
 0x1bc   :  { %867 = vrot.lane.b32.xlu0 %v11352_v51, %s11171_s1  ;;  %v11455_v58 = vpop.permute.xlu0 %10389 }
 0x1bd   :  { %v10391_v1 = vunpack.i.l.bf16 %v11455_v58 }
 0x1c0   :  { %839 = vrot.lane.b32.xlu2 %v11357_v53, %s11171_s1 }
 0x1c8   :  { %897 = vrot.lane.b32.xlu2 %v11312_v33, %s11170_s25 }
 0x1d1   :  { %841 = vrot.lane.b32.xlu1 %v11310_v32, %s11170_s25 }
 0x1e6   :  { %425 = vmax.xlane.f32.xlu0 %v424_v43 }
 0x1f1   :  { %422 = vmax.xlane.f32.xlu2 %v421_v50 }
 0x1fa   :  { %953 = vrot.lane.b32.xlu0 %v11322_v37, %s11170_s25 }
 0x1fd   :  { %v405_v34 = vpop.xlane.xlu0 %404 }
 0x1fe   :  { %v427_v43 = vsub.f32 %v11417_v26, %v405_v34 }
 0x200   :  { %v435_v50 = vmul.f32 1.442695, %v427_v43 }
 0x209   :  { %895 = vrot.lane.b32.xlu2 %v11340_v47, %s11171_s1 }
 0x213   :  { %v411_v56 = vpop.xlane.xlu2 %410 }
 0x214   :  { %v429_v7 = vsub.f32 %v11425_v40, %v411_v56 }
 0x215   :  { %v408_v60 = vpop.xlane.xlu1 %407 }
 0x216   :  { %v428_v9 = vsub.f32 %v396_v45, %v408_v60  ;;  %v439_v45 = vmul.f32 1.442695, %v429_v7 }
 0x218   :  { %v437_v23 = vmul.f32 1.442695, %v428_v9 }
 0x21a   :  { %10578 = vpow2.f32 %v437_v23  ;;  %v417_v23 = vpop.xlane.xlu0 %416 }
 0x21b   :  { %v414_v28 = vpop.xlane.xlu2 %413 }
 0x21c   :  { %v430_v29 = vsub.f32 %v398_v54, %v414_v28 }
 0x21e   :  { %v441_v36 = vmul.f32 1.442695, %v430_v29  ;;  %v431_v29 = vsub.f32 %v11421_v31, %v417_v23 }
 0x220   :  { %v11457_v38 = vpop.eup %10578  ;;  %10580 = vpow2.f32 %v441_v36  ;;  %v443_v56 = vmul.f32 1.442695, %v431_v29 }
 0x221   :  { %v454_v44 = vsel %vm173_vm1, %v11457_v38, 0.0  ;;  %10582 = vpow2.f32 %v435_v50 }
 0x222   :  { %10584 = vpow2.f32 %v439_v45  ;;  %v11480_v31 = vpop.permute.xlu0 %811 }
 0x224   :  { %455 = vadd.xlane.f32.xlu0 %v454_v44 }
 0x226   :  { %v11463_v3 = vpop.eup %10580 }
 0x227   :  { %v460_v54 = vsel %vm173_vm1, %v11463_v3, 0.0  ;;  %v11467_v26 = vpop.eup %10582 }
 0x228   :  { %v451_v40 = vsel %vm173_vm1, %v11467_v26, 0.0  ;;  %v11472_v7 = vpop.eup %10584 }
 0x229   :  { %v457_v36 = vsel %vm173_vm1, %v11472_v7, 0.0 }
 0x22a   :  { %v11486_v50 = vpop.permute.xlu0 %869 }
 0x22b   :  { %v420_v60 = vpop.xlane.xlu1 %419 }
 0x22c   :  { %v432_v9 = vsub.f32 %v400_v25, %v420_v60  ;;  %461 = vadd.xlane.f32.xlu0 %v460_v54  ;;  %v11490_v60 = vpop.permute.xlu2 %839 }
 0x22e   :  { %v445_v28 = vmul.f32 1.442695, %v432_v9 }
 0x230   :  { %10586 = vpow2.f32 %v445_v28 }
 0x231   :  { %10588 = vpow2.f32 %v443_v56 }
 0x232   :  { %452 = vadd.xlane.f32.xlu2 %v451_v40  ;;  %v11488_v45 = vpop.permute.xlu0 %867 }
 0x234   :  { %v11494_v23 = vpop.permute.xlu2 %897 }
 0x236   :  { %v11474_v34 = vpop.eup %10586 }
 0x237   :  { %v466_v25 = vsel %vm173_vm1, %v11474_v34, 0.0  ;;  %v11482_v43 = vpop.eup %10588 }
 0x238   :  { %467 = vadd.xlane.f32.xlu0 %v466_v25  ;;  %v463_v44 = vsel %vm173_vm1, %v11482_v43, 0.0 }
 0x23a   :  { %458 = vadd.xlane.f32.xlu2 %v457_v36 }
 0x242   :  { %464 = vadd.xlane.f32.xlu2 %v463_v44 }
 0x259   :  { %v426_v54 = vpop.xlane.xlu0 %425 }
 0x25a   :  { %v434_v9 = vsub.f32 %v402_v41, %v426_v54  ;;  %951 = vrot.lane.b32.xlu2 %v11367_v57, %s11171_s1 }
 0x25c   :  { %v449_v28 = vmul.f32 1.442695, %v434_v9 }
 0x25e   :  { %10590 = vpow2.f32 %v449_v28 }
 0x262   :  { %923 = vrot.lane.b32.xlu2 %v11347_v49, %s11171_s1 }
 0x264   :  { %v11498_v29 = vpop.eup %10590  ;;  %v423_v40 = vpop.xlane.xlu2 %422 }
 0x265   :  { %v433_v56 = vsub.f32 %v11445_v48, %v423_v40  ;;  %v472_v25 = vsel %vm173_vm1, %v11498_v29, 0.0 }
 0x266   :  { %473 = vadd.xlane.f32.xlu0 %v472_v25 }
 0x267   :  { %v447_v41 = vmul.f32 1.442695, %v433_v56  ;;  %v10393_v56 = vpack.i.bf16 %v11376_v61, %v11383_v5 }
 0x269   :  { %10592 = vpow2.f32 %v447_v41 }
 0x26a   :  { %10399 = vrot.lane.b32.xlu2 %v10398_v15, %s11172_s27 }
 0x26c   :  { %v11519_v15 = vpop.permute.xlu0 %953  ;;  %v11529_v54 = vpop.permute.xlu2 %895 }
 0x26f   :  { %v11507_v36 = vpop.eup %10592 }
 0x270   :  { %v469_v44 = vsel %vm173_vm1, %v11507_v36, 0.0 }
 0x271   :  { %470 = vadd.xlane.f32.xlu1 %v469_v44 }
 0x27a   :  { %925 = vrot.lane.b32.xlu0 %v11318_v35, %s11170_s25 }
 0x282   :  { %1009 = vrot.lane.b32.xlu0 %v11330_v42, %s11170_s25 }
 0x28a   :  { %981 = vrot.lane.b32.xlu1 %v11326_v39, %s11170_s25  ;;  %1473 = vrot.lane.b32.xlu0 %v11310_v32, %s11173_s28 }
 0x292   :  { %979 = vrot.lane.b32.xlu1 %v11372_v59, %s11171_s1  ;;  %1501 = vrot.lane.b32.xlu0 %v11306_v30, %s11173_s28 }
 0x297   :  { %v456_v48 = vpop.xlane.xlu0 %455 }
 0x298   :  { %10594 = vrcp.f32 %v456_v48  ;;  %v501_v41 = vand.u32 2147483648, %v456_v48  ;;  %v499_v13 = vand.u32 2147483647, %v456_v48  ;;  %vm495_vm3 = vweird.f32 %v456_v48 }
 0x29a   :  { %1007 = vrot.lane.b32.xlu1 %v11362_v55, %s11171_s1  ;;  %1445 = vrot.lane.b32.xlu0 %v11302_v27, %s11173_s28  ;;  %v502_v18 = vor.u32 1.1754944e-38, %v501_v41  ;;  %vm500_vm5 = vcmp.eq.f32.partialorder %v499_v13, 8.507059e+37 }
 0x29e   :  { %v10595_v9 = vpop.eup %10594 }
 0x29f   :  { %v491_v28 = vmul.f32 %v10595_v9, %v456_v48  ;;  %v11531_v40 = vpop.xlane.xlu0 %461  ;;  %vm496_vm2 = vweird.f32 %v10595_v9 }
 0x2a0   :  { %10596 = vrcp.f32 %v11531_v40  ;;  %vm497_vm4 = vmor %vm495_vm3, %vm496_vm2  ;;  %v531_v17 = vand.u32 2147483648, %v11531_v40  ;;  %vm525_vm11 = vweird.f32 %v11531_v40 }
 0x2a1   :  { %v492_v25 = vsub.f32 1.0, %v491_v28 }
 0x2a2   :  { %10394 = vrot.lane.b32.xlu1 %v10393_v56, %s11172_s27 }
 0x2a3   :  { %v493_v44 = vmul.f32 %v10595_v9, %v492_v25 }
 0x2a5   :  { %v494_v24 = vadd.f32 %v10595_v9, %v493_v44  ;;  %v453_v22 = vpop.xlane.xlu2 %452  ;;  %v10392_v44 = vunpack.i.h.bf16 %v11455_v58 }
 0x2a6   :  { %v11537_v20 = vpop.eup %10596  ;;  %10598 = vrcp.f32 %v453_v22  ;;  %vm480_vm7 = vweird.f32 %v453_v22 }
 0x2a7   :  { %v498_v16 = vsel %vm497_vm4, %v10595_v9, %v494_v24  ;;  %v521_v56 = vmul.f32 %v11537_v20, %v11531_v40  ;;  %v486_v9 = vand.u32 2147483648, %v453_v22  ;;  %vm526_vm8 = vweird.f32 %v11537_v20 }
 0x2a8   :  { %v503_v28 = vsel %vm500_vm5, %v502_v18, %v498_v16  ;;  %vm11565_vm12 = vmor %vm525_vm11, %vm526_vm8 }
 0x2a9   :  { %v504_v25 = vmul.f32 %v11457_v38, %v503_v28  ;;  %v522_v24 = vsub.f32 1.0, %v521_v56 }
 0x2aa   :  { %10404 = vrot.lane.b32.xlu1 %v10403_v14, %s11172_s27  ;;  %v484_v14 = vand.u32 2147483647, %v453_v22 }
 0x2ab   :  { %10003 = vmatmul.msk.f32.vlgmr.msra.gmra.mxu1 %vm173_vm1, %v504_v25  ;;  %v11547_v48 = vpop.xlane.xlu0 %467  ;;  %v523_v38 = vmul.f32 %v11537_v20, %v522_v24 }
 0x2ac   :  { %v10599_v41 = vpop.eup %10598  ;;  %806 = vmatpush.msra.mxu1 %v10392_v44  ;;  %10600 = vrcp.f32 %v11547_v48  ;;  %vm485_vm10 = vcmp.eq.f32.partialorder %v484_v14, 8.507059e+37  ;;  %vm555_vm5 = vweird.f32 %v11547_v48 }
 0x2ad   :  { %v476_v13 = vmul.f32 %v10599_v41, %v453_v22  ;;  %v459_v16 = vpop.xlane.xlu2 %458  ;;  %vm481_vm6 = vweird.f32 %v10599_v41  ;;  %v524_v24 = vadd.f32 %v11537_v20, %v523_v38  ;;  %v529_v22 = vand.u32 2147483647, %v11531_v40 }
 0x2ae   :  { %10602 = vrcp.f32 %v459_v16  ;;  %vm482_vm9 = vmor %vm480_vm7, %vm481_vm6  ;;  %v516_v38 = vand.u32 2147483648, %v459_v16  ;;  %vm510_vm15 = vweird.f32 %v459_v16 }
 0x2af   :  { %v477_v18 = vsub.f32 1.0, %v476_v13  ;;  %v487_v13 = vor.u32 1.1754944e-38, %v486_v9  ;;  %v528_v14 = vsel %vm11565_vm12, %v11537_v20, %v524_v24  ;;  %vm530_vm14 = vcmp.eq.f32.partialorder %v529_v22, 8.507059e+37 }
 0x2b0   :  { %v561_v24 = vand.u32 2147483648, %v11547_v48  ;;  %v559_v22 = vand.u32 2147483647, %v11547_v48 }
 0x2b1   :  { %v478_v28 = vmul.f32 %v10599_v41, %v477_v18 }
 0x2b2   :  { %v11551_v12 = vpop.eup %10600  ;;  %1471 = vrot.lane.b32.xlu1 %v11357_v53, %s11174_s3  ;;  %vm560_vm8 = vcmp.eq.f32.partialorder %v559_v22, 8.507059e+37 }
 0x2b3   :  { %v479_v25 = vadd.f32 %v10599_v41, %v478_v28  ;;  %v551_v56 = vmul.f32 %v11551_v12, %v11547_v48  ;;  %vm556_vm4 = vweird.f32 %v11551_v12  ;;  %v842_v48 = vpop.permute.xlu1 %841 }
 0x2b4   :  { %v10603_v44 = vpop.eup %10602  ;;  %vm11583_vm6 = vmor %vm555_vm5, %vm556_vm4 }
 0x2b5   :  { %v483_v18 = vsel %vm482_vm9, %v10599_v41, %v479_v25  ;;  %v552_v10 = vsub.f32 1.0, %v551_v56  ;;  %v506_v2 = vmul.f32 %v10603_v44, %v459_v16  ;;  %v465_v4 = vpop.xlane.xlu2 %464  ;;  %v514_v41 = vand.u32 2147483647, %v459_v16 }
 0x2b6   :  { %10604 = vrcp.f32 %v465_v4  ;;  %v488_v0 = vsel %vm485_vm10, %v487_v13, %v483_v18  ;;  %vm511_vm13 = vweird.f32 %v10603_v44  ;;  %v532_v56 = vor.u32 1.1754944e-38, %v531_v17 }
 0x2b7   :  { %v507_v28 = vsub.f32 1.0, %v506_v2  ;;  %v489_v25 = vmul.f32 %v11467_v26, %v488_v0  ;;  %v553_v40 = vmul.f32 %v11551_v12, %v552_v10  ;;  %vm512_vm2 = vmor %vm510_vm15, %vm511_vm13  ;;  %vm515_vm3 = vcmp.eq.f32.partialorder %v514_v41, 8.507059e+37 }
 0x2b8   :  { %v517_v0 = vor.u32 1.1754944e-38, %v516_v38  ;;  %v533_v26 = vsel %vm530_vm14, %v532_v56, %v528_v14  ;;  %v546_v9 = vand.u32 2147483648, %v465_v4  ;;  %v562_v14 = vor.u32 1.1754944e-38, %v561_v24 }
 0x2b9   :  { %v508_v2 = vmul.f32 %v10603_v44, %v507_v28  ;;  %10002 = vmatmul.msk.f32.vlgmr.msra.gmra.mxu3 %vm173_vm1, %v489_v25  ;;  %v554_v20 = vadd.f32 %v11551_v12, %v553_v40  ;;  %v534_v41 = vmul.f32 %v11463_v3, %v533_v26  ;;  %v544_v25 = vand.u32 2147483647, %v465_v4 }
 0x2ba   :  { %1585 = vrot.lane.b32.xlu1 %v11322_v37, %s11173_s28  ;;  %779 = vmatpush.msra.mxu3 %v10391_v1  ;;  %vm540_vm9 = vweird.f32 %v465_v4  ;;  %v547_v3 = vor.u32 1.1754944e-38, %v546_v9 }
 0x2bb   :  { %v509_v58 = vadd.f32 %v10603_v44, %v508_v2  ;;  %vm545_vm11 = vcmp.eq.f32.partialorder %v544_v25, 8.507059e+37 }
 0x2bc   :  { %v10605_v13 = vpop.eup %10604 }
 0x2bd   :  { %v513_v10 = vsel %vm512_vm2, %v10603_v44, %v509_v58  ;;  %v536_v17 = vmul.f32 %v10605_v13, %v465_v4  ;;  %v558_v44 = vsel %vm11583_vm6, %v11551_v12, %v554_v20  ;;  %vm541_vm7 = vweird.f32 %v10605_v13 }
 0x2be   :  { %v518_v18 = vsel %vm515_vm3, %v517_v0, %v513_v10  ;;  %vm542_vm10 = vmor %vm540_vm9, %vm541_vm7  ;;  %v563_v12 = vsel %vm560_vm8, %v562_v14, %v558_v44 }
 0x2bf   :  { %v537_v16 = vsub.f32 1.0, %v536_v17  ;;  %v519_v1 = vmul.f32 %v11472_v7, %v518_v18  ;;  %v564_v58 = vmul.f32 %v11474_v34, %v563_v12 }
 0x2c1   :  { %v538_v38 = vmul.f32 %v10605_v13, %v537_v16  ;;  %10004 = vmatmul.msk.f32.vlgmr.msra.gmra.mxu2 %vm173_vm1, %v519_v1  ;;  %10005 = vmatmul.msk.f32.vlgmr.msrb.gmra.mxu3 %vm173_vm1, %v534_v41 }
 0x2c2   :  { %10010 = vmatpush.xpose.msk.msra.mxu2 %vm173_vm1, %v11453_v52  ;;  %10012 = vmatpush.xpose.msk.msrb.mxu3 %vm173_vm1, %v842_v48  ;;  %v952_v52 = vpop.permute.xlu2 %951 }
 0x2c3   :  { %v539_v7 = vadd.f32 %v10605_v13, %v538_v38 }
 0x2c5   :  { %v543_v40 = vsel %vm542_vm10, %v10605_v13, %v539_v7 }
 0x2c6   :  { %v548_v2 = vsel %vm545_vm11, %v547_v3, %v543_v40 }
 0x2c7   :  { %v549_v56 = vmul.f32 %v11482_v43, %v548_v2 }
 0x2c9   :  { %10006 = vmatmul.msk.f32.vlgmr.msrb.gmra.mxu1 %vm173_vm1, %v549_v56  ;;  %10007 = vmatmul.msk.f32.vlgmr.msrb.gmra.mxu2 %vm173_vm1, %v564_v58 }
 0x2ca   :  { %10014 = vmatpush.xpose.msk.msrb.mxu1 %vm173_vm1, %v11486_v50  ;;  %10016 = vmatpush.xpose.msk.msrb.mxu2 %vm173_vm1, %v11494_v23  ;;  %v924_v10 = vpop.permute.xlu2 %923 }
 0x2d1   :  { %10011 = vmatmul.msk.f32.vlgmr.msra.gmra.mxu2 %vm173_vm1, %v11480_v31 }
 0x2d2   :  { %v10400_v41 = vpop.permute.xlu2 %10399 }
 0x2d3   :  { %v10402_v25 = vunpack.i.h.bf16 %v10400_v41  ;;  %v10401_v56 = vunpack.i.l.bf16 %v10400_v41 }
 0x2d9   :  { %10017 = vmatmul.msk.f32.vlgmr.msrb.gmra.mxu2 %vm173_vm1, %v11529_v54  ;;  %v474_v4 = vpop.xlane.xlu0 %473 }
 0x2da   :  { %10606 = vrcp.f32 %v474_v4  ;;  %v591_v0 = vand.u32 2147483648, %v474_v4  ;;  %v589_v50 = vand.u32 2147483647, %v474_v4  ;;  %vm585_vm13 = vweird.f32 %v474_v4 }
 0x2dc   :  { %v592_v31 = vor.u32 1.1754944e-38, %v591_v0  ;;  %vm590_vm15 = vcmp.eq.f32.partialorder %v589_v50, 8.507059e+37 }
 0x2e0   :  { %v10607_v34 = vpop.eup %10606 }
 0x2e1   :  { %v581_v43 = vmul.f32 %v10607_v34, %v474_v4  ;;  %vm586_vm12 = vweird.f32 %v10607_v34 }
 0x2e2   :  { %vm587_vm14 = vmor %vm585_vm13, %vm586_vm12 }
 0x2e3   :  { %v582_v13 = vsub.f32 1.0, %v581_v43 }
 0x2e4   :  { %v471_v26 = vpop.xlane.xlu1 %470 }
 0x2e5   :  { %v583_v20 = vmul.f32 %v10607_v34, %v582_v13  ;;  %10608 = vrcp.f32 %v471_v26  ;;  %v576_v1 = vand.u32 2147483648, %v471_v26  ;;  %v574_v9 = vand.u32 2147483647, %v471_v26 }
 0x2e6   :  { %vm570_vm3 = vweird.f32 %v471_v26 }
 0x2e7   :  { %v584_v23 = vadd.f32 %v10607_v34, %v583_v20  ;;  %v577_v38 = vor.u32 1.1754944e-38, %v576_v1  ;;  %vm575_vm5 = vcmp.eq.f32.partialorder %v574_v9, 8.507059e+37 }
 0x2e9   :  { %v588_v17 = vsel %vm587_vm14, %v10607_v34, %v584_v23 }
 0x2ea   :  { %v593_v54 = vsel %vm590_vm15, %v592_v31, %v588_v17 }
 0x2eb   :  { %v10609_v24 = vpop.eup %10608  ;;  %v594_v18 = vmul.f32 %v11498_v29, %v593_v54 }
 0x2ec   :  { %v566_v22 = vmul.f32 %v10609_v24, %v471_v26  ;;  %vm571_vm2 = vweird.f32 %v10609_v24  ;;  %v926_v14 = vpop.permute.xlu0 %925 }
 0x2ed   :  { %10009 = vmatmul.msk.f32.vlgmr.msra.gmra.mxu1 %vm173_vm1, %v594_v18  ;;  %vm572_vm4 = vmor %vm570_vm3, %vm571_vm2 }
 0x2ee   :  { %v567_v16 = vsub.f32 1.0, %v566_v22  ;;  %10020 = vmatpush.xpose.msk.msra.mxu1 %vm173_vm1, %v11519_v15 }
 0x2f0   :  { %v568_v28 = vmul.f32 %v10609_v24, %v567_v16 }
 0x2f2   :  { %v569_v44 = vadd.f32 %v10609_v24, %v568_v28 }
 0x2f4   :  { %v573_v48 = vsel %vm572_vm4, %v10609_v24, %v569_v44  ;;  %v1010_v3 = vpop.permute.xlu0 %1009 }
 0x2f5   :  { %10015 = vmatmul.msk.f32.vlgmr.msrb.gmra.mxu1 %vm173_vm1, %v11488_v45  ;;  %v578_v29 = vsel %vm575_vm5, %v577_v38, %v573_v48 }
 0x2f6   :  { %1256 = vmatpush.msrb.mxu1 %v10402_v25  ;;  %v579_v15 = vmul.f32 %v11507_v36, %v578_v29 }
 0x2f8   :  { %10008 = vmatmul.msk.f32.vlgmr.msra.gmra.mxu3 %vm173_vm1, %v579_v15 }
 0x2f9   :  { %10018 = vmatpush.xpose.msk.msra.mxu3 %vm173_vm1, %v926_v14 }
 0x2fc   :  { %v982_v7 = vpop.permute.xlu1 %981 }
 0x2fd   :  { %10021 = vmatmul.msk.f32.vlgmr.msra.gmra.mxu1 %vm173_vm1, %v952_v52  ;;  %10022 = vmatpush.xpose.msk.msra.mxu2 %vm173_vm1, %v982_v7 }
 0x300   :  { %10013 = vmatmul.msk.f32.vlgmr.msrb.gmra.mxu3 %vm173_vm1, %v11490_v60 }
 0x301   :  { %10024 = vmatpush.xpose.msk.msrb.mxu3 %vm173_vm1, %v1010_v3 }
 0x304   :  { %v980_v45 = vpop.permute.xlu1 %979 }
 0x305   :  { %10023 = vmatmul.msk.f32.vlgmr.msra.gmra.mxu2 %vm173_vm1, %v980_v45 }
 0x308   :  { %10019 = vmatmul.msk.f32.vlgmr.msra.gmra.mxu3 %vm173_vm1, %v924_v10 }
 0x30c   :  { %v1008_v36 = vpop.permute.xlu1 %1007 }
 0x310   :  { %10025 = vmatmul.msk.f32.vlgmr.msrb.gmra.mxu3 %vm173_vm1, %v1008_v36 }
 0x314   :  { %v10395_v12 = vpop.permute.xlu1 %10394 }
 0x315   :  { %v10397_v40 = vunpack.i.h.bf16 %v10395_v12  ;;  %v10396_v2 = vunpack.i.l.bf16 %v10395_v12 }
 0x317   :  { %1282 = vmatpush.msrb.mxu2 %v10396_v2  ;;  %1308 = vmatpush.msra.mxu3 %v10397_v40  ;;  %v11656_v2 = vpop.permute.xlu0 %1473 }
 0x319   :  { %1386 = vmatpush.msra.mxu2 %v10401_v56 }
 0x31c   :  { %v10405_v58 = vpop.permute.xlu1 %10404 }
 0x31d   :  { %v10407_v4 = vunpack.i.h.bf16 %v10405_v58  ;;  %v10406_v60 = vunpack.i.l.bf16 %v10405_v58 }
 0x31f   :  { %1360 = vmatpush.msra.mxu1 %v10407_v4  ;;  %1412 = vmatpush.msrb.mxu3 %v10406_v60  ;;  %v11660_v4 = vpop.permute.xlu0 %1501 }
 0x328   :  { %v11630_v26 = vpop.f32.mrf.mxu1 }
 0x33c   :  { %v11634_v50 = vpop.f32.mrf.mxu3 }
 0x344   :  { %v11625_v52 = vpop.f32.mrf.mxu2  ;;  %v11638_v31 = vpop.f32.mrf.mxu3 }
 0x346   :  { %v11632_v20 = vpop.f32.mrf.mxu1 }
 0x34c   :  { %v11627_v34 = vpop.f32.mrf.mxu2 }
 0x354   :  { %v836_v43 = vpop.f32.mrf.mxu2 }
 0x355   :  { %v1035_v13 = vmul.f32 0.35355338, %v836_v43  ;;  %v11666_v43 = vpop.permute.xlu0 %1445 }
 0x357   :  { %v1043_v0 = vsel %vm173_vm1, %v1035_v13, -inf }
 0x358   :  { %1044 = vmax.xlane.f32.xlu2 %v1043_v0 }
 0x35c   :  { %v920_v18 = vpop.f32.mrf.mxu2 }
 0x35d   :  { %v1038_v41 = vmul.f32 0.35355338, %v920_v18 }
 0x35f   :  { %v1052_v48 = vsel %vm173_vm1, %v1038_v41, -inf }
 0x36a   :  { %v11636_v10 = vpop.f32.mrf.mxu1 }
 0x372   :  { %v892_v23 = vpop.f32.mrf.mxu1 }
 0x373   :  { %v1037_v17 = vmul.f32 0.35355338, %v892_v23 }
 0x375   :  { %v1049_v54 = vsel %vm173_vm1, %v1037_v17, -inf }
 0x376   :  { %1050 = vmax.xlane.f32.xlu0 %v1049_v54  ;;  %v11668_v54 = vpop.permute.xlu1 %1471 }
 0x37a   :  { %v976_v14 = vpop.f32.mrf.mxu1 }
 0x37b   :  { %v11641_v24 = vpop.f32.mrf.mxu3  ;;  %v1040_v15 = vmul.f32 0.35355338, %v976_v14 }
 0x37d   :  { %v1058_v7 = vsel %vm173_vm1, %v1040_v15, -inf }
 0x383   :  { %v864_v22 = vpop.f32.mrf.mxu3 }
 0x384   :  { %v1036_v16 = vmul.f32 0.35355338, %v864_v22 }
 0x386   :  { %v1046_v1 = vsel %vm173_vm1, %v1036_v16, -inf }
 0x387   :  { %1047 = vmax.xlane.f32.xlu2 %v1046_v1  ;;  %v11674_v1 = vpop.permute.xlu1 %1585 }
 0x388   :  { %v1004_v28 = vpop.f32.mrf.mxu2 }
 0x389   :  { %v1041_v9 = vmul.f32 0.35355338, %v1004_v28 }
 0x38b   :  { %v948_v44 = vpop.f32.mrf.mxu3  ;;  %v1061_v38 = vsel %vm173_vm1, %v1041_v9, -inf }
 0x38c   :  { %v1039_v25 = vmul.f32 0.35355338, %v948_v44  ;;  %1062 = vmax.xlane.f32.xlu0 %v1061_v38 }
 0x38e   :  { %v1055_v29 = vsel %vm173_vm1, %v1039_v25, -inf }
 0x38f   :  { %1053 = vmax.xlane.f32.xlu2 %v1052_v48  ;;  %1056 = vmax.xlane.f32.xlu1 %v1055_v29 }
 0x393   :  { %v1032_v3 = vpop.f32.mrf.mxu3 }
 0x394   :  { %v11652_v45 = vmul.f32 0.35355338, %v1032_v3 }
 0x396   :  { %v1064_v36 = vsel %vm173_vm1, %v11652_v45, -inf }
 0x397   :  { %1059 = vmax.xlane.f32.xlu1 %v1058_v7 }
 0x3a0   :  { %1583 = vrot.lane.b32.xlu0 %v11367_v57, %s11174_s3 }
 0x3b0   :  { %1499 = vrot.lane.b32.xlu1 %v11352_v51, %s11174_s3 }
 0x3ca   :  { %1065 = vmax.xlane.f32.xlu0 %v1064_v36 }
 0x3cb   :  { %v1045_v12 = vpop.xlane.xlu2 %1044 }
 0x3cc   :  { %v1067_v40 = vsub.f32 %v1035_v13, %v1045_v12 }
 0x3ce   :  { %v1075_v56 = vmul.f32 1.442695, %v1067_v40 }
 0x3d0   :  { %10610 = vpow2.f32 %v1075_v56 }
 0x3d6   :  { %v11658_v58 = vpop.eup %10610 }
 0x3d7   :  { %v1091_v60 = vsel %vm173_vm1, %v11658_v58, 0.0 }
 0x3da   :  { %1092 = vadd.xlane.f32.xlu1 %v1091_v60 }
 0x3de   :  { %1313 = vrot.lane.b32.xlu0 %v11378_v62, %s11172_s27 }
 0x3e9   :  { %v1051_v0 = vpop.xlane.xlu0 %1050 }
 0x3ea   :  { %v1069_v23 = vsub.f32 %v1037_v17, %v1051_v0 }
 0x3ec   :  { %v1079_v13 = vmul.f32 1.442695, %v1069_v23 }
 0x3ee   :  { %10612 = vpow2.f32 %v1079_v13 }
 0x3f4   :  { %v11670_v18 = vpop.eup %10612 }
 0x3f5   :  { %v1097_v22 = vsel %vm173_vm1, %v11670_v18, 0.0 }
 0x3f6   :  { %1098 = vadd.xlane.f32.xlu2 %v1097_v22 }
 0x3fa   :  { %v1048_v28 = vpop.xlane.xlu2 %1047 }
 0x3fb   :  { %v1068_v44 = vsub.f32 %v1036_v16, %v1048_v28 }
 0x3fd   :  { %v1077_v38 = vmul.f32 1.442695, %v1068_v44 }
 0x3ff   :  { %10614 = vpow2.f32 %v1077_v38  ;;  %v1063_v48 = vpop.xlane.xlu0 %1062 }
 0x400   :  { %v1073_v29 = vsub.f32 %v1041_v9, %v1063_v48 }
 0x402   :  { %v1087_v14 = vmul.f32 1.442695, %v1073_v29  ;;  %v1054_v17 = vpop.xlane.xlu2 %1053  ;;  %v1057_v7 = vpop.xlane.xlu1 %1056 }
 0x403   :  { %v1070_v3 = vsub.f32 %v1038_v41, %v1054_v17  ;;  %v1071_v40 = vsub.f32 %v1039_v25, %v1057_v7  ;;  %v10413_v7 = vpack.i.bf16 %v11387_v8, %v11376_v61 }
 0x404   :  { %10616 = vpow2.f32 %v1087_v14 }
 0x405   :  { %v11676_v36 = vpop.eup %10614  ;;  %v1081_v12 = vmul.f32 1.442695, %v1070_v3  ;;  %v1083_v60 = vmul.f32 1.442695, %v1071_v40 }
 0x406   :  { %v1094_v56 = vsel %vm173_vm1, %v11676_v36, 0.0 }
 0x407   :  { %10618 = vpow2.f32 %v1081_v12  ;;  %1095 = vadd.xlane.f32.xlu1 %v1094_v56 }
 0x408   :  { %10620 = vpow2.f32 %v1083_v60 }
 0x40a   :  { %v11680_v16 = vpop.eup %10616  ;;  %v1060_v0 = vpop.xlane.xlu1 %1059 }
 0x40b   :  { %v1109_v9 = vsel %vm173_vm1, %v11680_v16, 0.0  ;;  %v1072_v41 = vsub.f32 %v1040_v15, %v1060_v0 }
 0x40c   :  { %1110 = vadd.xlane.f32.xlu2 %v1109_v9 }
 0x40d   :  { %v11684_v23 = vpop.eup %10618  ;;  %v1085_v13 = vmul.f32 1.442695, %v1072_v41 }
 0x40e   :  { %v1100_v25 = vsel %vm173_vm1, %v11684_v23, 0.0  ;;  %v11688_v22 = vpop.eup %10620 }
 0x40f   :  { %1101 = vadd.xlane.f32.xlu0 %v1100_v25  ;;  %10622 = vpow2.f32 %v1085_v13  ;;  %v1103_v28 = vsel %vm173_vm1, %v11688_v22, 0.0 }
 0x412   :  { %v11706_v15 = vpop.permute.xlu0 %1583 }
 0x415   :  { %v11692_v44 = vpop.eup %10622 }
 0x416   :  { %v1106_v38 = vsel %vm173_vm1, %v11692_v44, 0.0 }
 0x417   :  { %1104 = vadd.xlane.f32.xlu0 %v1103_v28 }
 0x41f   :  { %1107 = vadd.xlane.f32.xlu0 %v1106_v38 }
 0x420   :  { %1443 = vrot.lane.b32.xlu1 %v11338_v46, %s11174_s3 }
 0x422   :  { %v11717_v17 = vpop.permute.xlu1 %1499 }
 0x424   :  { %1557 = vrot.lane.b32.xlu2 %v11318_v35, %s11173_s28 }
 0x428   :  { %1613 = vrot.lane.b32.xlu1 %v11326_v39, %s11173_s28 }
 0x430   :  { %1555 = vrot.lane.b32.xlu1 %v11347_v49, %s11174_s3 }
 0x433   :  { %1611 = vrot.lane.b32.xlu0 %v11372_v59, %s11174_s3 }
 0x438   :  { %1529 = vrot.lane.b32.xlu1 %v11312_v33, %s11173_s28 }
 0x43b   :  { %1417 = vrot.lane.b32.xlu0 %v11408_v21, %s11172_s27 }
 0x43d   :  { %v1066_v48 = vpop.xlane.xlu0 %1065 }
 0x43e   :  { %v1074_v29 = vsub.f32 %v11652_v45, %v1066_v48  ;;  %v10418_v45 = vpack.i.bf16 %v11406_v19, %v11385_v6 }
 0x440   :  { %v1089_v14 = vmul.f32 1.442695, %v1074_v29  ;;  %1641 = vrot.lane.b32.xlu1 %v11330_v42, %s11173_s28  ;;  %v14914_v29 = vpack.i.bf16 %v11381_v63, %v11383_v5 }
 0x442   :  { %10624 = vpow2.f32 %v1089_v14 }
 0x443   :  { %1527 = vrot.lane.b32.xlu0 %v11340_v47, %s11174_s3 }
 0x448   :  { %10414 = vrot.lane.b32.xlu1 %v10413_v7, %s11175_s29  ;;  %v11722_v3 = vpop.eup %10624 }
 0x449   :  { %v1112_v12 = vsel %vm173_vm1, %v11722_v3, 0.0 }
 0x44b   :  { %10419 = vrot.lane.b32.xlu0 %v10418_v45, %s11175_s29 }
 0x44d   :  { %v1093_v40 = vpop.xlane.xlu1 %1092  ;;  %1113 = vadd.xlane.f32.xlu2 %v1112_v12 }
 0x44e   :  { %10626 = vrcp.f32 %v1093_v40  ;;  %v1126_v9 = vand.u32 2147483648, %v1093_v40  ;;  %v1124_v6 = vand.u32 2147483647, %v1093_v40  ;;  %vm1120_vm7 = vweird.f32 %v1093_v40 }
 0x450   :  { %2103 = vrot.lane.b32.xlu1 %v11357_v53, %s11176_s30  ;;  %v1314_v8 = vpop.permute.xlu0 %1313  ;;  %v1127_v13 = vor.u32 1.1754944e-38, %v1126_v9  ;;  %vm1125_vm9 = vcmp.eq.f32.partialorder %v1124_v6, 8.507059e+37 }
 0x451   :  { %1334 = vmatpush.msrb.mxu0 %v1314_v8 }
 0x454   :  { %v10627_v56 = vpop.eup %10626 }
 0x455   :  { %v1116_v60 = vmul.f32 %v10627_v56, %v1093_v40  ;;  %vm1121_vm6 = vweird.f32 %v10627_v56 }
 0x456   :  { %vm1122_vm8 = vmor %vm1120_vm7, %vm1121_vm6 }
 0x457   :  { %v1117_v0 = vsub.f32 1.0, %v1116_v60 }
 0x459   :  { %v1118_v41 = vmul.f32 %v10627_v56, %v1117_v0 }
 0x45b   :  { %v1119_v25 = vadd.f32 %v10627_v56, %v1118_v41 }
 0x45d   :  { %v1123_v28 = vsel %vm1122_vm8, %v10627_v56, %v1119_v25 }
 0x45e   :  { %v1128_v38 = vsel %vm1125_vm9, %v1127_v13, %v1123_v28 }
 0x45f   :  { %v1129_v48 = vmul.f32 %v11658_v58, %v1128_v38 }
 0x461   :  { %10026 = vmatmul.msk.f32.vlgmr.msrb.gmra.mxu1 %vm173_vm1, %v1129_v48 }
 0x462   :  { %10034 = vmatpush.xpose.msk.msrb.mxu1 %vm173_vm1, %v11666_v43 }
 0x465   :  { %1639 = vrot.lane.b32.xlu2 %v11362_v55, %s11174_s3 }
 0x469   :  { %v1099_v53 = vpop.xlane.xlu2 %1098 }
 0x46a   :  { %10628 = vrcp.f32 %v1099_v53  ;;  %v1156_v12 = vand.u32 2147483648, %v1099_v53  ;;  %v1154_v40 = vand.u32 2147483647, %v1099_v53  ;;  %vm1150_vm11 = vweird.f32 %v1099_v53 }
 0x46c   :  { %v1157_v8 = vor.u32 1.1754944e-38, %v1156_v12  ;;  %vm1155_vm13 = vcmp.eq.f32.partialorder %v1154_v40, 8.507059e+37 }
 0x46d   :  { %10409 = vrot.lane.b32.xlu2 %v14914_v29, %s11175_s29 }
 0x470   :  { %v10629_v14 = vpop.eup %10628 }
 0x471   :  { %v1146_v7 = vmul.f32 %v10629_v14, %v1099_v53  ;;  %vm1151_vm10 = vweird.f32 %v10629_v14 }
 0x472   :  { %vm1152_vm12 = vmor %vm1150_vm11, %vm1151_vm10 }
 0x473   :  { %v1147_v45 = vsub.f32 1.0, %v1146_v7 }
 0x475   :  { %v1148_v58 = vmul.f32 %v10629_v14, %v1147_v45  ;;  %2105 = vrot.lane.b32.xlu2 %v11310_v32, %s11177_s5 }
 0x477   :  { %v1149_v43 = vadd.f32 %v10629_v14, %v1148_v58 }
 0x479   :  { %v1153_v56 = vsel %vm1152_vm12, %v10629_v14, %v1149_v43 }
 0x47a   :  { %v1096_v60 = vpop.xlane.xlu1 %1095  ;;  %v1158_v63 = vsel %vm1155_vm13, %v1157_v8, %v1153_v56 }
 0x47b   :  { %10630 = vrcp.f32 %v1096_v60  ;;  %v1159_v5 = vmul.f32 %v11670_v18, %v1158_v63  ;;  %v1139_v25 = vand.u32 2147483647, %v1096_v60  ;;  %v1141_v38 = vand.u32 2147483648, %v1096_v60 }
 0x47c   :  { %vm1135_vm15 = vweird.f32 %v1096_v60 }
 0x47d   :  { %10028 = vmatmul.msk.f32.vlgmr.msra.gmra.mxu3 %vm173_vm1, %v1159_v5  ;;  %vm1140_vm3 = vcmp.eq.f32.partialorder %v1139_v25, 8.507059e+37  ;;  %v1142_v14 = vor.u32 1.1754944e-38, %v1141_v38 }
 0x47e   :  { %10038 = vmatpush.xpose.msk.msra.mxu3 %vm173_vm1, %v11660_v4 }
 0x47f   :  { %v1111_v0 = vpop.xlane.xlu2 %1110 }
 0x480   :  { %10632 = vrcp.f32 %v1111_v0  ;;  %v1216_v7 = vand.u32 2147483648, %v1111_v0  ;;  %v1214_v40 = vand.u32 2147483647, %v1111_v0  ;;  %vm1210_vm5 = vweird.f32 %v1111_v0 }
 0x481   :  { %v10631_v9 = vpop.eup %10630 }
 0x482   :  { %v1131_v32 = vmul.f32 %v10631_v9, %v1096_v60  ;;  %v1102_v41 = vpop.xlane.xlu0 %1101  ;;  %vm1136_vm14 = vweird.f32 %v10631_v9  ;;  %v1217_v60 = vor.u32 1.1754944e-38, %v1216_v7  ;;  %vm1215_vm8 = vcmp.eq.f32.partialorder %v1214_v40, 8.507059e+37 }
 0x483   :  { %10634 = vrcp.f32 %v1102_v41  ;;  %vm1137_vm2 = vmor %vm1135_vm15, %vm1136_vm14  ;;  %vm1165_vm9 = vweird.f32 %v1102_v41 }
 0x484   :  { %v1132_v6 = vsub.f32 1.0, %v1131_v32  ;;  %v1171_v32 = vand.u32 2147483648, %v1102_v41 }
 0x486   :  { %v10633_v13 = vpop.eup %10632  ;;  %v1133_v28 = vmul.f32 %v10631_v9, %v1132_v6  ;;  %v1169_v6 = vand.u32 2147483647, %v1102_v41 }
 0x487   :  { %v1206_v48 = vmul.f32 %v10633_v13, %v1111_v0  ;;  %vm1211_vm4 = vweird.f32 %v10633_v13 }
 0x488   :  { %v1134_v53 = vadd.f32 %v10631_v9, %v1133_v28  ;;  %vm1212_vm6 = vmor %vm1210_vm5, %vm1211_vm4  ;;  %vm1170_vm11 = vcmp.eq.f32.partialorder %v1169_v6, 8.507059e+37 }
 0x489   :  { %v10635_v18 = vpop.eup %10634  ;;  %v1207_v29 = vsub.f32 1.0, %v1206_v48  ;;  %v1172_v48 = vor.u32 1.1754944e-38, %v1171_v32 }
 0x48a   :  { %v1138_v4 = vsel %vm1137_vm2, %v10631_v9, %v1134_v53  ;;  %v1161_v45 = vmul.f32 %v10635_v18, %v1102_v41  ;;  %v1105_v12 = vpop.xlane.xlu0 %1104  ;;  %vm1166_vm7 = vweird.f32 %v10635_v18 }
 0x48b   :  { %v1208_v58 = vmul.f32 %v10633_v13, %v1207_v29  ;;  %10636 = vrcp.f32 %v1105_v12  ;;  %v1143_v8 = vsel %vm1140_vm3, %v1142_v14, %v1138_v4  ;;  %vm1167_vm10 = vmor %vm1165_vm9, %vm1166_vm7  ;;  %v1186_v41 = vand.u32 2147483648, %v1105_v12 }
 0x48c   :  { %v1162_v43 = vsub.f32 1.0, %v1161_v45  ;;  %v1144_v63 = vmul.f32 %v11676_v36, %v1143_v8  ;;  %v1184_v45 = vand.u32 2147483647, %v1105_v12  ;;  %vm1180_vm13 = vweird.f32 %v1105_v12 }
 0x48d   :  { %v1209_v56 = vadd.f32 %v10633_v13, %v1208_v58  ;;  %v1187_v58 = vor.u32 1.1754944e-38, %v1186_v41 }
 0x48e   :  { %v1163_v5 = vmul.f32 %v10635_v18, %v1162_v43  ;;  %10027 = vmatmul.msk.f32.vlgmr.msrb.gmra.mxu2 %vm173_vm1, %v1144_v63  ;;  %vm1185_vm15 = vcmp.eq.f32.partialorder %v1184_v45, 8.507059e+37 }
 0x48f   :  { %v1213_v9 = vsel %vm1212_vm6, %v10633_v13, %v1209_v56  ;;  %10036 = vmatpush.xpose.msk.msrb.mxu2 %vm173_vm1, %v11656_v2 }
 0x490   :  { %v1164_v25 = vadd.f32 %v10635_v18, %v1163_v5  ;;  %v1218_v28 = vsel %vm1215_vm8, %v1217_v60, %v1213_v9  ;;  %v1558_v5 = vpop.permute.xlu2 %1557 }
 0x491   :  { %v10637_v38 = vpop.eup %10636  ;;  %v1219_v36 = vmul.f32 %v11680_v16, %v1218_v28 }
 0x492   :  { %v1168_v0 = vsel %vm1167_vm10, %v10635_v18, %v1164_v25  ;;  %v1176_v53 = vmul.f32 %v10637_v38, %v1105_v12  ;;  %v1444_v29 = vpop.permute.xlu1 %1443  ;;  %v1108_v4 = vpop.xlane.xlu0 %1107  ;;  %vm1181_vm12 = vweird.f32 %v10637_v38 }
 0x493   :  { %10638 = vrcp.f32 %v1108_v4  ;;  %10032 = vmatmul.msk.f32.vlgmr.msrb.gmra.mxu3 %vm173_vm1, %v1219_v36  ;;  %v1173_v14 = vsel %vm1170_vm11, %v1172_v48, %v1168_v0  ;;  %vm1182_vm14 = vmor %vm1180_vm13, %vm1181_vm12  ;;  %v1201_v60 = vand.u32 2147483648, %v1108_v4  ;;  %v1199_v12 = vand.u32 2147483647, %v1108_v4 }
 0x494   :  { %v1177_v13 = vsub.f32 1.0, %v1176_v53  ;;  %v1174_v7 = vmul.f32 %v11684_v23, %v1173_v14  ;;  %vm1195_vm3 = vweird.f32 %v1108_v4 }
 0x495   :  { %v1202_v6 = vor.u32 1.1754944e-38, %v1201_v60  ;;  %vm1200_vm5 = vcmp.eq.f32.partialorder %v1199_v12, 8.507059e+37 }
 0x496   :  { %v1178_v2 = vmul.f32 %v10637_v38, %v1177_v13  ;;  %10029 = vmatmul.msk.f32.vlgmr.msrb.gmra.mxu0 %vm173_vm1, %v1174_v7 }
 0x498   :  { %v1179_v16 = vadd.f32 %v10637_v38, %v1178_v2 }
 0x499   :  { %v10639_v18 = vpop.eup %10638 }
 0x49a   :  { %v1183_v40 = vsel %vm1182_vm14, %v10637_v38, %v1179_v16  ;;  %v1191_v43 = vmul.f32 %v10639_v18, %v1108_v4  ;;  %v1614_v8 = vpop.permute.xlu1 %1613  ;;  %vm1196_vm2 = vweird.f32 %v10639_v18 }
 0x49b   :  { %10039 = vmatmul.msk.f32.vlgmr.msra.gmra.mxu3 %vm173_vm1, %v11717_v17  ;;  %v1188_v56 = vsel %vm1185_vm15, %v1187_v58, %v1183_v40  ;;  %vm1197_vm4 = vmor %vm1195_vm3, %vm1196_vm2 }
 0x49c   :  { %v1192_v63 = vsub.f32 1.0, %v1191_v43  ;;  %10046 = vmatpush.xpose.msk.msrb.mxu3 %vm173_vm1, %v1614_v8  ;;  %v1189_v23 = vmul.f32 %v11688_v22, %v1188_v56 }
 0x49e   :  { %v1193_v32 = vmul.f32 %v10639_v18, %v1192_v63  ;;  %10030 = vmatmul.msk.f32.vlgmr.msra.gmra.mxu1 %vm173_vm1, %v1189_v23 }
 0x49f   :  { %10042 = vmatpush.xpose.msk.msra.mxu1 %vm173_vm1, %v1558_v5 }
 0x4a0   :  { %v1194_v9 = vadd.f32 %v10639_v18, %v1193_v32 }
 0x4a2   :  { %v1198_v17 = vsel %vm1197_vm4, %v10639_v18, %v1194_v9  ;;  %v1556_v25 = vpop.permute.xlu1 %1555 }
 0x4a3   :  { %v1203_v28 = vsel %vm1200_vm5, %v1202_v6, %v1198_v17 }
 0x4a4   :  { %v1204_v38 = vmul.f32 %v11692_v44, %v1203_v28 }
 0x4a5   :  { %v1612_v22 = vpop.permute.xlu0 %1611 }
 0x4a6   :  { %10031 = vmatmul.msk.f32.vlgmr.msra.gmra.mxu2 %vm173_vm1, %v1204_v38  ;;  %10035 = vmatmul.msk.f32.vlgmr.msrb.gmra.mxu1 %vm173_vm1, %v1444_v29 }
 0x4a7   :  { %10044 = vmatpush.xpose.msk.msra.mxu2 %vm173_vm1, %v11674_v1  ;;  %10047 = vmatmul.msk.f32.vlgmr.msrb.gmra.mxu3 %vm173_vm1, %v1612_v22 }
 0x4aa   :  { %v1530_v36 = vpop.permute.xlu1 %1529 }
 0x4ad   :  { %v1418_v0 = vpop.permute.xlu0 %1417 }
 0x4ae   :  { %1438 = vmatpush.msra.mxu0 %v1418_v0  ;;  %10037 = vmatmul.msk.f32.vlgmr.msrb.gmra.mxu2 %vm173_vm1, %v11668_v54 }
 0x4af   :  { %10043 = vmatmul.msk.f32.vlgmr.msra.gmra.mxu1 %vm173_vm1, %v1556_v25 }
 0x4b0   :  { %10040 = vmatpush.xpose.msk.msrb.mxu0 %vm173_vm1, %v1530_v36 }
 0x4b2   :  { %v1642_v44 = vpop.permute.xlu1 %1641 }
 0x4b5   :  { %v1528_v48 = vpop.permute.xlu0 %1527 }
 0x4b6   :  { %10045 = vmatmul.msk.f32.vlgmr.msra.gmra.mxu2 %vm173_vm1, %v11706_v15 }
 0x4ba   :  { %v10415_v53 = vpop.permute.xlu1 %10414 }
 0x4bb   :  { %v10416_v29 = vunpack.i.l.bf16 %v10415_v53  ;;  %v10417_v60 = vunpack.i.h.bf16 %v10415_v53 }
 0x4bd   :  { %1940 = vmatpush.msra.mxu3 %v10416_v29  ;;  %v10420_v1 = vpop.permute.xlu0 %10419 }
 0x4be   :  { %v10422_v4 = vunpack.i.h.bf16 %v10420_v1  ;;  %v10421_v63 = vunpack.i.l.bf16 %v10420_v1 }
 0x4c0   :  { %v1114_v13 = vpop.xlane.xlu2 %1113  ;;  %2044 = vmatpush.msrb.mxu3 %v10422_v4 }
 0x4c1   :  { %10640 = vrcp.f32 %v1114_v13  ;;  %v1231_v2 = vand.u32 2147483648, %v1114_v13  ;;  %v1229_v16 = vand.u32 2147483647, %v1114_v13  ;;  %vm1225_vm7 = vweird.f32 %v1114_v13 }
 0x4c3   :  { %v1232_v15 = vor.u32 1.1754944e-38, %v1231_v2  ;;  %vm1230_vm9 = vcmp.eq.f32.partialorder %v1229_v16, 8.507059e+37 }
 0x4c7   :  { %v10641_v14 = vpop.eup %10640 }
 0x4c8   :  { %v1221_v41 = vmul.f32 %v10641_v14, %v1114_v13  ;;  %v1640_v54 = vpop.permute.xlu2 %1639  ;;  %vm1226_vm6 = vweird.f32 %v10641_v14 }
 0x4c9   :  { %vm1227_vm8 = vmor %vm1225_vm7, %vm1226_vm6 }
 0x4ca   :  { %v1222_v7 = vsub.f32 1.0, %v1221_v41 }
 0x4cc   :  { %v1223_v45 = vmul.f32 %v10641_v14, %v1222_v7 }
 0x4ce   :  { %v1224_v18 = vadd.f32 %v10641_v14, %v1223_v45 }
 0x4d0   :  { %v1228_v58 = vsel %vm1227_vm8, %v10641_v14, %v1224_v18  ;;  %v10410_v40 = vpop.permute.xlu2 %10409 }
 0x4d1   :  { %v10412_v43 = vunpack.i.h.bf16 %v10410_v40  ;;  %v10411_v8 = vunpack.i.l.bf16 %v10410_v40  ;;  %v1233_v56 = vsel %vm1230_vm9, %v1232_v15, %v1228_v58 }
 0x4d2   :  { %v1234_v23 = vmul.f32 %v11722_v3, %v1233_v56 }
 0x4d3   :  { %1888 = vmatpush.msrb.mxu1 %v10412_v43  ;;  %1914 = vmatpush.msrb.mxu2 %v10411_v8  ;;  %v11813_v8 = vpop.permute.xlu1 %2103 }
 0x4d4   :  { %10033 = vmatmul.msk.f32.vlgmr.msra.gmra.mxu0 %vm173_vm1, %v1234_v23 }
 0x4d5   :  { %1992 = vmatpush.msra.mxu1 %v10421_v63  ;;  %10048 = vmatpush.xpose.msk.msra.mxu0 %vm173_vm1, %v1642_v44 }
 0x4d6   :  { %2018 = vmatpush.msra.mxu2 %v10417_v60 }
 0x4d8   :  { %v11811_v43 = vpop.permute.xlu2 %2105 }
 0x4dc   :  { %10041 = vmatmul.msk.f32.vlgmr.msrb.gmra.mxu0 %vm173_vm1, %v1528_v48 }
 0x4de   :  { %v11780_v32 = vpop.f32.mrf.mxu1 }
 0x4e4   :  { %10049 = vmatmul.msk.f32.vlgmr.msra.gmra.mxu0 %vm173_vm1, %v1640_v54 }
 0x500   :  { %v11778_v5 = vpop.f32.mrf.mxu3 }
 0x511   :  { %v11795_v29 = vpop.f32.mrf.mxu2 }
 0x513   :  { %v11797_v1 = vpop.f32.mrf.mxu0 }
 0x516   :  { %v11782_v12 = vpop.f32.mrf.mxu3 }
 0x51b   :  { %v11784_v3 = vpop.f32.mrf.mxu1 }
 0x51e   :  { %v1524_v9 = vpop.f32.mrf.mxu3 }
 0x51f   :  { %v1669_v6 = vmul.f32 0.35355338, %v1524_v9 }
 0x521   :  { %v1681_v17 = vsel %vm173_vm1, %v1669_v6, -inf }
 0x522   :  { %1682 = vmax.xlane.f32.xlu2 %v1681_v17 }
 0x523   :  { %v1468_v25 = vpop.f32.mrf.mxu1 }
 0x524   :  { %v1667_v28 = vmul.f32 0.35355338, %v1468_v25 }
 0x526   :  { %v1675_v38 = vsel %vm173_vm1, %v1667_v28, -inf }
 0x527   :  { %1676 = vmax.xlane.f32.xlu1 %v1675_v38 }
 0x529   :  { %v11799_v4 = vpop.f32.mrf.mxu2 }
 0x52a   :  { %v1636_v22 = vpop.f32.mrf.mxu3 }
 0x52b   :  { %v11788_v36 = vmul.f32 0.35355338, %v1636_v22 }
 0x52c   :  { %v1580_v0 = vpop.f32.mrf.mxu1 }
 0x52d   :  { %v1671_v44 = vmul.f32 0.35355338, %v1580_v0  ;;  %v1693_v48 = vsel %vm173_vm1, %v11788_v36, -inf }
 0x52e   :  { %1694 = vmax.xlane.f32.xlu2 %v1693_v48 }
 0x52f   :  { %v1687_v53 = vsel %vm173_vm1, %v1671_v44, -inf }
 0x530   :  { %1688 = vmax.xlane.f32.xlu1 %v1687_v53 }
 0x531   :  { %v1496_v54 = vpop.f32.mrf.mxu2 }
 0x532   :  { %v1668_v2 = vmul.f32 0.35355338, %v1496_v54 }
 0x534   :  { %v1678_v18 = vsel %vm173_vm1, %v1668_v2, -inf }
 0x539   :  { %v1608_v15 = vpop.f32.mrf.mxu2 }
 0x53a   :  { %v1672_v58 = vmul.f32 0.35355338, %v1608_v15 }
 0x53c   :  { %v1690_v40 = vsel %vm173_vm1, %v1672_v58, -inf }
 0x546   :  { %2077 = vrot.lane.b32.xlu2 %v11302_v27, %s11177_s5 }
 0x551   :  { %v11801_v13 = vpop.f32.mrf.mxu0 }
 0x559   :  { %v1552_v14 = vpop.f32.mrf.mxu0 }
 0x55a   :  { %v1670_v41 = vmul.f32 0.35355338, %v1552_v14 }
 0x55c   :  { %v1684_v7 = vsel %vm173_vm1, %v1670_v41, -inf }
 0x55d   :  { %1685 = vmax.xlane.f32.xlu0 %v1684_v7 }
 0x561   :  { %v1664_v45 = vpop.f32.mrf.mxu0 }
 0x562   :  { %v1674_v16 = vmul.f32 0.35355338, %v1664_v45 }
 0x564   :  { %v1696_v27 = vsel %vm173_vm1, %v1674_v16, -inf }
 0x565   :  { %1679 = vmax.xlane.f32.xlu0 %v1678_v18  ;;  %1697 = vmax.xlane.f32.xlu1 %v1696_v27 }
 0x56d   :  { %1691 = vmax.xlane.f32.xlu0 %v1690_v40 }
 0x57e   :  { %1945 = vrot.lane.b32.xlu1 %v11378_v62, %s11175_s29 }
 0x581   :  { %2075 = vrot.lane.b32.xlu0 %v11338_v46, %s11176_s30 }
 0x595   :  { %v1683_v56 = vpop.xlane.xlu2 %1682 }
 0x596   :  { %v1701_v63 = vsub.f32 %v1669_v6, %v1683_v56 }
 0x598   :  { %v1711_v23 = vmul.f32 1.442695, %v1701_v63 }
 0x59a   :  { %v1677_v60 = vpop.xlane.xlu1 %1676  ;;  %10642 = vpow2.f32 %v1711_v23 }
 0x59b   :  { %v1699_v9 = vsub.f32 %v1667_v28, %v1677_v60 }
 0x59d   :  { %v1707_v17 = vmul.f32 1.442695, %v1699_v9 }
 0x59f   :  { %10644 = vpow2.f32 %v1707_v17 }
 0x5a0   :  { %v11815_v38 = vpop.eup %10642 }
 0x5a1   :  { %v1729_v46 = vsel %vm173_vm1, %v11815_v38, 0.0  ;;  %v1695_v7 = vpop.xlane.xlu2 %1694 }
 0x5a2   :  { %v1705_v27 = vsub.f32 %v11788_v36, %v1695_v7 }
 0x5a3   :  { %v1689_v25 = vpop.xlane.xlu1 %1688 }
 0x5a4   :  { %v1703_v22 = vsub.f32 %v1671_v44, %v1689_v25  ;;  %v1719_v9 = vmul.f32 1.442695, %v1705_v27 }
 0x5a5   :  { %v11817_v48 = vpop.eup %10644 }
 0x5a6   :  { %v1715_v0 = vmul.f32 1.442695, %v1703_v22  ;;  %v1723_v6 = vsel %vm173_vm1, %v11817_v48, 0.0 }
 0x5a8   :  { %1730 = vadd.xlane.f32.xlu1 %v1729_v46  ;;  %10646 = vpow2.f32 %v1715_v0 }
 0x5ab   :  { %1724 = vadd.xlane.f32.xlu0 %v1723_v6 }
 0x5ae   :  { %v11823_v28 = vpop.eup %10646 }
 0x5af   :  { %v1735_v53 = vsel %vm173_vm1, %v11823_v28, 0.0 }
 0x5b3   :  { %1736 = vadd.xlane.f32.xlu0 %v1735_v53 }
 0x5c1   :  { %2049 = vrot.lane.b32.xlu1 %v11408_v21, %s11175_s29 }
 0x5d0   :  { %v1686_v44 = vpop.xlane.xlu0 %1685 }
 0x5d1   :  { %v1702_v14 = vsub.f32 %v1670_v41, %v1686_v44 }
 0x5d3   :  { %v1713_v54 = vmul.f32 1.442695, %v1702_v14 }
 0x5d5   :  { %10648 = vpow2.f32 %v1713_v54 }
 0x5d8   :  { %v1698_v45 = vpop.xlane.xlu1 %1697  ;;  %v1680_v18 = vpop.xlane.xlu0 %1679 }
 0x5d9   :  { %v1706_v15 = vsub.f32 %v1674_v16, %v1698_v45  ;;  %v1700_v40 = vsub.f32 %v1668_v2, %v1680_v18 }
 0x5db   :  { %v11830_v56 = vpop.eup %10648  ;;  %v1721_v63 = vmul.f32 1.442695, %v1706_v15  ;;  %v1709_v23 = vmul.f32 1.442695, %v1700_v40 }
 0x5dc   :  { %v1732_v60 = vsel %vm173_vm1, %v11830_v56, 0.0 }
 0x5dd   :  { %10650 = vpow2.f32 %v1721_v63  ;;  %1733 = vadd.xlane.f32.xlu0 %v1732_v60 }
 0x5de   :  { %10652 = vpow2.f32 %v1709_v23 }
 0x5df   :  { %10654 = vpow2.f32 %v1719_v9 }
 0x5e0   :  { %v1692_v41 = vpop.xlane.xlu0 %1691 }
 0x5e1   :  { %v1704_v17 = vsub.f32 %v1672_v58, %v1692_v41 }
 0x5e3   :  { %v11834_v25 = vpop.eup %10650  ;;  %v1717_v22 = vmul.f32 1.442695, %v1704_v17 }
 0x5e4   :  { %v11836_v36 = vpop.eup %10652  ;;  %v1744_v2 = vsel %vm173_vm1, %v11834_v25, 0.0 }
 0x5e5   :  { %10656 = vpow2.f32 %v1717_v22  ;;  %1745 = vadd.xlane.f32.xlu0 %v1744_v2  ;;  %v1726_v16 = vsel %vm173_vm1, %v11836_v36, 0.0  ;;  %v11842_v0 = vpop.eup %10654 }
 0x5e6   :  { %1727 = vadd.xlane.f32.xlu2 %v1726_v16  ;;  %v1741_v46 = vsel %vm173_vm1, %v11842_v0, 0.0 }
 0x5eb   :  { %v11846_v58 = vpop.eup %10656  ;;  %1742 = vadd.xlane.f32.xlu1 %v1741_v46  ;;  %v2078_v46 = vpop.permute.xlu2 %2077 }
 0x5ec   :  { %v1738_v6 = vsel %vm173_vm1, %v11846_v58, 0.0 }
 0x5ee   :  { %1739 = vadd.xlane.f32.xlu2 %v1738_v6 }
 0x5f0   :  { %v1946_v53 = vpop.permute.xlu1 %1945 }
 0x5f1   :  { %1966 = vmatpush.msrb.mxu0 %v1946_v53 }
 0x5f9   :  { %2131 = vrot.lane.b32.xlu0 %v11352_v51, %s11176_s30 }
 0x601   :  { %2159 = vrot.lane.b32.xlu0 %v11340_v47, %s11176_s30  ;;  %v2076_v47 = vpop.permute.xlu0 %2075 }
 0x604   :  { %2217 = vrot.lane.b32.xlu1 %v11322_v37, %s11177_s5 }
 0x606   :  { %2133 = vrot.lane.b32.xlu2 %v11306_v30, %s11177_s5 }
 0x609   :  { %2189 = vrot.lane.b32.xlu0 %v11318_v35, %s11177_s5 }
 0x60c   :  { %2187 = vrot.lane.b32.xlu1 %v11347_v49, %s11176_s30 }
 0x60e   :  { %2161 = vrot.lane.b32.xlu2 %v11312_v33, %s11177_s5 }
 0x611   :  { %2243 = vrot.lane.b32.xlu0 %v11372_v59, %s11176_s30 }
 0x614   :  { %2273 = vrot.lane.b32.xlu1 %v11330_v42, %s11177_s5 }
 0x616   :  { %2215 = vrot.lane.b32.xlu2 %v11367_v57, %s11176_s30 }
 0x61b   :  { %v1731_v30 = vpop.xlane.xlu1 %1730 }
 0x61c   :  { %10658 = vrcp.f32 %v1731_v30  ;;  %v1788_v44 = vand.u32 2147483648, %v1731_v30  ;;  %v1786_v57 = vand.u32 2147483647, %v1731_v30  ;;  %vm1782_vm11 = vweird.f32 %v1731_v30 }
 0x61e   :  { %2245 = vrot.lane.b32.xlu2 %v11326_v39, %s11177_s5  ;;  %v1725_v35 = vpop.xlane.xlu0 %1724  ;;  %v1789_v45 = vor.u32 1.1754944e-38, %v1788_v44  ;;  %vm1787_vm14 = vcmp.eq.f32.partialorder %v1786_v57, 8.507059e+37 }
 0x61f   :  { %10660 = vrcp.f32 %v1725_v35  ;;  %v1758_v39 = vand.u32 2147483648, %v1725_v35  ;;  %v1756_v27 = vand.u32 2147483647, %v1725_v35  ;;  %vm1752_vm15 = vweird.f32 %v1725_v35 }
 0x621   :  { %v1759_v23 = vor.u32 1.1754944e-38, %v1758_v39  ;;  %vm1757_vm3 = vcmp.eq.f32.partialorder %v1756_v27, 8.507059e+37 }
 0x622   :  { %v10659_v37 = vpop.eup %10658 }
 0x623   :  { %v1778_v49 = vmul.f32 %v10659_v37, %v1731_v30  ;;  %vm1783_vm10 = vweird.f32 %v10659_v37 }
 0x624   :  { %vm1784_vm12 = vmor %vm1782_vm11, %vm1783_vm10 }
 0x625   :  { %v10661_v33 = vpop.eup %10660  ;;  %v1779_v51 = vsub.f32 1.0, %v1778_v49 }
 0x626   :  { %v1748_v59 = vmul.f32 %v10661_v33, %v1725_v35  ;;  %2271 = vrot.lane.b32.xlu2 %v11362_v55, %s11176_s30  ;;  %v1737_v42 = vpop.xlane.xlu0 %1736  ;;  %vm1753_vm13 = vweird.f32 %v10661_v33 }
 0x627   :  { %v1780_v14 = vmul.f32 %v10659_v37, %v1779_v51  ;;  %10662 = vrcp.f32 %v1737_v42  ;;  %vm1754_vm2 = vmor %vm1752_vm15, %vm1753_vm13  ;;  %v1818_v16 = vand.u32 2147483648, %v1737_v42  ;;  %v1816_v53 = vand.u32 2147483647, %v1737_v42 }
 0x628   :  { %v1749_v54 = vsub.f32 1.0, %v1748_v59  ;;  %vm1812_vm5 = vweird.f32 %v1737_v42 }
 0x629   :  { %v1781_v7 = vadd.f32 %v10659_v37, %v1780_v14  ;;  %v1819_v35 = vor.u32 1.1754944e-38, %v1818_v16  ;;  %vm1817_vm7 = vcmp.eq.f32.partialorder %v1816_v53, 8.507059e+37 }
 0x62a   :  { %v1750_v18 = vmul.f32 %v10661_v33, %v1749_v54 }
 0x62b   :  { %v1785_v15 = vsel %vm1784_vm12, %v10659_v37, %v1781_v7 }
 0x62c   :  { %v1751_v40 = vadd.f32 %v10661_v33, %v1750_v18  ;;  %v1790_v63 = vsel %vm1787_vm14, %v1789_v45, %v1785_v15 }
 0x62d   :  { %v10663_v55 = vpop.eup %10662  ;;  %v1791_v60 = vmul.f32 %v11815_v38, %v1790_v63 }
 0x62e   :  { %v1755_v9 = vsel %vm1754_vm2, %v10661_v33, %v1751_v40  ;;  %v1808_v41 = vmul.f32 %v10663_v55, %v1737_v42  ;;  %vm1813_vm4 = vweird.f32 %v10663_v55 }
 0x62f   :  { %10052 = vmatmul.msk.f32.vlgmr.msra.gmra.mxu3 %vm173_vm1, %v1791_v60  ;;  %v1760_v17 = vsel %vm1757_vm3, %v1759_v23, %v1755_v9  ;;  %vm1814_vm6 = vmor %vm1812_vm5, %vm1813_vm4 }
 0x630   :  { %v1809_v22 = vsub.f32 1.0, %v1808_v41  ;;  %v1761_v2 = vmul.f32 %v11817_v48, %v1760_v17 }
 0x632   :  { %v1810_v6 = vmul.f32 %v10663_v55, %v1809_v22  ;;  %10050 = vmatmul.msk.f32.vlgmr.msrb.gmra.mxu1 %vm173_vm1, %v1761_v2 }
 0x633   :  { %10058 = vmatpush.xpose.msk.msrb.mxu1 %vm173_vm1, %v2078_v46  ;;  %v2050_v30 = vpop.permute.xlu1 %2049 }
 0x634   :  { %v1811_v38 = vadd.f32 %v10663_v55, %v1810_v6  ;;  %2070 = vmatpush.msra.mxu0 %v2050_v30 }
 0x636   :  { %v1815_v37 = vsel %vm1814_vm6, %v10663_v55, %v1811_v38 }
 0x637   :  { %v1820_v49 = vsel %vm1817_vm7, %v1819_v35, %v1815_v37 }
 0x638   :  { %v1821_v48 = vmul.f32 %v11823_v28, %v1820_v49 }
 0x63a   :  { %10054 = vmatmul.msk.f32.vlgmr.msra.gmra.mxu1 %vm173_vm1, %v1821_v48 }
 0x642   :  { %10059 = vmatmul.msk.f32.vlgmr.msrb.gmra.mxu1 %vm173_vm1, %v2076_v47 }
 0x650   :  { %v1734_v33 = vpop.xlane.xlu0 %1733 }
 0x651   :  { %10664 = vrcp.f32 %v1734_v33  ;;  %v1803_v54 = vand.u32 2147483648, %v1734_v33  ;;  %vm1797_vm9 = vweird.f32 %v1734_v33  ;;  %v1801_v39 = vand.u32 2147483647, %v1734_v33 }
 0x653   :  { %v1804_v40 = vor.u32 1.1754944e-38, %v1803_v54  ;;  %vm1802_vm11 = vcmp.eq.f32.partialorder %v1801_v39, 8.507059e+37 }
 0x657   :  { %v10665_v51 = vpop.eup %10664 }
 0x658   :  { %v1793_v44 = vmul.f32 %v10665_v51, %v1734_v33  ;;  %v1746_v59 = vpop.xlane.xlu0 %1745  ;;  %vm1798_vm8 = vweird.f32 %v10665_v51 }
 0x659   :  { %v1728_v14 = vpop.xlane.xlu2 %1727  ;;  %10666 = vrcp.f32 %v1746_v59  ;;  %vm11884_vm10 = vmor %vm1797_vm9, %vm1798_vm8  ;;  %v1861_v60 = vand.u32 2147483647, %v1746_v59  ;;  %v1863_v17 = vand.u32 2147483648, %v1746_v59  ;;  %vm1857_vm15 = vweird.f32 %v1746_v59 }
 0x65a   :  { %v1794_v42 = vsub.f32 1.0, %v1793_v44  ;;  %10668 = vrcp.f32 %v1728_v14  ;;  %v1771_v41 = vand.u32 2147483647, %v1728_v14  ;;  %v1773_v2 = vand.u32 2147483648, %v1728_v14 }
 0x65b   :  { %vm1767_vm14 = vweird.f32 %v1728_v14  ;;  %vm1862_vm4 = vcmp.eq.f32.partialorder %v1861_v60, 8.507059e+37  ;;  %v1864_v49 = vor.u32 1.1754944e-38, %v1863_v17 }
 0x65c   :  { %v1795_v57 = vmul.f32 %v10665_v51, %v1794_v42  ;;  %vm11897_vm2 = vcmp.eq.f32.partialorder %v1771_v41, 8.507059e+37 }
 0x65e   :  { %v1796_v7 = vadd.f32 %v10665_v51, %v1795_v57  ;;  %v11882_v28 = vpop.xlane.xlu1 %1742 }
 0x65f   :  { %v10667_v45 = vpop.eup %10666  ;;  %10670 = vrcp.f32 %v11882_v28  ;;  %v1846_v44 = vand.u32 2147483647, %v11882_v28  ;;  %vm1842_vm7 = vweird.f32 %v11882_v28 }
 0x660   :  { %v10669_v18 = vpop.eup %10668  ;;  %v1800_v27 = vsel %vm11884_vm10, %v10665_v51, %v1796_v7  ;;  %v1853_v15 = vmul.f32 %v10667_v45, %v1746_v59  ;;  %vm1858_vm12 = vweird.f32 %v10667_v45 }
 0x661   :  { %v1763_v63 = vmul.f32 %v10669_v18, %v1728_v14  ;;  %v11891_v55 = vpop.xlane.xlu2 %1739  ;;  %v1805_v22 = vsel %vm1802_vm11, %v1804_v40, %v1800_v27  ;;  %vm1768_vm13 = vweird.f32 %v10669_v18  ;;  %vm1859_vm3 = vmor %vm1857_vm15, %vm1858_vm12  ;;  %v1848_v14 = vand.u32 2147483648, %v11882_v28 }
 0x662   :  { %v1854_v23 = vsub.f32 1.0, %v1853_v15  ;;  %10672 = vrcp.f32 %v11891_v55  ;;  %v1806_v46 = vmul.f32 %v11830_v56, %v1805_v22  ;;  %vm1769_vm5 = vmor %vm1767_vm14, %vm1768_vm13  ;;  %v1774_v56 = vor.u32 1.1754944e-38, %v1773_v2 }
 0x663   :  { %v1764_v9 = vsub.f32 1.0, %v1763_v63  ;;  %v1833_v40 = vand.u32 2147483648, %v11891_v55  ;;  %v1849_v63 = vor.u32 1.1754944e-38, %v1848_v14  ;;  %v1831_v60 = vand.u32 2147483647, %v11891_v55 }
 0x664   :  { %v1855_v16 = vmul.f32 %v10667_v45, %v1854_v23  ;;  %10053 = vmatmul.msk.f32.vlgmr.msrb.gmra.mxu0 %vm173_vm1, %v1806_v46  ;;  %vm1847_vm10 = vcmp.eq.f32.partialorder %v1846_v44, 8.507059e+37  ;;  %vm1827_vm11 = vweird.f32 %v11891_v55 }
 0x665   :  { %v10671_v6 = vpop.eup %10670  ;;  %v1765_v53 = vmul.f32 %v10669_v18, %v1764_v9  ;;  %vm1832_vm13 = vcmp.eq.f32.partialorder %v1831_v60, 8.507059e+37 }
 0x666   :  { %v1856_v30 = vadd.f32 %v10667_v45, %v1855_v16  ;;  %v1838_v38 = vmul.f32 %v10671_v6, %v11882_v28  ;;  %vm1843_vm6 = vweird.f32 %v10671_v6  ;;  %v1834_v28 = vor.u32 1.1754944e-38, %v1833_v40 }
 0x667   :  { %v1766_v35 = vadd.f32 %v10669_v18, %v1765_v53  ;;  %vm1844_vm8 = vmor %vm1842_vm7, %vm1843_vm6 }
 0x668   :  { %v10673_v48 = vpop.eup %10672  ;;  %v1860_v33 = vsel %vm1859_vm3, %v10667_v45, %v1856_v30  ;;  %v1839_v51 = vsub.f32 1.0, %v1838_v38 }
 0x669   :  { %v1770_v59 = vsel %vm1769_vm5, %v10669_v18, %v1766_v35  ;;  %v1823_v42 = vmul.f32 %v10673_v48, %v11891_v55  ;;  %v2134_v57 = vpop.permute.xlu2 %2133  ;;  %v1865_v54 = vsel %vm1862_vm4, %v1864_v49, %v1860_v33  ;;  %vm1828_vm9 = vweird.f32 %v10673_v48 }
 0x66a   :  { %v1840_v7 = vmul.f32 %v10671_v6, %v1839_v51  ;;  %10062 = vmatpush.xpose.msk.msra.mxu3 %vm173_vm1, %v2134_v57  ;;  %v1775_v39 = vsel %vm11897_vm2, %v1774_v56, %v1770_v59  ;;  %v1866_v47 = vmul.f32 %v11834_v25, %v1865_v54  ;;  %vm1829_vm12 = vmor %vm1827_vm11, %vm1828_vm9 }
 0x66b   :  { %v1824_v45 = vsub.f32 1.0, %v1823_v42  ;;  %v2132_v27 = vpop.permute.xlu0 %2131  ;;  %v1776_v15 = vmul.f32 %v11836_v36, %v1775_v39 }
 0x66c   :  { %v1841_v18 = vadd.f32 %v10671_v6, %v1840_v7  ;;  %10057 = vmatmul.msk.f32.vlgmr.msra.gmra.mxu0 %vm173_vm1, %v1866_v47 }
 0x66d   :  { %v1825_v23 = vmul.f32 %v10673_v48, %v1824_v45  ;;  %10051 = vmatmul.msk.f32.vlgmr.msrb.gmra.mxu2 %vm173_vm1, %v1776_v15 }
 0x66e   :  { %v1845_v9 = vsel %vm1844_vm8, %v10671_v6, %v1841_v18  ;;  %10060 = vmatpush.xpose.msk.msrb.mxu2 %vm173_vm1, %v11811_v43 }
 0x66f   :  { %v1826_v25 = vadd.f32 %v10673_v48, %v1825_v23  ;;  %v1850_v36 = vsel %vm1847_vm10, %v1849_v63, %v1845_v9 }
 0x670   :  { %v1851_v41 = vmul.f32 %v11842_v0, %v1850_v36 }
 0x671   :  { %v1830_v17 = vsel %vm1829_vm12, %v10673_v48, %v1826_v25  ;;  %v2162_v22 = vpop.permute.xlu2 %2161 }
 0x672   :  { %10064 = vmatpush.xpose.msk.msrb.mxu0 %vm173_vm1, %v2162_v22  ;;  %10056 = vmatmul.msk.f32.vlgmr.msrb.gmra.mxu3 %vm173_vm1, %v1851_v41  ;;  %v1835_v2 = vsel %vm1832_vm13, %v1834_v28, %v1830_v17 }
 0x673   :  { %v2160_v16 = vpop.permute.xlu0 %2159  ;;  %v1836_v46 = vmul.f32 %v11846_v58, %v1835_v2 }
 0x675   :  { %10055 = vmatmul.msk.f32.vlgmr.msra.gmra.mxu2 %vm173_vm1, %v1836_v46  ;;  %10065 = vmatmul.msk.f32.vlgmr.msrb.gmra.mxu0 %vm173_vm1, %v2160_v16 }
 0x676   :  { %v2218_v43 = vpop.permute.xlu1 %2217 }
 0x677   :  { %10068 = vmatpush.xpose.msk.msra.mxu2 %vm173_vm1, %v2218_v43 }
 0x679   :  { %v2216_v55 = vpop.permute.xlu2 %2215 }
 0x67a   :  { %10063 = vmatmul.msk.f32.vlgmr.msra.gmra.mxu3 %vm173_vm1, %v2132_v27 }
 0x67b   :  { %v2190_v0 = vpop.permute.xlu0 %2189 }
 0x67c   :  { %10066 = vmatpush.xpose.msk.msra.mxu1 %vm173_vm1, %v2190_v0 }
 0x67d   :  { %10061 = vmatmul.msk.f32.vlgmr.msrb.gmra.mxu2 %vm173_vm1, %v11813_v8 }
 0x67e   :  { %v2188_v6 = vpop.permute.xlu1 %2187 }
 0x67f   :  { %10067 = vmatmul.msk.f32.vlgmr.msra.gmra.mxu1 %vm173_vm1, %v2188_v6 }
 0x681   :  { %v2246_v58 = vpop.permute.xlu2 %2245 }
 0x682   :  { %10070 = vmatpush.xpose.msk.msrb.mxu3 %vm173_vm1, %v2246_v58 }
 0x683   :  { %v2244_v53 = vpop.permute.xlu0 %2243 }
 0x685   :  { %10069 = vmatmul.msk.f32.vlgmr.msra.gmra.mxu2 %vm173_vm1, %v2216_v55  ;;  %10071 = vmatmul.msk.f32.vlgmr.msrb.gmra.mxu3 %vm173_vm1, %v2244_v53 }
 0x686   :  { %v2274_v30 = vpop.permute.xlu1 %2273 }
 0x687   :  { %10072 = vmatpush.xpose.msk.msra.mxu0 %vm173_vm1, %v2274_v30 }
 0x689   :  { %v2272_v38 = vpop.permute.xlu2 %2271 }
 0x68a   :  { %10073 = vmatmul.msk.f32.vlgmr.msra.gmra.mxu0 %vm173_vm1, %v2272_v38 }
 0x6af   :  { %v11934_v35 = vpop.f32.mrf.mxu1 }
 0x6b2   :  { %v11943_v51 = vpop.f32.mrf.mxu3 }
 0x6b7   :  { %v11936_v8 = vpop.f32.mrf.mxu1 }
 0x6bf   :  { %v2100_v37 = vpop.f32.mrf.mxu1 }
 0x6c0   :  { %v2299_v49 = vmul.f32 0.35355338, %v2100_v37 }
 0x6c2   :  { %v2307_v48 = vsel %vm173_vm1, %v2299_v49, -inf }
 0x6c3   :  { %2308 = vmax.xlane.f32.xlu0 %v2307_v48 }
 0x6e1   :  { %v11939_v56 = vpop.f32.mrf.mxu0 }
 0x6e9   :  { %v11941_v33 = vpop.f32.mrf.mxu0 }
 0x6f0   :  { %v11945_v44 = vpop.f32.mrf.mxu2 }
 0x6f2   :  { %v2184_v59 = vpop.f32.mrf.mxu0 }
 0x6f3   :  { %v2302_v14 = vmul.f32 0.35355338, %v2184_v59 }
 0x6f5   :  { %v11947_v42 = vpop.f32.mrf.mxu3  ;;  %v2316_v57 = vsel %vm173_vm1, %v2302_v14, -inf }
 0x6f6   :  { %2317 = vmax.xlane.f32.xlu0 %v2316_v57 }
 0x6f8   :  { %v11950_v54 = vpop.f32.mrf.mxu2 }
 0x6fc   :  { %v2212_v27 = vpop.f32.mrf.mxu1 }
 0x6fd   :  { %v2156_v7 = vpop.f32.mrf.mxu3  ;;  %v2303_v40 = vmul.f32 0.35355338, %v2212_v27 }
 0x6fe   :  { %v2301_v39 = vmul.f32 0.35355338, %v2156_v7 }
 0x6ff   :  { %v2319_v60 = vsel %vm173_vm1, %v2303_v40, -inf }
 0x700   :  { %v2128_v47 = vpop.f32.mrf.mxu2  ;;  %v2313_v45 = vsel %vm173_vm1, %v2301_v39, -inf }
 0x701   :  { %v2300_v15 = vmul.f32 0.35355338, %v2128_v47  ;;  %2314 = vmax.xlane.f32.xlu2 %v2313_v45 }
 0x703   :  { %v2310_v18 = vsel %vm173_vm1, %v2300_v15, -inf }
 0x704   :  { %2311 = vmax.xlane.f32.xlu1 %v2310_v18 }
 0x707   :  { %v2296_v36 = vpop.f32.mrf.mxu0 }
 0x708   :  { %v2240_v63 = vpop.f32.mrf.mxu2  ;;  %v2268_v23 = vpop.f32.mrf.mxu3  ;;  %v11957_v17 = vmul.f32 0.35355338, %v2296_v36 }
 0x709   :  { %v2304_v9 = vmul.f32 0.35355338, %v2240_v63  ;;  %v2305_v25 = vmul.f32 0.35355338, %v2268_v23  ;;  %2320 = vmax.xlane.f32.xlu2 %v2319_v60 }
 0x70a   :  { %v2328_v22 = vsel %vm173_vm1, %v11957_v17, -inf }
 0x70b   :  { %v2322_v28 = vsel %vm173_vm1, %v2304_v9, -inf  ;;  %v2325_v41 = vsel %vm173_vm1, %v2305_v25, -inf }
 0x70c   :  { %2323 = vmax.xlane.f32.xlu1 %v2322_v28  ;;  %2326 = vmax.xlane.f32.xlu0 %v2325_v41 }
 0x711   :  { %2329 = vmax.xlane.f32.xlu2 %v2328_v22 }
 0x725   :  { %10424 = vrot.lane.b32.xlu1 %v11393_v11, %s11178_s6 }
 0x736   :  { %v2309_v2 = vpop.xlane.xlu0 %2308 }
 0x737   :  { %v2331_v16 = vsub.f32 %v2299_v49, %v2309_v2 }
 0x739   :  { %v2339_v46 = vmul.f32 1.442695, %v2331_v16 }
 0x73b   :  { %10674 = vpow2.f32 %v2339_v46 }
 0x741   :  { %v11963_v43 = vpop.eup %10674 }
 0x742   :  { %v2355_v55 = vsel %vm173_vm1, %v11963_v43, 0.0 }
 0x743   :  { %2356 = vadd.xlane.f32.xlu2 %v2355_v55 }
 0x769   :  { %v2318_v0 = vpop.xlane.xlu0 %2317 }
 0x76a   :  { %v2334_v6 = vsub.f32 %v2302_v14, %v2318_v0 }
 0x76c   :  { %v2345_v58 = vmul.f32 1.442695, %v2334_v6 }
 0x76e   :  { %10676 = vpow2.f32 %v2345_v58  ;;  %v14919_v58 = vld [vmem:[#allocation9_spill] sm:$0xff] }
 0x774   :  { %v2315_v53 = vpop.xlane.xlu2 %2314  ;;  %v11967_v30 = vpop.eup %10676 }
 0x775   :  { %v2364_v11 = vsel %vm173_vm1, %v11967_v30, 0.0  ;;  %v2333_v57 = vsub.f32 %v2301_v39, %v2315_v53 }
 0x776   :  { %2365 = vadd.xlane.f32.xlu2 %v2364_v11  ;;  %v14922_v11 = vld [vmem:[#allocation20_spill] sm:$0xff] }
 0x777   :  { %v2312_v38 = vpop.xlane.xlu1 %2311  ;;  %v2343_v14 = vmul.f32 1.442695, %v2333_v57 }
 0x778   :  { %v2332_v37 = vsub.f32 %v2300_v15, %v2312_v38 }
 0x77a   :  { %v2341_v49 = vmul.f32 1.442695, %v2332_v37  ;;  %v14924_v37 = vld [vmem:[#allocation10_spill] sm:$0xff] }
 0x77c   :  { %10678 = vpow2.f32 %v2341_v49  ;;  %v2321_v48 = vpop.xlane.xlu2 %2320 }
 0x77d   :  { %v2335_v59 = vsub.f32 %v2303_v40, %v2321_v48 }
 0x77f   :  { %v2347_v7 = vmul.f32 1.442695, %v2335_v59  ;;  %v2324_v27 = vpop.xlane.xlu1 %2323  ;;  %v2327_v39 = vpop.xlane.xlu0 %2326 }
 0x780   :  { %v2336_v63 = vsub.f32 %v2304_v9, %v2324_v27  ;;  %v2337_v60 = vsub.f32 %v2305_v25, %v2327_v39 }
 0x781   :  { %10680 = vpow2.f32 %v2347_v7 }
 0x782   :  { %v11971_v47 = vpop.eup %10678  ;;  %10682 = vpow2.f32 %v2343_v14  ;;  %v2349_v40 = vmul.f32 1.442695, %v2336_v63  ;;  %v2351_v28 = vmul.f32 1.442695, %v2337_v60 }
 0x783   :  { %v2358_v45 = vsel %vm173_vm1, %v11971_v47, 0.0 }
 0x784   :  { %2359 = vadd.xlane.f32.xlu1 %v2358_v45  ;;  %10684 = vpow2.f32 %v2349_v40  ;;  %v2330_v46 = vpop.xlane.xlu2 %2329 }
 0x785   :  { %10686 = vpow2.f32 %v2351_v28  ;;  %v2338_v55 = vsub.f32 %v11957_v17, %v2330_v46 }
 0x787   :  { %v11975_v18 = vpop.eup %10680  ;;  %v2353_v0 = vmul.f32 1.442695, %v2338_v55 }
 0x788   :  { %v2367_v15 = vsel %vm173_vm1, %v11975_v18, 0.0  ;;  %v11979_v23 = vpop.eup %10682 }
 0x789   :  { %2368 = vadd.xlane.f32.xlu0 %v2367_v15  ;;  %v2361_v36 = vsel %vm173_vm1, %v11979_v23, 0.0  ;;  %10688 = vpow2.f32 %v2353_v0 }
 0x78a   :  { %v11985_v41 = vpop.eup %10684 }
 0x78b   :  { %v2370_v16 = vsel %vm173_vm1, %v11985_v41, 0.0  ;;  %v11989_v25 = vpop.eup %10686 }
 0x78e   :  { %2551 = vrot.lane.b32.xlu2 %v11376_v61, %s11178_s6  ;;  %v2373_v61 = vsel %vm173_vm1, %v11989_v25, 0.0 }
 0x78f   :  { %v12000_v6 = vpop.eup %10688 }
 0x791   :  { %2362 = vadd.xlane.f32.xlu0 %v2361_v36 }
 0x797   :  { %v10425_v9 = vpop.permute.xlu1 %10424 }
 0x798   :  { %v10427_v22 = vunpack.i.h.bf16 %v10425_v9  ;;  %v10426_v2 = vunpack.i.l.bf16 %v10425_v9 }
 0x799   :  { %2371 = vadd.xlane.f32.xlu0 %v2370_v16 }
 0x79a   :  { %2520 = vmatpush.msrb.mxu1 %v10426_v2  ;;  %2546 = vmatpush.msrb.mxu2 %v10427_v22 }
 0x79d   :  { %2577 = vrot.lane.b32.xlu1 %v11378_v62, %s11178_s6  ;;  %v14920_v62 = vld [vmem:[#allocation8_spill] sm:$0xff] }
 0x79e   :  { %v14921_v53 = vpack.i.bf16 %v14919_v58, %v14920_v62 }
 0x7a1   :  { %2374 = vadd.xlane.f32.xlu0 %v2373_v61 }
 0x7a5   :  { %2655 = vrot.lane.b32.xlu1 %v11406_v19, %s11178_s6  ;;  %v2376_v19 = vsel %vm173_vm1, %v12000_v6, 0.0 }
 0x7ad   :  { %2681 = vrot.lane.b32.xlu1 %v11408_v21, %s11178_s6  ;;  %v14923_v21 = vld [vmem:[#allocation11_spill] sm:$0xff] }
 0x7ae   :  { %v14925_v49 = vpack.i.bf16 %v14923_v21, %v14924_v37 }
 0x7b5   :  { %10434 = vrot.lane.b32.xlu1 %v14921_v53, %s11167_s9  ;;  %10429 = vrot.lane.b32.xlu0 %v14922_v11, %s11178_s6 }
 0x7b6   :  { %v2357_v38 = vpop.xlane.xlu2 %2356 }
 0x7b7   :  { %10690 = vrcp.f32 %v2357_v38  ;;  %2377 = vadd.xlane.f32.xlu2 %v2376_v19  ;;  %v2390_v57 = vand.u32 2147483648, %v2357_v38  ;;  %v2388_v14 = vand.u32 2147483647, %v2357_v38  ;;  %vm2384_vm15 = vweird.f32 %v2357_v38 }
 0x7b9   :  { %v2391_v27 = vor.u32 1.1754944e-38, %v2390_v57  ;;  %vm2389_vm3 = vcmp.eq.f32.partialorder %v2388_v14, 8.507059e+37 }
 0x7bd   :  { %v10691_v17 = vpop.eup %10690  ;;  %10439 = vrot.lane.b32.xlu1 %v14925_v49, %s11167_s9  ;;  %2715 = vrot.lane.b32.xlu0 %v11780_v32, %s11166_s26 }
 0x7be   :  { %v2380_v48 = vmul.f32 %v10691_v17, %v2357_v38  ;;  %vm2385_vm14 = vweird.f32 %v10691_v17 }
 0x7bf   :  { %vm2386_vm2 = vmor %vm2384_vm15, %vm2385_vm14 }
 0x7c0   :  { %v2381_v59 = vsub.f32 1.0, %v2380_v48 }
 0x7c2   :  { %v2382_v7 = vmul.f32 %v10691_v17, %v2381_v59 }
 0x7c4   :  { %v2383_v45 = vadd.f32 %v10691_v17, %v2382_v7 }
 0x7c5   :  { %2749 = vrot.lane.b32.xlu1 %v11945_v44, %s11179_s7  ;;  %2747 = vrot.lane.b32.xlu0 %v11934_v35, %s11179_s7 }
 0x7c6   :  { %v2387_v63 = vsel %vm2386_vm2, %v10691_v17, %v2383_v45 }
 0x7c7   :  { %v2392_v32 = vsel %vm2389_vm3, %v2391_v27, %v2387_v63 }
 0x7c8   :  { %v2393_v15 = vmul.f32 %v11963_v43, %v2392_v32 }
 0x7ca   :  { %10074 = vmatmul.msk.f32.vlgmr.msrb.gmra.mxu1 %vm173_vm1, %v2393_v15 }
 0x7cd   :  { %2717 = vrot.lane.b32.xlu0 %v11795_v29, %s11166_s26 }
 0x7cf   :  { %2719 = vrot.lane.b32.xlu2 %v11778_v5, %s11166_s26 }
 0x7d5   :  { %2721 = vrot.lane.b32.xlu0 %v11797_v1, %s11166_s26 }
 0x7d7   :  { %2755 = vrot.lane.b32.xlu2 %v11936_v8, %s11179_s7 }
 0x7df   :  { %2757 = vrot.lane.b32.xlu2 %v11950_v54, %s11179_s7 }
 0x7e7   :  { %2759 = vrot.lane.b32.xlu2 %v11947_v42, %s11179_s7 }
 0x7e9   :  { %v2366_v35 = vpop.xlane.xlu2 %2365 }
 0x7ea   :  { %10692 = vrcp.f32 %v2366_v35  ;;  %v2435_v2 = vand.u32 2147483648, %v2366_v35  ;;  %vm2429_vm8 = vweird.f32 %v2366_v35  ;;  %v2433_v61 = vand.u32 2147483647, %v2366_v35 }
 0x7ec   :  { %v2436_v62 = vor.u32 1.1754944e-38, %v2435_v2  ;;  %vm2434_vm11 = vcmp.eq.f32.partialorder %v2433_v61, 8.507059e+37 }
 0x7ef   :  { %2761 = vrot.lane.b32.xlu2 %v11941_v33, %s11179_s7 }
 0x7f0   :  { %v10693_v5 = vpop.eup %10692 }
 0x7f1   :  { %v2552_v29 = vpop.permute.xlu2 %2551  ;;  %v2425_v1 = vmul.f32 %v10693_v5, %v2366_v35  ;;  %vm2430_vm5 = vweird.f32 %v10693_v5 }
 0x7f2   :  { %2572 = vmatpush.msra.mxu3 %v2552_v29  ;;  %vm2431_vm10 = vmor %vm2429_vm8, %vm2430_vm5 }
 0x7f3   :  { %v2426_v8 = vsub.f32 1.0, %v2425_v1 }
 0x7f5   :  { %v2427_v54 = vmul.f32 %v10693_v5, %v2426_v8 }
 0x7f7   :  { %v2360_v44 = vpop.xlane.xlu1 %2359  ;;  %v2428_v33 = vadd.f32 %v10693_v5, %v2427_v54 }
 0x7f8   :  { %10694 = vrcp.f32 %v2360_v44  ;;  %v2405_v36 = vand.u32 2147483648, %v2360_v44  ;;  %v2403_v28 = vand.u32 2147483647, %v2360_v44  ;;  %vm2399_vm6 = vweird.f32 %v2360_v44 }
 0x7f9   :  { %v2432_v0 = vsel %vm2431_vm10, %v10693_v5, %v2428_v33 }
 0x7fa   :  { %v2406_v16 = vor.u32 1.1754944e-38, %v2405_v36  ;;  %vm2404_vm9 = vcmp.eq.f32.partialorder %v2403_v28, 8.507059e+37  ;;  %v2437_v19 = vsel %vm2434_vm11, %v2436_v62, %v2432_v0 }
 0x7fb   :  { %v2438_v37 = vmul.f32 %v11967_v30, %v2437_v19 }
 0x7fc   :  { %v12036_v43 = vpop.xlane.xlu0 %2368 }
 0x7fd   :  { %vm2444_vm2 = vweird.f32 %v12036_v43  ;;  %v2448_v2 = vand.u32 2147483647, %v12036_v43 }
 0x7fe   :  { %v10695_v40 = vpop.eup %10694 }
 0x7ff   :  { %v2395_v39 = vmul.f32 %v10695_v40, %v2360_v44  ;;  %vm2400_vm4 = vweird.f32 %v10695_v40 }
 0x800   :  { %vm2401_vm7 = vmor %vm2399_vm6, %vm2400_vm4 }
 0x801   :  { %v2396_v60 = vsub.f32 1.0, %v2395_v39  ;;  %v2450_v39 = vand.u32 2147483648, %v12036_v43 }
 0x803   :  { %v2397_v42 = vmul.f32 %v10695_v40, %v2396_v60 }
 0x804   :  { %v2363_v9 = vpop.xlane.xlu0 %2362 }
 0x805   :  { %v2398_v22 = vadd.f32 %v10695_v40, %v2397_v42  ;;  %10696 = vrcp.f32 %v2363_v9  ;;  %v2420_v48 = vand.u32 2147483648, %v2363_v9  ;;  %v2418_v59 = vand.u32 2147483647, %v2363_v9 }
 0x806   :  { %10698 = vrcp.f32 %v12036_v43  ;;  %vm2414_vm13 = vweird.f32 %v2363_v9 }
 0x807   :  { %v2402_v46 = vsel %vm2401_vm7, %v10695_v40, %v2398_v22  ;;  %v2421_v27 = vor.u32 1.1754944e-38, %v2420_v48  ;;  %vm2419_vm15 = vcmp.eq.f32.partialorder %v2418_v59, 8.507059e+37 }
 0x808   :  { %v2407_v55 = vsel %vm2404_vm9, %v2406_v16, %v2402_v46 }
 0x809   :  { %v2408_v58 = vmul.f32 %v11971_v47, %v2407_v55 }
 0x80b   :  { %v10697_v53 = vpop.eup %10696  ;;  %10075 = vmatmul.msk.f32.vlgmr.msrb.gmra.mxu2 %vm173_vm1, %v2408_v58 }
 0x80c   :  { %v2410_v11 = vmul.f32 %v10697_v53, %v2363_v9  ;;  %v12041_v38 = vpop.xlane.xlu0 %2371  ;;  %v12045_v49 = vpop.eup %10698  ;;  %vm2415_vm12 = vweird.f32 %v10697_v53 }
 0x80d   :  { %10700 = vrcp.f32 %v12041_v38  ;;  %v2440_v14 = vmul.f32 %v12045_v49, %v12036_v43  ;;  %vm2416_vm14 = vmor %vm2414_vm13, %vm2415_vm12  ;;  %vm2445_vm3 = vweird.f32 %v12045_v49  ;;  %v2465_v28 = vand.u32 2147483648, %v12041_v38 }
 0x80e   :  { %v2411_v17 = vsub.f32 1.0, %v2410_v11  ;;  %vm12059_vm6 = vmor %vm2444_vm2, %vm2445_vm3  ;;  %vm2459_vm7 = vweird.f32 %v12041_v38  ;;  %v2463_v16 = vand.u32 2147483647, %v12041_v38  ;;  %v2451_v43 = vor.u32 1.1754944e-38, %v2450_v39 }
 0x80f   :  { %v2578_v21 = vpop.permute.xlu1 %2577  ;;  %v2441_v15 = vsub.f32 1.0, %v2440_v14  ;;  %v2466_v62 = vor.u32 1.1754944e-38, %v2465_v28  ;;  %vm2449_vm12 = vcmp.eq.f32.partialorder %v2448_v2, 8.507059e+37 }
 0x810   :  { %v2412_v47 = vmul.f32 %v10697_v53, %v2411_v17  ;;  %2598 = vmatpush.msrb.mxu0 %v2578_v21  ;;  %vm2464_vm13 = vcmp.eq.f32.partialorder %v2463_v16, 8.507059e+37 }
 0x811   :  { %10077 = vmatmul.msk.f32.vlgmr.msrb.gmra.mxu0 %vm173_vm1, %v2438_v37  ;;  %v2442_v1 = vmul.f32 %v12045_v49, %v2441_v15 }
 0x812   :  { %v2413_v57 = vadd.f32 %v10697_v53, %v2412_v47 }
 0x813   :  { %v10701_v7 = vpop.eup %10700  ;;  %v2443_v60 = vadd.f32 %v12045_v49, %v2442_v1 }
 0x814   :  { %v2417_v45 = vsel %vm2416_vm14, %v10697_v53, %v2413_v57  ;;  %v2455_v30 = vmul.f32 %v10701_v7, %v12041_v38  ;;  %v2375_v63 = vpop.xlane.xlu0 %2374  ;;  %vm2460_vm4 = vweird.f32 %v10701_v7 }
 0x815   :  { %10702 = vrcp.f32 %v2375_v63  ;;  %v2422_v32 = vsel %vm2419_vm15, %v2421_v27, %v2417_v45  ;;  %v2478_v33 = vand.u32 2147483647, %v2375_v63  ;;  %vm12066_vm8 = vmor %vm2459_vm7, %vm2460_vm4  ;;  %vm2474_vm9 = vweird.f32 %v2375_v63 }
 0x816   :  { %v2456_v35 = vsub.f32 1.0, %v2455_v30  ;;  %v2423_v5 = vmul.f32 %v11979_v23, %v2422_v32  ;;  %v2480_v23 = vand.u32 2147483648, %v2375_v63  ;;  %v2447_v55 = vsel %vm12059_vm6, %v12045_v49, %v2443_v60 }
 0x817   :  { %v2656_v29 = vpop.permute.xlu1 %2655  ;;  %vm2479_vm11 = vcmp.eq.f32.partialorder %v2478_v33, 8.507059e+37  ;;  %v2452_v19 = vsel %vm2449_vm12, %v2451_v43, %v2447_v55  ;;  %vm2811_vm4 = vcmask 130048  }
 0x818   :  { %2676 = vmatpush.msrb.mxu3 %v2656_v29  ;;  %v2457_v8 = vmul.f32 %v10701_v7, %v2456_v35  ;;  %v2481_v58 = vor.u32 1.1754944e-38, %v2480_v23  ;;  %v2453_v59 = vmul.f32 %v11975_v18, %v2452_v19 }
 0x819   :  { %10076 = vmatmul.msk.f32.vlgmr.msra.gmra.mxu3 %vm173_vm1, %v2423_v5 }
 0x81a   :  { %v2458_v36 = vadd.f32 %v10701_v7, %v2457_v8 }
 0x81b   :  { %v10703_v44 = vpop.eup %10702 }
 0x81c   :  { %v2470_v40 = vmul.f32 %v10703_v44, %v2375_v63  ;;  %vm2475_vm5 = vweird.f32 %v10703_v44  ;;  %v2462_v0 = vsel %vm12066_vm8, %v10701_v7, %v2458_v36 }
 0x81d   :  { %vm2476_vm10 = vmor %vm2474_vm9, %vm2475_vm5  ;;  %v2467_v17 = vsel %vm2464_vm13, %v2466_v62, %v2462_v0  ;;  %vm2820_vm5 = vcmask 195584  }
 0x81e   :  { %v2471_v54 = vsub.f32 1.0, %v2470_v40  ;;  %v2468_v57 = vmul.f32 %v11985_v41, %v2467_v17 }
 0x81f   :  { %v2682_v42 = vpop.permute.xlu1 %2681 }
 0x820   :  { %v2472_v9 = vmul.f32 %v10703_v44, %v2471_v54  ;;  %2702 = vmatpush.msra.mxu0 %v2682_v42 }
 0x822   :  { %v2473_v46 = vadd.f32 %v10703_v44, %v2472_v9 }
 0x824   :  { %v2477_v53 = vsel %vm2476_vm10, %v10703_v44, %v2473_v46 }
 0x825   :  { %v2482_v11 = vsel %vm2479_vm11, %v2481_v58, %v2477_v53 }
 0x826   :  { %v2483_v38 = vmul.f32 %v11989_v25, %v2482_v11 }
 0x827   :  { %v10435_v21 = vpop.permute.xlu1 %10434  ;;  %v10430_v37 = vpop.permute.xlu0 %10429 }
 0x828   :  { %v10436_v47 = vunpack.i.l.bf16 %v10435_v21  ;;  %v10432_v49 = vunpack.i.h.bf16 %v10430_v37  ;;  %v10431_v48 = vunpack.i.l.bf16 %v10430_v37  ;;  %10080 = vmatmul.msk.f32.vlgmr.msrb.gmra.mxu3 %vm173_vm1, %v2483_v38  ;;  %v10437_v7 = vunpack.i.h.bf16 %v10435_v21 }
 0x82a   :  { %2624 = vmatpush.msra.mxu1 %v10431_v48  ;;  %2650 = vmatpush.msra.mxu2 %v10432_v49  ;;  %v2378_v14 = vpop.xlane.xlu2 %2377 }
 0x82b   :  { %10078 = vmatmul.msk.f32.vlgmr.msra.gmra.mxu1 %vm173_vm1, %v2453_v59  ;;  %10079 = vmatmul.msk.f32.vlgmr.msra.gmra.mxu2 %vm173_vm1, %v2468_v57  ;;  %10704 = vrcp.f32 %v2378_v14  ;;  %v2495_v63 = vand.u32 2147483648, %v2378_v14  ;;  %v2493_v15 = vand.u32 2147483647, %v2378_v14  ;;  %vm2489_vm15 = vweird.f32 %v2378_v14 }
 0x82c   :  { %2882 = vmatpush.msrb.mxu1 %v10436_v47  ;;  %10346 = vmatpush.msrb.mxu2 %v10436_v47 }
 0x82d   :  { %10347 = vmatpush.msra.mxu3 %v10436_v47  ;;  %v2496_v29 = vor.u32 1.1754944e-38, %v2495_v63  ;;  %vm2494_vm3 = vcmp.eq.f32.partialorder %v2493_v15, 8.507059e+37 }
 0x82e   :  { %2883 = vmatpush.msrb.mxu1 %v10437_v7  ;;  %10348 = vmatpush.msrb.mxu2 %v10437_v7 }
 0x82f   :  { %v10440_v25 = vpop.permute.xlu1 %10439  ;;  %10349 = vmatpush.msra.mxu3 %v10437_v7 }
 0x830   :  { %v10442_v45 = vunpack.i.h.bf16 %v10440_v25  ;;  %v10441_v18 = vunpack.i.l.bf16 %v10440_v25 }
 0x831   :  { %v10705_v27 = vpop.eup %10704 }
 0x832   :  { %2884 = vmatpush.msrb.mxu1 %v10441_v18  ;;  %10350 = vmatpush.msrb.mxu2 %v10441_v18  ;;  %v2485_v41 = vmul.f32 %v10705_v27, %v2378_v14  ;;  %vm2490_vm14 = vweird.f32 %v10705_v27  ;;  %v2720_v46 = vpop.permute.xlu2 %2719 }
 0x833   :  { %10351 = vmatpush.msra.mxu3 %v10441_v18  ;;  %vm2491_vm2 = vmor %vm2489_vm15, %vm2490_vm14  ;;  %v2805_v55 = vsel %vm173_vm1, %v11625_v52, %v2720_v46 }
 0x834   :  { %2885 = vmatpush.msrb.mxu1 %v10442_v45  ;;  %10352 = vmatpush.msrb.mxu2 %v10442_v45  ;;  %v2486_v30 = vsub.f32 1.0, %v2485_v41  ;;  %v12140_v41 = vld [vmem:[#allocation4] sm:$0xff] }
 0x835   :  { %10353 = vmatpush.msra.mxu3 %v10442_v45 }
 0x836   :  { %v2487_v32 = vmul.f32 %v10705_v27, %v2486_v30  ;;  %v12143_v30 = vperm.slane %v12140_v41, 3 }
 0x838   :  { %v2488_v35 = vadd.f32 %v10705_v27, %v2487_v32 }
 0x83a   :  { %v2492_v5 = vsel %vm2491_vm2, %v10705_v27, %v2488_v35  ;;  %v2756_v38 = vpop.permute.xlu2 %2755 }
 0x83b   :  { %v2497_v44 = vsel %vm2494_vm3, %v2496_v29, %v2492_v5 }
 0x83c   :  { %v2498_v1 = vmul.f32 %v12000_v6, %v2497_v44 }
 0x83e   :  { %10081 = vmatmul.msk.f32.vlgmr.msra.gmra.mxu0 %vm173_vm1, %v2498_v1 }
 0x847   :  { %v2522_v8 = vpop.f32.mrf.mxu1 }
 0x848   :  { %2779 = vrot.lane.b32.xlu1 %v2522_v8, %s11180_s8 }
 0x850   :  { %2751 = vrot.lane.b32.xlu1 %v11943_v51, %s11179_s7  ;;  %v2716_v51 = vpop.permute.xlu0 %2715 }
 0x858   :  { %v2748_v36 = vpop.permute.xlu0 %2747 }
 0x860   :  { %v2718_v9 = vpop.permute.xlu0 %2717 }
 0x868   :  { %v2722_v33 = vpop.permute.xlu0 %2721 }
 0x869   :  { %v2806_v62 = vsel %vm173_vm1, %v11638_v31, %v2722_v33  ;;  %v2758_v31 = vpop.permute.xlu2 %2757  ;;  %v14931_v33 = vld [vmem:[#allocation13_spill] sm:$0xff] }
 0x88e   :  { %v2548_v40 = vpop.f32.mrf.mxu2  ;;  %v2600_v6 = vpop.f32.mrf.mxu0 }
 0x88f   :  { %2781 = vrot.lane.b32.xlu0 %v2548_v40, %s11180_s8 }
 0x897   :  { %2753 = vrot.lane.b32.xlu0 %v11939_v56, %s11179_s7  ;;  %v2750_v56 = vpop.permute.xlu1 %2749 }
 0x89c   :  { %v2574_v39 = vpop.f32.mrf.mxu3 }
 0x89d   :  { %2783 = vrot.lane.b32.xlu1 %v2574_v39, %s11180_s8  ;;  %v14930_v39 = vld [vmem:[#allocation12_spill] sm:$0xff] }
 0x89f   :  { %2723 = vrot.lane.b32.xlu0 %v11784_v3, %s11166_s26  ;;  %v2803_v3 = vsel %vm173_vm1, %v11634_v50, %v2716_v51 }
 0x8a5   :  { %2785 = vrot.lane.b32.xlu1 %v2600_v6, %s11180_s8 }
 0x8a7   :  { %2725 = vrot.lane.b32.xlu0 %v11799_v4, %s11166_s26  ;;  %v2812_v4 = vsel %vm2811_vm4, %v2803_v3, %v2748_v36 }
 0x8a8   :  { %v2626_v54 = vpop.f32.mrf.mxu1 }
 0x8ab   :  { %v2678_v28 = vpop.f32.mrf.mxu3 }
 0x8ad   :  { %2787 = vrot.lane.b32.xlu1 %v2626_v54, %s11180_s8 }
 0x8ae   :  { %v2652_v60 = vpop.f32.mrf.mxu2 }
 0x8af   :  { %2727 = vrot.lane.b32.xlu0 %v11782_v12, %s11166_s26 }
 0x8b5   :  { %2789 = vrot.lane.b32.xlu1 %v2652_v60, %s11180_s8 }
 0x8b7   :  { %2729 = vrot.lane.b32.xlu0 %v11801_v13, %s11166_s26  ;;  %v2804_v13 = vsel %vm173_vm1, %v11630_v26, %v2718_v9 }
 0x8b8   :  { %v2813_v50 = vsel %vm2811_vm4, %v2804_v13, %v2750_v56 }
 0x8ba   :  { %v2780_v23 = vpop.permute.xlu1 %2779 }
 0x8bb   :  { %v2821_v42 = vsel %vm2820_vm5, %v2812_v4, %v2780_v23  ;;  %v2704_v12 = vpop.f32.mrf.mxu0 }
 0x8bc   :  { %10082 = vmatmul.msk.f32.vlgmr.msrb.gmra.mxu1 %vm69_vm0, %v2821_v42 }
 0x8bd   :  { %2791 = vrot.lane.b32.xlu1 %v2678_v28, %s11180_s8 }
 0x8c2   :  { %v2752_v16 = vpop.permute.xlu1 %2751 }
 0x8c3   :  { %v2814_v0 = vsel %vm2811_vm4, %v2805_v55, %v2752_v16 }
 0x8c5   :  { %2793 = vrot.lane.b32.xlu1 %v2704_v12, %s11180_s8 }
 0x901   :  { %v2782_v22 = vpop.permute.xlu0 %2781 }
 0x902   :  { %v2822_v2 = vsel %vm2820_vm5, %v2813_v50, %v2782_v22 }
 0x903   :  { %10083 = vmatmul.msk.f32.gmra.mxu1 %vm69_vm0, %v2822_v2 }
 0x909   :  { %v2754_v61 = vpop.permute.xlu0 %2753 }
 0x90a   :  { %v2815_v53 = vsel %vm2811_vm4, %v2806_v62, %v2754_v61 }
 0x90f   :  { %v2784_v58 = vpop.permute.xlu1 %2783 }
 0x910   :  { %v2823_v43 = vsel %vm2820_vm5, %v2814_v0, %v2784_v58 }
 0x911   :  { %10084 = vmatmul.msk.f32.gmra.mxu1 %vm69_vm0, %v2823_v43  ;;  %v2724_v26 = vpop.permute.xlu0 %2723  ;;  %v14932_v43 = vld [vmem:[#allocation14_spill] sm:$0xff] }
 0x912   :  { %v2807_v52 = vsel %vm173_vm1, %v11632_v20, %v2724_v26  ;;  %v2760_v20 = vpop.permute.xlu2 %2759 }
 0x913   :  { %v2816_v37 = vsel %vm2811_vm4, %v2807_v52, %v2756_v38  ;;  %v11181_v52 = vmov 32.0  }
 0x917   :  { %v2786_v11 = vpop.permute.xlu1 %2785 }
 0x918   :  { %v2824_v19 = vsel %vm2820_vm5, %v2815_v53, %v2786_v11 }
 0x919   :  { %10085 = vmatmul.msk.f32.vlgmr.msrb.gmra.mxu2 %vm69_vm0, %v2824_v19  ;;  %v2726_v17 = vpop.permute.xlu0 %2725 }
 0x91a   :  { %v2808_v49 = vsel %vm173_vm1, %v11627_v34, %v2726_v17  ;;  %v2762_v63 = vpop.permute.xlu2 %2761 }
 0x91b   :  { %v2817_v57 = vsel %vm2811_vm4, %v2808_v49, %v2758_v31 }
 0x91f   :  { %v2788_v21 = vpop.permute.xlu1 %2787 }
 0x920   :  { %v2825_v47 = vsel %vm2820_vm5, %v2816_v37, %v2788_v21 }
 0x921   :  { %10086 = vmatmul.msk.f32.gmra.mxu2 %vm69_vm0, %v2825_v47  ;;  %v2728_v48 = vpop.permute.xlu0 %2727 }
 0x922   :  { %v2809_v14 = vsel %vm173_vm1, %v11641_v24, %v2728_v48 }
 0x923   :  { %v2818_v45 = vsel %vm2811_vm4, %v2809_v14, %v2760_v20 }
 0x927   :  { %v2790_v59 = vpop.permute.xlu1 %2789 }
 0x928   :  { %v2826_v7 = vsel %vm2820_vm5, %v2817_v57, %v2790_v59 }
 0x929   :  { %10087 = vmatmul.msk.f32.gmra.mxu2 %vm69_vm0, %v2826_v7  ;;  %v2730_v27 = vpop.permute.xlu0 %2729  ;;  %v14933_v7 = vld [vmem:[#allocation15_spill] sm:$0xff] }
 0x92a   :  { %v2810_v34 = vsel %vm173_vm1, %v11636_v10, %v2730_v27 }
 0x92b   :  { %v2819_v24 = vsel %vm2811_vm4, %v2810_v34, %v2762_v63 }
 0x92f   :  { %v2792_v25 = vpop.permute.xlu1 %2791 }
 0x930   :  { %v2827_v18 = vsel %vm2820_vm5, %v2818_v45, %v2792_v25 }
 0x931   :  { %10088 = vmatmul.msk.f32.vlgmr.msra.gmra.mxu3 %vm69_vm0, %v2827_v18 }
 0x937   :  { %v2794_v32 = vpop.permute.xlu1 %2793 }
 0x938   :  { %v2828_v15 = vsel %vm2820_vm5, %v2819_v24, %v2794_v32 }
 0x939   :  { %10089 = vmatmul.msk.f32.gmra.mxu3 %vm69_vm0, %v2828_v15  ;;  %v2887_v35 = vpop.f32.mrf.mxu1 }
 0x93a   :  { %v2888_v29 = vadd.f32 %v2887_v35, %v12143_v30 }
 0x93c   :  { %v2919_v5 = vmul.f32 1.442695, %v2888_v29  ;;  %vm2911_vm6 = vcmp.gt.f32.partialorder %v2888_v29, 0.0 }
 0x93e   :  { %10706 = vpow2.f32 %v2919_v5 }
 0x944   :  { %v10707_v44 = vpop.eup %10706 }
 0x945   :  { %v10090_v10 = vadd.f32 -1.0, %v10707_v44 }
 0x947   :  { %v2943_v1 = vmul.f32 1.6732632, %v10090_v10 }
 0x949   :  { %v2951_v8 = vsel %vm2911_vm6, %v2888_v29, %v2943_v1  ;;  %v14934_v29 = vld [vmem:[#allocation16_spill] sm:$0xff] }
 0x94a   :  { %v2959_v40 = vmul.f32 1.050701, %v2951_v8 }
 0x94c   :  { %v12150_v6 = vadd.f32 %v2959_v40, %v14930_v39 }
 0x94e   :  { %v2975_v54 = vsel %vm69_vm0, %v12150_v6, 0.0 }
 0x94f   :  { %2976 = vadd.xlane.f32.xlu0 %v2975_v54 }
 0x980   :  { %v2890_v51 = vpop.f32.mrf.mxu1 }
 0x981   :  { %v2891_v56 = vadd.f32 %v2890_v51, %v12143_v30 }
 0x983   :  { %v2921_v60 = vmul.f32 1.442695, %v2891_v56  ;;  %vm2912_vm7 = vcmp.gt.f32.partialorder %v2891_v56, 0.0 }
 0x985   :  { %10708 = vpow2.f32 %v2921_v60 }
 0x98b   :  { %v10709_v36 = vpop.eup %10708 }
 0x98c   :  { %v10091_v3 = vadd.f32 -1.0, %v10709_v36 }
 0x98e   :  { %v2944_v4 = vmul.f32 1.6732632, %v10091_v3  ;;  %v2893_v23 = vpop.f32.mrf.mxu1 }
 0x98f   :  { %v2894_v42 = vadd.f32 %v2893_v23, %v12143_v30 }
 0x990   :  { %v2952_v28 = vsel %vm2912_vm7, %v2891_v56, %v2944_v4  ;;  %v14935_v56 = vld [vmem:[#allocation17_spill] sm:$0xff] }
 0x991   :  { %v2923_v12 = vmul.f32 1.442695, %v2894_v42  ;;  %v2960_v9 = vmul.f32 1.050701, %v2952_v28  ;;  %vm2913_vm8 = vcmp.gt.f32.partialorder %v2894_v42, 0.0 }
 0x993   :  { %10710 = vpow2.f32 %v2923_v12  ;;  %v12157_v13 = vadd.f32 %v2960_v9, %v14931_v33 }
 0x995   :  { %v2978_v22 = vsel %vm69_vm0, %v12157_v13, 0.0 }
 0x996   :  { %2979 = vadd.xlane.f32.xlu2 %v2978_v22  ;;  %v14937_v22 = vld [vmem:[#allocation18_spill] sm:$0xff] }
 0x999   :  { %v10711_v50 = vpop.eup %10710 }
 0x99a   :  { %v10092_v2 = vadd.f32 -1.0, %v10711_v50 }
 0x99c   :  { %v2945_v16 = vmul.f32 1.6732632, %v10092_v2  ;;  %v2896_v61 = vpop.f32.mrf.mxu2 }
 0x99d   :  { %v2897_v46 = vadd.f32 %v2896_v61, %v12143_v30 }
 0x99e   :  { %v2953_v55 = vsel %vm2913_vm8, %v2894_v42, %v2945_v16 }
 0x99f   :  { %v2925_v0 = vmul.f32 1.442695, %v2897_v46  ;;  %v2961_v58 = vmul.f32 1.050701, %v2953_v55  ;;  %vm2914_vm9 = vcmp.gt.f32.partialorder %v2897_v46, 0.0 }
 0x9a1   :  { %10712 = vpow2.f32 %v2925_v0  ;;  %v12163_v26 = vadd.f32 %v2961_v58, %v14932_v43 }
 0x9a2   :  { %10714 = vrcp.f32 %v11181_v52 }
 0x9a3   :  { %v2981_v62 = vsel %vm69_vm0, %v12163_v26, 0.0 }
 0x9a4   :  { %2982 = vadd.xlane.f32.xlu1 %v2981_v62  ;;  %v2899_v53 = vpop.f32.mrf.mxu2 }
 0x9a5   :  { %v2900_v11 = vadd.f32 %v2899_v53, %v12143_v30 }
 0x9a7   :  { %v10713_v38 = vpop.eup %10712  ;;  %v2927_v19 = vmul.f32 1.442695, %v2900_v11  ;;  %vm2915_vm10 = vcmp.gt.f32.partialorder %v2900_v11, 0.0 }
 0x9a8   :  { %v10093_v17 = vadd.f32 -1.0, %v10713_v38  ;;  %v10715_v31 = vpop.eup %10714 }
 0x9a9   :  { %10716 = vpow2.f32 %v2927_v19  ;;  %v3000_v25 = vmul.f32 32.0, %v10715_v31  ;;  %vm3004_vm12 = vweird.f32 %v10715_v31 }
 0x9aa   :  { %v2946_v21 = vmul.f32 1.6732632, %v10093_v17 }
 0x9ab   :  { %v3001_v63 = vsub.f32 1.0, %v3000_v25 }
 0x9ac   :  { %v2902_v37 = vpop.f32.mrf.mxu2  ;;  %v2954_v47 = vsel %vm2914_vm9, %v2897_v46, %v2946_v21 }
 0x9ad   :  { %v2903_v49 = vadd.f32 %v2902_v37, %v12143_v30  ;;  %v2962_v48 = vmul.f32 1.050701, %v2954_v47  ;;  %v3002_v10 = vmul.f32 %v10715_v31, %v3001_v63 }
 0x9af   :  { %v10717_v59 = vpop.eup %10716  ;;  %v2929_v57 = vmul.f32 1.442695, %v2903_v49  ;;  %v12170_v20 = vadd.f32 %v2962_v48, %v14933_v7  ;;  %vm2916_vm11 = vcmp.gt.f32.partialorder %v2903_v49, 0.0  ;;  %v3003_v39 = vadd.f32 %v10715_v31, %v3002_v10 }
 0x9b0   :  { %v10094_v14 = vadd.f32 -1.0, %v10717_v59 }
 0x9b1   :  { %10718 = vpow2.f32 %v2929_v57  ;;  %v2984_v45 = vsel %vm69_vm0, %v12170_v20, 0.0  ;;  %v12181_v3 = vsel %vm3004_vm12, %v10715_v31, %v3003_v39  ;;  %v14938_v31 = vld [vmem:[#allocation19_spill] sm:$0xff] }
 0x9b2   :  { %v2947_v18 = vmul.f32 1.6732632, %v10094_v14  ;;  %2985 = vadd.xlane.f32.xlu0 %v2984_v45  ;;  %14936 = vst [vmem:[#allocation9_spill] sm:$0xff] %v12181_v3 }
 0x9b4   :  { %v2905_v27 = vpop.f32.mrf.mxu3  ;;  %v2955_v34 = vsel %vm2915_vm10, %v2900_v11, %v2947_v18 }
 0x9b5   :  { %v2906_v32 = vadd.f32 %v2905_v27, %v12143_v30  ;;  %v2963_v24 = vmul.f32 1.050701, %v2955_v34 }
 0x9b7   :  { %v10719_v15 = vpop.eup %10718  ;;  %v2931_v35 = vmul.f32 1.442695, %v2906_v32  ;;  %v12176_v5 = vadd.f32 %v2963_v24, %v14934_v29  ;;  %vm2917_vm13 = vcmp.gt.f32.partialorder %v2906_v32, 0.0 }
 0x9b8   :  { %v10095_v44 = vadd.f32 -1.0, %v10719_v15 }
 0x9b9   :  { %10720 = vpow2.f32 %v2931_v35  ;;  %v2987_v1 = vsel %vm69_vm0, %v12176_v5, 0.0 }
 0x9ba   :  { %v2948_v8 = vmul.f32 1.6732632, %v10095_v44  ;;  %2988 = vadd.xlane.f32.xlu2 %v2987_v1 }
 0x9bc   :  { %v2956_v40 = vsel %vm2916_vm11, %v2903_v49, %v2948_v8  ;;  %v2908_v46 = vpop.f32.mrf.mxu3 }
 0x9bd   :  { %v2964_v54 = vmul.f32 1.050701, %v2956_v40  ;;  %v2909_v55 = vadd.f32 %v2908_v46, %v12143_v30 }
 0x9bf   :  { %v10721_v51 = vpop.eup %10720  ;;  %v2972_v60 = vadd.f32 %v2964_v54, %v14935_v56  ;;  %v2933_v0 = vmul.f32 1.442695, %v2909_v55  ;;  %vm2918_vm14 = vcmp.gt.f32.partialorder %v2909_v55, 0.0 }
 0x9c0   :  { %v10096_v36 = vadd.f32 -1.0, %v10721_v51 }
 0x9c1   :  { %v2990_v4 = vsel %vm69_vm0, %v2972_v60, 0.0  ;;  %10722 = vpow2.f32 %v2933_v0 }
 0x9c2   :  { %v2949_v23 = vmul.f32 1.6732632, %v10096_v36  ;;  %2991 = vadd.xlane.f32.xlu1 %v2990_v4  ;;  %v2977_v42 = vpop.xlane.xlu0 %2976  ;;  %v12241_v4 = vperm.slane %v12140_v41, 4 }
 0x9c3   :  { %v3006_v28 = vmul.f32 %v12181_v3, %v2977_v42  ;;  %v12244_v42 = vperm.slane %v12140_v41, 5 }
 0x9c4   :  { %v2957_v12 = vsel %vm2917_vm13, %v2906_v32, %v2949_v23 }
 0x9c5   :  { %v12186_v9 = vsub.f32 %v12150_v6, %v3006_v28  ;;  %v2965_v33 = vmul.f32 1.050701, %v2957_v12 }
 0x9c7   :  { %v2973_v50 = vadd.f32 %v2965_v33, %v14937_v22  ;;  %v3022_v2 = vmul.f32 %v12186_v9, %v12186_v9  ;;  %v10723_v53 = vpop.eup %10722 }
 0x9c8   :  { %v10097_v38 = vadd.f32 -1.0, %v10723_v53 }
 0x9c9   :  { %v2993_v16 = vsel %vm69_vm0, %v2973_v50, 0.0  ;;  %v3030_v61 = vsel %vm69_vm0, %v3022_v2, 0.0 }
 0x9ca   :  { %2994 = vadd.xlane.f32.xlu2 %v2993_v16  ;;  %3031 = vadd.xlane.f32.xlu0 %v3030_v61  ;;  %v2950_v19 = vmul.f32 1.6732632, %v10097_v38 }
 0x9cc   :  { %v2958_v21 = vsel %vm2918_vm14, %v2909_v55, %v2950_v19 }
 0x9cd   :  { %v2966_v47 = vmul.f32 1.050701, %v2958_v21 }
 0x9cf   :  { %v12209_v49 = vadd.f32 %v2966_v47, %v14938_v31 }
 0x9d1   :  { %v2996_v57 = vsel %vm69_vm0, %v12209_v49, 0.0 }
 0xa09   :  { %v2980_v58 = vpop.xlane.xlu2 %2979 }
 0xa0a   :  { %v3007_v6 = vmul.f32 %v12181_v3, %v2980_v58 }
 0xa0c   :  { %v12196_v43 = vsub.f32 %v12157_v13, %v3007_v6 }
 0xa0e   :  { %v3023_v62 = vmul.f32 %v12196_v43, %v12196_v43 }
 0xa10   :  { %v3033_v11 = vsel %vm69_vm0, %v3023_v62, 0.0 }
 0xa11   :  { %3034 = vadd.xlane.f32.xlu1 %v3033_v11 }
 0xa17   :  { %v2983_v52 = vpop.xlane.xlu1 %2982 }
 0xa18   :  { %v3008_v30 = vmul.f32 %v12181_v3, %v2983_v52 }
 0xa1a   :  { %v12203_v17 = vsub.f32 %v12163_v26, %v3008_v30 }
 0xa1c   :  { %v3024_v13 = vmul.f32 %v12203_v17, %v12203_v17 }
 0xa1e   :  { %v3036_v37 = vsel %vm69_vm0, %v3024_v13, 0.0 }
 0xa1f   :  { %3037 = vadd.xlane.f32.xlu0 %v3036_v37 }
 0xa25   :  { %v2986_v48 = vpop.xlane.xlu0 %2985 }
 0xa26   :  { %v3009_v59 = vmul.f32 %v12181_v3, %v2986_v48 }
 0xa27   :  { %2997 = vadd.xlane.f32.xlu0 %v2996_v57 }
 0xa28   :  { %v12215_v26 = vsub.f32 %v12170_v20, %v3009_v59 }
 0xa2a   :  { %v3025_v7 = vmul.f32 %v12215_v26, %v12215_v26 }
 0xa2c   :  { %v3039_v14 = vsel %vm69_vm0, %v3025_v7, 0.0 }
 0xa2d   :  { %3040 = vadd.xlane.f32.xlu2 %v3039_v14  ;;  %v2989_v25 = vpop.xlane.xlu2 %2988 }
 0xa2e   :  { %v3010_v45 = vmul.f32 %v12181_v3, %v2989_v25 }
 0xa30   :  { %v12222_v18 = vsub.f32 %v12176_v5, %v3010_v45 }
 0xa32   :  { %v3026_v27 = vmul.f32 %v12222_v18, %v12222_v18 }
 0xa34   :  { %v3042_v34 = vsel %vm69_vm0, %v3026_v27, 0.0 }
 0xa35   :  { %v2992_v63 = vpop.xlane.xlu1 %2991  ;;  %3043 = vadd.xlane.f32.xlu1 %v3042_v34 }
 0xa36   :  { %v3011_v20 = vmul.f32 %v12181_v3, %v2992_v63 }
 0xa38   :  { %v12228_v32 = vsub.f32 %v2972_v60, %v3011_v20 }
 0xa3a   :  { %v3027_v24 = vmul.f32 %v12228_v32, %v12228_v32 }
 0xa3c   :  { %v3045_v15 = vsel %vm69_vm0, %v3027_v24, 0.0 }
 0xa3d   :  { %3046 = vadd.xlane.f32.xlu2 %v3045_v15  ;;  %v2995_v35 = vpop.xlane.xlu2 %2994  ;;  %v3032_v29 = vpop.xlane.xlu0 %3031 }
 0xa3e   :  { %v3012_v5 = vmul.f32 %v12181_v3, %v2995_v35  ;;  %v3054_v44 = vmul.f32 %v3032_v29, %v12181_v3 }
 0xa40   :  { %v12235_v10 = vsub.f32 %v2973_v50, %v3012_v5  ;;  %v3062_v1 = vadd.f32 1e-05, %v3054_v44 }
 0xa42   :  { %10724 = vrsqrt.f32 %v3062_v1  ;;  %v3028_v8 = vmul.f32 %v12235_v10, %v12235_v10  ;;  %vm3076_vm2 = vweird.f32 %v3062_v1 }
 0xa44   :  { %v3048_v40 = vsel %vm69_vm0, %v3028_v8, 0.0 }
 0xa45   :  { %3049 = vadd.xlane.f32.xlu1 %v3048_v40 }
 0xa48   :  { %v10725_v39 = vpop.eup %10724 }
 0xa49   :  { %v3071_v54 = vmul.f32 %v10725_v39, %v3062_v1  ;;  %vm3077_vm15 = vweird.f32 %v10725_v39 }
 0xa4a   :  { %vm3078_vm3 = vmor %vm3076_vm2, %vm3077_vm15 }
 0xa4b   :  { %v3072_v51 = vmul.f32 %v10725_v39, %v3071_v54 }
 0xa4d   :  { %v3073_v56 = vmul.f32 0.5, %v3072_v51 }
 0xa4f   :  { %v3074_v60 = vsub.f32 1.5, %v3073_v56 }
 0xa51   :  { %v3075_v36 = vmul.f32 %v10725_v39, %v3074_v60 }
 0xa53   :  { %v3079_v23 = vsel %vm3078_vm3, %v10725_v39, %v3075_v36 }
 0xa54   :  { %v3150_v28 = vmul.f32 %v3079_v23, %v12186_v9 }
 0xa56   :  { %v3159_v12 = vmul.f32 %v12241_v4, %v3150_v28 }
 0xa58   :  { %v12249_v33 = vadd.f32 %v12244_v42, %v3159_v12 }
 0xa5a   :  { %v3176_v22 = vsel %vm69_vm0, %v12249_v33, 0.0 }
 0xa5b   :  { %3177 = vadd.xlane.f32.xlu0 %v3176_v22 }
 0xa84   :  { %v3035_v50 = vpop.xlane.xlu1 %3034 }
 0xa85   :  { %v3055_v2 = vmul.f32 %v3035_v50, %v12181_v3 }
 0xa87   :  { %v3063_v16 = vadd.f32 1e-05, %v3055_v2 }
 0xa89   :  { %10726 = vrsqrt.f32 %v3063_v16  ;;  %vm3086_vm7 = vweird.f32 %v3063_v16 }
 0xa8f   :  { %v10727_v61 = vpop.eup %10726 }
 0xa90   :  { %v3081_v46 = vmul.f32 %v10727_v61, %v3063_v16  ;;  %vm3087_vm6 = vweird.f32 %v10727_v61 }
 0xa91   :  { %vm3088_vm8 = vmor %vm3086_vm7, %vm3087_vm6 }
 0xa92   :  { %v3082_v55 = vmul.f32 %v10727_v61, %v3081_v46  ;;  %v3038_v0 = vpop.xlane.xlu0 %3037 }
 0xa93   :  { %v3056_v9 = vmul.f32 %v3038_v0, %v12181_v3 }
 0xa94   :  { %v3083_v58 = vmul.f32 0.5, %v3082_v55 }
 0xa95   :  { %v3064_v6 = vadd.f32 1e-05, %v3056_v9 }
 0xa96   :  { %v3084_v62 = vsub.f32 1.5, %v3083_v58 }
 0xa97   :  { %10728 = vrsqrt.f32 %v3064_v6  ;;  %vm3096_vm10 = vweird.f32 %v3064_v6 }
 0xa98   :  { %v3085_v53 = vmul.f32 %v10727_v61, %v3084_v62 }
 0xa9a   :  { %v2998_v11 = vpop.xlane.xlu0 %2997  ;;  %v3089_v38 = vsel %vm3088_vm8, %v10727_v61, %v3085_v53 }
 0xa9b   :  { %v3013_v19 = vmul.f32 %v12181_v3, %v2998_v11  ;;  %v3151_v52 = vmul.f32 %v3089_v38, %v12196_v43 }
 0xa9d   :  { %v10729_v30 = vpop.eup %10728  ;;  %v12258_v21 = vsub.f32 %v12209_v49, %v3013_v19  ;;  %v3160_v13 = vmul.f32 %v12241_v4, %v3151_v52 }
 0xa9e   :  { %v3091_v37 = vmul.f32 %v10729_v30, %v3064_v6  ;;  %vm3097_vm9 = vweird.f32 %v10729_v30 }
 0xa9f   :  { %v3029_v47 = vmul.f32 %v12258_v21, %v12258_v21  ;;  %v12264_v31 = vadd.f32 %v12244_v42, %v3160_v13  ;;  %vm3098_vm11 = vmor %vm3096_vm10, %vm3097_vm9 }
 0xaa0   :  { %v3092_v48 = vmul.f32 %v10729_v30, %v3091_v37  ;;  %v3041_v59 = vpop.xlane.xlu2 %3040 }
 0xaa1   :  { %v3057_v57 = vmul.f32 %v3041_v59, %v12181_v3  ;;  %v3051_v7 = vsel %vm69_vm0, %v3029_v47, 0.0  ;;  %v3179_v43 = vsel %vm69_vm0, %v12264_v31, 0.0 }
 0xaa2   :  { %v3093_v49 = vmul.f32 0.5, %v3092_v48  ;;  %3052 = vadd.xlane.f32.xlu0 %v3051_v7  ;;  %3180 = vadd.xlane.f32.xlu2 %v3179_v43 }
 0xaa3   :  { %v3065_v14 = vadd.f32 1e-05, %v3057_v57 }
 0xaa4   :  { %v3094_v25 = vsub.f32 1.5, %v3093_v49 }
 0xaa5   :  { %10730 = vrsqrt.f32 %v3065_v14  ;;  %vm3106_vm13 = vweird.f32 %v3065_v14 }
 0xaa6   :  { %v3095_v45 = vmul.f32 %v10729_v30, %v3094_v25 }
 0xaa8   :  { %v3044_v27 = vpop.xlane.xlu1 %3043  ;;  %v3099_v34 = vsel %vm3098_vm11, %v10729_v30, %v3095_v45 }
 0xaa9   :  { %v3058_v63 = vmul.f32 %v3044_v27, %v12181_v3  ;;  %v3152_v20 = vmul.f32 %v3099_v34, %v12203_v17 }
 0xaab   :  { %v10731_v24 = vpop.eup %10730  ;;  %v3066_v15 = vadd.f32 1e-05, %v3058_v63  ;;  %v3161_v35 = vmul.f32 %v12241_v4, %v3152_v20 }
 0xaac   :  { %v3101_v29 = vmul.f32 %v10731_v24, %v3065_v14  ;;  %vm3107_vm12 = vweird.f32 %v10731_v24 }
 0xaad   :  { %10732 = vrsqrt.f32 %v3066_v15  ;;  %v12274_v5 = vadd.f32 %v12244_v42, %v3161_v35  ;;  %vm3108_vm14 = vmor %vm3106_vm13, %vm3107_vm12  ;;  %vm3116_vm2 = vweird.f32 %v3066_v15 }
 0xaae   :  { %v3102_v44 = vmul.f32 %v10731_v24, %v3101_v29 }
 0xaaf   :  { %v3182_v1 = vsel %vm69_vm0, %v12274_v5, 0.0 }
 0xab0   :  { %v3103_v8 = vmul.f32 0.5, %v3102_v44  ;;  %3183 = vadd.xlane.f32.xlu1 %v3182_v1  ;;  %v3047_v40 = vpop.xlane.xlu2 %3046 }
 0xab1   :  { %v3059_v39 = vmul.f32 %v3047_v40, %v12181_v3 }
 0xab2   :  { %v3104_v54 = vsub.f32 1.5, %v3103_v8 }
 0xab3   :  { %v10733_v17 = vpop.eup %10732  ;;  %v3067_v51 = vadd.f32 1e-05, %v3059_v39 }
 0xab4   :  { %v3105_v56 = vmul.f32 %v10731_v24, %v3104_v54  ;;  %v3111_v60 = vmul.f32 %v10733_v17, %v3066_v15  ;;  %vm3117_vm15 = vweird.f32 %v10733_v17 }
 0xab5   :  { %10734 = vrsqrt.f32 %v3067_v51  ;;  %vm3118_vm3 = vmor %vm3116_vm2, %vm3117_vm15  ;;  %vm3126_vm7 = vweird.f32 %v3067_v51 }
 0xab6   :  { %v3112_v36 = vmul.f32 %v10733_v17, %v3111_v60  ;;  %v3109_v23 = vsel %vm3108_vm14, %v10731_v24, %v3105_v56 }
 0xab7   :  { %v3153_v28 = vmul.f32 %v3109_v23, %v12215_v26 }
 0xab8   :  { %v3113_v12 = vmul.f32 0.5, %v3112_v36  ;;  %v3050_v22 = vpop.xlane.xlu1 %3049 }
 0xab9   :  { %v3060_v50 = vmul.f32 %v3050_v22, %v12181_v3  ;;  %v3162_v2 = vmul.f32 %v12241_v4, %v3153_v28 }
 0xaba   :  { %v3114_v16 = vsub.f32 1.5, %v3113_v12 }
 0xabb   :  { %v10735_v61 = vpop.eup %10734  ;;  %v3068_v46 = vadd.f32 1e-05, %v3060_v50  ;;  %v12283_v55 = vadd.f32 %v12244_v42, %v3162_v2 }
 0xabc   :  { %v3115_v0 = vmul.f32 %v10733_v17, %v3114_v16  ;;  %v3121_v9 = vmul.f32 %v10735_v61, %v3067_v51  ;;  %vm3127_vm6 = vweird.f32 %v10735_v61 }
 0xabd   :  { %10736 = vrsqrt.f32 %v3068_v46  ;;  %v3185_v26 = vsel %vm69_vm0, %v12283_v55, 0.0  ;;  %vm3128_vm8 = vmor %vm3126_vm7, %vm3127_vm6  ;;  %vm3136_vm10 = vweird.f32 %v3068_v46 }
 0xabe   :  { %v3122_v58 = vmul.f32 %v10735_v61, %v3121_v9  ;;  %3186 = vadd.xlane.f32.xlu2 %v3185_v26  ;;  %v3119_v6 = vsel %vm3118_vm3, %v10733_v17, %v3115_v0 }
 0xabf   :  { %v3154_v62 = vmul.f32 %v3119_v6, %v12222_v18 }
 0xac0   :  { %v3123_v53 = vmul.f32 0.5, %v3122_v58 }
 0xac1   :  { %v3163_v11 = vmul.f32 %v12241_v4, %v3154_v62 }
 0xac2   :  { %v3124_v38 = vsub.f32 1.5, %v3123_v53 }
 0xac3   :  { %v10737_v19 = vpop.eup %10736  ;;  %v12290_v52 = vadd.f32 %v12244_v42, %v3163_v11 }
 0xac4   :  { %v3125_v30 = vmul.f32 %v10735_v61, %v3124_v38  ;;  %v3131_v13 = vmul.f32 %v10737_v19, %v3068_v46  ;;  %vm3137_vm9 = vweird.f32 %v10737_v19  ;;  %v12361_v38 = vld [vmem:[%s14861_s2 + $0x30] sm:$0xff] }
 0xac5   :  { %v3188_v37 = vsel %vm69_vm0, %v12290_v52, 0.0  ;;  %vm3138_vm11 = vmor %vm3136_vm10, %vm3137_vm9 }
 0xac6   :  { %v3132_v47 = vmul.f32 %v10737_v19, %v3131_v13  ;;  %3189 = vadd.xlane.f32.xlu1 %v3188_v37  ;;  %v3129_v48 = vsel %vm3128_vm8, %v10735_v61, %v3125_v30 }
 0xac7   :  { %v3155_v18 = vmul.f32 %v3129_v48, %v12228_v32 }
 0xac8   :  { %v3133_v59 = vmul.f32 0.5, %v3132_v47 }
 0xac9   :  { %v3164_v57 = vmul.f32 %v12241_v4, %v3155_v18 }
 0xaca   :  { %v3134_v7 = vsub.f32 1.5, %v3133_v59 }
 0xacb   :  { %v12297_v43 = vadd.f32 %v12244_v42, %v3164_v57 }
 0xacc   :  { %v3135_v49 = vmul.f32 %v10737_v19, %v3134_v7 }
 0xacd   :  { %v3191_v14 = vsel %vm69_vm0, %v12297_v43, 0.0 }
 0xace   :  { %3192 = vadd.xlane.f32.xlu0 %v3191_v14  ;;  %v3178_v25 = vpop.xlane.xlu0 %3177  ;;  %v3139_v45 = vsel %vm3138_vm11, %v10737_v19, %v3135_v49  ;;  %v12366_v19 = vld [vmem:[%s14861_s2 + $0x28] sm:$0xff] }
 0xacf   :  { %v3200_v27 = vmul.f32 %v3178_v25, %v12181_v3  ;;  %v3156_v32 = vmul.f32 %v3139_v45, %v12235_v10 }
 0xad1   :  { %v12304_v34 = vsub.f32 %v12249_v33, %v3200_v27  ;;  %v3165_v63 = vmul.f32 %v12241_v4, %v3156_v32 }
 0xad3   :  { %v12308_v20 = vadd.f32 %v12244_v42, %v3165_v63  ;;  %v3216_v24 = vmul.f32 %v12304_v34, %v12304_v34 }
 0xad5   :  { %v3194_v15 = vsel %vm69_vm0, %v12308_v20, 0.0  ;;  %v3224_v35 = vsel %vm69_vm0, %v3216_v24, 0.0 }
 0xad6   :  { %3195 = vadd.xlane.f32.xlu1 %v3194_v15  ;;  %3225 = vadd.xlane.f32.xlu2 %v3224_v35  ;;  %v12394_v15 = vld [vmem:[#allocation4 + $0x8] sm:$0xff] }
 0xb15   :  { %v3053_v29 = vpop.xlane.xlu0 %3052  ;;  %v3181_v10 = vpop.xlane.xlu2 %3180 }
 0xb16   :  { %v3061_v33 = vmul.f32 %v3053_v29, %v12181_v3  ;;  %v3201_v44 = vmul.f32 %v3181_v10, %v12181_v3  ;;  %v3451_v29 = vperm.slane %v12394_v15, 1 }
 0xb18   :  { %v3069_v1 = vadd.f32 1e-05, %v3061_v33  ;;  %v12318_v8 = vsub.f32 %v12264_v31, %v3201_v44  ;;  %v12401_v33 = vperm.slane %v12140_v41, 7 }
 0xb1a   :  { %10738 = vrsqrt.f32 %v3069_v1  ;;  %v3217_v40 = vmul.f32 %v12318_v8, %v12318_v8  ;;  %vm3146_vm13 = vweird.f32 %v3069_v1 }
 0xb1c   :  { %v3227_v39 = vsel %vm69_vm0, %v3217_v40, 0.0 }
 0xb1d   :  { %3228 = vadd.xlane.f32.xlu0 %v3227_v39 }
 0xb20   :  { %v10739_v54 = vpop.eup %10738 }
 0xb21   :  { %v3141_v17 = vmul.f32 %v10739_v54, %v3069_v1  ;;  %vm3147_vm12 = vweird.f32 %v10739_v54 }
 0xb22   :  { %vm3148_vm14 = vmor %vm3146_vm13, %vm3147_vm12 }
 0xb23   :  { %v3142_v51 = vmul.f32 %v10739_v54, %v3141_v17  ;;  %v3184_v56 = vpop.xlane.xlu1 %3183 }
 0xb24   :  { %v3202_v60 = vmul.f32 %v3184_v56, %v12181_v3 }
 0xb25   :  { %v3143_v36 = vmul.f32 0.5, %v3142_v51 }
 0xb26   :  { %v12325_v23 = vsub.f32 %v12274_v5, %v3202_v60 }
 0xb27   :  { %v3144_v28 = vsub.f32 1.5, %v3143_v36 }
 0xb28   :  { %v3218_v31 = vmul.f32 %v12325_v23, %v12325_v23 }
 0xb29   :  { %v3145_v12 = vmul.f32 %v10739_v54, %v3144_v28 }
 0xb2a   :  { %v3230_v22 = vsel %vm69_vm0, %v3218_v31, 0.0 }
 0xb2b   :  { %3231 = vadd.xlane.f32.xlu2 %v3230_v22  ;;  %v3149_v50 = vsel %vm3148_vm14, %v10739_v54, %v3145_v12 }
 0xb2c   :  { %v3157_v2 = vmul.f32 %v3149_v50, %v12258_v21 }
 0xb2e   :  { %v3166_v16 = vmul.f32 %v12241_v4, %v3157_v2 }
 0xb30   :  { %v12333_v61 = vadd.f32 %v12244_v42, %v3166_v16 }
 0xb31   :  { %v3187_v5 = vpop.xlane.xlu2 %3186 }
 0xb32   :  { %v3203_v46 = vmul.f32 %v3187_v5, %v12181_v3  ;;  %v3197_v0 = vsel %vm69_vm0, %v12333_v61, 0.0 }
 0xb33   :  { %3198 = vadd.xlane.f32.xlu2 %v3197_v0 }
 0xb34   :  { %v12339_v9 = vsub.f32 %v12283_v55, %v3203_v46  ;;  %v12354_v55 = vld [vmem:[%s14861_s2 + $0x38] sm:$0xff] }
 0xb35   :  { %3413 = vmatpush.msra.mxu2 %v12354_v55 }
 0xb36   :  { %v3219_v26 = vmul.f32 %v12339_v9, %v12339_v9 }
 0xb37   :  { %3414 = vmatpush.msra.mxu2 %v12361_v38 }
 0xb38   :  { %v3233_v21 = vsel %vm69_vm0, %v3219_v26, 0.0 }
 0xb39   :  { %v3190_v58 = vpop.xlane.xlu1 %3189  ;;  %3234 = vadd.xlane.f32.xlu1 %v3233_v21  ;;  %3415 = vmatpush.msra.mxu2 %v12366_v19 }
 0xb3a   :  { %v3204_v4 = vmul.f32 %v3190_v58, %v12181_v3 }
 0xb3c   :  { %v12346_v42 = vsub.f32 %v12290_v52, %v3204_v4  ;;  %v12371_v52 = vld [vmem:[%s14861_s2 + $0x20] sm:$0xff] }
 0xb3d   :  { %3416 = vmatpush.msra.mxu2 %v12371_v52 }
 0xb3e   :  { %v3220_v6 = vmul.f32 %v12346_v42, %v12346_v42 }
 0xb40   :  { %v3236_v62 = vsel %vm69_vm0, %v3220_v6, 0.0 }
 0xb41   :  { %v3193_v53 = vpop.xlane.xlu0 %3192  ;;  %3237 = vadd.xlane.f32.xlu0 %v3236_v62 }
 0xb42   :  { %v3205_v11 = vmul.f32 %v3193_v53, %v12181_v3 }
 0xb44   :  { %v12378_v37 = vsub.f32 %v12297_v43, %v3205_v11 }
 0xb46   :  { %v3221_v47 = vmul.f32 %v12378_v37, %v12378_v37 }
 0xb48   :  { %v3239_v48 = vsel %vm69_vm0, %v3221_v47, 0.0 }
 0xb49   :  { %v3196_v18 = vpop.xlane.xlu1 %3195  ;;  %3240 = vadd.xlane.f32.xlu1 %v3239_v48  ;;  %v3226_v59 = vpop.xlane.xlu2 %3225 }
 0xb4a   :  { %v3206_v57 = vmul.f32 %v3196_v18, %v12181_v3  ;;  %v3248_v7 = vmul.f32 %v3226_v59, %v12181_v3 }
 0xb4c   :  { %v12389_v43 = vsub.f32 %v12308_v20, %v3206_v57  ;;  %v3256_v49 = vadd.f32 1e-05, %v3248_v7  ;;  %v12397_v20 = vperm.slane %v12140_v41, 6 }
 0xb4e   :  { %10740 = vrsqrt.f32 %v3256_v49  ;;  %v3222_v14 = vmul.f32 %v12389_v43, %v12389_v43  ;;  %vm3270_vm2 = vweird.f32 %v3256_v49 }
 0xb50   :  { %v3242_v25 = vsel %vm69_vm0, %v3222_v14, 0.0 }
 0xb51   :  { %3243 = vadd.xlane.f32.xlu0 %v3242_v25 }
 0xb54   :  { %v10741_v45 = vpop.eup %10740 }
 0xb55   :  { %v3265_v27 = vmul.f32 %v10741_v45, %v3256_v49  ;;  %vm3271_vm15 = vweird.f32 %v10741_v45 }
 0xb56   :  { %vm3272_vm3 = vmor %vm3270_vm2, %vm3271_vm15 }
 0xb57   :  { %v3266_v32 = vmul.f32 %v10741_v45, %v3265_v27 }
 0xb59   :  { %v3267_v63 = vmul.f32 0.5, %v3266_v32 }
 0xb5b   :  { %v3268_v24 = vsub.f32 1.5, %v3267_v63 }
 0xb5d   :  { %v3269_v35 = vmul.f32 %v10741_v45, %v3268_v24 }
 0xb5f   :  { %v3273_v10 = vsel %vm3272_vm3, %v10741_v45, %v3269_v35 }
 0xb60   :  { %v3344_v44 = vmul.f32 %v3273_v10, %v12304_v34 }
 0xb62   :  { %v3353_v1 = vmul.f32 %v12397_v20, %v3344_v44  ;;  %3453 = vrot.lane.b32.xlu1 %v3451_v29, %s11167_s9 }
 0xb64   :  { %v12407_v40 = vadd.f32 %v12401_v33, %v3353_v1 }
 0xb66   :  { %14939 = vst [vmem:[#allocation8_spill] sm:$0xff] %v12407_v40  ;;  %10102 = vmatmul.msk.f32.vlgmr.msra.gmra.mxu2 %vm69_vm0, %v12407_v40 }
 0xb90   :  { %v3229_v39 = vpop.xlane.xlu0 %3228 }
 0xb91   :  { %v3249_v54 = vmul.f32 %v3229_v39, %v12181_v3 }
 0xb93   :  { %v3257_v17 = vadd.f32 1e-05, %v3249_v54 }
 0xb95   :  { %10742 = vrsqrt.f32 %v3257_v17  ;;  %vm3280_vm7 = vweird.f32 %v3257_v17 }
 0xb9b   :  { %v10743_v51 = vpop.eup %10742 }
 0xb9c   :  { %v3275_v41 = vmul.f32 %v10743_v51, %v3257_v17  ;;  %vm3281_vm6 = vweird.f32 %v10743_v51 }
 0xb9d   :  { %vm3282_vm8 = vmor %vm3280_vm7, %vm3281_vm6 }
 0xb9e   :  { %v3276_v56 = vmul.f32 %v10743_v51, %v3275_v41  ;;  %v3232_v60 = vpop.xlane.xlu2 %3231 }
 0xb9f   :  { %v3250_v34 = vmul.f32 %v3232_v60, %v12181_v3 }
 0xba0   :  { %v3277_v36 = vmul.f32 0.5, %v3276_v56 }
 0xba1   :  { %v3258_v28 = vadd.f32 1e-05, %v3250_v34 }
 0xba2   :  { %v3278_v31 = vsub.f32 1.5, %v3277_v36 }
 0xba3   :  { %10744 = vrsqrt.f32 %v3258_v28  ;;  %vm3290_vm10 = vweird.f32 %v3258_v28 }
 0xba4   :  { %v3279_v12 = vmul.f32 %v10743_v51, %v3278_v31 }
 0xba6   :  { %v3199_v22 = vpop.xlane.xlu2 %3198  ;;  %v3283_v50 = vsel %vm3282_vm8, %v10743_v51, %v3279_v12 }
 0xba7   :  { %v3207_v2 = vmul.f32 %v3199_v22, %v12181_v3  ;;  %v3345_v16 = vmul.f32 %v3283_v50, %v12318_v8 }
 0xba9   :  { %v10745_v5 = vpop.eup %10744  ;;  %v12416_v46 = vsub.f32 %v12333_v61, %v3207_v2  ;;  %v3354_v0 = vmul.f32 %v12397_v20, %v3345_v16 }
 0xbaa   :  { %v3285_v26 = vmul.f32 %v10745_v5, %v3258_v28  ;;  %vm3291_vm9 = vweird.f32 %v10745_v5 }
 0xbab   :  { %v12420_v21 = vadd.f32 %v12401_v33, %v3354_v0  ;;  %v3223_v58 = vmul.f32 %v12416_v46, %v12416_v46  ;;  %vm3292_vm11 = vmor %vm3290_vm10, %vm3291_vm9 }
 0xbac   :  { %v3286_v4 = vmul.f32 %v10745_v5, %v3285_v26  ;;  %v3235_v6 = vpop.xlane.xlu1 %3234 }
 0xbad   :  { %14940 = vst [vmem:[#allocation20_spill] sm:$0xff] %v12420_v21  ;;  %v3251_v62 = vmul.f32 %v3235_v6, %v12181_v3  ;;  %10103 = vmatmul.msk.f32.gmra.mxu2 %vm69_vm0, %v12420_v21  ;;  %v3245_v8 = vsel %vm69_vm0, %v3223_v58, 0.0 }
 0xbae   :  { %v3287_v61 = vmul.f32 0.5, %v3286_v4  ;;  %3246 = vadd.xlane.f32.xlu2 %v3245_v8 }
 0xbaf   :  { %v3259_v53 = vadd.f32 1e-05, %v3251_v62 }
 0xbb0   :  { %v3288_v11 = vsub.f32 1.5, %v3287_v61 }
 0xbb1   :  { %10746 = vrsqrt.f32 %v3259_v53  ;;  %vm3300_vm13 = vweird.f32 %v3259_v53 }
 0xbb2   :  { %v3289_v47 = vmul.f32 %v10745_v5, %v3288_v11 }
 0xbb4   :  { %v3238_v48 = vpop.xlane.xlu0 %3237  ;;  %v3293_v18 = vsel %vm3292_vm11, %v10745_v5, %v3289_v47 }
 0xbb5   :  { %v3252_v59 = vmul.f32 %v3238_v48, %v12181_v3  ;;  %v3346_v57 = vmul.f32 %v3293_v18, %v12325_v23 }
 0xbb7   :  { %v10747_v7 = vpop.eup %10746  ;;  %v3260_v49 = vadd.f32 1e-05, %v3252_v59  ;;  %v3355_v14 = vmul.f32 %v12397_v20, %v3346_v57 }
 0xbb8   :  { %v3295_v25 = vmul.f32 %v10747_v7, %v3259_v53  ;;  %vm3301_vm12 = vweird.f32 %v10747_v7 }
 0xbb9   :  { %10748 = vrsqrt.f32 %v3260_v49  ;;  %v12432_v45 = vadd.f32 %v12401_v33, %v3355_v14  ;;  %vm3302_vm14 = vmor %vm3300_vm13, %vm3301_vm12  ;;  %vm3310_vm2 = vweird.f32 %v3260_v49 }
 0xbba   :  { %v3296_v27 = vmul.f32 %v10747_v7, %v3295_v25 }
 0xbbb   :  { %14941 = vst [vmem:[#allocation11_spill] sm:$0xff] %v12432_v45  ;;  %10104 = vmatmul.msk.f32.gmra.mxu2 %vm69_vm0, %v12432_v45 }
 0xbbc   :  { %v3297_v32 = vmul.f32 0.5, %v3296_v27  ;;  %v3241_v63 = vpop.xlane.xlu1 %3240 }
 0xbbd   :  { %v3253_v24 = vmul.f32 %v3241_v63, %v12181_v3 }
 0xbbe   :  { %v3298_v35 = vsub.f32 1.5, %v3297_v32 }
 0xbbf   :  { %v10749_v23 = vpop.eup %10748  ;;  %v3261_v29 = vadd.f32 1e-05, %v3253_v24 }
 0xbc0   :  { %v3299_v10 = vmul.f32 %v10747_v7, %v3298_v35  ;;  %v3305_v44 = vmul.f32 %v10749_v23, %v3260_v49  ;;  %vm3311_vm15 = vweird.f32 %v10749_v23 }
 0xbc1   :  { %10750 = vrsqrt.f32 %v3261_v29  ;;  %vm3312_vm3 = vmor %vm3310_vm2, %vm3311_vm15  ;;  %vm3320_vm7 = vweird.f32 %v3261_v29 }
 0xbc2   :  { %v3306_v1 = vmul.f32 %v10749_v23, %v3305_v44  ;;  %v3303_v39 = vsel %vm3302_vm14, %v10747_v7, %v3299_v10 }
 0xbc3   :  { %v3347_v54 = vmul.f32 %v3303_v39, %v12339_v9 }
 0xbc4   :  { %v3307_v17 = vmul.f32 0.5, %v3306_v1  ;;  %v3244_v51 = vpop.xlane.xlu0 %3243 }
 0xbc5   :  { %v3254_v41 = vmul.f32 %v3244_v51, %v12181_v3  ;;  %v3356_v56 = vmul.f32 %v12397_v20, %v3347_v54 }
 0xbc6   :  { %v3308_v60 = vsub.f32 1.5, %v3307_v17 }
 0xbc7   :  { %v10751_v34 = vpop.eup %10750  ;;  %v3262_v36 = vadd.f32 1e-05, %v3254_v41  ;;  %v12441_v28 = vadd.f32 %v12401_v33, %v3356_v56 }
 0xbc8   :  { %v3309_v31 = vmul.f32 %v10749_v23, %v3308_v60  ;;  %v3315_v12 = vmul.f32 %v10751_v34, %v3261_v29  ;;  %vm3321_vm6 = vweird.f32 %v10751_v34 }
 0xbc9   :  { %14942 = vst [vmem:[#allocation10_spill] sm:$0xff] %v12441_v28  ;;  %10752 = vrsqrt.f32 %v3262_v36  ;;  %10105 = vmatmul.msk.f32.gmra.mxu2 %vm69_vm0, %v12441_v28  ;;  %vm3322_vm8 = vmor %vm3320_vm7, %vm3321_vm6  ;;  %vm3330_vm10 = vweird.f32 %v3262_v36 }
 0xbca   :  { %v3313_v9 = vsel %vm3312_vm3, %v10749_v23, %v3309_v31  ;;  %v3316_v22 = vmul.f32 %v10751_v34, %v3315_v12 }
 0xbcb   :  { %v3348_v50 = vmul.f32 %v3313_v9, %v12346_v42 }
 0xbcc   :  { %v3317_v2 = vmul.f32 0.5, %v3316_v22  ;;  %v3464_v22 = vperm.slane %v12394_v15, 2 }
 0xbcd   :  { %v3357_v16 = vmul.f32 %v12397_v20, %v3348_v50 }
 0xbce   :  { %v3318_v5 = vsub.f32 1.5, %v3317_v2 }
 0xbcf   :  { %v10753_v0 = vpop.eup %10752  ;;  %v12448_v26 = vadd.f32 %v12401_v33, %v3357_v16 }
 0xbd0   :  { %v3319_v58 = vmul.f32 %v10751_v34, %v3318_v5  ;;  %v3325_v4 = vmul.f32 %v10753_v0, %v3262_v36  ;;  %vm3331_vm9 = vweird.f32 %v10753_v0 }
 0xbd1   :  { %14943 = vst [vmem:[#allocation12_spill] sm:$0xff] %v12448_v26  ;;  %10106 = vmatmul.msk.f32.gmra.mxu2 %vm69_vm0, %v12448_v26  ;;  %vm3332_vm11 = vmor %vm3330_vm10, %vm3331_vm9 }
 0xbd2   :  { %v3323_v6 = vsel %vm3322_vm8, %v10751_v34, %v3319_v58  ;;  %v3326_v62 = vmul.f32 %v10753_v0, %v3325_v4 }
 0xbd3   :  { %v3349_v42 = vmul.f32 %v3323_v6, %v12378_v37 }
 0xbd4   :  { %v3327_v8 = vmul.f32 0.5, %v3326_v62  ;;  %v3454_v57 = vpop.permute.xlu1 %3453 }
 0xbd5   :  { %v3358_v61 = vmul.f32 %v12397_v20, %v3349_v42 }
 0xbd6   :  { %v3328_v53 = vsub.f32 1.5, %v3327_v8 }
 0xbd7   :  { %v12455_v11 = vadd.f32 %v12401_v33, %v3358_v61 }
 0xbd8   :  { %v3329_v47 = vmul.f32 %v10753_v0, %v3328_v53 }
 0xbd9   :  { %14944 = vst [vmem:[#allocation13_spill] sm:$0xff] %v12455_v11  ;;  %10107 = vmatmul.msk.f32.gmra.mxu2 %vm69_vm0, %v12455_v11 }
 0xbda   :  { %v3333_v48 = vsel %vm3332_vm11, %v10753_v0, %v3329_v47 }
 0xbdb   :  { %v3350_v18 = vmul.f32 %v3333_v48, %v12389_v43 }
 0xbdd   :  { %v3359_v59 = vmul.f32 %v12397_v20, %v3350_v18 }
 0xbdf   :  { %v12462_v37 = vadd.f32 %v12401_v33, %v3359_v59 }
 0xbe1   :  { %14945 = vst [vmem:[#allocation14_spill] sm:$0xff] %v12462_v37  ;;  %10108 = vmatmul.msk.f32.gmra.mxu2 %vm69_vm0, %v12462_v37 }
 0xbe9   :  { %v12466_v7 = vpop.f32.mrf.mxu2 }
 0xbea   :  { %v12469_v49 = vadd.f32 %v3454_v57, %v12466_v7 }
 0xbec   :  { %3478 = vrot.lane.b32.xlu0 %v12469_v49, %s11168_s24 }
 0xc21   :  { %v3247_v14 = vpop.xlane.xlu2 %3246 }
 0xc22   :  { %v3255_v43 = vmul.f32 %v3247_v14, %v12181_v3 }
 0xc24   :  { %v3263_v25 = vadd.f32 1e-05, %v3255_v43 }
 0xc26   :  { %10754 = vrsqrt.f32 %v3263_v25  ;;  %vm3340_vm13 = vweird.f32 %v3263_v25 }
 0xc2c   :  { %v10755_v27 = vpop.eup %10754 }
 0xc2d   :  { %v3335_v32 = vmul.f32 %v10755_v27, %v3263_v25  ;;  %vm3341_vm12 = vweird.f32 %v10755_v27 }
 0xc2e   :  { %vm3342_vm14 = vmor %vm3340_vm13, %vm3341_vm12 }
 0xc2f   :  { %v3336_v63 = vmul.f32 %v10755_v27, %v3335_v32 }
 0xc30   :  { %v12474_v29 = vpop.f32.mrf.mxu2 }
 0xc31   :  { %v3337_v24 = vmul.f32 0.5, %v3336_v63  ;;  %v12504_v60 = vadd.f32 %v3454_v57, %v12474_v29 }
 0xc33   :  { %v3338_v35 = vsub.f32 1.5, %v3337_v24 }
 0xc35   :  { %v3339_v23 = vmul.f32 %v10755_v27, %v3338_v35 }
 0xc37   :  { %v3343_v10 = vsel %vm3342_vm14, %v10755_v27, %v3339_v23 }
 0xc38   :  { %v3351_v44 = vmul.f32 %v3343_v10, %v12416_v46  ;;  %v12499_v46 = vperm.slane %v12394_v15, 0 }
 0xc3a   :  { %v3360_v1 = vmul.f32 %v12397_v20, %v3351_v44  ;;  %v12511_v36 = vadd.f32 %v12499_v46, %v12466_v7  ;;  %v12550_v6 = vadd.f32 %v12499_v46, %v12474_v29 }
 0xc3c   :  { %v12479_v39 = vadd.f32 %v12401_v33, %v3360_v1 }
 0xc3e   :  { %14946 = vst [vmem:[#allocation15_spill] sm:$0xff] %v12479_v39  ;;  %v3424_v54 = vpop.f32.mrf.mxu2  ;;  %10109 = vmatmul.msk.f32.gmra.mxu2 %vm69_vm0, %v12479_v39 }
 0xc3f   :  { %v12483_v17 = vadd.f32 %v3454_v57, %v3424_v54  ;;  %v12530_v2 = vadd.f32 %v12499_v46, %v3424_v54 }
 0xc41   :  { %3534 = vrot.lane.b32.xlu2 %v12483_v17, %s11168_s24 }
 0xc4c   :  { %v12487_v51 = vpop.f32.mrf.mxu2 }
 0xc4d   :  { %v12490_v41 = vadd.f32 %v3454_v57, %v12487_v51  ;;  %v12558_v42 = vadd.f32 %v12499_v46, %v12487_v51 }
 0xc4f   :  { %3562 = vrot.lane.b32.xlu2 %v12490_v41, %s11168_s24 }
 0xc54   :  { %v3430_v20 = vpop.f32.mrf.mxu2 }
 0xc55   :  { %v12494_v33 = vadd.f32 %v3454_v57, %v3430_v20  ;;  %v12543_v0 = vadd.f32 %v12499_v46, %v3430_v20 }
 0xc57   :  { %3590 = vrot.lane.b32.xlu0 %v12494_v33, %s11168_s24 }
 0xc5c   :  { %v12501_v56 = vpop.f32.mrf.mxu2 }
 0xc5d   :  { %v12520_v9 = vadd.f32 %v3454_v57, %v12501_v56  ;;  %v12570_v53 = vadd.f32 %v12499_v46, %v12501_v56 }
 0xc5e   :  { %v3479_v34 = vpop.permute.xlu0 %3478 }
 0xc5f   :  { %3506 = vrot.lane.b32.xlu0 %v12504_v60, %s11168_s24  ;;  %10110 = vmatpush.xpose.msk.msrb.mxu3 %vm173_vm1, %v3479_v34 }
 0xc62   :  { %10111 = vmatmul.msk.f32.vlgmr.msrb.gmra.mxu3 %vm173_vm1, %v12511_v36 }
 0xc64   :  { %v3436_v31 = vpop.f32.mrf.mxu2 }
 0xc65   :  { %v12515_v12 = vadd.f32 %v3454_v57, %v3436_v31  ;;  %v12561_v8 = vadd.f32 %v12499_v46, %v3436_v31 }
 0xc67   :  { %3646 = vrot.lane.b32.xlu1 %v12515_v12, %s11168_s24 }
 0xc6f   :  { %3618 = vrot.lane.b32.xlu1 %v12520_v9, %s11168_s24 }
 0xc77   :  { %3466 = vrot.lane.b32.xlu1 %v3464_v22, %s11169_s0 }
 0xc7f   :  { %4147 = vrot.lane.b32.xlu1 %v12504_v60, %s11170_s25 }
 0xc9b   :  { %v3535_v50 = vpop.permute.xlu2 %3534 }
 0xc9c   :  { %10114 = vmatpush.xpose.msk.msra.mxu3 %vm173_vm1, %v3535_v50 }
 0xc9f   :  { %10115 = vmatmul.msk.f32.vlgmr.msra.gmra.mxu3 %vm173_vm1, %v12530_v2 }
 0xca9   :  { %v3563_v4 = vpop.permute.xlu2 %3562 }
 0xcc1   :  { %v12534_v16 = vpop.f32.mrf.mxu2 }
 0xcc2   :  { %v12537_v5 = vadd.f32 %v3454_v57, %v12534_v16  ;;  %v12617_v1 = vadd.f32 %v12499_v46, %v12534_v16 }
 0xcc4   :  { %3674 = vrot.lane.b32.xlu0 %v12537_v5, %s11168_s24 }
 0xcc9   :  { %v3591_v15 = vpop.permute.xlu0 %3590 }
 0xcca   :  { %10118 = vmatpush.xpose.msk.msrb.mxu3 %vm173_vm1, %v3591_v15 }
 0xccd   :  { %10119 = vmatmul.msk.f32.vlgmr.msrb.gmra.mxu3 %vm173_vm1, %v12543_v0 }
 0xcd1   :  { %v3507_v58 = vpop.permute.xlu0 %3506 }
 0xcd2   :  { %10112 = vmatpush.xpose.msk.msrb.mxu0 %vm173_vm1, %v3507_v58 }
 0xcd5   :  { %10113 = vmatmul.msk.f32.vlgmr.msrb.gmra.mxu0 %vm173_vm1, %v12550_v6 }
 0xcd6   :  { %10116 = vmatpush.xpose.msk.msra.mxu0 %vm173_vm1, %v3563_v4 }
 0xcd9   :  { %v3647_v62 = vpop.permute.xlu1 %3646 }
 0xcda   :  { %10122 = vmatpush.xpose.msk.msra.mxu3 %vm173_vm1, %v3647_v62 }
 0xcdd   :  { %10117 = vmatmul.msk.f32.vlgmr.msra.gmra.mxu0 %vm173_vm1, %v12558_v42  ;;  %10123 = vmatmul.msk.f32.vlgmr.msra.gmra.mxu3 %vm173_vm1, %v12561_v8 }
 0xce1   :  { %v3619_v61 = vpop.permute.xlu1 %3618 }
 0xce2   :  { %10120 = vmatpush.xpose.msk.msrb.mxu0 %vm173_vm1, %v3619_v61 }
 0xce5   :  { %10121 = vmatmul.msk.f32.vlgmr.msrb.gmra.mxu0 %vm173_vm1, %v12570_v53  ;;  %v3502_v63 = vpop.f32.mrf.mxu3 }
 0xce6   :  { %v3701_v24 = vmul.f32 0.35355338, %v3502_v63 }
 0xce8   :  { %v3709_v35 = vsel %vm173_vm1, %v3701_v24, -inf }
 0xce9   :  { %v12574_v47 = vpop.permute.xlu1 %3466 }
 0xcea   :  { %v12577_v48 = vadd.f32 %v12574_v47, %v3430_v20  ;;  %v12580_v18 = vadd.f32 %v12574_v47, %v3436_v31  ;;  %v12584_v59 = vadd.f32 %v12574_v47, %v12466_v7  ;;  %v12587_v57 = vadd.f32 %v12574_v47, %v3424_v54 }
 0xceb   :  { %v12591_v14 = vadd.f32 %v12574_v47, %v12474_v29  ;;  %v12625_v54 = vadd.f32 %v12574_v47, %v12487_v51 }
 0xcec   :  { %v12595_v43 = vpack.i.bf16 %v12580_v18, %v12577_v48  ;;  %v10443_v25 = vpack.i.bf16 %v12587_v57, %v12584_v59 }
 0xced   :  { %v10453_v20 = vpack.i.bf16 %v12625_v54, %v12591_v14 }
 0xcee   :  { %10449 = vrot.lane.b32.xlu2 %v12595_v43, %s11169_s0  ;;  %10444 = vrot.lane.b32.xlu0 %v10443_v25, %s11169_s0 }
 0xcf1   :  { %v4148_v32 = vpop.permute.xlu1 %4147 }
 0xcf2   :  { %10136 = vmatpush.xpose.msk.msrb.mxu2 %vm173_vm1, %v4148_v32 }
 0xcf6   :  { %4145 = vrot.lane.b32.xlu2 %v12550_v6, %s11171_s1 }
 0xd1f   :  { %3710 = vmax.xlane.f32.xlu2 %v3709_v35 }
 0xd22   :  { %v3558_v23 = vpop.f32.mrf.mxu3 }
 0xd23   :  { %v12610_v29 = vmul.f32 0.35355338, %v3558_v23 }
 0xd25   :  { %v3715_v10 = vsel %vm173_vm1, %v12610_v29, -inf }
 0xd26   :  { %3716 = vmax.xlane.f32.xlu1 %v3715_v10 }
 0xd36   :  { %v3675_v44 = vpop.permute.xlu0 %3674 }
 0xd37   :  { %10124 = vmatpush.xpose.msk.msra.mxu0 %vm173_vm1, %v3675_v44 }
 0xd3a   :  { %10125 = vmatmul.msk.f32.vlgmr.msra.gmra.mxu0 %vm173_vm1, %v12617_v1 }
 0xd3f   :  { %4259 = vrot.lane.b32.xlu1 %v12520_v9, %s11170_s25 }
 0xd47   :  { %10454 = vrot.lane.b32.xlu1 %v10453_v20, %s11169_s0 }
 0xd48   :  { %v12630_v34 = vpop.permute.xlu2 %10449 }
 0xd50   :  { %v4146_v31 = vpop.permute.xlu2 %4145  ;;  %v3614_v15 = vpop.f32.mrf.mxu3 }
 0xd51   :  { %10137 = vmatmul.msk.f32.vlgmr.msrb.gmra.mxu2 %vm173_vm1, %v4146_v31  ;;  %v3705_v58 = vmul.f32 0.35355338, %v3614_v15 }
 0xd52   :  { %v3530_v46 = vpop.f32.mrf.mxu0 }
 0xd53   :  { %v3702_v22 = vmul.f32 0.35355338, %v3530_v46  ;;  %v3721_v62 = vsel %vm173_vm1, %v3705_v58, -inf }
 0xd55   :  { %v3712_v50 = vsel %vm173_vm1, %v3702_v22, -inf }
 0xd56   :  { %3713 = vmax.xlane.f32.xlu0 %v3712_v50 }
 0xd5a   :  { %v3586_v4 = vpop.f32.mrf.mxu0 }
 0xd5b   :  { %v3704_v51 = vmul.f32 0.35355338, %v3586_v4 }
 0xd5d   :  { %v3718_v61 = vsel %vm173_vm1, %v3704_v51, -inf }
 0xd5e   :  { %3722 = vmax.xlane.f32.xlu0 %v3721_v62  ;;  %3719 = vmax.xlane.f32.xlu2 %v3718_v61 }
 0xd60   :  { %v10445_v25 = vpop.permute.xlu0 %10444  ;;  %v3670_v32 = vpop.f32.mrf.mxu3 }
 0xd61   :  { %v10447_v63 = vunpack.i.h.bf16 %v10445_v25  ;;  %v10446_v35 = vunpack.i.l.bf16 %v10445_v25  ;;  %v12636_v23 = vmul.f32 0.35355338, %v3670_v32 }
 0xd62   :  { %v3642_v31 = vpop.f32.mrf.mxu0 }
 0xd63   :  { %3923 = vmatpush.msrb.mxu3 %v10446_v35  ;;  %v3727_v10 = vsel %vm173_vm1, %v12636_v23, -inf  ;;  %v3706_v50 = vmul.f32 0.35355338, %v3642_v31 }
 0xd65   :  { %3977 = vmatpush.msra.mxu3 %v10447_v63  ;;  %v3724_v15 = vsel %vm173_vm1, %v3706_v50, -inf }
 0xd66   :  { %3728 = vmax.xlane.f32.xlu2 %v3727_v10 }
 0xd72   :  { %4175 = vrot.lane.b32.xlu0 %v12483_v17, %s11170_s25 }
 0xd92   :  { %v3711_v44 = vpop.xlane.xlu2 %3710 }
 0xd93   :  { %v3733_v20 = vsub.f32 %v3701_v24, %v3711_v44 }
 0xd95   :  { %v3741_v46 = vmul.f32 1.442695, %v3733_v20 }
 0xd97   :  { %10756 = vpow2.f32 %v3741_v46 }
 0xd99   :  { %v3717_v61 = vpop.xlane.xlu1 %3716 }
 0xd9a   :  { %v3735_v46 = vsub.f32 %v12610_v29, %v3717_v61 }
 0xd9c   :  { %3725 = vmax.xlane.f32.xlu0 %v3724_v15 }
 0xd9d   :  { %v12643_v4 = vpop.eup %10756 }
 0xd9e   :  { %v3757_v62 = vsel %vm173_vm1, %v12643_v4, 0.0 }
 0xd9f   :  { %3758 = vadd.xlane.f32.xlu2 %v3757_v62  ;;  %v3745_v62 = vmul.f32 1.442695, %v3735_v46 }
 0xdb1   :  { %v4260_v25 = vpop.permute.xlu1 %4259 }
 0xdb2   :  { %10144 = vmatpush.xpose.msk.msra.mxu2 %vm173_vm1, %v4260_v25 }
 0xdb7   :  { %v3698_v32 = vpop.f32.mrf.mxu0 }
 0xdb8   :  { %v12648_v63 = vmul.f32 0.35355338, %v3698_v32 }
 0xdb9   :  { %v10455_v24 = vpop.permute.xlu1 %10454 }
 0xdba   :  { %v10457_v35 = vunpack.i.h.bf16 %v10455_v24  ;;  %v10456_v10 = vunpack.i.l.bf16 %v10455_v24  ;;  %v3730_v44 = vsel %vm173_vm1, %v12648_v63, -inf }
 0xdbb   :  { %3731 = vmax.xlane.f32.xlu0 %v3730_v44 }
 0xdbc   :  { %3950 = vmatpush.msrb.mxu0 %v10456_v10 }
 0xdbe   :  { %4004 = vmatpush.msra.mxu0 %v10457_v35 }
 0xdc9   :  { %v3714_v20 = vpop.xlane.xlu0 %3713 }
 0xdca   :  { %v3734_v31 = vsub.f32 %v3702_v22, %v3714_v20  ;;  %v12685_v20 = vadd.f32 %v12574_v47, %v12501_v56 }
 0xdcc   :  { %v3743_v15 = vmul.f32 1.442695, %v3734_v31 }
 0xdce   :  { %10758 = vpow2.f32 %v3743_v15 }
 0xdcf   :  { %10760 = vpow2.f32 %v3745_v62 }
 0xdd1   :  { %v3723_v25 = vpop.xlane.xlu0 %3722  ;;  %v3720_v13 = vpop.xlane.xlu2 %3719 }
 0xdd2   :  { %v3737_v32 = vsub.f32 %v3705_v58, %v3723_v25  ;;  %v3736_v30 = vsub.f32 %v3704_v51, %v3720_v13 }
 0xdd4   :  { %v12653_v7 = vpop.eup %10758  ;;  %v3749_v24 = vmul.f32 1.442695, %v3737_v32  ;;  %v3747_v27 = vmul.f32 1.442695, %v3736_v30  ;;  %v12692_v32 = vadd.f32 %v12574_v47, %v12534_v16 }
 0xdd5   :  { %v3760_v10 = vsel %vm173_vm1, %v12653_v7, 0.0  ;;  %v12657_v22 = vpop.eup %10760 }
 0xdd6   :  { %10762 = vpow2.f32 %v3749_v24  ;;  %3761 = vadd.xlane.f32.xlu2 %v3760_v10  ;;  %v3763_v58 = vsel %vm173_vm1, %v12657_v22, 0.0 }
 0xdd7   :  { %10764 = vpow2.f32 %v3747_v27 }
 0xdd9   :  { %v3729_v51 = vpop.xlane.xlu2 %3728 }
 0xdda   :  { %v3739_v15 = vsub.f32 %v12636_v23, %v3729_v51 }
 0xddc   :  { %v12659_v29 = vpop.eup %10762  ;;  %v3753_v25 = vmul.f32 1.442695, %v3739_v15 }
 0xddd   :  { %v12661_v61 = vpop.eup %10764  ;;  %v3769_v13 = vsel %vm173_vm1, %v12659_v29, 0.0 }
 0xdde   :  { %3770 = vadd.xlane.f32.xlu1 %v3769_v13  ;;  %3764 = vadd.xlane.f32.xlu2 %v3763_v58  ;;  %v3766_v30 = vsel %vm173_vm1, %v12661_v61, 0.0 }
 0xddf   :  { %3767 = vadd.xlane.f32.xlu0 %v3766_v30 }
 0xde4   :  { %v12679_v27 = vpop.permute.xlu0 %4175 }
 0xdf3   :  { %4257 = vrot.lane.b32.xlu0 %v12570_v53, %s11171_s1 }
 0xdf6   :  { %4119 = vrot.lane.b32.xlu2 %v12469_v49, %s11170_s25 }
 0xdf7   :  { %4173 = vrot.lane.b32.xlu1 %v12530_v2, %s11171_s1 }
 0xdfb   :  { %4287 = vrot.lane.b32.xlu0 %v12515_v12, %s11170_s25 }
 0xe03   :  { %4117 = vrot.lane.b32.xlu0 %v12511_v36, %s11171_s1 }
 0xe0b   :  { %4285 = vrot.lane.b32.xlu0 %v12561_v8, %s11171_s1 }
 0xe0f   :  { %v3726_v35 = vpop.xlane.xlu0 %3725 }
 0xe10   :  { %v3738_v44 = vsub.f32 %v3706_v50, %v3726_v35 }
 0xe12   :  { %v3751_v31 = vmul.f32 1.442695, %v3738_v44  ;;  %v3759_v46 = vpop.xlane.xlu2 %3758 }
 0xe13   :  { %4037 = vrot.lane.b32.xlu0 %v12685_v20, %s11169_s0  ;;  %10766 = vrcp.f32 %v3759_v46  ;;  %v3792_v10 = vand.u32 2147483648, %v3759_v46  ;;  %v3790_v58 = vand.u32 2147483647, %v3759_v46  ;;  %vm3786_vm2 = vweird.f32 %v3759_v46 }
 0xe14   :  { %10768 = vpow2.f32 %v3751_v31  ;;  %v10451_v31 = vunpack.i.l.bf16 %v12630_v34 }
 0xe15   :  { %10770 = vpow2.f32 %v3753_v25  ;;  %v3793_v16 = vor.u32 1.1754944e-38, %v3792_v10  ;;  %vm3791_vm6 = vcmp.eq.f32.partialorder %v3790_v58, 8.507059e+37 }
 0xe19   :  { %v10767_v62 = vpop.eup %10766 }
 0xe1a   :  { %v3782_v50 = vmul.f32 %v10767_v62, %v3759_v46  ;;  %v12694_v24 = vpop.eup %10768  ;;  %vm3787_vm15 = vweird.f32 %v10767_v62 }
 0xe1b   :  { %4091 = vrot.lane.b32.xlu0 %v12692_v32, %s11169_s0  ;;  %v3772_v23 = vsel %vm173_vm1, %v12694_v24, 0.0  ;;  %vm3788_vm3 = vmor %vm3786_vm2, %vm3787_vm15  ;;  %v12700_v51 = vpop.eup %10770 }
 0xe1c   :  { %v3783_v56 = vsub.f32 1.0, %v3782_v50  ;;  %v3775_v15 = vsel %vm173_vm1, %v12700_v51, 0.0 }
 0xe1e   :  { %v3784_v13 = vmul.f32 %v10767_v62, %v3783_v56 }
 0xe1f   :  { %3773 = vadd.xlane.f32.xlu2 %v3772_v23 }
 0xe20   :  { %v3785_v30 = vadd.f32 %v10767_v62, %v3784_v13 }
 0xe22   :  { %v3789_v47 = vsel %vm3788_vm3, %v10767_v62, %v3785_v30 }
 0xe23   :  { %v3794_v35 = vsel %vm3791_vm6, %v3793_v16, %v3789_v47  ;;  %4201 = vrot.lane.b32.xlu0 %v12558_v42, %s11171_s1 }
 0xe24   :  { %v3795_v44 = vmul.f32 %v12643_v4, %v3794_v35  ;;  %v4170_v4 = vpop.f32.mrf.mxu2 }
 0xe25   :  { %v12718_v10 = vmul.f32 0.35355338, %v4170_v4 }
 0xe26   :  { %10126 = vmatmul.msk.f32.vlgmr.msrb.gmra.mxu3 %vm173_vm1, %v3795_v44 }
 0xe27   :  { %4031 = vmatpush.msrb.mxu3 %v10451_v31  ;;  %3776 = vadd.xlane.f32.xlu2 %v3775_v15 }
 0xe2e   :  { %v3732_v46 = vpop.xlane.xlu0 %3731 }
 0xe2f   :  { %v3740_v62 = vsub.f32 %v12648_v63, %v3732_v46  ;;  %v4352_v63 = vsel %vm173_vm1, %v12718_v10, -inf }
 0xe31   :  { %v3755_v25 = vmul.f32 1.442695, %v3740_v62 }
 0xe33   :  { %10772 = vpow2.f32 %v3755_v25 }
 0xe39   :  { %v12710_v50 = vpop.eup %10772 }
 0xe3a   :  { %v3778_v56 = vsel %vm173_vm1, %v12710_v50, 0.0 }
 0xe3b   :  { %3779 = vadd.xlane.f32.xlu1 %v3778_v56 }
 0xe3f   :  { %4231 = vrot.lane.b32.xlu2 %v12494_v33, %s11170_s25 }
 0xe47   :  { %4229 = vrot.lane.b32.xlu2 %v12543_v0, %s11171_s1 }
 0xe49   :  { %v3762_v13 = vpop.xlane.xlu2 %3761 }
 0xe4a   :  { %10774 = vrcp.f32 %v3762_v13  ;;  %v3807_v44 = vand.u32 2147483648, %v3762_v13  ;;  %v3805_v15 = vand.u32 2147483647, %v3762_v13  ;;  %vm3801_vm8 = vweird.f32 %v3762_v13 }
 0xe4c   :  { %v3808_v25 = vor.u32 1.1754944e-38, %v3807_v44  ;;  %vm3806_vm10 = vcmp.eq.f32.partialorder %v3805_v15, 8.507059e+37 }
 0xe4d   :  { %4353 = vmax.xlane.f32.xlu0 %v4352_v63 }
 0xe4f   :  { %4203 = vrot.lane.b32.xlu2 %v12490_v41, %s11170_s25 }
 0xe50   :  { %v10775_v58 = vpop.eup %10774 }
 0xe51   :  { %v3797_v23 = vmul.f32 %v10775_v58, %v3762_v13  ;;  %v12724_v30 = vpop.xlane.xlu1 %3770  ;;  %v3765_v16 = vpop.xlane.xlu2 %3764  ;;  %vm3802_vm7 = vweird.f32 %v10775_v58 }
 0xe52   :  { %10776 = vrcp.f32 %v12724_v30  ;;  %v3768_v47 = vpop.xlane.xlu0 %3767  ;;  %vm3803_vm9 = vmor %vm3801_vm8, %vm3802_vm7  ;;  %vm3816_vm15 = vweird.f32 %v3765_v16  ;;  %vm3846_vm8 = vweird.f32 %v12724_v30 }
 0xe53   :  { %v3798_v35 = vsub.f32 1.0, %v3797_v23  ;;  %10778 = vrcp.f32 %v3768_v47  ;;  %v3835_v3 = vand.u32 2147483647, %v3768_v47  ;;  %v3837_v28 = vand.u32 2147483648, %v3768_v47 }
 0xe54   :  { %10780 = vrcp.f32 %v3765_v16  ;;  %4315 = vrot.lane.b32.xlu1 %v12537_v5, %s11170_s25  ;;  %vm3831_vm13 = vweird.f32 %v3768_v47 }
 0xe55   :  { %v3799_v31 = vmul.f32 %v10775_v58, %v3798_v35  ;;  %vm3836_vm2 = vcmp.eq.f32.partialorder %v3835_v3, 8.507059e+37 }
 0xe57   :  { %v3800_v46 = vadd.f32 %v10775_v58, %v3799_v31  ;;  %4313 = vrot.lane.b32.xlu2 %v12617_v1, %s11171_s1 }
 0xe58   :  { %v12731_v62 = vpop.eup %10776 }
 0xe59   :  { %v10779_v56 = vpop.eup %10778  ;;  %v3804_v4 = vsel %vm3803_vm9, %v10775_v58, %v3800_v46  ;;  %v3842_v63 = vmul.f32 %v12731_v62, %v12724_v30  ;;  %v4120_v23 = vpop.permute.xlu2 %4119  ;;  %v10463_v58 = vpack.i.bf16 %v12584_v59, %v12685_v20  ;;  %v3820_v46 = vand.u32 2147483647, %v3765_v16 }
 0xe5a   :  { %v10781_v39 = vpop.eup %10780  ;;  %v3809_v35 = vsel %vm3806_vm10, %v3808_v25, %v3804_v4  ;;  %v3827_v37 = vmul.f32 %v10779_v56, %v3768_v47  ;;  %10134 = vmatpush.xpose.msk.msra.mxu1 %vm173_vm1, %v4120_v23  ;;  %vm3832_vm11 = vweird.f32 %v10779_v56  ;;  %v3822_v25 = vand.u32 2147483648, %v3765_v16 }
 0xe5b   :  { %v3810_v13 = vmul.f32 %v12653_v7, %v3809_v35  ;;  %v3843_v31 = vsub.f32 1.0, %v3842_v63  ;;  %v3812_v11 = vmul.f32 %v10781_v39, %v3765_v16  ;;  %vm3817_vm12 = vweird.f32 %v10781_v39  ;;  %vm3833_vm14 = vmor %vm3831_vm13, %vm3832_vm11 }
 0xe5c   :  { %v3828_v26 = vsub.f32 1.0, %v3827_v37  ;;  %v3838_v37 = vor.u32 1.1754944e-38, %v3837_v28  ;;  %vm3818_vm3 = vmor %vm3816_vm15, %vm3817_vm12  ;;  %vm3821_vm6 = vcmp.eq.f32.partialorder %v3820_v46, 8.507059e+37  ;;  %vm3847_vm7 = vweird.f32 %v12731_v62 }
 0xe5d   :  { %v3813_v44 = vsub.f32 1.0, %v3812_v11  ;;  %10127 = vmatmul.msk.f32.vlgmr.msrb.gmra.mxu0 %vm173_vm1, %v3810_v13  ;;  %v3844_v4 = vmul.f32 %v12731_v62, %v3843_v31  ;;  %v3850_v28 = vand.u32 2147483647, %v12724_v30  ;;  %vm3848_vm9 = vmor %vm3846_vm8, %vm3847_vm7 }
 0xe5e   :  { %v3829_v15 = vmul.f32 %v10779_v56, %v3828_v26  ;;  %v3823_v26 = vor.u32 1.1754944e-38, %v3822_v25 }
 0xe5f   :  { %v3814_v23 = vmul.f32 %v10781_v39, %v3813_v44  ;;  %10464 = vrot.lane.b32.xlu2 %v10463_v58, %s11172_s27  ;;  %v3845_v35 = vadd.f32 %v12731_v62, %v3844_v4  ;;  %v3852_v44 = vand.u32 2147483648, %v12724_v30  ;;  %vm3851_vm10 = vcmp.eq.f32.partialorder %v3850_v28, 8.507059e+37 }
 0xe60   :  { %v3830_v7 = vadd.f32 %v10779_v56, %v3829_v15 }
 0xe61   :  { %v3815_v11 = vadd.f32 %v10781_v39, %v3814_v23 }
 0xe62   :  { %v3834_v63 = vsel %vm3833_vm14, %v10779_v56, %v3830_v7  ;;  %v10452_v56 = vunpack.i.h.bf16 %v12630_v34 }
 0xe63   :  { %v3839_v13 = vsel %vm3836_vm2, %v3838_v37, %v3834_v63  ;;  %v3819_v31 = vsel %vm3818_vm3, %v10781_v39, %v3815_v11  ;;  %v3849_v39 = vsel %vm3848_vm9, %v12731_v62, %v3845_v35 }
 0xe64   :  { %v3840_v58 = vmul.f32 %v12661_v61, %v3839_v13  ;;  %v3824_v47 = vsel %vm3821_vm6, %v3823_v26, %v3819_v31  ;;  %v3853_v61 = vor.u32 1.1754944e-38, %v3852_v44 }
 0xe65   :  { %v3825_v3 = vmul.f32 %v12657_v22, %v3824_v47  ;;  %v4258_v16 = vpop.permute.xlu0 %4257 }
 0xe66   :  { %10129 = vmatmul.msk.f32.vlgmr.msra.gmra.mxu0 %vm173_vm1, %v3840_v58  ;;  %10145 = vmatmul.msk.f32.vlgmr.msra.gmra.mxu2 %vm173_vm1, %v4258_v16  ;;  %v3854_v30 = vsel %vm3851_vm10, %v3853_v61, %v3849_v39 }
 0xe67   :  { %10128 = vmatmul.msk.f32.vlgmr.msra.gmra.mxu3 %vm173_vm1, %v3825_v3  ;;  %4777 = vrot.lane.b32.xlu2 %v12550_v6, %s11174_s3  ;;  %v3855_v22 = vmul.f32 %v12659_v29, %v3854_v30 }
 0xe68   :  { %4085 = vmatpush.msra.mxu3 %v10452_v56 }
 0xe69   :  { %v4174_v56 = vpop.permute.xlu1 %4173 }
 0xe6d   :  { %v4288_v15 = vpop.permute.xlu0 %4287 }
 0xe6f   :  { %10130 = vmatmul.msk.f32.vlgmr.msrb.gmra.mxu3 %vm173_vm1, %v3855_v22  ;;  %4891 = vrot.lane.b32.xlu2 %v12520_v9, %s11173_s28 }
 0xe70   :  { %10138 = vmatpush.xpose.msk.msrb.mxu3 %vm173_vm1, %v12679_v27 }
 0xe75   :  { %v4118_v34 = vpop.permute.xlu0 %4117 }
 0xe76   :  { %10135 = vmatmul.msk.f32.vlgmr.msra.gmra.mxu1 %vm173_vm1, %v4118_v34 }
 0xe77   :  { %4751 = vrot.lane.b32.xlu2 %v12469_v49, %s11173_s28 }
 0xe7d   :  { %v12765_v62 = vpop.permute.xlu0 %4285 }
 0xe7f   :  { %4805 = vrot.lane.b32.xlu2 %v12530_v2, %s11174_s3 }
 0xe85   :  { %v4038_v29 = vpop.permute.xlu0 %4037 }
 0xe86   :  { %4058 = vmatpush.msrb.mxu0 %v4038_v29 }
 0xe87   :  { %4889 = vrot.lane.b32.xlu2 %v12570_v53, %s11174_s3 }
 0xe8d   :  { %v4092_v46 = vpop.permute.xlu0 %4091 }
 0xe8e   :  { %4112 = vmatpush.msra.mxu0 %v4092_v46 }
 0xe8f   :  { %4919 = vrot.lane.b32.xlu2 %v12515_v12, %s11173_s28 }
 0xe92   :  { %v3774_v27 = vpop.xlane.xlu2 %3773 }
 0xe93   :  { %10782 = vrcp.f32 %v3774_v27  ;;  %v3867_v37 = vand.u32 2147483648, %v3774_v27  ;;  %v3865_v63 = vand.u32 2147483647, %v3774_v27  ;;  %vm3861_vm12 = vweird.f32 %v3774_v27 }
 0xe95   :  { %v3868_v13 = vor.u32 1.1754944e-38, %v3867_v37  ;;  %vm3866_vm14 = vcmp.eq.f32.partialorder %v3865_v63, 8.507059e+37 }
 0xe99   :  { %v10783_v25 = vpop.eup %10782 }
 0xe9a   :  { %v3857_v4 = vmul.f32 %v10783_v25, %v3774_v27  ;;  %v3777_v23 = vpop.xlane.xlu2 %3776  ;;  %vm3862_vm11 = vweird.f32 %v10783_v25 }
 0xe9b   :  { %10784 = vrcp.f32 %v3777_v23  ;;  %vm3863_vm13 = vmor %vm3861_vm12, %vm3862_vm11  ;;  %v3882_v16 = vand.u32 2147483648, %v3777_v23  ;;  %v3880_v61 = vand.u32 2147483647, %v3777_v23  ;;  %vm3876_vm2 = vweird.f32 %v3777_v23 }
 0xe9c   :  { %v3858_v7 = vsub.f32 1.0, %v3857_v4 }
 0xe9d   :  { %v3883_v22 = vor.u32 1.1754944e-38, %v3882_v16  ;;  %vm3881_vm6 = vcmp.eq.f32.partialorder %v3880_v61, 8.507059e+37 }
 0xe9e   :  { %v3859_v11 = vmul.f32 %v10783_v25, %v3858_v7 }
 0xea0   :  { %v3860_v26 = vadd.f32 %v10783_v25, %v3859_v11 }
 0xea1   :  { %v10785_v35 = vpop.eup %10784 }
 0xea2   :  { %v3864_v31 = vsel %vm3863_vm13, %v10783_v25, %v3860_v26  ;;  %v3872_v44 = vmul.f32 %v10785_v35, %v3777_v23  ;;  %v4232_v58 = vpop.permute.xlu2 %4231  ;;  %vm3877_vm15 = vweird.f32 %v10785_v35 }
 0xea3   :  { %v3869_v47 = vsel %vm3866_vm14, %v3868_v13, %v3864_v31  ;;  %10142 = vmatpush.xpose.msk.msrb.mxu1 %vm173_vm1, %v4232_v58  ;;  %vm3878_vm3 = vmor %vm3876_vm2, %vm3877_vm15 }
 0xea4   :  { %v3870_v28 = vmul.f32 %v12694_v24, %v3869_v47  ;;  %v3873_v3 = vsub.f32 1.0, %v3872_v44 }
 0xea6   :  { %v3874_v39 = vmul.f32 %v10785_v35, %v3873_v3  ;;  %10131 = vmatmul.msk.f32.vlgmr.msrb.gmra.mxu0 %vm173_vm1, %v3870_v28  ;;  %v4202_v28 = vpop.permute.xlu0 %4201 }
 0xea8   :  { %v3875_v30 = vadd.f32 %v10785_v35, %v3874_v39 }
 0xeaa   :  { %v3879_v34 = vsel %vm3878_vm3, %v10785_v35, %v3875_v30  ;;  %v4230_v29 = vpop.permute.xlu2 %4229 }
 0xeab   :  { %v3884_v46 = vsel %vm3881_vm6, %v3883_v22, %v3879_v34  ;;  %10143 = vmatmul.msk.f32.vlgmr.msrb.gmra.mxu1 %vm173_vm1, %v4230_v29 }
 0xeac   :  { %v3885_v24 = vmul.f32 %v12700_v51, %v3884_v46  ;;  %v12799_v46 = vpop.f32.mrf.mxu3 }
 0xead   :  { %14947 = vst [vmem:[#allocation16_spill] sm:$0xff] %v12799_v46 }
 0xeae   :  { %v3780_v27 = vpop.xlane.xlu1 %3779  ;;  %10132 = vmatmul.msk.f32.vlgmr.msra.gmra.mxu3 %vm173_vm1, %v3885_v24 }
 0xeaf   :  { %10786 = vrcp.f32 %v3780_v27  ;;  %10146 = vmatpush.xpose.msk.msra.mxu3 %vm173_vm1, %v4288_v15  ;;  %v3897_v37 = vand.u32 2147483648, %v3780_v27  ;;  %v3895_v63 = vand.u32 2147483647, %v3780_v27  ;;  %vm3891_vm8 = vweird.f32 %v3780_v27 }
 0xeb1   :  { %v3898_v35 = vor.u32 1.1754944e-38, %v3897_v37  ;;  %vm3896_vm10 = vcmp.eq.f32.partialorder %v3895_v63, 8.507059e+37 }
 0xeb2   :  { %v4204_v25 = vpop.permute.xlu2 %4203 }
 0xeb3   :  { %10140 = vmatpush.xpose.msk.msrb.mxu0 %vm173_vm1, %v4204_v25 }
 0xeb5   :  { %v10787_v4 = vpop.eup %10786 }
 0xeb6   :  { %v3887_v23 = vmul.f32 %v10787_v4, %v3780_v27  ;;  %10139 = vmatmul.msk.f32.vlgmr.msrb.gmra.mxu3 %vm173_vm1, %v4174_v56  ;;  %vm3892_vm7 = vweird.f32 %v10787_v4 }
 0xeb7   :  { %vm3893_vm9 = vmor %vm3891_vm8, %vm3892_vm7 }
 0xeb8   :  { %v3888_v7 = vsub.f32 1.0, %v3887_v23 }
 0xeba   :  { %v3889_v11 = vmul.f32 %v10787_v4, %v3888_v7  ;;  %v4314_v26 = vpop.permute.xlu2 %4313 }
 0xebc   :  { %v3890_v51 = vadd.f32 %v10787_v4, %v3889_v11 }
 0xebe   :  { %v3894_v13 = vsel %vm3893_vm9, %v10787_v4, %v3890_v51  ;;  %10147 = vmatmul.msk.f32.vlgmr.msra.gmra.mxu3 %vm173_vm1, %v12765_v62 }
 0xebf   :  { %v3899_v15 = vsel %vm3896_vm10, %v3898_v35, %v3894_v13 }
 0xec0   :  { %v3900_v31 = vmul.f32 %v12710_v50, %v3899_v15  ;;  %v4354_v3 = vpop.xlane.xlu0 %4353 }
 0xec1   :  { %v4374_v62 = vsub.f32 %v12718_v10, %v4354_v3 }
 0xec2   :  { %10133 = vmatmul.msk.f32.vlgmr.msra.gmra.mxu0 %vm173_vm1, %v3900_v31  ;;  %v12786_v44 = vpop.permute.xlu2 %10464 }
 0xec3   :  { %v10467_v58 = vunpack.i.h.bf16 %v12786_v44  ;;  %v4383_v16 = vmul.f32 1.442695, %v4374_v62 }
 0xec5   :  { %4562 = vmatpush.msra.mxu1 %v10467_v58  ;;  %10788 = vpow2.f32 %v4383_v16 }
 0xec6   :  { %v4316_v47 = vpop.permute.xlu1 %4315 }
 0xec7   :  { %10148 = vmatpush.xpose.msk.msra.mxu0 %vm173_vm1, %v4316_v47 }
 0xeca   :  { %10141 = vmatmul.msk.f32.vlgmr.msrb.gmra.mxu0 %vm173_vm1, %v4202_v28 }
 0xecb   :  { %v12794_v61 = vpop.eup %10788 }
 0xecc   :  { %v4400_v34 = vsel %vm173_vm1, %v12794_v61, 0.0 }
 0xed2   :  { %10149 = vmatmul.msk.f32.vlgmr.msra.gmra.mxu0 %vm173_vm1, %v4314_v26 }
 0xeda   :  { %v12801_v10 = vpop.f32.mrf.mxu0 }
 0xedb   :  { %14948 = vst [vmem:[#allocation17_spill] sm:$0xff] %v12801_v10 }
 0xee3   :  { %v12806_v23 = vpop.f32.mrf.mxu0 }
 0xee4   :  { %14950 = vst [vmem:[#allocation19_spill] sm:$0xff] %v12806_v23 }
 0xee9   :  { %v4282_v50 = vpop.f32.mrf.mxu2 }
 0xeea   :  { %v4346_v56 = vmul.f32 0.35355338, %v4282_v50  ;;  %v12804_v4 = vpop.f32.mrf.mxu3 }
 0xeeb   :  { %14949 = vst [vmem:[#allocation18_spill] sm:$0xff] %v12804_v4 }
 0xeec   :  { %v4364_v39 = vsel %vm173_vm1, %v4346_v56, -inf }
 0xeed   :  { %4365 = vmax.xlane.f32.xlu1 %v4364_v39 }
 0xef2   :  { %v12808_v7 = vpop.f32.mrf.mxu3 }
 0xef3   :  { %v4142_v30 = vpop.f32.mrf.mxu1  ;;  %14951 = vst [vmem:[#allocation21_spill] sm:$0xff] %v12808_v7 }
 0xef4   :  { %v4341_v22 = vmul.f32 0.35355338, %v4142_v30 }
 0xef5   :  { %4401 = vadd.xlane.f32.xlu1 %v4400_v34 }
 0xef6   :  { %v4349_v29 = vsel %vm173_vm1, %v4341_v22, -inf }
 0xef7   :  { %4350 = vmax.xlane.f32.xlu0 %v4349_v29 }
 0xf23   :  { %v12810_v37 = vpop.f32.mrf.mxu0 }
 0xf24   :  { %14952 = vst [vmem:[#allocation22_spill] sm:$0xff] %v12810_v37 }
 0xf28   :  { %v4254_v24 = vpop.f32.mrf.mxu1 }
 0xf29   :  { %v4345_v27 = vmul.f32 0.35355338, %v4254_v24 }
 0xf2b   :  { %v4361_v25 = vsel %vm173_vm1, %v4345_v27, -inf }
 0xf2c   :  { %4362 = vmax.xlane.f32.xlu0 %v4361_v25  ;;  %v12829_v25 = vpop.permute.xlu2 %4777 }
 0xf31   :  { %v12812_v11 = vpop.f32.mrf.mxu3 }
 0xf32   :  { %14953 = vst [vmem:[#allocation23_spill] sm:$0xff] %v12812_v11 }
 0xf39   :  { %v4198_v35 = vpop.f32.mrf.mxu3 }
 0xf3a   :  { %v4343_v15 = vmul.f32 0.35355338, %v4198_v35 }
 0xf3c   :  { %v4355_v31 = vsel %vm173_vm1, %v4343_v15, -inf }
 0xf3f   :  { %v12814_v63 = vpop.f32.mrf.mxu0 }
 0xf40   :  { %14954 = vst [vmem:[#allocation24_spill] sm:$0xff] %v12814_v63 }
 0xf41   :  { %v4310_v58 = vpop.f32.mrf.mxu3 }
 0xf42   :  { %v4347_v47 = vmul.f32 0.35355338, %v4310_v58 }
 0xf44   :  { %v4367_v28 = vsel %vm173_vm1, %v4347_v47, -inf }
 0xf47   :  { %v4226_v26 = vpop.f32.mrf.mxu0 }
 0xf48   :  { %v4344_v51 = vmul.f32 0.35355338, %v4226_v26  ;;  %v12831_v26 = vpop.permute.xlu2 %4891 }
 0xf4a   :  { %v4358_v13 = vsel %vm173_vm1, %v4344_v51, -inf }
 0xf4b   :  { %4359 = vmax.xlane.f32.xlu2 %v4358_v13 }
 0xf50   :  { %v12836_v35 = vpop.permute.xlu2 %4751 }
 0xf53   :  { %4356 = vmax.xlane.f32.xlu2 %v4355_v31 }
 0xf58   :  { %v12840_v58 = vpop.permute.xlu2 %4805 }
 0xf5b   :  { %4368 = vmax.xlane.f32.xlu2 %v4367_v28 }
 0xf60   :  { %v4366_v3 = vpop.xlane.xlu1 %4365 }
 0xf61   :  { %v4378_v62 = vsub.f32 %v4346_v56, %v4366_v3 }
 0xf63   :  { %v4391_v16 = vmul.f32 1.442695, %v4378_v62 }
 0xf65   :  { %10790 = vpow2.f32 %v4391_v16  ;;  %v12846_v16 = vpop.permute.xlu2 %4889 }
 0xf6a   :  { %v4351_v50 = vpop.xlane.xlu0 %4350 }
 0xf6b   :  { %v12819_v39 = vpop.eup %10790  ;;  %v4373_v30 = vsub.f32 %v4341_v22, %v4351_v50  ;;  %v10458_v22 = vpack.i.bf16 %v12587_v57, %v12591_v14 }
 0xf6c   :  { %v4412_v34 = vsel %vm173_vm1, %v12819_v39, 0.0 }
 0xf6d   :  { %v4381_v29 = vmul.f32 1.442695, %v4373_v30  ;;  %4413 = vadd.xlane.f32.xlu0 %v4412_v34  ;;  %v12848_v50 = vpop.permute.xlu2 %4919 }
 0xf6f   :  { %10792 = vpow2.f32 %v4381_v29 }
 0xf73   :  { %4863 = vrot.lane.b32.xlu2 %v12494_v33, %s11173_s28 }
 0xf75   :  { %v12825_v24 = vpop.eup %10792 }
 0xf76   :  { %v4397_v56 = vsel %vm173_vm1, %v12825_v24, 0.0 }
 0xf77   :  { %4398 = vadd.xlane.f32.xlu1 %v4397_v56  ;;  %v10468_v56 = vpack.i.bf16 %v12577_v48, %v12580_v18 }
 0xf90   :  { %10459 = vrot.lane.b32.xlu1 %v10458_v22, %s11172_s27 }
 0xf98   :  { %4749 = vrot.lane.b32.xlu1 %v12511_v36, %s11174_s3 }
 0xf9f   :  { %v4363_v13 = vpop.xlane.xlu0 %4362 }
 0xfa0   :  { %v4377_v31 = vsub.f32 %v4345_v27, %v4363_v13 }
 0xfa2   :  { %v4389_v28 = vmul.f32 1.442695, %v4377_v31 }
 0xfa4   :  { %10794 = vpow2.f32 %v4389_v28 }
 0xfaa   :  { %v12842_v3 = vpop.eup %10794 }
 0xfab   :  { %v4409_v62 = vsel %vm173_vm1, %v12842_v3, 0.0 }
 0xfac   :  { %4410 = vadd.xlane.f32.xlu0 %v4409_v62 }
 0xfbe   :  { %v4360_v30 = vpop.xlane.xlu2 %4359 }
 0xfbf   :  { %v4376_v34 = vsub.f32 %v4344_v51, %v4360_v30 }
 0xfc0   :  { %4779 = vrot.lane.b32.xlu0 %v12504_v60, %s11173_s28 }
 0xfc1   :  { %v4387_v27 = vmul.f32 1.442695, %v4376_v34 }
 0xfc3   :  { %10796 = vpow2.f32 %v4387_v27 }
 0xfc6   :  { %v4357_v29 = vpop.xlane.xlu2 %4356 }
 0xfc7   :  { %v4375_v22 = vsub.f32 %v4343_v15, %v4357_v29 }
 0xfc8   :  { %10469 = vrot.lane.b32.xlu0 %v10468_v56, %s11172_s27  ;;  %v4402_v56 = vpop.xlane.xlu1 %4401 }
 0xfc9   :  { %v12855_v13 = vpop.eup %10796  ;;  %v4385_v31 = vmul.f32 1.442695, %v4375_v22  ;;  %vm4441_vm2 = vweird.f32 %v4402_v56 }
 0xfca   :  { %v4406_v28 = vsel %vm173_vm1, %v12855_v13, 0.0 }
 0xfcb   :  { %10798 = vpow2.f32 %v4385_v31  ;;  %4407 = vadd.xlane.f32.xlu1 %v4406_v28 }
 0xfce   :  { %v4369_v51 = vpop.xlane.xlu2 %4368 }
 0xfcf   :  { %v4379_v62 = vsub.f32 %v4347_v47, %v4369_v51 }
 0xfd0   :  { %4807 = vrot.lane.b32.xlu0 %v12483_v17, %s11173_s28 }
 0xfd1   :  { %v12861_v30 = vpop.eup %10798  ;;  %v4393_v34 = vmul.f32 1.442695, %v4379_v62 }
 0xfd2   :  { %v4403_v15 = vsel %vm173_vm1, %v12861_v30, 0.0 }
 0xfd3   :  { %10800 = vpow2.f32 %v4393_v34  ;;  %4404 = vadd.xlane.f32.xlu2 %v4403_v15  ;;  %v4338_v34 = vpop.f32.mrf.mxu0 }
 0xfd4   :  { %10802 = vrcp.f32 %v4402_v56  ;;  %v12880_v63 = vmul.f32 0.35355338, %v4338_v34  ;;  %v4445_v34 = vand.u32 2147483647, %v4402_v56 }
 0xfd6   :  { %vm4446_vm6 = vcmp.eq.f32.partialorder %v4445_v34, 8.507059e+37 }
 0xfd9   :  { %v12865_v27 = vpop.eup %10800 }
 0xfda   :  { %v4415_v29 = vsel %vm173_vm1, %v12865_v27, 0.0  ;;  %v10803_v47 = vpop.eup %10802 }
 0xfdb   :  { %4416 = vadd.xlane.f32.xlu2 %v4415_v29  ;;  %v4437_v28 = vmul.f32 %v10803_v47, %v4402_v56  ;;  %vm4442_vm13 = vweird.f32 %v10803_v47 }
 0xfdc   :  { %vm4443_vm3 = vmor %vm4441_vm2, %vm4442_vm13 }
 0xfdd   :  { %v4438_v62 = vsub.f32 1.0, %v4437_v28 }
 0xfdf   :  { %v4439_v21 = vmul.f32 %v10803_v47, %v4438_v62  ;;  %v4447_v62 = vand.u32 2147483648, %v4402_v56 }
 0xfe0   :  { %v12871_v22 = vpop.xlane.xlu0 %4413 }
 0xfe1   :  { %v4440_v4 = vadd.f32 %v10803_v47, %v4439_v21  ;;  %v4448_v21 = vor.u32 1.1754944e-38, %v4447_v62  ;;  %vm4501_vm8 = vweird.f32 %v12871_v22 }
 0xfe4   :  { %4861 = vrot.lane.b32.xlu1 %v12543_v0, %s11174_s3 }
 0xfea   :  { %v4399_v31 = vpop.xlane.xlu1 %4398 }
 0xfeb   :  { %10804 = vrcp.f32 %v4399_v31  ;;  %v4432_v40 = vand.u32 2147483648, %v4399_v31  ;;  %v4430_v7 = vand.u32 2147483647, %v4399_v31  ;;  %vm4426_vm12 = vweird.f32 %v4399_v31 }
 0xfec   :  { %4835 = vrot.lane.b32.xlu1 %v12490_v41, %s11173_s28  ;;  %10806 = vrcp.f32 %v12871_v22 }
 0xfed   :  { %v4433_v23 = vor.u32 1.1754944e-38, %v4432_v40  ;;  %vm4431_vm15 = vcmp.eq.f32.partialorder %v4430_v7, 8.507059e+37  ;;  %v4444_v40 = vsel %vm4443_vm3, %v10803_v47, %v4440_v4  ;;  %v10466_v4 = vunpack.i.l.bf16 %v12786_v44 }
 0xff1   :  { %v10805_v51 = vpop.eup %10804 }
 0xff2   :  { %v4422_v15 = vmul.f32 %v10805_v51, %v4399_v31  ;;  %v10807_v29 = vpop.eup %10806  ;;  %vm4427_vm11 = vweird.f32 %v10805_v51 }
 0xff3   :  { %4619 = vrot.lane.b32.xlu2 %v12625_v54, %s11172_s27  ;;  %v4497_v11 = vmul.f32 %v10807_v29, %v12871_v22  ;;  %vm4428_vm14 = vmor %vm4426_vm12, %vm4427_vm11  ;;  %vm4502_vm7 = vweird.f32 %v10807_v29 }
 0xff4   :  { %v4423_v45 = vsub.f32 1.0, %v4422_v15  ;;  %4945 = vrot.lane.b32.xlu1 %v12617_v1, %s11174_s3  ;;  %v4370_v15 = vsel %vm173_vm1, %v12880_v63, -inf  ;;  %vm4503_vm9 = vmor %vm4501_vm8, %vm4502_vm7 }
 0xff5   :  { %v4498_v10 = vsub.f32 1.0, %v4497_v11  ;;  %v4449_v11 = vsel %vm4446_vm6, %v4448_v21, %v4444_v40 }
 0xff6   :  { %v4424_v37 = vmul.f32 %v10805_v51, %v4423_v45 }
 0xff7   :  { %v4499_v31 = vmul.f32 %v10807_v29, %v4498_v10  ;;  %v4505_v10 = vand.u32 2147483647, %v12871_v22 }
 0xff8   :  { %v4425_v28 = vadd.f32 %v10805_v51, %v4424_v37 }
 0xff9   :  { %v4500_v7 = vadd.f32 %v10807_v29, %v4499_v31  ;;  %vm4506_vm10 = vcmp.eq.f32.partialorder %v4505_v10, 8.507059e+37 }
 0xffa   :  { %v4429_v46 = vsel %vm4428_vm14, %v10805_v51, %v4425_v28  ;;  %4371 = vmax.xlane.f32.xlu0 %v4370_v15  ;;  %v4507_v28 = vand.u32 2147483648, %v12871_v22 }
 0xffb   :  { %4723 = vrot.lane.b32.xlu2 %v12692_v32, %s11172_s27  ;;  %v4434_v45 = vsel %vm4431_vm15, %v4433_v23, %v4429_v46  ;;  %v4450_v23 = vmul.f32 %v12794_v61, %v4449_v11 }
 0xffc   :  { %v4435_v37 = vmul.f32 %v12825_v24, %v4434_v45  ;;  %v4504_v24 = vsel %vm4503_vm9, %v10807_v29, %v4500_v7  ;;  %v4508_v56 = vor.u32 1.1754944e-38, %v4507_v28 }
 0xffe   :  { %10150 = vmatmul.msk.f32.vlgmr.msra.gmra.mxu1 %vm173_vm1, %v4435_v37  ;;  %v4509_v47 = vsel %vm4506_vm10, %v4508_v56, %v4504_v24 }
 0xfff   :  { %v4510_v62 = vmul.f32 %v12819_v39, %v4509_v47 }
0x1002   :  { %v10460_v51 = vpop.permute.xlu1 %10459 }
0x1003   :  { %v10462_v15 = vunpack.i.h.bf16 %v10460_v51  ;;  %v10461_v46 = vunpack.i.l.bf16 %v10460_v51  ;;  %4833 = vrot.lane.b32.xlu2 %v12558_v42, %s11174_s3 }
0x1005   :  { %4588 = vmatpush.msrb.mxu2 %v10461_v46  ;;  %4614 = vmatpush.msrb.mxu3 %v10462_v15 }
0x1006   :  { %10151 = vmatmul.msk.f32.vlgmr.msrb.gmra.mxu2 %vm173_vm1, %v4450_v23  ;;  %v4864_v23 = vpop.permute.xlu2 %4863 }
0x1007   :  { %4692 = vmatpush.msra.mxu2 %v10466_v4 }
0x100a   :  { %v4750_v39 = vpop.permute.xlu1 %4749 }
0x100e   :  { %10155 = vmatmul.msk.f32.vlgmr.msra.gmra.mxu2 %vm173_vm1, %v4510_v62  ;;  %4917 = vrot.lane.b32.xlu0 %v12561_v8, %s11174_s3 }
0x101f   :  { %v4411_v61 = vpop.xlane.xlu0 %4410 }
0x1020   :  { %10808 = vrcp.f32 %v4411_v61  ;;  %v4492_v40 = vand.u32 2147483648, %v4411_v61  ;;  %vm4486_vm12 = vweird.f32 %v4411_v61  ;;  %v4490_v31 = vand.u32 2147483647, %v4411_v61 }
0x1022   :  { %v4493_v11 = vor.u32 1.1754944e-38, %v4492_v40  ;;  %vm4491_vm14 = vcmp.eq.f32.partialorder %v4490_v31, 8.507059e+37 }
0x1026   :  { %v10809_v44 = vpop.eup %10808 }
0x1027   :  { %v4482_v22 = vmul.f32 %v10809_v44, %v4411_v61  ;;  %vm4487_vm11 = vweird.f32 %v10809_v44 }
0x1028   :  { %vm4488_vm13 = vmor %vm4486_vm12, %vm4487_vm11 }
0x1029   :  { %v4483_v45 = vsub.f32 1.0, %v4482_v22 }
0x102b   :  { %v4484_v34 = vmul.f32 %v10809_v44, %v4483_v45 }
0x102d   :  { %v4485_v29 = vadd.f32 %v10809_v44, %v4484_v34 }
0x102f   :  { %v4489_v21 = vsel %vm4488_vm13, %v10809_v44, %v4485_v29 }
0x1030   :  { %v4494_v7 = vsel %vm4491_vm14, %v4493_v11, %v4489_v21 }
0x1031   :  { %v4495_v46 = vmul.f32 %v12842_v3, %v4494_v7 }
0x1032   :  { %v4780_v37 = vpop.permute.xlu0 %4779 }
0x1033   :  { %10160 = vmatpush.xpose.msk.msrb.mxu2 %vm173_vm1, %v4780_v37 }
0x1036   :  { %10161 = vmatmul.msk.f32.vlgmr.msrb.gmra.mxu2 %vm173_vm1, %v12829_v25 }
0x1037   :  { %10168 = vmatpush.xpose.msk.msra.mxu2 %vm173_vm1, %v12831_v26 }
0x103a   :  { %v10470_v51 = vpop.permute.xlu0 %10469 }
0x103b   :  { %v10472_v28 = vunpack.i.h.bf16 %v10470_v51  ;;  %v10471_v15 = vunpack.i.l.bf16 %v10470_v51 }
0x103d   :  { %4666 = vmatpush.msrb.mxu1 %v10472_v28  ;;  %4718 = vmatpush.msra.mxu3 %v10471_v15 }
0x103e   :  { %v4408_v10 = vpop.xlane.xlu1 %4407  ;;  %10154 = vmatmul.msk.f32.vlgmr.msrb.gmra.mxu1 %vm173_vm1, %v4495_v46  ;;  %10169 = vmatmul.msk.f32.vlgmr.msra.gmra.mxu2 %vm173_vm1, %v12846_v16 }
0x103f   :  { %10810 = vrcp.f32 %v4408_v10  ;;  %10158 = vmatpush.xpose.msk.msra.mxu1 %vm173_vm1, %v12836_v35  ;;  %v4477_v62 = vand.u32 2147483648, %v4408_v10  ;;  %vm4471_vm2 = vweird.f32 %v4408_v10  ;;  %v4475_v16 = vand.u32 2147483647, %v4408_v10 }
0x1041   :  { %v4478_v45 = vor.u32 1.1754944e-38, %v4477_v62  ;;  %vm4476_vm6 = vcmp.eq.f32.partialorder %v4475_v16, 8.507059e+37 }
0x1043   :  { %10166 = vmatpush.xpose.msk.msrb.mxu1 %vm173_vm1, %v4864_v23 }
0x1045   :  { %v10811_v25 = vpop.eup %10810 }
0x1046   :  { %v4467_v26 = vmul.f32 %v10811_v25, %v4408_v10  ;;  %10159 = vmatmul.msk.f32.vlgmr.msra.gmra.mxu1 %vm173_vm1, %v4750_v39  ;;  %v4405_v3 = vpop.xlane.xlu2 %4404  ;;  %vm4472_vm15 = vweird.f32 %v10811_v25 }
0x1047   :  { %10812 = vrcp.f32 %v4405_v3  ;;  %vm4473_vm3 = vmor %vm4471_vm2, %vm4472_vm15  ;;  %v4462_v34 = vand.u32 2147483648, %v4405_v3  ;;  %v4460_v37 = vand.u32 2147483647, %v4405_v3  ;;  %vm4456_vm8 = vweird.f32 %v4405_v3 }
0x1048   :  { %v4468_v4 = vsub.f32 1.0, %v4467_v26  ;;  %v4808_v26 = vpop.permute.xlu0 %4807 }
0x1049   :  { %v4463_v21 = vor.u32 1.1754944e-38, %v4462_v34  ;;  %vm4461_vm10 = vcmp.eq.f32.partialorder %v4460_v37, 8.507059e+37 }
0x104a   :  { %v4469_v24 = vmul.f32 %v10811_v25, %v4468_v4 }
0x104c   :  { %v4470_v56 = vadd.f32 %v10811_v25, %v4469_v24 }
0x104d   :  { %v10813_v47 = vpop.eup %10812 }
0x104e   :  { %v4452_v61 = vmul.f32 %v10813_v47, %v4405_v3  ;;  %v4417_v44 = vpop.xlane.xlu2 %4416  ;;  %v4474_v35 = vsel %vm4473_vm3, %v10811_v25, %v4470_v56  ;;  %vm4457_vm7 = vweird.f32 %v10813_v47 }
0x104f   :  { %10814 = vrcp.f32 %v4417_v44  ;;  %v4479_v40 = vsel %vm4476_vm6, %v4478_v45, %v4474_v35  ;;  %vm4458_vm9 = vmor %vm4456_vm8, %vm4457_vm7  ;;  %v4522_v25 = vand.u32 2147483648, %v4417_v44  ;;  %v4520_v4 = vand.u32 2147483647, %v4417_v44 }
0x1050   :  { %v4453_v22 = vsub.f32 1.0, %v4452_v61  ;;  %v4480_v11 = vmul.f32 %v12855_v13, %v4479_v40  ;;  %vm4516_vm12 = vweird.f32 %v4417_v44 }
0x1051   :  { %v4523_v24 = vor.u32 1.1754944e-38, %v4522_v25  ;;  %vm4521_vm14 = vcmp.eq.f32.partialorder %v4520_v4, 8.507059e+37 }
0x1052   :  { %v4454_v29 = vmul.f32 %v10813_v47, %v4453_v22 }
0x1054   :  { %v4455_v31 = vadd.f32 %v10813_v47, %v4454_v29 }
0x1055   :  { %v10815_v39 = vpop.eup %10814 }
0x1056   :  { %v4459_v7 = vsel %vm4458_vm9, %v10813_v47, %v4455_v31  ;;  %v4512_v51 = vmul.f32 %v10815_v39, %v4417_v44  ;;  %v4862_v28 = vpop.permute.xlu1 %4861  ;;  %v4620_v15 = vpop.permute.xlu2 %4619  ;;  %vm4517_vm11 = vweird.f32 %v10815_v39 }
0x1057   :  { %v4464_v46 = vsel %vm4461_vm10, %v4463_v21, %v4459_v7  ;;  %4640 = vmatpush.msrb.mxu0 %v4620_v15  ;;  %10167 = vmatmul.msk.f32.vlgmr.msrb.gmra.mxu1 %vm173_vm1, %v4862_v28  ;;  %vm4518_vm13 = vmor %vm4516_vm12, %vm4517_vm11 }
0x1058   :  { %v4465_v23 = vmul.f32 %v12861_v30, %v4464_v46  ;;  %v4513_v10 = vsub.f32 1.0, %v4512_v51  ;;  %10153 = vmatmul.msk.f32.vlgmr.msrb.gmra.mxu0 %vm173_vm1, %v4480_v11 }
0x105a   :  { %v4514_v3 = vmul.f32 %v10815_v39, %v4513_v10  ;;  %10152 = vmatmul.msk.f32.vlgmr.msrb.gmra.mxu3 %vm173_vm1, %v4465_v23 }
0x105b   :  { %10162 = vmatpush.xpose.msk.msrb.mxu3 %vm173_vm1, %v4808_v26 }
0x105c   :  { %v4515_v13 = vadd.f32 %v10815_v39, %v4514_v3 }
0x105e   :  { %v4519_v56 = vsel %vm4518_vm13, %v10815_v39, %v4515_v13  ;;  %v4836_v47 = vpop.permute.xlu1 %4835  ;;  %v4724_v30 = vpop.permute.xlu2 %4723 }
0x105f   :  { %v4524_v62 = vsel %vm4521_vm14, %v4523_v24, %v4519_v56  ;;  %4744 = vmatpush.msra.mxu0 %v4724_v30 }
0x1060   :  { %v4525_v16 = vmul.f32 %v12865_v27, %v4524_v62 }
0x1061   :  { %10164 = vmatpush.xpose.msk.msrb.mxu0 %vm173_vm1, %v4836_v47 }
0x1062   :  { %10156 = vmatmul.msk.f32.vlgmr.msra.gmra.mxu3 %vm173_vm1, %v4525_v16 }
0x1063   :  { %10170 = vmatpush.xpose.msk.msra.mxu3 %vm173_vm1, %v12848_v50 }
0x106a   :  { %10163 = vmatmul.msk.f32.vlgmr.msrb.gmra.mxu3 %vm173_vm1, %v12840_v58 }
0x106d   :  { %v4372_v61 = vpop.xlane.xlu0 %4371 }
0x106e   :  { %v4380_v44 = vsub.f32 %v12880_v63, %v4372_v61  ;;  %v4834_v61 = vpop.permute.xlu2 %4833 }
0x1070   :  { %v4395_v35 = vmul.f32 1.442695, %v4380_v44  ;;  %v4946_v44 = vpop.permute.xlu1 %4945 }
0x1072   :  { %10816 = vpow2.f32 %v4395_v35 }
0x1078   :  { %v10817_v22 = vpop.eup %10816 }
0x1079   :  { %v4418_v45 = vsel %vm173_vm1, %v10817_v22, 0.0 }
0x107a   :  { %4419 = vadd.xlane.f32.xlu0 %v4418_v45 }
0x107b   :  { %v12937_v58 = vpop.f32.mrf.mxu1 }
0x1080   :  { %v4918_v27 = vpop.permute.xlu0 %4917 }
0x1081   :  { %10171 = vmatmul.msk.f32.vlgmr.msra.gmra.mxu3 %vm173_vm1, %v4918_v27 }
0x1089   :  { %v12933_v34 = vpop.f32.mrf.mxu2 }
0x108e   :  { %4947 = vrot.lane.b32.xlu0 %v12537_v5, %s11173_s28 }
0x1091   :  { %v12935_v50 = vpop.f32.mrf.mxu2 }
0x10b9   :  { %v4802_v29 = vpop.f32.mrf.mxu2 }
0x10ba   :  { %v4974_v63 = vmul.f32 0.35355338, %v4802_v29 }
0x10bb   :  { %v12939_v37 = vpop.f32.mrf.mxu1 }
0x10bc   :  { %v4984_v40 = vsel %vm173_vm1, %v4974_v63, -inf }
0x10bd   :  { %4985 = vmax.xlane.f32.xlu2 %v4984_v40 }
0x10c1   :  { %v4914_v31 = vpop.f32.mrf.mxu2 }
0x10c2   :  { %v4978_v39 = vmul.f32 0.35355338, %v4914_v31 }
0x10c3   :  { %v4774_v21 = vpop.f32.mrf.mxu1 }
0x10c4   :  { %v4973_v11 = vmul.f32 0.35355338, %v4774_v21  ;;  %v4996_v7 = vsel %vm173_vm1, %v4978_v39, -inf }
0x10c5   :  { %4997 = vmax.xlane.f32.xlu2 %v4996_v7 }
0x10c6   :  { %v4981_v51 = vsel %vm173_vm1, %v4973_v11, -inf }
0x10c7   :  { %4982 = vmax.xlane.f32.xlu0 %v4981_v51 }
0x10d4   :  { %v4886_v28 = vpop.f32.mrf.mxu1 }
0x10d5   :  { %v4977_v15 = vmul.f32 0.35355338, %v4886_v28 }
0x10d7   :  { %v4993_v46 = vsel %vm173_vm1, %v4977_v15, -inf }
0x10d8   :  { %4994 = vmax.xlane.f32.xlu0 %v4993_v46 }
0x10dd   :  { %v12949_v45 = vpop.f32.mrf.mxu3 }
0x10e5   :  { %v12953_v7 = vpop.f32.mrf.mxu3 }
0x10ed   :  { %v4420_v23 = vpop.xlane.xlu0 %4419 }
0x10ee   :  { %10818 = vrcp.f32 %v4420_v23  ;;  %v4537_v3 = vand.u32 2147483648, %v4420_v23  ;;  %v4535_v13 = vand.u32 2147483647, %v4420_v23  ;;  %vm4531_vm2 = vweird.f32 %v4420_v23 }
0x10f0   :  { %v4538_v56 = vor.u32 1.1754944e-38, %v4537_v3  ;;  %vm4536_vm6 = vcmp.eq.f32.partialorder %v4535_v13, 8.507059e+37 }
0x10f4   :  { %v10819_v10 = vpop.eup %10818 }
0x10f5   :  { %v4527_v25 = vmul.f32 %v10819_v10, %v4420_v23  ;;  %vm4532_vm15 = vweird.f32 %v10819_v10 }
0x10f6   :  { %vm4533_vm3 = vmor %vm4531_vm2, %vm4532_vm15 }
0x10f7   :  { %v4528_v26 = vsub.f32 1.0, %v4527_v25  ;;  %v4830_v25 = vpop.f32.mrf.mxu3 }
0x10f9   :  { %v4529_v4 = vmul.f32 %v10819_v10, %v4528_v26 }
0x10fb   :  { %v4530_v24 = vadd.f32 %v10819_v10, %v4529_v4 }
0x10fd   :  { %v4534_v47 = vsel %vm4533_vm3, %v10819_v10, %v4530_v24 }
0x10fe   :  { %v4539_v30 = vsel %vm4536_vm6, %v4538_v56, %v4534_v47 }
0x10ff   :  { %v4540_v62 = vmul.f32 %v10817_v22, %v4539_v30 }
0x1100   :  { %v4948_v16 = vpop.permute.xlu0 %4947 }
0x1101   :  { %10157 = vmatmul.msk.f32.vlgmr.msra.gmra.mxu0 %vm173_vm1, %v4540_v62 }
0x1102   :  { %10172 = vmatpush.xpose.msk.msra.mxu0 %vm173_vm1, %v4948_v16 }
0x1104   :  { %v4942_v24 = vpop.f32.mrf.mxu3 }
0x1105   :  { %v12969_v47 = vmul.f32 0.35355338, %v4942_v24 }
0x1107   :  { %v4999_v30 = vsel %vm173_vm1, %v12969_v47, -inf }
0x1109   :  { %10165 = vmatmul.msk.f32.vlgmr.msrb.gmra.mxu0 %vm173_vm1, %v4834_v61  ;;  %v12981_v61 = vpop.f32.mrf.mxu0 }
0x1111   :  { %10173 = vmatmul.msk.f32.vlgmr.msra.gmra.mxu0 %vm173_vm1, %v4946_v44 }
0x1130   :  { %v4986_v35 = vpop.xlane.xlu2 %4985 }
0x1131   :  { %v5006_v27 = vsub.f32 %v4974_v63, %v4986_v35 }
0x1133   :  { %v5015_v29 = vmul.f32 1.442695, %v5006_v27 }
0x1135   :  { %10820 = vpow2.f32 %v5015_v29 }
0x1138   :  { %v4998_v40 = vpop.xlane.xlu2 %4997 }
0x1139   :  { %v5010_v31 = vsub.f32 %v4978_v39, %v4998_v40 }
0x113a   :  { %v4983_v22 = vpop.xlane.xlu0 %4982 }
0x113b   :  { %v12951_v21 = vpop.eup %10820  ;;  %v5023_v51 = vmul.f32 1.442695, %v5010_v31  ;;  %v5005_v28 = vsub.f32 %v4973_v11, %v4983_v22  ;;  %v12965_v11 = vmul.f32 0.35355338, %v4830_v25 }
0x113c   :  { %v5032_v46 = vsel %vm173_vm1, %v12951_v21, 0.0 }
0x113d   :  { %10822 = vpow2.f32 %v5023_v51  ;;  %v5013_v23 = vmul.f32 1.442695, %v5005_v28  ;;  %5033 = vadd.xlane.f32.xlu1 %v5032_v46  ;;  %v4987_v13 = vsel %vm173_vm1, %v12965_v11, -inf  ;;  %v10478_v51 = vpack.i.bf16 %v12685_v20, %v12587_v57 }
0x113f   :  { %10824 = vpow2.f32 %v5013_v23 }
0x1143   :  { %v12957_v10 = vpop.eup %10822 }
0x1144   :  { %v5044_v63 = vsel %vm173_vm1, %v12957_v10, 0.0 }
0x1145   :  { %v12961_v39 = vpop.eup %10824  ;;  %5045 = vadd.xlane.f32.xlu1 %v5044_v63 }
0x1146   :  { %v5029_v26 = vsel %vm173_vm1, %v12961_v39, 0.0 }
0x1147   :  { %5030 = vadd.xlane.f32.xlu2 %v5029_v26 }
0x114b   :  { %v4995_v3 = vpop.xlane.xlu0 %4994 }
0x114c   :  { %v5009_v4 = vsub.f32 %v4977_v15, %v4995_v3  ;;  %v14955_v15 = vpack.i.bf16 %v12584_v59, %v12591_v14 }
0x114d   :  { %4988 = vmax.xlane.f32.xlu1 %v4987_v13 }
0x114e   :  { %v5021_v56 = vmul.f32 1.442695, %v5009_v4 }
0x1150   :  { %10826 = vpow2.f32 %v5021_v56 }
0x1155   :  { %5000 = vmax.xlane.f32.xlu1 %v4999_v30 }
0x1156   :  { %v12973_v62 = vpop.eup %10826 }
0x1157   :  { %v5041_v16 = vsel %vm173_vm1, %v12973_v62, 0.0 }
0x1158   :  { %5042 = vadd.xlane.f32.xlu2 %v5041_v16 }
0x116e   :  { %10474 = vrot.lane.b32.xlu1 %v14955_v15, %s11175_s29 }
0x117e   :  { %v12983_v44 = vpop.f32.mrf.mxu0 }
0x1186   :  { %v4858_v35 = vpop.f32.mrf.mxu0 }
0x1187   :  { %v12985_v27 = vmul.f32 0.35355338, %v4858_v35 }
0x1189   :  { %v4990_v29 = vsel %vm173_vm1, %v12985_v27, -inf }
0x118a   :  { %4991 = vmax.xlane.f32.xlu2 %v4990_v29 }
0x118e   :  { %v4970_v40 = vpop.f32.mrf.mxu0 }
0x118f   :  { %v12989_v31 = vmul.f32 0.35355338, %v4970_v40 }
0x1191   :  { %v5002_v22 = vsel %vm173_vm1, %v12989_v31, -inf }
0x1192   :  { %5003 = vmax.xlane.f32.xlu0 %v5002_v22 }
0x11a2   :  { %10479 = vrot.lane.b32.xlu2 %v10478_v51, %s11175_s29 }
0x11a6   :  { %10484 = vrot.lane.b32.xlu0 %v12595_v43, %s11175_s29 }
0x11aa   :  { %5411 = vrot.lane.b32.xlu2 %v12504_v60, %s11177_s5 }
0x11ae   :  { %5383 = vrot.lane.b32.xlu0 %v12469_v49, %s11177_s5 }
0x11b0   :  { %v5034_v28 = vpop.xlane.xlu1 %5033 }
0x11b1   :  { %10828 = vrcp.f32 %v5034_v28  ;;  %vm5073_vm9 = vweird.f32 %v5034_v28  ;;  %v5079_v13 = vand.u32 2147483648, %v5034_v28  ;;  %v5077_v56 = vand.u32 2147483647, %v5034_v28 }
0x11b2   :  { %5409 = vrot.lane.b32.xlu2 %v12550_v6, %s11176_s30 }
0x11b3   :  { %v5080_v15 = vor.u32 1.1754944e-38, %v5079_v13  ;;  %vm5078_vm13 = vcmp.eq.f32.partialorder %v5077_v56, 8.507059e+37 }
0x11b6   :  { %5439 = vrot.lane.b32.xlu0 %v12483_v17, %s11177_s5 }
0x11b7   :  { %v10829_v60 = vpop.eup %10828 }
0x11b8   :  { %v13012_v49 = vpop.xlane.xlu1 %5045  ;;  %v5069_v17 = vmul.f32 %v10829_v60, %v5034_v28  ;;  %vm5074_vm7 = vweird.f32 %v10829_v60 }
0x11b9   :  { %vm5075_vm10 = vmor %vm5073_vm9, %vm5074_vm7  ;;  %vm5133_vm2 = vweird.f32 %v13012_v49 }
0x11ba   :  { %5381 = vrot.lane.b32.xlu2 %v12511_v36, %s11176_s30  ;;  %v5031_v43 = vpop.xlane.xlu2 %5030  ;;  %v5070_v36 = vsub.f32 1.0, %v5069_v17 }
0x11bb   :  { %10830 = vrcp.f32 %v5031_v43  ;;  %v5064_v24 = vand.u32 2147483648, %v5031_v43  ;;  %vm5058_vm11 = vweird.f32 %v5031_v43  ;;  %v5062_v30 = vand.u32 2147483647, %v5031_v43 }
0x11bc   :  { %v5071_v25 = vmul.f32 %v10829_v60, %v5070_v36  ;;  %10832 = vrcp.f32 %v13012_v49  ;;  %v5139_v36 = vand.u32 2147483648, %v13012_v49 }
0x11bd   :  { %v5065_v35 = vor.u32 1.1754944e-38, %v5064_v24  ;;  %vm5063_vm14 = vcmp.eq.f32.partialorder %v5062_v30, 8.507059e+37 }
0x11be   :  { %5251 = vrot.lane.b32.xlu0 %v12625_v54, %s11175_s29  ;;  %v5140_v13 = vor.u32 1.1754944e-38, %v5139_v36 }
0x11c0   :  { %v13016_v23 = vpop.xlane.xlu1 %4988 }
0x11c1   :  { %v10831_v6 = vpop.eup %10830 }
0x11c2   :  { %5437 = vrot.lane.b32.xlu2 %v12530_v2, %s11176_s30  ;;  %v5054_v46 = vmul.f32 %v10831_v6, %v5031_v43  ;;  %v5072_v2 = vadd.f32 %v10829_v60, %v5071_v25  ;;  %vm5059_vm8 = vweird.f32 %v10831_v6  ;;  %v5137_v25 = vand.u32 2147483647, %v13012_v49 }
0x11c3   :  { %vm5060_vm12 = vmor %vm5058_vm11, %vm5059_vm8 }
0x11c4   :  { %v5055_v63 = vsub.f32 1.0, %v5054_v46  ;;  %vm5138_vm6 = vcmp.eq.f32.partialorder %v5137_v25, 8.507059e+37 }
0x11c6   :  { %v5056_v26 = vmul.f32 %v10831_v6, %v5055_v63 }
0x11c8   :  { %v5057_v3 = vadd.f32 %v10831_v6, %v5056_v26  ;;  %v13020_v4 = vpop.xlane.xlu1 %5000 }
0x11ca   :  { %5355 = vrot.lane.b32.xlu2 %v12692_v32, %s11175_s29  ;;  %v5061_v16 = vsel %vm5060_vm12, %v10831_v6, %v5057_v3 }
0x11cb   :  { %v5066_v40 = vsel %vm5063_vm14, %v5065_v35, %v5061_v16 }
0x11cc   :  { %v5067_v28 = vmul.f32 %v12961_v39, %v5066_v40 }
0x11d2   :  { %5465 = vrot.lane.b32.xlu2 %v12558_v42, %s11176_s30  ;;  %v5076_v42 = vsel %vm5075_vm10, %v10829_v60, %v5072_v2  ;;  %v5043_v60 = vpop.xlane.xlu2 %5042 }
0x11d3   :  { %v5081_v29 = vsel %vm5078_vm13, %v5080_v15, %v5076_v42  ;;  %10834 = vrcp.f32 %v5043_v60  ;;  %vm5118_vm8 = vweird.f32 %v5043_v60 }
0x11d4   :  { %v5082_v46 = vmul.f32 %v12951_v21, %v5081_v29 }
0x11da   :  { %5495 = vrot.lane.b32.xlu2 %v12494_v33, %s11177_s5  ;;  %v10833_v33 = vpop.eup %10832 }
0x11db   :  { %v5129_v43 = vmul.f32 %v10833_v33, %v13012_v49  ;;  %vm5134_vm15 = vweird.f32 %v10833_v33  ;;  %v10835_v2 = vpop.eup %10834 }
0x11dc   :  { %vm5135_vm3 = vmor %vm5133_vm2, %vm5134_vm15  ;;  %v5114_v30 = vmul.f32 %v10835_v2, %v5043_v60  ;;  %vm5119_vm7 = vweird.f32 %v10835_v2 }
0x11dd   :  { %v5130_v21 = vsub.f32 1.0, %v5129_v43  ;;  %v5122_v43 = vand.u32 2147483647, %v5043_v60  ;;  %vm5120_vm9 = vmor %vm5118_vm8, %vm5119_vm7 }
0x11df   :  { %v5131_v39 = vmul.f32 %v10833_v33, %v5130_v21  ;;  %vm5123_vm10 = vcmp.eq.f32.partialorder %v5122_v43, 8.507059e+37 }
0x11e0   :  { %v10475_v22 = vpop.permute.xlu1 %10474 }
0x11e1   :  { %v10477_v51 = vunpack.i.h.bf16 %v10475_v22  ;;  %v10476_v17 = vunpack.i.l.bf16 %v10475_v22  ;;  %v5132_v6 = vadd.f32 %v10833_v33, %v5131_v39 }
0x11e2   :  { %5551 = vrot.lane.b32.xlu2 %v12515_v12, %s11177_s5 }
0x11e3   :  { %5194 = vmatpush.msra.mxu1 %v10477_v51  ;;  %5220 = vmatpush.msrb.mxu2 %v10476_v17  ;;  %v5136_v3 = vsel %vm5135_vm3, %v10833_v33, %v5132_v6 }
0x11e4   :  { %10174 = vmatmul.msk.f32.vlgmr.msra.gmra.mxu1 %vm173_vm1, %v5067_v28  ;;  %10175 = vmatmul.msk.f32.vlgmr.msrb.gmra.mxu2 %vm173_vm1, %v5082_v46  ;;  %v5141_v24 = vsel %vm5138_vm6, %v5140_v13, %v5136_v3 }
0x11e5   :  { %v5142_v49 = vmul.f32 %v12957_v10, %v5141_v24 }
0x11ea   :  { %5579 = vrot.lane.b32.xlu2 %v12537_v5, %s11177_s5  ;;  %v5007_v5 = vsub.f32 %v12965_v11, %v13016_v23  ;;  %v5011_v11 = vsub.f32 %v12969_v47, %v13020_v4  ;;  %v5115_v23 = vsub.f32 1.0, %v5114_v30  ;;  %v5124_v4 = vand.u32 2147483648, %v5043_v60 }
0x11ec   :  { %v5017_v56 = vmul.f32 1.442695, %v5007_v5  ;;  %v5116_v51 = vmul.f32 %v10835_v2, %v5115_v23  ;;  %v5125_v39 = vor.u32 1.1754944e-38, %v5124_v4 }
0x11ee   :  { %v5117_v47 = vadd.f32 %v10835_v2, %v5116_v51 }
0x11f0   :  { %v5121_v21 = vsel %vm5120_vm9, %v10835_v2, %v5117_v47 }
0x11f1   :  { %v5126_v36 = vsel %vm5123_vm10, %v5125_v39, %v5121_v21 }
0x11f2   :  { %v5127_v60 = vmul.f32 %v12973_v62, %v5126_v36 }
0x11fd   :  { %v4992_v12 = vpop.xlane.xlu2 %4991 }
0x11fe   :  { %v5008_v63 = vsub.f32 %v12985_v27, %v4992_v12 }
0x1200   :  { %v5019_v26 = vmul.f32 1.442695, %v5008_v63 }
0x1202   :  { %10836 = vpow2.f32 %v5019_v26 }
0x1203   :  { %10838 = vpow2.f32 %v5017_v56 }
0x1205   :  { %v5004_v42 = vpop.xlane.xlu0 %5003  ;;  %v10480_v16 = vpop.permute.xlu2 %10479 }
0x1206   :  { %v5012_v27 = vsub.f32 %v12989_v31, %v5004_v42  ;;  %v10482_v15 = vunpack.i.h.bf16 %v10480_v16  ;;  %v10481_v35 = vunpack.i.l.bf16 %v10480_v16  ;;  %v5025_v31 = vmul.f32 1.442695, %v5011_v11 }
0x1208   :  { %v13042_v29 = vpop.eup %10836  ;;  %v5027_v40 = vmul.f32 1.442695, %v5012_v27  ;;  %5246 = vmatpush.msrb.mxu3 %v10481_v35  ;;  %5324 = vmatpush.msra.mxu2 %v10482_v15 }
0x1209   :  { %10179 = vmatmul.msk.f32.vlgmr.msra.gmra.mxu2 %vm173_vm1, %v5142_v49  ;;  %v5038_v22 = vsel %vm173_vm1, %v13042_v29, 0.0  ;;  %v13049_v17 = vpop.eup %10838 }
0x120a   :  { %10840 = vpow2.f32 %v5027_v40  ;;  %5039 = vadd.xlane.f32.xlu0 %v5038_v22  ;;  %v5035_v33 = vsel %vm173_vm1, %v13049_v17, 0.0 }
0x120b   :  { %10842 = vpow2.f32 %v5025_v31 }
0x120d   :  { %v5412_v10 = vpop.permute.xlu2 %5411 }
0x120e   :  { %10184 = vmatpush.xpose.msk.msrb.mxu2 %vm173_vm1, %v5412_v10 }
0x1210   :  { %v13052_v46 = vpop.eup %10840 }
0x1211   :  { %v5050_v28 = vsel %vm173_vm1, %v13052_v46, 0.0  ;;  %v13058_v12 = vpop.eup %10842 }
0x1212   :  { %5051 = vadd.xlane.f32.xlu1 %v5050_v28  ;;  %5036 = vadd.xlane.f32.xlu0 %v5035_v33  ;;  %v5047_v26 = vsel %vm173_vm1, %v13058_v12, 0.0 }
0x1215   :  { %v5410_v6 = vpop.permute.xlu2 %5409 }
0x1216   :  { %10185 = vmatmul.msk.f32.vlgmr.msrb.gmra.mxu2 %vm173_vm1, %v5410_v6 }
0x1218   :  { %v10485_v63 = vpop.permute.xlu0 %10484 }
0x1219   :  { %v10487_v25 = vunpack.i.h.bf16 %v10485_v63  ;;  %v10486_v5 = vunpack.i.l.bf16 %v10485_v63 }
0x121a   :  { %5048 = vadd.xlane.f32.xlu0 %v5047_v26 }
0x121b   :  { %5298 = vmatpush.msrb.mxu1 %v10486_v5  ;;  %5350 = vmatpush.msra.mxu3 %v10487_v25 }
0x121c   :  { %10178 = vmatmul.msk.f32.vlgmr.msrb.gmra.mxu1 %vm173_vm1, %v5127_v60 }
0x121d   :  { %v5382_v2 = vpop.permute.xlu2 %5381 }
0x1220   :  { %v5384_v3 = vpop.permute.xlu0 %5383 }
0x1221   :  { %10182 = vmatpush.xpose.msk.msra.mxu1 %vm173_vm1, %v5384_v3 }
0x1224   :  { %10183 = vmatmul.msk.f32.vlgmr.msra.gmra.mxu1 %vm173_vm1, %v5382_v2 }
0x1225   :  { %v13067_v13 = vpop.permute.xlu2 %5437 }
0x1228   :  { %v13069_v24 = vpop.permute.xlu0 %5439 }
0x122b   :  { %5521 = vrot.lane.b32.xlu1 %v12570_v53, %s11176_s30 }
0x122d   :  { %v5356_v56 = vpop.permute.xlu2 %5355 }
0x122e   :  { %5467 = vrot.lane.b32.xlu0 %v12490_v41, %s11177_s5 }
0x1230   :  { %v5252_v62 = vpop.permute.xlu0 %5251 }
0x1231   :  { %5272 = vmatpush.msrb.mxu0 %v5252_v62 }
0x1233   :  { %5376 = vmatpush.msra.mxu0 %v5356_v56 }
0x1235   :  { %v13075_v30 = vpop.permute.xlu2 %5465 }
0x1236   :  { %5523 = vrot.lane.b32.xlu0 %v12520_v9, %s11177_s5 }
0x123d   :  { %v5496_v42 = vpop.permute.xlu2 %5495 }
0x123e   :  { %5493 = vrot.lane.b32.xlu0 %v12543_v0, %s11176_s30  ;;  %10190 = vmatpush.xpose.msk.msrb.mxu1 %vm173_vm1, %v5496_v42 }
0x1246   :  { %5549 = vrot.lane.b32.xlu0 %v12561_v8, %s11176_s30 }
0x124e   :  { %5577 = vrot.lane.b32.xlu0 %v12617_v1, %s11176_s30 }
0x1261   :  { %v13089_v21 = vpop.f32.mrf.mxu1 }
0x1267   :  { %v13086_v49 = vpop.f32.mrf.mxu2 }
0x127d   :  { %v5040_v41 = vpop.xlane.xlu0 %5039 }
0x127e   :  { %10844 = vrcp.f32 %v5040_v41  ;;  %v5109_v35 = vand.u32 2147483648, %v5040_v41  ;;  %v5107_v11 = vand.u32 2147483647, %v5040_v41  ;;  %vm5103_vm12 = vweird.f32 %v5040_v41 }
0x1280   :  { %v5110_v1 = vor.u32 1.1754944e-38, %v5109_v35  ;;  %vm5108_vm14 = vcmp.eq.f32.partialorder %v5107_v11, 8.507059e+37 }
0x1284   :  { %v10845_v53 = vpop.eup %10844 }
0x1285   :  { %v5099_v16 = vmul.f32 %v10845_v53, %v5040_v41  ;;  %v5052_v27 = vpop.xlane.xlu1 %5051  ;;  %v5037_v15 = vpop.xlane.xlu0 %5036  ;;  %vm5104_vm11 = vweird.f32 %v10845_v53 }
0x1286   :  { %10846 = vrcp.f32 %v5052_v27  ;;  %vm5105_vm13 = vmor %vm5103_vm12, %vm5104_vm11  ;;  %v5169_v33 = vand.u32 2147483648, %v5052_v27  ;;  %v5167_v6 = vand.u32 2147483647, %v5052_v27  ;;  %v5094_v36 = vand.u32 2147483648, %v5037_v15 }
0x1287   :  { %v5100_v9 = vsub.f32 1.0, %v5099_v16  ;;  %10848 = vrcp.f32 %v5037_v15  ;;  %v5092_v5 = vand.u32 2147483647, %v5037_v15  ;;  %vm5163_vm3 = vweird.f32 %v5052_v27 }
0x1288   :  { %vm5088_vm7 = vweird.f32 %v5037_v15  ;;  %vm5168_vm8 = vcmp.eq.f32.partialorder %v5167_v6, 8.507059e+37  ;;  %v5095_v56 = vor.u32 1.1754944e-38, %v5094_v36 }
0x1289   :  { %v5101_v0 = vmul.f32 %v10845_v53, %v5100_v9  ;;  %vm5093_vm10 = vcmp.eq.f32.partialorder %v5092_v5, 8.507059e+37 }
0x128b   :  { %v5102_v23 = vadd.f32 %v10845_v53, %v5101_v0 }
0x128c   :  { %v10847_v8 = vpop.eup %10846  ;;  %v13091_v63 = vpop.f32.mrf.mxu2 }
0x128d   :  { %v10849_v40 = vpop.eup %10848  ;;  %v5106_v22 = vsel %vm5105_vm13, %v10845_v53, %v5102_v23  ;;  %v5159_v31 = vmul.f32 %v10847_v8, %v5052_v27  ;;  %v5049_v51 = vpop.xlane.xlu0 %5048  ;;  %vm5164_vm15 = vweird.f32 %v10847_v8 }
0x128e   :  { %v5111_v10 = vsel %vm5108_vm14, %v5110_v1, %v5106_v22  ;;  %v5084_v47 = vmul.f32 %v10849_v40, %v5037_v15  ;;  %10850 = vrcp.f32 %v5049_v51  ;;  %vm5089_vm2 = vweird.f32 %v10849_v40  ;;  %vm5165_vm6 = vmor %vm5163_vm3, %vm5164_vm15  ;;  %v5552_v53 = vpop.permute.xlu2 %5551 }
0x128f   :  { %v5112_v4 = vmul.f32 %v13042_v29, %v5111_v10  ;;  %v5160_v28 = vsub.f32 1.0, %v5159_v31  ;;  %v5170_v29 = vor.u32 1.1754944e-38, %v5169_v33  ;;  %vm5090_vm9 = vmor %vm5088_vm7, %vm5089_vm2  ;;  %v5154_v0 = vand.u32 2147483648, %v5049_v51 }
0x1290   :  { %v5085_v43 = vsub.f32 1.0, %v5084_v47  ;;  %v5152_v23 = vand.u32 2147483647, %v5049_v51  ;;  %vm5148_vm12 = vweird.f32 %v5049_v51 }
0x1291   :  { %v5161_v39 = vmul.f32 %v10847_v8, %v5160_v28  ;;  %10177 = vmatmul.msk.f32.vlgmr.msrb.gmra.mxu0 %vm173_vm1, %v5112_v4 }
0x1292   :  { %v5086_v25 = vmul.f32 %v10849_v40, %v5085_v43  ;;  %vm5153_vm14 = vcmp.eq.f32.partialorder %v5152_v23, 8.507059e+37 }
0x1293   :  { %v5162_v26 = vadd.f32 %v10847_v8, %v5161_v39 }
0x1294   :  { %v10851_v60 = vpop.eup %10850  ;;  %v5087_v2 = vadd.f32 %v10849_v40, %v5086_v25 }
0x1295   :  { %v5166_v3 = vsel %vm5165_vm6, %v10847_v8, %v5162_v26  ;;  %v5144_v62 = vmul.f32 %v10851_v60, %v5049_v51  ;;  %vm5149_vm11 = vweird.f32 %v10851_v60 }
0x1296   :  { %v5171_v42 = vsel %vm5168_vm8, %v5170_v29, %v5166_v3  ;;  %v5091_v41 = vsel %vm5090_vm9, %v10849_v40, %v5087_v2  ;;  %vm5150_vm13 = vmor %vm5148_vm12, %vm5149_vm11  ;;  %v5580_v4 = vpop.permute.xlu2 %5579 }
0x1297   :  { %v5172_v16 = vmul.f32 %v13052_v46, %v5171_v42  ;;  %v5096_v9 = vsel %vm5093_vm10, %v5095_v56, %v5091_v41  ;;  %v5145_v35 = vsub.f32 1.0, %v5144_v62  ;;  %v5155_v46 = vor.u32 1.1754944e-38, %v5154_v0 }
0x1298   :  { %v5097_v27 = vmul.f32 %v13049_v17, %v5096_v9 }
0x1299   :  { %v5146_v11 = vmul.f32 %v10851_v60, %v5145_v35  ;;  %v13096_v15 = vpop.f32.mrf.mxu1  ;;  %10181 = vmatmul.msk.f32.vlgmr.msra.gmra.mxu0 %vm173_vm1, %v5172_v16  ;;  %v5434_v8 = vpop.f32.mrf.mxu2 }
0x129a   :  { %10176 = vmatmul.msk.f32.vlgmr.msrb.gmra.mxu3 %vm173_vm1, %v5097_v27  ;;  %v5606_v1 = vmul.f32 0.35355338, %v5434_v8 }
0x129b   :  { %v5147_v40 = vadd.f32 %v10851_v60, %v5146_v11  ;;  %10186 = vmatpush.xpose.msk.msrb.mxu3 %vm173_vm1, %v13069_v24 }
0x129c   :  { %v5616_v17 = vsel %vm173_vm1, %v5606_v1, -inf }
0x129d   :  { %v5151_v22 = vsel %vm5150_vm13, %v10851_v60, %v5147_v40  ;;  %5617 = vmax.xlane.f32.xlu2 %v5616_v17 }
0x129e   :  { %v5156_v31 = vsel %vm5153_vm14, %v5155_v46, %v5151_v22 }
0x129f   :  { %v5157_v10 = vmul.f32 %v13058_v12, %v5156_v31  ;;  %v5522_v12 = vpop.permute.xlu1 %5521 }
0x12a0   :  { %v5468_v47 = vpop.permute.xlu0 %5467 }
0x12a1   :  { %v5406_v28 = vpop.f32.mrf.mxu1  ;;  %10188 = vmatpush.xpose.msk.msrb.mxu0 %vm173_vm1, %v5468_v47 }
0x12a2   :  { %10180 = vmatmul.msk.f32.vlgmr.msra.gmra.mxu3 %vm173_vm1, %v5157_v10  ;;  %v5605_v51 = vmul.f32 0.35355338, %v5406_v28  ;;  %v14956_v10 = vpack.i.bf16 %v12591_v14, %v12584_v59 }
0x12a3   :  { %10194 = vmatpush.xpose.msk.msra.mxu3 %vm173_vm1, %v5552_v53 }
0x12a4   :  { %10189 = vmatmul.msk.f32.vlgmr.msrb.gmra.mxu0 %vm173_vm1, %v13075_v30  ;;  %v5613_v24 = vsel %vm173_vm1, %v5605_v51, -inf }
0x12a5   :  { %10196 = vmatpush.xpose.msk.msra.mxu0 %vm173_vm1, %v5580_v4  ;;  %5614 = vmax.xlane.f32.xlu1 %v5613_v24 }
0x12a8   :  { %v5524_v33 = vpop.permute.xlu0 %5523 }
0x12a9   :  { %10192 = vmatpush.xpose.msk.msra.mxu2 %vm173_vm1, %v5524_v33 }
0x12aa   :  { %10187 = vmatmul.msk.f32.vlgmr.msrb.gmra.mxu3 %vm173_vm1, %v13067_v13 }
0x12ac   :  { %10193 = vmatmul.msk.f32.vlgmr.msra.gmra.mxu2 %vm173_vm1, %v5522_v12 }
0x12b0   :  { %v5494_v43 = vpop.permute.xlu0 %5493 }
0x12b1   :  { %10191 = vmatmul.msk.f32.vlgmr.msrb.gmra.mxu1 %vm173_vm1, %v5494_v43 }
0x12b8   :  { %v5550_v39 = vpop.permute.xlu0 %5549 }
0x12b9   :  { %10195 = vmatmul.msk.f32.vlgmr.msra.gmra.mxu3 %vm173_vm1, %v5550_v39 }
0x12c0   :  { %v5578_v6 = vpop.permute.xlu0 %5577 }
0x12c1   :  { %10197 = vmatmul.msk.f32.vlgmr.msra.gmra.mxu0 %vm173_vm1, %v5578_v6 }
0x130e   :  { %v13118_v30 = vpop.f32.mrf.mxu0 }
0x1310   :  { %v5618_v3 = vpop.xlane.xlu2 %5617 }
0x1311   :  { %v5638_v53 = vsub.f32 %v5606_v1, %v5618_v3 }
0x1313   :  { %v5647_v0 = vmul.f32 1.442695, %v5638_v53 }
0x1316   :  { %v13120_v36 = vpop.f32.mrf.mxu0 }
0x1318   :  { %v5615_v60 = vpop.xlane.xlu1 %5614 }
0x1319   :  { %v5637_v2 = vsub.f32 %v5605_v51, %v5615_v60 }
0x131b   :  { %v5645_v56 = vmul.f32 1.442695, %v5637_v2 }
0x131d   :  { %v13122_v25 = vpop.f32.mrf.mxu3  ;;  %10852 = vpow2.f32 %v5645_v56 }
0x131e   :  { %10854 = vpow2.f32 %v5647_v0 }
0x1321   :  { %v5490_v5 = vpop.f32.mrf.mxu0 }
0x1322   :  { %v5608_v13 = vmul.f32 0.35355338, %v5490_v5 }
0x1323   :  { %v13129_v23 = vpop.eup %10852 }
0x1324   :  { %v5622_v26 = vsel %vm173_vm1, %v5608_v13, -inf  ;;  %v5661_v1 = vsel %vm173_vm1, %v13129_v23, 0.0  ;;  %v13134_v46 = vpop.eup %10854 }
0x1325   :  { %v13125_v29 = vpop.f32.mrf.mxu3  ;;  %5623 = vmax.xlane.f32.xlu1 %v5622_v26  ;;  %v5664_v31 = vsel %vm173_vm1, %v13134_v46, 0.0 }
0x132d   :  { %v5462_v62 = vpop.f32.mrf.mxu3 }
0x132e   :  { %v5607_v42 = vmul.f32 0.35355338, %v5462_v62  ;;  %v5518_v41 = vpop.f32.mrf.mxu1 }
0x132f   :  { %v5609_v16 = vmul.f32 0.35355338, %v5518_v41  ;;  %v5546_v35 = vpop.f32.mrf.mxu2 }
0x1330   :  { %v5619_v9 = vsel %vm173_vm1, %v5607_v42, -inf  ;;  %v5610_v11 = vmul.f32 0.35355338, %v5546_v35 }
0x1331   :  { %5620 = vmax.xlane.f32.xlu0 %v5619_v9  ;;  %v5625_v27 = vsel %vm173_vm1, %v5609_v16, -inf }
0x1332   :  { %5626 = vmax.xlane.f32.xlu2 %v5625_v27  ;;  %v5628_v8 = vsel %vm173_vm1, %v5610_v11, -inf }
0x1339   :  { %5629 = vmax.xlane.f32.xlu0 %v5628_v8 }
0x133a   :  { %5662 = vadd.xlane.f32.xlu2 %v5661_v1 }
0x133c   :  { %v5574_v40 = vpop.f32.mrf.mxu3 }
0x133d   :  { %v5611_v17 = vmul.f32 0.35355338, %v5574_v40 }
0x133e   :  { %v5602_v2 = vpop.f32.mrf.mxu0 }
0x133f   :  { %v5631_v22 = vsel %vm173_vm1, %v5611_v17, -inf }
0x1340   :  { %5632 = vmax.xlane.f32.xlu1 %v5631_v22 }
0x1341   :  { %5665 = vadd.xlane.f32.xlu0 %v5664_v31 }
0x1352   :  { %10489 = vrot.lane.b32.xlu2 %v14956_v10, %s11178_s6 }
0x1359   :  { %5857 = vrot.lane.b32.xlu1 %v12587_v57, %s11178_s6 }
0x1398   :  { %v5624_v43 = vpop.xlane.xlu1 %5623 }
0x1399   :  { %v5640_v26 = vsub.f32 %v5608_v13, %v5624_v43 }
0x139b   :  { %v5651_v56 = vmul.f32 1.442695, %v5640_v26 }
0x13a4   :  { %v5621_v47 = vpop.xlane.xlu0 %5620 }
0x13a5   :  { %v5639_v4 = vsub.f32 %v5607_v42, %v5621_v47  ;;  %v5627_v28 = vpop.xlane.xlu2 %5626  ;;  %v13153_v42 = vmul.f32 0.35355338, %v5602_v2 }
0x13a6   :  { %v5641_v51 = vsub.f32 %v5609_v16, %v5627_v28 }
0x13a7   :  { %v5649_v24 = vmul.f32 1.442695, %v5639_v4  ;;  %v5634_v22 = vsel %vm173_vm1, %v13153_v42, -inf }
0x13a8   :  { %v5653_v33 = vmul.f32 1.442695, %v5641_v51 }
0x13a9   :  { %10856 = vpow2.f32 %v5649_v24 }
0x13aa   :  { %10858 = vpow2.f32 %v5653_v33 }
0x13ac   :  { %v5630_v12 = vpop.xlane.xlu0 %5629 }
0x13ad   :  { %v5642_v39 = vsub.f32 %v5610_v11, %v5630_v12  ;;  %v5663_v6 = vpop.xlane.xlu2 %5662 }
0x13ae   :  { %10860 = vrcp.f32 %v5663_v6  ;;  %v5696_v0 = vand.u32 2147483648, %v5663_v6  ;;  %v5694_v40 = vand.u32 2147483647, %v5663_v6  ;;  %vm5690_vm2 = vweird.f32 %v5663_v6 }
0x13af   :  { %v13145_v5 = vpop.eup %10856  ;;  %v5655_v59 = vmul.f32 1.442695, %v5642_v39 }
0x13b0   :  { %v13147_v14 = vpop.eup %10858  ;;  %v5667_v57 = vsel %vm173_vm1, %v13145_v5, 0.0  ;;  %v5697_v47 = vor.u32 1.1754944e-38, %v5696_v0  ;;  %vm5695_vm6 = vcmp.eq.f32.partialorder %v5694_v40, 8.507059e+37 }
0x13b1   :  { %10862 = vpow2.f32 %v5655_v59  ;;  %5668 = vadd.xlane.f32.xlu1 %v5667_v57  ;;  %v5673_v60 = vsel %vm173_vm1, %v13147_v14, 0.0 }
0x13b2   :  { %5674 = vadd.xlane.f32.xlu0 %v5673_v60 }
0x13b3   :  { %v5633_v53 = vpop.xlane.xlu1 %5632 }
0x13b4   :  { %v10861_v3 = vpop.eup %10860  ;;  %v5666_v62 = vpop.xlane.xlu0 %5665  ;;  %v5643_v11 = vsub.f32 %v5611_v17, %v5633_v53 }
0x13b5   :  { %v5686_v41 = vmul.f32 %v10861_v3, %v5663_v6  ;;  %10864 = vrcp.f32 %v5666_v62  ;;  %v10490_v16 = vpop.permute.xlu2 %10489  ;;  %vm5691_vm15 = vweird.f32 %v10861_v3  ;;  %v5711_v43 = vand.u32 2147483648, %v5666_v62 }
0x13b6   :  { %v10492_v13 = vunpack.i.h.bf16 %v10490_v16  ;;  %v10491_v27 = vunpack.i.l.bf16 %v10490_v16  ;;  %10866 = vpow2.f32 %v5651_v56  ;;  %vm5692_vm3 = vmor %vm5690_vm2, %vm5691_vm15  ;;  %v5657_v17 = vmul.f32 1.442695, %v5643_v11 }
0x13b7   :  { %v13155_v9 = vpop.eup %10862  ;;  %v5687_v35 = vsub.f32 1.0, %v5686_v41  ;;  %v5709_v59 = vand.u32 2147483647, %v5666_v62  ;;  %vm5705_vm8 = vweird.f32 %v5666_v62  ;;  %v5712_v57 = vor.u32 1.1754944e-38, %v5711_v43 }
0x13b8   :  { %5852 = vmatpush.msrb.mxu2 %v10492_v13  ;;  %v5676_v8 = vsel %vm173_vm1, %v13155_v9, 0.0  ;;  %5826 = vmatpush.msra.mxu1 %v10491_v27  ;;  %10868 = vpow2.f32 %v5657_v17 }
0x13b9   :  { %v5688_v1 = vmul.f32 %v10861_v3, %v5687_v35  ;;  %5677 = vadd.xlane.f32.xlu2 %v5676_v8  ;;  %vm5710_vm10 = vcmp.eq.f32.partialorder %v5709_v59, 8.507059e+37 }
0x13ba   :  { %5635 = vmax.xlane.f32.xlu0 %v5634_v22 }
0x13bb   :  { %v10865_v31 = vpop.eup %10864  ;;  %v5689_v10 = vadd.f32 %v10861_v3, %v5688_v1 }
0x13bc   :  { %v5701_v4 = vmul.f32 %v10865_v31, %v5666_v62  ;;  %v13161_v51 = vpop.eup %10866  ;;  %vm5706_vm7 = vweird.f32 %v10865_v31 }
0x13bd   :  { %v5693_v28 = vsel %vm5692_vm3, %v10861_v3, %v5689_v10  ;;  %v5670_v6 = vsel %vm173_vm1, %v13161_v51, 0.0  ;;  %vm5707_vm9 = vmor %vm5705_vm8, %vm5706_vm7 }
0x13be   :  { %v5698_v24 = vsel %vm5695_vm6, %v5697_v47, %v5693_v28  ;;  %v5702_v33 = vsub.f32 1.0, %v5701_v4  ;;  %v13167_v3 = vpop.eup %10868 }
0x13bf   :  { %v5699_v12 = vmul.f32 %v13129_v23, %v5698_v24  ;;  %v5679_v56 = vsel %vm173_vm1, %v13167_v3, 0.0 }
0x13c0   :  { %v5703_v39 = vmul.f32 %v10865_v31, %v5702_v33 }
0x13c1   :  { %10198 = vmatmul.msk.f32.vlgmr.msra.gmra.mxu1 %vm173_vm1, %v5699_v12 }
0x13c2   :  { %v5704_v26 = vadd.f32 %v10865_v31, %v5703_v39  ;;  %5671 = vadd.xlane.f32.xlu0 %v5670_v6 }
0x13c4   :  { %v5708_v60 = vsel %vm5707_vm9, %v10865_v31, %v5704_v26 }
0x13c5   :  { %v5713_v2 = vsel %vm5710_vm10, %v5712_v57, %v5708_v60 }
0x13c6   :  { %v5714_v23 = vmul.f32 %v13134_v46, %v5713_v2  ;;  %v10493_v46 = vpack.i.bf16 %v12685_v20, %v12577_v48 }
0x13c8   :  { %10199 = vmatmul.msk.f32.vlgmr.msrb.gmra.mxu2 %vm173_vm1, %v5714_v23 }
0x13ca   :  { %5883 = vrot.lane.b32.xlu1 %v12625_v54, %s11178_s6  ;;  %5680 = vadd.xlane.f32.xlu0 %v5679_v56  ;;  %v14957_v54 = vpack.i.bf16 %v12361_v38, %v12354_v55 }
0x13cb   :  { %v5858_v62 = vpop.permute.xlu1 %5857 }
0x13cc   :  { %5878 = vmatpush.msrb.mxu3 %v5858_v62 }
0x13d1   :  { %6021 = vrot.lane.b32.xlu2 %v12937_v58, %s11166_s26 }
0x13d2   :  { %5961 = vrot.lane.b32.xlu1 %v12580_v18, %s11178_s6  ;;  %v14958_v18 = vpack.i.bf16 %v12371_v52, %v12366_v19 }
0x13d9   :  { %6055 = vrot.lane.b32.xlu2 %v13086_v49, %s11179_s7 }
0x13de   :  { %10494 = vrot.lane.b32.xlu0 %v10493_v46, %s11178_s6 }
0x13e1   :  { %6025 = vrot.lane.b32.xlu2 %v12949_v45, %s11166_s26 }
0x13e6   :  { %5987 = vrot.lane.b32.xlu0 %v12692_v32, %s11178_s6 }
0x13ee   :  { %10499 = vrot.lane.b32.xlu0 %v14957_v54, %s11167_s9 }
0x13f6   :  { %10504 = vrot.lane.b32.xlu0 %v14958_v18, %s11167_s9 }
0x13fe   :  { %6053 = vrot.lane.b32.xlu0 %v13089_v21, %s11179_s7 }
0x1424   :  { %v5669_v48 = vpop.xlane.xlu1 %5668 }
0x1425   :  { %10870 = vrcp.f32 %v5669_v48  ;;  %v13198_v20 = vpop.xlane.xlu0 %5674  ;;  %v5726_v55 = vand.u32 2147483648, %v5669_v48  ;;  %v5724_v53 = vand.u32 2147483647, %v5669_v48  ;;  %vm5720_vm12 = vweird.f32 %v5669_v48 }
0x1426   :  { %vm5750_vm8 = vweird.f32 %v13198_v20 }
0x1427   :  { %v5727_v21 = vor.u32 1.1754944e-38, %v5726_v55  ;;  %vm5725_vm14 = vcmp.eq.f32.partialorder %v5724_v53, 8.507059e+37 }
0x142b   :  { %v10871_v58 = vpop.eup %10870 }
0x142c   :  { %v5716_v45 = vmul.f32 %v10871_v58, %v5669_v48  ;;  %vm5721_vm11 = vweird.f32 %v10871_v58  ;;  %v13201_v19 = vpop.xlane.xlu2 %5677 }
0x142d   :  { %v5636_v32 = vpop.xlane.xlu0 %5635  ;;  %vm5722_vm13 = vmor %vm5720_vm12, %vm5721_vm11  ;;  %vm5765_vm12 = vweird.f32 %v13201_v19 }
0x142e   :  { %v5717_v49 = vsub.f32 1.0, %v5716_v45  ;;  %v5644_v41 = vsub.f32 %v13153_v42, %v5636_v32 }
0x1430   :  { %v5718_v38 = vmul.f32 %v10871_v58, %v5717_v49  ;;  %v5659_v16 = vmul.f32 1.442695, %v5644_v41  ;;  %v5771_v49 = vand.u32 2147483648, %v13201_v19  ;;  %v5754_v41 = vand.u32 2147483647, %v13198_v20 }
0x1432   :  { %v5719_v52 = vadd.f32 %v10871_v58, %v5718_v38  ;;  %10872 = vpow2.f32 %v5659_v16  ;;  %v5769_v38 = vand.u32 2147483647, %v13201_v19 }
0x1433   :  { %10874 = vrcp.f32 %v13198_v20 }
0x1434   :  { %v5723_v13 = vsel %vm5722_vm13, %v10871_v58, %v5719_v52  ;;  %10876 = vrcp.f32 %v13201_v19 }
0x1435   :  { %v5728_v35 = vsel %vm5725_vm14, %v5727_v21, %v5723_v13  ;;  %v5672_v42 = vpop.xlane.xlu0 %5671 }
0x1436   :  { %v5729_v27 = vmul.f32 %v13145_v5, %v5728_v35  ;;  %10878 = vrcp.f32 %v5672_v42  ;;  %v5741_v24 = vand.u32 2147483648, %v5672_v42  ;;  %v5739_v43 = vand.u32 2147483647, %v5672_v42 }
0x1437   :  { %vm5735_vm2 = vweird.f32 %v5672_v42 }
0x1438   :  { %v13206_v0 = vpop.eup %10872  ;;  %10200 = vmatmul.msk.f32.vlgmr.msrb.gmra.mxu3 %vm173_vm1, %v5729_v27  ;;  %v5742_v26 = vor.u32 1.1754944e-38, %v5741_v24  ;;  %vm5740_vm6 = vcmp.eq.f32.partialorder %v5739_v43, 8.507059e+37 }
0x1439   :  { %v13209_v11 = vpop.eup %10874  ;;  %v5682_v8 = vsel %vm173_vm1, %v13206_v0, 0.0 }
0x143a   :  { %v13213_v1 = vpop.eup %10876  ;;  %5683 = vadd.xlane.f32.xlu1 %v5682_v8  ;;  %v5746_v22 = vmul.f32 %v13209_v11, %v13198_v20  ;;  %vm5751_vm7 = vweird.f32 %v13209_v11 }
0x143b   :  { %v5761_v5 = vmul.f32 %v13213_v1, %v13201_v19  ;;  %vm5766_vm9 = vweird.f32 %v13213_v1  ;;  %vm13229_vm11 = vmor %vm5750_vm8, %vm5751_vm7 }
0x143c   :  { %v10879_v40 = vpop.eup %10878  ;;  %v5884_v31 = vpop.permute.xlu1 %5883  ;;  %v5747_v28 = vsub.f32 1.0, %v5746_v22  ;;  %vm13237_vm13 = vmor %vm5765_vm12, %vm5766_vm9 }
0x143d   :  { %v5731_v10 = vmul.f32 %v10879_v40, %v5672_v42  ;;  %5904 = vmatpush.msrb.mxu0 %v5884_v31  ;;  %v5681_v47 = vpop.xlane.xlu0 %5680  ;;  %v5762_v33 = vsub.f32 1.0, %v5761_v5  ;;  %vm5736_vm15 = vweird.f32 %v10879_v40  ;;  %v5772_v42 = vor.u32 1.1754944e-38, %v5771_v49 }
0x143e   :  { %10880 = vrcp.f32 %v5681_v47  ;;  %v5828_v4 = vpop.f32.mrf.mxu1  ;;  %v5748_v6 = vmul.f32 %v13209_v11, %v5747_v28  ;;  %vm5737_vm3 = vmor %vm5735_vm2, %vm5736_vm15  ;;  %v5786_v18 = vand.u32 2147483648, %v5681_v47  ;;  %v5784_v45 = vand.u32 2147483647, %v5681_v47 }
0x143f   :  { %v5732_v17 = vsub.f32 1.0, %v5731_v10  ;;  %6085 = vrot.lane.b32.xlu0 %v5828_v4, %s11180_s8  ;;  %v5763_v60 = vmul.f32 %v13213_v1, %v5762_v33  ;;  %vm5780_vm14 = vweird.f32 %v5681_v47 }
0x1440   :  { %v5749_v54 = vadd.f32 %v13209_v11, %v5748_v6  ;;  %v5787_v52 = vor.u32 1.1754944e-38, %v5786_v18  ;;  %vm5785_vm2 = vcmp.eq.f32.partialorder %v5784_v45, 8.507059e+37  ;;  %v14965_v45 = vld [vmem:[#allocation18_spill] sm:$0xff] }
0x1441   :  { %v5733_v12 = vmul.f32 %v10879_v40, %v5732_v17  ;;  %v5764_v48 = vadd.f32 %v13213_v1, %v5763_v60  ;;  %v14964_v60 = vld [vmem:[#allocation17_spill] sm:$0xff] }
0x1442   :  { %v5753_v21 = vsel %vm13229_vm11, %v13209_v11, %v5749_v54 }
0x1443   :  { %v5734_v39 = vadd.f32 %v10879_v40, %v5733_v12 }
0x1444   :  { %v10881_v59 = vpop.eup %10880  ;;  %v5962_v57 = vpop.permute.xlu1 %5961 }
0x1445   :  { %v5738_v2 = vsel %vm5737_vm3, %v10879_v40, %v5734_v39  ;;  %v5776_v23 = vmul.f32 %v10881_v59, %v5681_v47  ;;  %5982 = vmatpush.msra.mxu3 %v5962_v57  ;;  %vm5781_vm10 = vweird.f32 %v10881_v59  ;;  %vm5755_vm3 = vcmp.eq.f32.partialorder %v5754_v41, 8.507059e+37 }
0x1446   :  { %v5743_v56 = vsel %vm5740_vm6, %v5742_v26, %v5738_v2  ;;  %vm5782_vm15 = vmor %vm5780_vm14, %vm5781_vm10  ;;  %vm5770_vm6 = vcmp.eq.f32.partialorder %v5769_v38, 8.507059e+37 }
0x1447   :  { %v5744_v62 = vmul.f32 %v13161_v51, %v5743_v56  ;;  %v5777_v46 = vsub.f32 1.0, %v5776_v23  ;;  %v5756_v51 = vand.u32 2147483648, %v13198_v20  ;;  %v5768_v20 = vsel %vm13237_vm13, %v13213_v1, %v5764_v48 }
0x1448   :  { %v5773_v40 = vsel %vm5770_vm6, %v5772_v42, %v5768_v20  ;;  %v14967_v42 = vld [vmem:[#allocation21_spill] sm:$0xff] }
0x1449   :  { %v5778_v58 = vmul.f32 %v10881_v59, %v5777_v46  ;;  %10201 = vmatmul.msk.f32.vlgmr.msrb.gmra.mxu0 %vm173_vm1, %v5744_v62  ;;  %v5757_v35 = vor.u32 1.1754944e-38, %v5756_v51  ;;  %v5774_v1 = vmul.f32 %v13155_v9, %v5773_v40 }
0x144b   :  { %v5779_v53 = vadd.f32 %v10881_v59, %v5778_v58  ;;  %v5854_v16 = vpop.f32.mrf.mxu2  ;;  %v5758_v8 = vsel %vm5755_vm3, %v5757_v35, %v5753_v21 }
0x144c   :  { %6087 = vrot.lane.b32.xlu0 %v5854_v16, %s11180_s8  ;;  %v5759_v11 = vmul.f32 %v13147_v14, %v5758_v8 }
0x144d   :  { %v5783_v13 = vsel %vm5782_vm15, %v10881_v59, %v5779_v53  ;;  %v14966_v53 = vld [vmem:[#allocation19_spill] sm:$0xff] }
0x144e   :  { %v5788_v19 = vsel %vm5785_vm2, %v5787_v52, %v5783_v13 }
0x144f   :  { %v5789_v27 = vmul.f32 %v13167_v3, %v5788_v19 }
0x1450   :  { %v10495_v22 = vpop.permute.xlu0 %10494 }
0x1451   :  { %v10497_v31 = vunpack.i.h.bf16 %v10495_v22  ;;  %v10496_v5 = vunpack.i.l.bf16 %v10495_v22  ;;  %10204 = vmatmul.msk.f32.vlgmr.msra.gmra.mxu3 %vm173_vm1, %v5789_v27  ;;  %v13309_v22 = vld [vmem:[#allocation4 + $0x8] sm:$0xff] }
0x1453   :  { %6023 = vrot.lane.b32.xlu1 %v12933_v34, %s11166_s26  ;;  %5930 = vmatpush.msrb.mxu1 %v10496_v5 }
0x1454   :  { %6057 = vrot.lane.b32.xlu0 %v13122_v25, %s11179_s7  ;;  %5956 = vmatpush.msra.mxu2 %v10497_v31  ;;  %v13312_v31 = vperm.slane %v13309_v22, 3 }
0x1455   :  { %10202 = vmatmul.msk.f32.vlgmr.msrb.gmra.mxu1 %vm173_vm1, %v5759_v11  ;;  %10203 = vmatmul.msk.f32.vlgmr.msra.gmra.mxu2 %vm173_vm1, %v5774_v1 }
0x1458   :  { %v5988_v3 = vpop.permute.xlu0 %5987 }
0x1459   :  { %6008 = vmatpush.msra.mxu0 %v5988_v3 }
0x145b   :  { %6059 = vrot.lane.b32.xlu1 %v13118_v30, %s11179_s7 }
0x145c   :  { %6027 = vrot.lane.b32.xlu0 %v12981_v61, %s11166_s26  ;;  %v6022_v61 = vpop.permute.xlu2 %6021 }
0x1460   :  { %v10500_v14 = vpop.permute.xlu0 %10499 }
0x1461   :  { %v10502_v9 = vunpack.i.h.bf16 %v10500_v14  ;;  %v10501_v34 = vunpack.i.l.bf16 %v10500_v14  ;;  %v14968_v14 = vld [vmem:[#allocation22_spill] sm:$0xff] }
0x1463   :  { %6061 = vrot.lane.b32.xlu1 %v13096_v15, %s11179_s7  ;;  %6186 = vmatpush.msra.mxu1 %v10501_v34  ;;  %v14963_v15 = vld [vmem:[#allocation16_spill] sm:$0xff] }
0x1464   :  { %6029 = vrot.lane.b32.xlu0 %v12939_v37, %s11166_s26  ;;  %v6056_v57 = vpop.permute.xlu2 %6055 }
0x1465   :  { %6187 = vmatpush.msra.mxu1 %v10502_v9 }
0x1468   :  { %v10505_v25 = vpop.permute.xlu0 %10504 }
0x1469   :  { %v10507_v10 = vunpack.i.h.bf16 %v10505_v25  ;;  %v10506_v47 = vunpack.i.l.bf16 %v10505_v25 }
0x146b   :  { %6063 = vrot.lane.b32.xlu1 %v13091_v63, %s11179_s7  ;;  %6188 = vmatpush.msra.mxu1 %v10506_v47 }
0x146c   :  { %6031 = vrot.lane.b32.xlu0 %v12935_v50, %s11166_s26  ;;  %v6109_v50 = vsel %vm173_vm1, %v14963_v15, %v6022_v61  ;;  %v6026_v48 = vpop.permute.xlu2 %6025  ;;  %v14969_v61 = vld [vmem:[#allocation23_spill] sm:$0xff] }
0x146d   :  { %6189 = vmatpush.msra.mxu1 %v10507_v10  ;;  %v6111_v32 = vsel %vm173_vm1, %v14965_v45, %v6026_v48 }
0x1470   :  { %v6054_v37 = vpop.permute.xlu0 %6053 }
0x1471   :  { %v6117_v30 = vsel %vm2811_vm4, %v6109_v50, %v6054_v37 }
0x1473   :  { %6065 = vrot.lane.b32.xlu1 %v13125_v29, %s11179_s7 }
0x1474   :  { %6033 = vrot.lane.b32.xlu0 %v12953_v7, %s11166_s26 }
0x147b   :  { %6067 = vrot.lane.b32.xlu1 %v13120_v36, %s11179_s7 }
0x147c   :  { %6035 = vrot.lane.b32.xlu0 %v12983_v44, %s11166_s26 }
0x14ad   :  { %v5684_v63 = vpop.xlane.xlu1 %5683 }
0x14ae   :  { %10882 = vrcp.f32 %v5684_v63  ;;  %v5801_v28 = vand.u32 2147483648, %v5684_v63  ;;  %v5799_v44 = vand.u32 2147483647, %v5684_v63  ;;  %vm5795_vm8 = vweird.f32 %v5684_v63 }
0x14b0   :  { %v5802_v43 = vor.u32 1.1754944e-38, %v5801_v28  ;;  %vm5800_vm10 = vcmp.eq.f32.partialorder %v5799_v44, 8.507059e+37  ;;  %v14970_v44 = vld [vmem:[#allocation8_spill] sm:$0xff] }
0x14b1   :  { %v6086_v4 = vpop.permute.xlu0 %6085 }
0x14b2   :  { %v6125_v29 = vsel %vm2820_vm5, %v6117_v30, %v6086_v4 }
0x14b3   :  { %10206 = vmatmul.msk.f32.vlgmr.msra.gmra.mxu1 %vm69_vm0, %v6125_v29 }
0x14b4   :  { %v10883_v7 = vpop.eup %10882 }
0x14b5   :  { %v5791_v17 = vmul.f32 %v10883_v7, %v5684_v63  ;;  %vm5796_vm7 = vweird.f32 %v10883_v7 }
0x14b6   :  { %vm5797_vm9 = vmor %vm5795_vm8, %vm5796_vm7 }
0x14b7   :  { %v5792_v36 = vsub.f32 1.0, %v5791_v17 }
0x14b9   :  { %v5793_v24 = vmul.f32 %v10883_v7, %v5792_v36 }
0x14bb   :  { %v5794_v33 = vadd.f32 %v10883_v7, %v5793_v24  ;;  %v5880_v12 = vpop.f32.mrf.mxu3 }
0x14bc   :  { %6089 = vrot.lane.b32.xlu2 %v5880_v12, %s11180_s8 }
0x14bd   :  { %v5798_v39 = vsel %vm5797_vm9, %v10883_v7, %v5794_v33 }
0x14be   :  { %v5803_v59 = vsel %vm5800_vm10, %v5802_v43, %v5798_v39  ;;  %v6088_v56 = vpop.permute.xlu0 %6087 }
0x14bf   :  { %v5804_v6 = vmul.f32 %v13206_v0, %v5803_v59 }
0x14c1   :  { %10205 = vmatmul.msk.f32.vlgmr.msra.gmra.mxu0 %vm173_vm1, %v5804_v6 }
0x14c5   :  { %v6024_v26 = vpop.permute.xlu1 %6023 }
0x14c6   :  { %v6110_v2 = vsel %vm173_vm1, %v14964_v60, %v6024_v26  ;;  %v5906_v23 = vpop.f32.mrf.mxu0  ;;  %v6058_v58 = vpop.permute.xlu0 %6057 }
0x14c7   :  { %v6118_v62 = vsel %vm2811_vm4, %v6110_v2, %v6056_v57  ;;  %6091 = vrot.lane.b32.xlu2 %v5906_v23, %s11180_s8  ;;  %v6119_v51 = vsel %vm2811_vm4, %v6111_v32, %v6058_v58  ;;  %v14971_v23 = vld [vmem:[#allocation20_spill] sm:$0xff] }
0x14c8   :  { %v6126_v46 = vsel %vm2820_vm5, %v6118_v62, %v6088_v56 }
0x14c9   :  { %10207 = vmatmul.msk.f32.gmra.mxu1 %vm69_vm0, %v6126_v46 }
0x14cd   :  { %v6060_v38 = vpop.permute.xlu1 %6059 }
0x14ce   :  { %v6028_v55 = vpop.permute.xlu0 %6027 }
0x14cf   :  { %v6112_v16 = vsel %vm173_vm1, %v14966_v53, %v6028_v55 }
0x14d0   :  { %v6120_v52 = vsel %vm2811_vm4, %v6112_v16, %v6060_v38 }
0x14d2   :  { %v5932_v54 = vpop.f32.mrf.mxu1 }
0x14d3   :  { %6093 = vrot.lane.b32.xlu2 %v5932_v54, %s11180_s8 }
0x14d4   :  { %v5984_v18 = vpop.f32.mrf.mxu3 }
0x14d5   :  { %v6062_v35 = vpop.permute.xlu1 %6061 }
0x14d6   :  { %v6030_v13 = vpop.permute.xlu0 %6029 }
0x14d7   :  { %v6113_v19 = vsel %vm173_vm1, %v14967_v42, %v6030_v13  ;;  %v14973_v13 = vld [vmem:[#allocation11_spill] sm:$0xff] }
0x14d8   :  { %v5958_v0 = vpop.f32.mrf.mxu2  ;;  %v6121_v27 = vsel %vm2811_vm4, %v6113_v19, %v6062_v35 }
0x14db   :  { %6095 = vrot.lane.b32.xlu2 %v5958_v0, %s11180_s8  ;;  %v14972_v0 = vld [vmem:[#allocation24_spill] sm:$0xff] }
0x14dd   :  { %v6064_v11 = vpop.permute.xlu1 %6063 }
0x14de   :  { %v6032_v8 = vpop.permute.xlu0 %6031 }
0x14df   :  { %v6114_v9 = vsel %vm173_vm1, %v14968_v14, %v6032_v8  ;;  %v14974_v14 = vld [vmem:[#allocation10_spill] sm:$0xff] }
0x14e0   :  { %v6122_v25 = vsel %vm2811_vm4, %v6114_v9, %v6064_v11 }
0x14e3   :  { %6097 = vrot.lane.b32.xlu2 %v5984_v18, %s11180_s8 }
0x14e5   :  { %v6066_v15 = vpop.permute.xlu1 %6065 }
0x14e6   :  { %v6034_v37 = vpop.permute.xlu0 %6033 }
0x14e7   :  { %v6115_v63 = vsel %vm173_vm1, %v14969_v61, %v6034_v37 }
0x14e8   :  { %v6123_v4 = vsel %vm2811_vm4, %v6115_v63, %v6066_v15 }
0x14ed   :  { %v6068_v48 = vpop.permute.xlu1 %6067 }
0x14ee   :  { %v6036_v46 = vpop.permute.xlu0 %6035 }
0x14ef   :  { %v6116_v18 = vsel %vm173_vm1, %v14972_v0, %v6036_v46 }
0x14f0   :  { %v6124_v32 = vsel %vm2811_vm4, %v6116_v18, %v6068_v48 }
0x1516   :  { %v6090_v49 = vpop.permute.xlu2 %6089 }
0x1517   :  { %v6127_v41 = vsel %vm2820_vm5, %v6119_v51, %v6090_v49 }
0x1518   :  { %10208 = vmatmul.msk.f32.gmra.mxu1 %vm69_vm0, %v6127_v41 }
0x1521   :  { %v6092_v21 = vpop.permute.xlu2 %6091 }
0x1522   :  { %v6128_v20 = vsel %vm2820_vm5, %v6120_v52, %v6092_v21 }
0x1523   :  { %10209 = vmatmul.msk.f32.gmra.mxu1 %vm69_vm0, %v6128_v20 }
0x152d   :  { %v6094_v40 = vpop.permute.xlu2 %6093 }
0x152e   :  { %v6129_v5 = vsel %vm2820_vm5, %v6121_v27, %v6094_v40 }
0x152f   :  { %10210 = vmatmul.msk.f32.gmra.mxu1 %vm69_vm0, %v6129_v5 }
0x1530   :  { %v6191_v1 = vpop.f32.mrf.mxu1 }
0x1531   :  { %v6192_v3 = vadd.f32 %v6191_v1, %v13312_v31 }
0x1533   :  { %v6223_v34 = vmul.f32 1.442695, %v6192_v3  ;;  %vm6215_vm11 = vcmp.gt.f32.partialorder %v6192_v3, 0.0 }
0x1535   :  { %10884 = vpow2.f32 %v6223_v34  ;;  %v6096_v10 = vpop.permute.xlu2 %6095 }
0x1536   :  { %v6130_v47 = vsel %vm2820_vm5, %v6122_v25, %v6096_v10 }
0x1537   :  { %10211 = vmatmul.msk.f32.gmra.mxu1 %vm69_vm0, %v6130_v47 }
0x153b   :  { %v10885_v50 = vpop.eup %10884 }
0x153c   :  { %v10214_v30 = vadd.f32 -1.0, %v10885_v50  ;;  %v14975_v50 = vld [vmem:[#allocation9_spill] sm:$0xff] }
0x153d   :  { %v6098_v29 = vpop.permute.xlu2 %6097 }
0x153e   :  { %v6247_v7 = vmul.f32 1.6732632, %v10214_v30  ;;  %v6131_v17 = vsel %vm2820_vm5, %v6123_v4, %v6098_v29  ;;  %v6010_v36 = vpop.f32.mrf.mxu0 }
0x153f   :  { %10212 = vmatmul.msk.f32.gmra.mxu1 %vm69_vm0, %v6131_v17  ;;  %6099 = vrot.lane.b32.xlu2 %v6010_v36, %s11180_s8 }
0x1540   :  { %v6255_v28 = vsel %vm6215_vm11, %v6192_v3, %v6247_v7 }
0x1541   :  { %v6263_v24 = vmul.f32 1.050701, %v6255_v28 }
0x1543   :  { %v13329_v33 = vadd.f32 %v6263_v24, %v14970_v44 }
0x1545   :  { %v6279_v12 = vsel %vm69_vm0, %v13329_v33, 0.0 }
0x1546   :  { %6280 = vadd.xlane.f32.xlu0 %v6279_v12  ;;  %v6194_v43 = vpop.f32.mrf.mxu1  ;;  %v14976_v12 = vld [vmem:[#allocation12_spill] sm:$0xff] }
0x1547   :  { %v6195_v39 = vadd.f32 %v6194_v43, %v13312_v31 }
0x1549   :  { %v6225_v59 = vmul.f32 1.442695, %v6195_v39  ;;  %vm6216_vm12 = vcmp.gt.f32.partialorder %v6195_v39, 0.0 }
0x154b   :  { %10886 = vpow2.f32 %v6225_v59 }
0x1551   :  { %v10887_v6 = vpop.eup %10886 }
0x1552   :  { %v10215_v26 = vadd.f32 -1.0, %v10887_v6 }
0x1554   :  { %v6248_v57 = vmul.f32 1.6732632, %v10215_v26 }
0x1556   :  { %v6256_v60 = vsel %vm6216_vm12, %v6195_v39, %v6248_v57 }
0x1557   :  { %v6264_v2 = vmul.f32 1.050701, %v6256_v60 }
0x1559   :  { %v13335_v56 = vadd.f32 %v6264_v2, %v14971_v23  ;;  %v14977_v2 = vld [vmem:[#allocation13_spill] sm:$0xff] }
0x155b   :  { %v6282_v62 = vsel %vm69_vm0, %v13335_v56, 0.0 }
0x155c   :  { %6283 = vadd.xlane.f32.xlu1 %v6282_v62 }
0x1595   :  { %v6197_v54 = vpop.f32.mrf.mxu1 }
0x1596   :  { %v6198_v58 = vadd.f32 %v6197_v54, %v13312_v31 }
0x1598   :  { %v6227_v45 = vmul.f32 1.442695, %v6198_v58  ;;  %vm6217_vm13 = vcmp.gt.f32.partialorder %v6198_v58, 0.0 }
0x1599   :  { %v6100_v51 = vpop.permute.xlu2 %6099 }
0x159a   :  { %10888 = vpow2.f32 %v6227_v45  ;;  %v6132_v49 = vsel %vm2820_vm5, %v6124_v32, %v6100_v51 }
0x159b   :  { %10213 = vmatmul.msk.f32.gmra.mxu1 %vm69_vm0, %v6132_v49 }
0x15a0   :  { %v10889_v41 = vpop.eup %10888  ;;  %v6200_v55 = vpop.f32.mrf.mxu1 }
0x15a1   :  { %v10216_v38 = vadd.f32 -1.0, %v10889_v41  ;;  %v6201_v53 = vadd.f32 %v6200_v55, %v13312_v31 }
0x15a3   :  { %v6249_v16 = vmul.f32 1.6732632, %v10216_v38  ;;  %v6229_v52 = vmul.f32 1.442695, %v6201_v53  ;;  %vm6218_vm14 = vcmp.gt.f32.partialorder %v6201_v53, 0.0 }
0x15a5   :  { %10890 = vpow2.f32 %v6229_v52  ;;  %v6257_v21 = vsel %vm6217_vm13, %v6198_v58, %v6249_v16  ;;  %v14978_v58 = vld [vmem:[#allocation14_spill] sm:$0xff] }
0x15a6   :  { %v6265_v20 = vmul.f32 1.050701, %v6257_v21 }
0x15a8   :  { %v13347_v35 = vadd.f32 %v6265_v20, %v14973_v13 }
0x15aa   :  { %v6285_v42 = vsel %vm69_vm0, %v13347_v35, 0.0 }
0x15ab   :  { %v10891_v19 = vpop.eup %10890  ;;  %6286 = vadd.xlane.f32.xlu2 %v6285_v42 }
0x15ac   :  { %v10217_v27 = vadd.f32 -1.0, %v10891_v19  ;;  %v6203_v8 = vpop.f32.mrf.mxu1 }
0x15ad   :  { %v6204_v40 = vadd.f32 %v6203_v8, %v13312_v31 }
0x15ae   :  { %v6250_v5 = vmul.f32 1.6732632, %v10217_v27 }
0x15af   :  { %v6231_v11 = vmul.f32 1.442695, %v6204_v40  ;;  %vm6219_vm15 = vcmp.gt.f32.partialorder %v6204_v40, 0.0 }
0x15b0   :  { %v6258_v1 = vsel %vm6218_vm14, %v6201_v53, %v6250_v5 }
0x15b1   :  { %10892 = vpow2.f32 %v6231_v11  ;;  %v6266_v3 = vmul.f32 1.050701, %v6258_v1  ;;  %v14979_v11 = vld [vmem:[#allocation15_spill] sm:$0xff] }
0x15b3   :  { %v13353_v9 = vadd.f32 %v6266_v3, %v14974_v14 }
0x15b4   :  { %v6206_v34 = vpop.f32.mrf.mxu1 }
0x15b5   :  { %v6207_v25 = vadd.f32 %v6206_v34, %v13312_v31  ;;  %v6288_v10 = vsel %vm69_vm0, %v13353_v9, 0.0 }
0x15b6   :  { %6289 = vadd.xlane.f32.xlu0 %v6288_v10 }
0x15b7   :  { %v10893_v47 = vpop.eup %10892  ;;  %v6233_v37 = vmul.f32 1.442695, %v6207_v25  ;;  %vm6220_vm2 = vcmp.gt.f32.partialorder %v6207_v25, 0.0 }
0x15b8   :  { %v10218_v61 = vadd.f32 -1.0, %v10893_v47 }
0x15b9   :  { %10894 = vpow2.f32 %v6233_v37  ;;  %v6281_v63 = vpop.xlane.xlu0 %6280 }
0x15ba   :  { %v6251_v15 = vmul.f32 1.6732632, %v10218_v61  ;;  %v6303_v30 = vmul.f32 %v6281_v63, %v14975_v50 }
0x15bc   :  { %v6259_v4 = vsel %vm6219_vm15, %v6204_v40, %v6251_v15  ;;  %v13360_v29 = vsub.f32 %v13329_v33, %v6303_v30  ;;  %v6209_v7 = vpop.f32.mrf.mxu1 }
0x15bd   :  { %v6267_v17 = vmul.f32 1.050701, %v6259_v4  ;;  %v6210_v36 = vadd.f32 %v6209_v7, %v13312_v31 }
0x15be   :  { %v6319_v28 = vmul.f32 %v13360_v29, %v13360_v29 }
0x15bf   :  { %v10895_v24 = vpop.eup %10894  ;;  %v6235_v44 = vmul.f32 1.442695, %v6210_v36  ;;  %v6275_v43 = vadd.f32 %v6267_v17, %v14976_v12  ;;  %vm6221_vm3 = vcmp.gt.f32.partialorder %v6210_v36, 0.0 }
0x15c0   :  { %v10219_v39 = vadd.f32 -1.0, %v10895_v24  ;;  %v6327_v59 = vsel %vm69_vm0, %v6319_v28, 0.0 }
0x15c1   :  { %10896 = vpow2.f32 %v6235_v44  ;;  %6328 = vadd.xlane.f32.xlu0 %v6327_v59  ;;  %v6291_v6 = vsel %vm69_vm0, %v6275_v43, 0.0 }
0x15c2   :  { %v6252_v33 = vmul.f32 1.6732632, %v10219_v39  ;;  %6292 = vadd.xlane.f32.xlu2 %v6291_v6 }
0x15c4   :  { %v6260_v26 = vsel %vm6220_vm2, %v6207_v25, %v6252_v33 }
0x15c5   :  { %v6268_v57 = vmul.f32 1.050701, %v6260_v26  ;;  %v13416_v26 = vperm.slane %v13309_v22, 4 }
0x15c7   :  { %v10897_v60 = vpop.eup %10896  ;;  %v6276_v23 = vadd.f32 %v6268_v57, %v14977_v2 }
0x15c8   :  { %v10220_v62 = vadd.f32 -1.0, %v10897_v60 }
0x15c9   :  { %v6294_v46 = vsel %vm69_vm0, %v6276_v23, 0.0 }
0x15ca   :  { %v6253_v54 = vmul.f32 1.6732632, %v10220_v62  ;;  %6295 = vadd.xlane.f32.xlu1 %v6294_v46  ;;  %v13423_v46 = vperm.slane %v13309_v22, 5 }
0x15cc   :  { %v6261_v0 = vsel %vm6221_vm3, %v6210_v36, %v6253_v54 }
0x15cd   :  { %v6269_v18 = vmul.f32 1.050701, %v6261_v0 }
0x15cf   :  { %v6284_v48 = vpop.xlane.xlu1 %6283  ;;  %v6277_v45 = vadd.f32 %v6269_v18, %v14978_v58 }
0x15d0   :  { %v6304_v32 = vmul.f32 %v6284_v48, %v14975_v50 }
0x15d1   :  { %v6297_v51 = vsel %vm69_vm0, %v6277_v45, 0.0 }
0x15d2   :  { %v13374_v49 = vsub.f32 %v13335_v56, %v6304_v32  ;;  %6298 = vadd.xlane.f32.xlu2 %v6297_v51 }
0x15d4   :  { %v6320_v41 = vmul.f32 %v13374_v49, %v13374_v49 }
0x15d6   :  { %v6330_v55 = vsel %vm69_vm0, %v6320_v41, 0.0 }
0x15d7   :  { %6331 = vadd.xlane.f32.xlu1 %v6330_v55 }
0x1618   :  { %v6212_v38 = vpop.f32.mrf.mxu1 }
0x1619   :  { %v6213_v53 = vadd.f32 %v6212_v38, %v13312_v31 }
0x161b   :  { %v6237_v16 = vmul.f32 1.442695, %v6213_v53  ;;  %vm6222_vm6 = vcmp.gt.f32.partialorder %v6213_v53, 0.0 }
0x161d   :  { %10898 = vpow2.f32 %v6237_v16 }
0x161e   :  { %v6287_v52 = vpop.xlane.xlu2 %6286 }
0x161f   :  { %v6305_v21 = vmul.f32 %v6287_v52, %v14975_v50 }
0x1621   :  { %v13382_v20 = vsub.f32 %v13347_v35, %v6305_v21 }
0x1623   :  { %v10899_v56 = vpop.eup %10898  ;;  %v6321_v13 = vmul.f32 %v13382_v20, %v13382_v20 }
0x1624   :  { %v10221_v42 = vadd.f32 -1.0, %v10899_v56 }
0x1625   :  { %v6333_v19 = vsel %vm69_vm0, %v6321_v13, 0.0 }
0x1626   :  { %v6254_v27 = vmul.f32 1.6732632, %v10221_v42  ;;  %6334 = vadd.xlane.f32.xlu0 %v6333_v19 }
0x1628   :  { %v6262_v8 = vsel %vm6222_vm6, %v6213_v53, %v6254_v27 }
0x1629   :  { %v6270_v31 = vmul.f32 1.050701, %v6262_v8  ;;  %v6290_v40 = vpop.xlane.xlu0 %6289 }
0x162a   :  { %v6306_v5 = vmul.f32 %v6290_v40, %v14975_v50 }
0x162b   :  { %v13389_v1 = vadd.f32 %v6270_v31, %v14979_v11 }
0x162c   :  { %v13392_v35 = vsub.f32 %v13353_v9, %v6306_v5 }
0x162d   :  { %v6300_v3 = vsel %vm69_vm0, %v13389_v1, 0.0 }
0x162e   :  { %6301 = vadd.xlane.f32.xlu0 %v6300_v3  ;;  %v6322_v14 = vmul.f32 %v13392_v35, %v13392_v35 }
0x1630   :  { %v6336_v34 = vsel %vm69_vm0, %v6322_v14, 0.0 }
0x1631   :  { %6337 = vadd.xlane.f32.xlu2 %v6336_v34 }
0x1634   :  { %v6329_v25 = vpop.xlane.xlu0 %6328 }
0x1635   :  { %v6351_v10 = vmul.f32 %v6329_v25, %v14975_v50  ;;  %v6293_v47 = vpop.xlane.xlu2 %6292 }
0x1636   :  { %v6307_v37 = vmul.f32 %v6293_v47, %v14975_v50 }
0x1637   :  { %v6359_v61 = vadd.f32 1e-05, %v6351_v10 }
0x1638   :  { %v13401_v63 = vsub.f32 %v6275_v43, %v6307_v37 }
0x1639   :  { %10900 = vrsqrt.f32 %v6359_v61  ;;  %vm6373_vm8 = vweird.f32 %v6359_v61 }
0x163a   :  { %v6323_v9 = vmul.f32 %v13401_v63, %v13401_v63 }
0x163c   :  { %v6339_v15 = vsel %vm69_vm0, %v6323_v9, 0.0 }
0x163d   :  { %6340 = vadd.xlane.f32.xlu1 %v6339_v15  ;;  %v6296_v30 = vpop.xlane.xlu1 %6295 }
0x163e   :  { %v6308_v4 = vmul.f32 %v6296_v30, %v14975_v50 }
0x163f   :  { %v10901_v7 = vpop.eup %10900 }
0x1640   :  { %v6368_v17 = vmul.f32 %v10901_v7, %v6359_v61  ;;  %v13407_v36 = vsub.f32 %v6276_v23, %v6308_v4  ;;  %vm6374_vm7 = vweird.f32 %v10901_v7 }
0x1641   :  { %vm6375_vm9 = vmor %vm6373_vm8, %vm6374_vm7 }
0x1642   :  { %v6369_v28 = vmul.f32 %v10901_v7, %v6368_v17  ;;  %v6324_v24 = vmul.f32 %v13407_v36, %v13407_v36 }
0x1644   :  { %v6370_v44 = vmul.f32 0.5, %v6369_v28  ;;  %v6342_v12 = vsel %vm69_vm0, %v6324_v24, 0.0 }
0x1645   :  { %v6299_v43 = vpop.xlane.xlu2 %6298  ;;  %6343 = vadd.xlane.f32.xlu2 %v6342_v12 }
0x1646   :  { %v6371_v39 = vsub.f32 1.5, %v6370_v44  ;;  %v6309_v59 = vmul.f32 %v6299_v43, %v14975_v50 }
0x1648   :  { %v6372_v6 = vmul.f32 %v10901_v7, %v6371_v39  ;;  %v13413_v33 = vsub.f32 %v6277_v45, %v6309_v59 }
0x164a   :  { %v6332_v57 = vpop.xlane.xlu1 %6331  ;;  %v6325_v60 = vmul.f32 %v13413_v33, %v13413_v33  ;;  %v6376_v2 = vsel %vm6375_vm9, %v10901_v7, %v6372_v6 }
0x164b   :  { %v6352_v23 = vmul.f32 %v6332_v57, %v14975_v50  ;;  %v6447_v62 = vmul.f32 %v6376_v2, %v13360_v29 }
0x164c   :  { %v6345_v54 = vsel %vm69_vm0, %v6325_v60, 0.0 }
0x164d   :  { %v6360_v0 = vadd.f32 1e-05, %v6352_v23  ;;  %6346 = vadd.xlane.f32.xlu1 %v6345_v54  ;;  %v6456_v18 = vmul.f32 %v13416_v26, %v6447_v62 }
0x164f   :  { %10902 = vrsqrt.f32 %v6360_v0  ;;  %v13428_v48 = vadd.f32 %v13423_v46, %v6456_v18  ;;  %vm6383_vm11 = vweird.f32 %v6360_v0 }
0x1651   :  { %v6473_v58 = vsel %vm69_vm0, %v13428_v48, 0.0 }
0x1652   :  { %6474 = vadd.xlane.f32.xlu0 %v6473_v58 }
0x1655   :  { %v10903_v45 = vpop.eup %10902 }
0x1656   :  { %v6378_v32 = vmul.f32 %v10903_v45, %v6360_v0  ;;  %vm6384_vm10 = vweird.f32 %v10903_v45 }
0x1657   :  { %vm6385_vm12 = vmor %vm6383_vm11, %vm6384_vm10 }
0x1658   :  { %v6379_v29 = vmul.f32 %v10903_v45, %v6378_v32 }
0x165a   :  { %v6380_v51 = vmul.f32 0.5, %v6379_v29 }
0x165c   :  { %v6381_v41 = vsub.f32 1.5, %v6380_v51 }
0x165e   :  { %v6382_v55 = vmul.f32 %v10903_v45, %v6381_v41 }
0x1660   :  { %v6386_v38 = vsel %vm6385_vm12, %v10903_v45, %v6382_v55 }
0x1661   :  { %v6448_v53 = vmul.f32 %v6386_v38, %v13374_v49 }
0x1663   :  { %v6457_v16 = vmul.f32 %v13416_v26, %v6448_v53 }
0x1665   :  { %v13435_v52 = vadd.f32 %v13423_v46, %v6457_v16 }
0x1667   :  { %v6476_v21 = vsel %vm69_vm0, %v13435_v52, 0.0 }
0x1668   :  { %6477 = vadd.xlane.f32.xlu2 %v6476_v21 }
0x1699   :  { %v6335_v56 = vpop.xlane.xlu0 %6334 }
0x169a   :  { %v6353_v13 = vmul.f32 %v6335_v56, %v14975_v50 }
0x169c   :  { %v6361_v42 = vadd.f32 1e-05, %v6353_v13 }
0x169e   :  { %10904 = vrsqrt.f32 %v6361_v42  ;;  %vm6393_vm14 = vweird.f32 %v6361_v42 }
0x16a1   :  { %v6302_v19 = vpop.xlane.xlu0 %6301 }
0x16a2   :  { %v6310_v27 = vmul.f32 %v6302_v19, %v14975_v50 }
0x16a4   :  { %v10905_v8 = vpop.eup %10904  ;;  %v13442_v49 = vsub.f32 %v13389_v1, %v6310_v27  ;;  %v6338_v31 = vpop.xlane.xlu2 %6337 }
0x16a5   :  { %v6388_v40 = vmul.f32 %v10905_v8, %v6361_v42  ;;  %v6354_v5 = vmul.f32 %v6338_v31, %v14975_v50  ;;  %vm6394_vm13 = vweird.f32 %v10905_v8 }
0x16a6   :  { %v6326_v11 = vmul.f32 %v13442_v49, %v13442_v49  ;;  %vm6395_vm15 = vmor %vm6393_vm14, %vm6394_vm13 }
0x16a7   :  { %v6389_v3 = vmul.f32 %v10905_v8, %v6388_v40  ;;  %v6362_v14 = vadd.f32 1e-05, %v6354_v5 }
0x16a8   :  { %v6348_v34 = vsel %vm69_vm0, %v6326_v11, 0.0 }
0x16a9   :  { %v6390_v25 = vmul.f32 0.5, %v6389_v3  ;;  %10906 = vrsqrt.f32 %v6362_v14  ;;  %6349 = vadd.xlane.f32.xlu0 %v6348_v34  ;;  %vm6403_vm3 = vweird.f32 %v6362_v14 }
0x16ab   :  { %v6391_v10 = vsub.f32 1.5, %v6390_v25 }
0x16ad   :  { %v6392_v47 = vmul.f32 %v10905_v8, %v6391_v10 }
0x16af   :  { %v10907_v1 = vpop.eup %10906  ;;  %v6396_v37 = vsel %vm6395_vm15, %v10905_v8, %v6392_v47 }
0x16b0   :  { %v6398_v61 = vmul.f32 %v10907_v1, %v6362_v14  ;;  %v6341_v9 = vpop.xlane.xlu1 %6340  ;;  %v6449_v15 = vmul.f32 %v6396_v37, %v13382_v20  ;;  %vm6404_vm2 = vweird.f32 %v10907_v1 }
0x16b1   :  { %v6355_v30 = vmul.f32 %v6341_v9, %v14975_v50  ;;  %vm6405_vm6 = vmor %vm6403_vm3, %vm6404_vm2 }
0x16b2   :  { %v6399_v4 = vmul.f32 %v10907_v1, %v6398_v61  ;;  %v6458_v7 = vmul.f32 %v13416_v26, %v6449_v15 }
0x16b3   :  { %v6363_v17 = vadd.f32 1e-05, %v6355_v30 }
0x16b4   :  { %v6400_v28 = vmul.f32 0.5, %v6399_v4  ;;  %v13452_v24 = vadd.f32 %v13423_v46, %v6458_v7 }
0x16b5   :  { %10908 = vrsqrt.f32 %v6363_v17  ;;  %vm6413_vm8 = vweird.f32 %v6363_v17 }
0x16b6   :  { %v6401_v44 = vsub.f32 1.5, %v6400_v28  ;;  %v6479_v12 = vsel %vm69_vm0, %v13452_v24, 0.0 }
0x16b7   :  { %6480 = vadd.xlane.f32.xlu1 %v6479_v12 }
0x16b8   :  { %v6402_v43 = vmul.f32 %v10907_v1, %v6401_v44  ;;  %v6344_v20 = vpop.xlane.xlu2 %6343 }
0x16b9   :  { %v6356_v39 = vmul.f32 %v6344_v20, %v14975_v50 }
0x16ba   :  { %v6406_v59 = vsel %vm6405_vm6, %v10907_v1, %v6402_v43 }
0x16bb   :  { %v10909_v6 = vpop.eup %10908  ;;  %v6364_v57 = vadd.f32 1e-05, %v6356_v39  ;;  %v6450_v60 = vmul.f32 %v6406_v59, %v13392_v35 }
0x16bc   :  { %v6408_v2 = vmul.f32 %v10909_v6, %v6363_v17  ;;  %vm6414_vm7 = vweird.f32 %v10909_v6 }
0x16bd   :  { %10910 = vrsqrt.f32 %v6364_v57  ;;  %v6459_v23 = vmul.f32 %v13416_v26, %v6450_v60  ;;  %vm6415_vm9 = vmor %vm6413_vm8, %vm6414_vm7  ;;  %vm6423_vm11 = vweird.f32 %v6364_v57 }
0x16be   :  { %v6409_v62 = vmul.f32 %v10909_v6, %v6408_v2 }
0x16bf   :  { %v13460_v54 = vadd.f32 %v13423_v46, %v6459_v23 }
0x16c0   :  { %v6410_v0 = vmul.f32 0.5, %v6409_v62  ;;  %v6347_v18 = vpop.xlane.xlu1 %6346 }
0x16c1   :  { %v6357_v58 = vmul.f32 %v6347_v18, %v14975_v50  ;;  %v6482_v45 = vsel %vm69_vm0, %v13460_v54, 0.0 }
0x16c2   :  { %v6411_v32 = vsub.f32 1.5, %v6410_v0  ;;  %6483 = vadd.xlane.f32.xlu2 %v6482_v45 }
0x16c3   :  { %v10911_v29 = vpop.eup %10910  ;;  %v6365_v35 = vadd.f32 1e-05, %v6357_v58 }
0x16c4   :  { %v6412_v51 = vmul.f32 %v10909_v6, %v6411_v32  ;;  %v6418_v41 = vmul.f32 %v10911_v29, %v6364_v57  ;;  %vm6424_vm10 = vweird.f32 %v10911_v29 }
0x16c5   :  { %10912 = vrsqrt.f32 %v6365_v35  ;;  %v6475_v55 = vpop.xlane.xlu0 %6474  ;;  %vm6425_vm12 = vmor %vm6423_vm11, %vm6424_vm10  ;;  %vm6433_vm14 = vweird.f32 %v6365_v35 }
0x16c6   :  { %v6419_v38 = vmul.f32 %v10911_v29, %v6418_v41  ;;  %v6497_v53 = vmul.f32 %v6475_v55, %v14975_v50  ;;  %v6416_v16 = vsel %vm6415_vm9, %v10909_v6, %v6412_v51  ;;  %v13522_v41 = vld [vmem:[%s14861_s2 + $0x58] sm:$0xff]  ;;  %v13543_v55 = vld [vmem:[%s14861_s2 + $0x40] sm:$0xff] }
0x16c7   :  { %v6451_v21 = vmul.f32 %v6416_v16, %v13401_v63  ;;  %6710 = vmatpush.msrb.mxu2 %v13522_v41 }
0x16c8   :  { %v6420_v56 = vmul.f32 0.5, %v6419_v38  ;;  %v13468_v13 = vsub.f32 %v13428_v48, %v6497_v53 }
0x16c9   :  { %v6460_v42 = vmul.f32 %v13416_v26, %v6451_v21 }
0x16ca   :  { %v6421_v19 = vsub.f32 1.5, %v6420_v56  ;;  %v6513_v27 = vmul.f32 %v13468_v13, %v13468_v13 }
0x16cb   :  { %v10913_v8 = vpop.eup %10912  ;;  %v13474_v31 = vadd.f32 %v13423_v46, %v6460_v42 }
0x16cc   :  { %v6422_v40 = vmul.f32 %v10911_v29, %v6421_v19  ;;  %v6428_v5 = vmul.f32 %v10913_v8, %v6365_v35  ;;  %v6521_v63 = vsel %vm69_vm0, %v6513_v27, 0.0  ;;  %vm6434_vm13 = vweird.f32 %v10913_v8 }
0x16cd   :  { %6522 = vadd.xlane.f32.xlu2 %v6521_v63  ;;  %v6485_v48 = vsel %vm69_vm0, %v13474_v31, 0.0  ;;  %vm6435_vm15 = vmor %vm6433_vm14, %vm6434_vm13 }
0x16ce   :  { %v6429_v11 = vmul.f32 %v10913_v8, %v6428_v5  ;;  %6486 = vadd.xlane.f32.xlu1 %v6485_v48  ;;  %v6426_v3 = vsel %vm6425_vm12, %v10911_v29, %v6422_v40 }
0x16cf   :  { %v6452_v14 = vmul.f32 %v6426_v3, %v13407_v36 }
0x16d0   :  { %v6430_v34 = vmul.f32 0.5, %v6429_v11 }
0x16d1   :  { %v6461_v25 = vmul.f32 %v13416_v26, %v6452_v14 }
0x16d2   :  { %v6431_v10 = vsub.f32 1.5, %v6430_v34 }
0x16d3   :  { %v13482_v47 = vadd.f32 %v13423_v46, %v6461_v25 }
0x16d4   :  { %v6432_v1 = vmul.f32 %v10913_v8, %v6431_v10 }
0x16d5   :  { %v6488_v37 = vsel %vm69_vm0, %v13482_v47, 0.0 }
0x16d6   :  { %6489 = vadd.xlane.f32.xlu0 %v6488_v37  ;;  %v6436_v61 = vsel %vm6435_vm15, %v10913_v8, %v6432_v1 }
0x16d7   :  { %v6453_v9 = vmul.f32 %v6436_v61, %v13413_v33 }
0x16d9   :  { %v6462_v36 = vmul.f32 %v13416_v26, %v6453_v9  ;;  %v13570_v9 = vperm.slane %v13309_v22, 6 }
0x16db   :  { %v6478_v15 = vpop.xlane.xlu2 %6477  ;;  %v13489_v30 = vadd.f32 %v13423_v46, %v6462_v36 }
0x16dc   :  { %v6498_v4 = vmul.f32 %v6478_v15, %v14975_v50 }
0x16dd   :  { %v6491_v7 = vsel %vm69_vm0, %v13489_v30, 0.0 }
0x16de   :  { %v13495_v17 = vsub.f32 %v13435_v52, %v6498_v4  ;;  %6492 = vadd.xlane.f32.xlu1 %v6491_v7  ;;  %v13575_v7 = vperm.slane %v13309_v22, 7 }
0x16e0   :  { %v6514_v28 = vmul.f32 %v13495_v17, %v13495_v17 }
0x16e2   :  { %v6524_v33 = vsel %vm69_vm0, %v6514_v28, 0.0 }
0x16e3   :  { %6525 = vadd.xlane.f32.xlu0 %v6524_v33 }
0x171c   :  { %v6350_v44 = vpop.xlane.xlu0 %6349 }
0x171d   :  { %v6358_v12 = vmul.f32 %v6350_v44, %v14975_v50 }
0x171f   :  { %v6366_v43 = vadd.f32 1e-05, %v6358_v12 }
0x1721   :  { %10914 = vrsqrt.f32 %v6366_v43  ;;  %vm6443_vm3 = vweird.f32 %v6366_v43 }
0x1727   :  { %v10915_v20 = vpop.eup %10914 }
0x1728   :  { %v6438_v39 = vmul.f32 %v10915_v20, %v6366_v43  ;;  %vm6444_vm2 = vweird.f32 %v10915_v20 }
0x1729   :  { %vm6445_vm6 = vmor %vm6443_vm3, %vm6444_vm2 }
0x172a   :  { %v6439_v59 = vmul.f32 %v10915_v20, %v6438_v39  ;;  %v6481_v6 = vpop.xlane.xlu1 %6480  ;;  %v13586_v39 = vld [vmem:[#allocation4 + $0x10] sm:$0xff] }
0x172b   :  { %v6499_v57 = vmul.f32 %v6481_v6, %v14975_v50  ;;  %v6748_v6 = vperm.slane %v13586_v39, 1 }
0x172c   :  { %v6440_v52 = vmul.f32 0.5, %v6439_v59 }
0x172d   :  { %v13503_v60 = vsub.f32 %v13452_v24, %v6499_v57 }
0x172e   :  { %v6441_v2 = vsub.f32 1.5, %v6440_v52 }
0x172f   :  { %v6515_v23 = vmul.f32 %v13503_v60, %v13503_v60 }
0x1730   :  { %v6442_v62 = vmul.f32 %v10915_v20, %v6441_v2 }
0x1731   :  { %v6527_v0 = vsel %vm69_vm0, %v6515_v23, 0.0 }
0x1732   :  { %6528 = vadd.xlane.f32.xlu2 %v6527_v0  ;;  %v6446_v18 = vsel %vm6445_vm6, %v10915_v20, %v6442_v62 }
0x1733   :  { %v6454_v58 = vmul.f32 %v6446_v18, %v13442_v49 }
0x1735   :  { %v6484_v45 = vpop.xlane.xlu2 %6483  ;;  %v6463_v32 = vmul.f32 %v13416_v26, %v6454_v58 }
0x1736   :  { %v6500_v24 = vmul.f32 %v6484_v45, %v14975_v50 }
0x1737   :  { %v13512_v29 = vadd.f32 %v13423_v46, %v6463_v32  ;;  %v13530_v46 = vld [vmem:[%s14861_s2 + $0x50] sm:$0xff] }
0x1738   :  { %v13515_v35 = vsub.f32 %v13460_v54, %v6500_v24  ;;  %6711 = vmatpush.msrb.mxu2 %v13530_v46  ;;  %v13537_v54 = vld [vmem:[%s14861_s2 + $0x48] sm:$0xff] }
0x1739   :  { %v6494_v51 = vsel %vm69_vm0, %v13512_v29, 0.0  ;;  %14980 = vst [vmem:[#allocation16_spill] sm:$0xff] %v13537_v54 }
0x173a   :  { %6495 = vadd.xlane.f32.xlu2 %v6494_v51  ;;  %v6516_v26 = vmul.f32 %v13515_v35, %v13515_v35  ;;  %6712 = vmatpush.msrb.mxu2 %v13537_v54 }
0x173c   :  { %v6530_v49 = vsel %vm69_vm0, %v6516_v26, 0.0  ;;  %6713 = vmatpush.msrb.mxu2 %v13543_v55 }
0x173d   :  { %6531 = vadd.xlane.f32.xlu1 %v6530_v49 }
0x1740   :  { %v6523_v38 = vpop.xlane.xlu2 %6522 }
0x1741   :  { %v6545_v53 = vmul.f32 %v6523_v38, %v14975_v50  ;;  %v6487_v16 = vpop.xlane.xlu1 %6486 }
0x1742   :  { %v6501_v21 = vmul.f32 %v6487_v16, %v14975_v50 }
0x1743   :  { %v6553_v56 = vadd.f32 1e-05, %v6545_v53 }
0x1744   :  { %v13549_v42 = vsub.f32 %v13474_v31, %v6501_v21 }
0x1745   :  { %10916 = vrsqrt.f32 %v6553_v56  ;;  %vm6567_vm8 = vweird.f32 %v6553_v56 }
0x1746   :  { %v6517_v19 = vmul.f32 %v13549_v42, %v13549_v42 }
0x1748   :  { %v6533_v27 = vsel %vm69_vm0, %v6517_v19, 0.0 }
0x1749   :  { %v6490_v8 = vpop.xlane.xlu0 %6489  ;;  %6534 = vadd.xlane.f32.xlu0 %v6533_v27 }
0x174a   :  { %v6502_v40 = vmul.f32 %v6490_v8, %v14975_v50 }
0x174b   :  { %v10917_v5 = vpop.eup %10916 }
0x174c   :  { %v6562_v63 = vmul.f32 %v10917_v5, %v6553_v56  ;;  %v13556_v48 = vsub.f32 %v13482_v47, %v6502_v40  ;;  %vm6568_vm7 = vweird.f32 %v10917_v5 }
0x174d   :  { %vm6569_vm9 = vmor %vm6567_vm8, %vm6568_vm7 }
0x174e   :  { %v6563_v3 = vmul.f32 %v10917_v5, %v6562_v63  ;;  %v6518_v14 = vmul.f32 %v13556_v48, %v13556_v48 }
0x1750   :  { %v6564_v34 = vmul.f32 0.5, %v6563_v3  ;;  %v6536_v25 = vsel %vm69_vm0, %v6518_v14, 0.0 }
0x1751   :  { %6537 = vadd.xlane.f32.xlu1 %v6536_v25  ;;  %v6493_v10 = vpop.xlane.xlu1 %6492 }
0x1752   :  { %v6565_v1 = vsub.f32 1.5, %v6564_v34  ;;  %v6503_v47 = vmul.f32 %v6493_v10, %v14975_v50 }
0x1754   :  { %v6566_v37 = vmul.f32 %v10917_v5, %v6565_v1  ;;  %v13567_v61 = vsub.f32 %v13489_v30, %v6503_v47 }
0x1756   :  { %v6570_v36 = vsel %vm6569_vm9, %v10917_v5, %v6566_v37  ;;  %v6526_v15 = vpop.xlane.xlu0 %6525  ;;  %v6519_v4 = vmul.f32 %v13567_v61, %v13567_v61 }
0x1757   :  { %v6641_v28 = vmul.f32 %v6570_v36, %v13468_v13  ;;  %v6546_v33 = vmul.f32 %v6526_v15, %v14975_v50 }
0x1758   :  { %v6539_v44 = vsel %vm69_vm0, %v6519_v4, 0.0 }
0x1759   :  { %v6650_v30 = vmul.f32 %v13570_v9, %v6641_v28  ;;  %v6554_v12 = vadd.f32 1e-05, %v6546_v33  ;;  %6540 = vadd.xlane.f32.xlu0 %v6539_v44 }
0x175b   :  { %v13582_v43 = vadd.f32 %v13575_v7, %v6650_v30  ;;  %10918 = vrsqrt.f32 %v6554_v12  ;;  %vm6577_vm11 = vweird.f32 %v6554_v12 }
0x175d   :  { %14981 = vst [vmem:[#allocation17_spill] sm:$0xff] %v13582_v43  ;;  %10226 = vmatmul.msk.f32.vlgmr.msrb.gmra.mxu2 %vm69_vm0, %v13582_v43 }
0x1761   :  { %v10919_v20 = vpop.eup %10918 }
0x1762   :  { %v6572_v22 = vmul.f32 %v10919_v20, %v6554_v12  ;;  %vm6578_vm10 = vweird.f32 %v10919_v20 }
0x1763   :  { %vm6579_vm12 = vmor %vm6577_vm11, %vm6578_vm10 }
0x1764   :  { %v6573_v13 = vmul.f32 %v10919_v20, %v6572_v22 }
0x1766   :  { %v6574_v59 = vmul.f32 0.5, %v6573_v13 }
0x1768   :  { %v6575_v57 = vsub.f32 1.5, %v6574_v59 }
0x176a   :  { %v6576_v52 = vmul.f32 %v10919_v20, %v6575_v57  ;;  %6750 = vrot.lane.b32.xlu1 %v6748_v6, %s11167_s9 }
0x176c   :  { %v6580_v2 = vsel %vm6579_vm12, %v10919_v20, %v6576_v52 }
0x176d   :  { %v6642_v23 = vmul.f32 %v6580_v2, %v13495_v17 }
0x176f   :  { %v6651_v62 = vmul.f32 %v13570_v9, %v6642_v23 }
0x1771   :  { %v13593_v0 = vadd.f32 %v13575_v7, %v6651_v62 }
0x1773   :  { %14982 = vst [vmem:[#allocation18_spill] sm:$0xff] %v13593_v0  ;;  %10227 = vmatmul.msk.f32.gmra.mxu2 %vm69_vm0, %v13593_v0 }
0x17a5   :  { %v6529_v18 = vpop.xlane.xlu2 %6528 }
0x17a6   :  { %v6547_v58 = vmul.f32 %v6529_v18, %v14975_v50 }
0x17a8   :  { %v6555_v45 = vadd.f32 1e-05, %v6547_v58 }
0x17aa   :  { %10920 = vrsqrt.f32 %v6555_v45  ;;  %vm6587_vm14 = vweird.f32 %v6555_v45 }
0x17ad   :  { %v6496_v32 = vpop.xlane.xlu2 %6495 }
0x17ae   :  { %v6504_v24 = vmul.f32 %v6496_v32, %v14975_v50 }
0x17b0   :  { %v10921_v51 = vpop.eup %10920  ;;  %v13600_v26 = vsub.f32 %v13512_v29, %v6504_v24  ;;  %v6532_v17 = vpop.xlane.xlu1 %6531 }
0x17b1   :  { %v6582_v49 = vmul.f32 %v10921_v51, %v6555_v45  ;;  %v6548_v38 = vmul.f32 %v6532_v17, %v14975_v50  ;;  %vm6588_vm13 = vweird.f32 %v10921_v51 }
0x17b2   :  { %v6520_v53 = vmul.f32 %v13600_v26, %v13600_v26  ;;  %vm6589_vm15 = vmor %vm6587_vm14, %vm6588_vm13 }
0x17b3   :  { %v6583_v16 = vmul.f32 %v10921_v51, %v6582_v49  ;;  %v6556_v21 = vadd.f32 1e-05, %v6548_v38 }
0x17b4   :  { %v6542_v56 = vsel %vm69_vm0, %v6520_v53, 0.0 }
0x17b5   :  { %v6584_v19 = vmul.f32 0.5, %v6583_v16  ;;  %10922 = vrsqrt.f32 %v6556_v21  ;;  %6543 = vadd.xlane.f32.xlu2 %v6542_v56  ;;  %vm6597_vm3 = vweird.f32 %v6556_v21 }
0x17b7   :  { %v6585_v27 = vsub.f32 1.5, %v6584_v19 }
0x17b9   :  { %v6586_v8 = vmul.f32 %v10921_v51, %v6585_v27 }
0x17bb   :  { %v10923_v29 = vpop.eup %10922  ;;  %v6590_v40 = vsel %vm6589_vm15, %v10921_v51, %v6586_v8 }
0x17bc   :  { %v6643_v5 = vmul.f32 %v6590_v40, %v13503_v60  ;;  %v6592_v63 = vmul.f32 %v10923_v29, %v6556_v21  ;;  %v6535_v3 = vpop.xlane.xlu0 %6534  ;;  %vm6598_vm2 = vweird.f32 %v10923_v29 }
0x17bd   :  { %v6549_v14 = vmul.f32 %v6535_v3, %v14975_v50  ;;  %vm6599_vm6 = vmor %vm6597_vm3, %vm6598_vm2 }
0x17be   :  { %v6593_v34 = vmul.f32 %v10923_v29, %v6592_v63  ;;  %v6652_v25 = vmul.f32 %v13570_v9, %v6643_v5 }
0x17bf   :  { %v6557_v10 = vadd.f32 1e-05, %v6549_v14 }
0x17c0   :  { %v6594_v1 = vmul.f32 0.5, %v6593_v34  ;;  %v13610_v47 = vadd.f32 %v13575_v7, %v6652_v25 }
0x17c1   :  { %10924 = vrsqrt.f32 %v6557_v10  ;;  %vm6607_vm8 = vweird.f32 %v6557_v10 }
0x17c2   :  { %14983 = vst [vmem:[#allocation19_spill] sm:$0xff] %v13610_v47  ;;  %v6595_v37 = vsub.f32 1.5, %v6594_v1  ;;  %10228 = vmatmul.msk.f32.gmra.mxu2 %vm69_vm0, %v13610_v47 }
0x17c4   :  { %v6596_v36 = vmul.f32 %v10923_v29, %v6595_v37  ;;  %v6538_v60 = vpop.xlane.xlu1 %6537 }
0x17c5   :  { %v6550_v15 = vmul.f32 %v6538_v60, %v14975_v50 }
0x17c6   :  { %v6600_v4 = vsel %vm6599_vm6, %v10923_v29, %v6596_v36 }
0x17c7   :  { %v10925_v28 = vpop.eup %10924  ;;  %v6644_v33 = vmul.f32 %v6600_v4, %v13515_v35  ;;  %v6558_v44 = vadd.f32 1e-05, %v6550_v15 }
0x17c8   :  { %v6602_v30 = vmul.f32 %v10925_v28, %v6557_v10  ;;  %vm6608_vm7 = vweird.f32 %v10925_v28 }
0x17c9   :  { %10926 = vrsqrt.f32 %v6558_v44  ;;  %v6653_v12 = vmul.f32 %v13570_v9, %v6644_v33  ;;  %vm6609_vm9 = vmor %vm6607_vm8, %vm6608_vm7  ;;  %vm6617_vm11 = vweird.f32 %v6558_v44 }
0x17ca   :  { %v6603_v20 = vmul.f32 %v10925_v28, %v6602_v30 }
0x17cb   :  { %v13618_v22 = vadd.f32 %v13575_v7, %v6653_v12 }
0x17cc   :  { %v6604_v13 = vmul.f32 0.5, %v6603_v20  ;;  %v6541_v59 = vpop.xlane.xlu0 %6540 }
0x17cd   :  { %14984 = vst [vmem:[#allocation21_spill] sm:$0xff] %v13618_v22  ;;  %v6551_v6 = vmul.f32 %v6541_v59, %v14975_v50  ;;  %10229 = vmatmul.msk.f32.gmra.mxu2 %vm69_vm0, %v13618_v22 }
0x17ce   :  { %v6605_v57 = vsub.f32 1.5, %v6604_v13 }
0x17cf   :  { %v10927_v52 = vpop.eup %10926  ;;  %v6559_v35 = vadd.f32 1e-05, %v6551_v6 }
0x17d0   :  { %v6606_v2 = vmul.f32 %v10925_v28, %v6605_v57  ;;  %v6612_v23 = vmul.f32 %v10927_v52, %v6558_v44  ;;  %vm6618_vm10 = vweird.f32 %v10927_v52 }
0x17d1   :  { %10928 = vrsqrt.f32 %v6559_v35  ;;  %vm6619_vm12 = vmor %vm6617_vm11, %vm6618_vm10  ;;  %vm6627_vm14 = vweird.f32 %v6559_v35 }
0x17d2   :  { %v6610_v62 = vsel %vm6609_vm9, %v10925_v28, %v6606_v2  ;;  %v6613_v18 = vmul.f32 %v10927_v52, %v6612_v23 }
0x17d3   :  { %v6645_v58 = vmul.f32 %v6610_v62, %v13549_v42 }
0x17d4   :  { %v6614_v45 = vmul.f32 0.5, %v6613_v18  ;;  %v6761_v18 = vperm.slane %v13586_v39, 2 }
0x17d5   :  { %v6654_v32 = vmul.f32 %v13570_v9, %v6645_v58 }
0x17d6   :  { %v6615_v24 = vsub.f32 1.5, %v6614_v45 }
0x17d7   :  { %v10929_v51 = vpop.eup %10928  ;;  %v13626_v17 = vadd.f32 %v13575_v7, %v6654_v32 }
0x17d8   :  { %v6616_v49 = vmul.f32 %v10927_v52, %v6615_v24  ;;  %v6622_v38 = vmul.f32 %v10929_v51, %v6559_v35  ;;  %vm6628_vm13 = vweird.f32 %v10929_v51 }
0x17d9   :  { %14985 = vst [vmem:[#allocation22_spill] sm:$0xff] %v13626_v17  ;;  %10230 = vmatmul.msk.f32.gmra.mxu2 %vm69_vm0, %v13626_v17  ;;  %vm6629_vm15 = vmor %vm6627_vm14, %vm6628_vm13 }
0x17da   :  { %v6620_v53 = vsel %vm6619_vm12, %v10927_v52, %v6616_v49  ;;  %v6623_v16 = vmul.f32 %v10929_v51, %v6622_v38 }
0x17db   :  { %v6646_v42 = vmul.f32 %v6620_v53, %v13556_v48 }
0x17dc   :  { %v6624_v21 = vmul.f32 0.5, %v6623_v16  ;;  %v13632_v27 = vpop.permute.xlu1 %6750 }
0x17dd   :  { %v6655_v56 = vmul.f32 %v13570_v9, %v6646_v42 }
0x17de   :  { %v6625_v19 = vsub.f32 1.5, %v6624_v21 }
0x17df   :  { %v13635_v8 = vadd.f32 %v13575_v7, %v6655_v56 }
0x17e0   :  { %v6626_v29 = vmul.f32 %v10929_v51, %v6625_v19  ;;  %v13637_v40 = vpop.f32.mrf.mxu2 }
0x17e1   :  { %14986 = vst [vmem:[#allocation23_spill] sm:$0xff] %v13635_v8  ;;  %10231 = vmatmul.msk.f32.gmra.mxu2 %vm69_vm0, %v13635_v8  ;;  %v13643_v48 = vadd.f32 %v13632_v27, %v13637_v40 }
0x17e2   :  { %v6630_v5 = vsel %vm6629_vm15, %v10929_v51, %v6626_v29 }
0x17e3   :  { %v6647_v63 = vmul.f32 %v6630_v5, %v13567_v61  ;;  %6775 = vrot.lane.b32.xlu0 %v13643_v48, %s11168_s24 }
0x17e5   :  { %v6656_v3 = vmul.f32 %v13570_v9, %v6647_v63 }
0x17e7   :  { %v13650_v14 = vadd.f32 %v13575_v7, %v6656_v3 }
0x17e9   :  { %14987 = vst [vmem:[#allocation8_spill] sm:$0xff] %v13650_v14  ;;  %10232 = vmatmul.msk.f32.gmra.mxu2 %vm69_vm0, %v13650_v14 }
0x17f6   :  { %v13655_v4 = vpop.f32.mrf.mxu2 }
0x17f7   :  { %v13671_v13 = vadd.f32 %v13632_v27, %v13655_v4 }
0x1828   :  { %v6544_v34 = vpop.xlane.xlu2 %6543 }
0x1829   :  { %v6552_v25 = vmul.f32 %v6544_v34, %v14975_v50 }
0x182b   :  { %v6560_v10 = vadd.f32 1e-05, %v6552_v25 }
0x182d   :  { %10930 = vrsqrt.f32 %v6560_v10  ;;  %vm6637_vm3 = vweird.f32 %v6560_v10 }
0x1833   :  { %v10931_v1 = vpop.eup %10930 }
0x1834   :  { %v6632_v37 = vmul.f32 %v10931_v1, %v6560_v10  ;;  %vm6638_vm2 = vweird.f32 %v10931_v1 }
0x1835   :  { %vm6639_vm6 = vmor %vm6637_vm3, %vm6638_vm2 }
0x1836   :  { %v6633_v36 = vmul.f32 %v10931_v1, %v6632_v37 }
0x1838   :  { %v6634_v61 = vmul.f32 0.5, %v6633_v36 }
0x183a   :  { %v6635_v60 = vsub.f32 1.5, %v6634_v61 }
0x183c   :  { %v6636_v15 = vmul.f32 %v10931_v1, %v6635_v60 }
0x183e   :  { %v6640_v28 = vsel %vm6639_vm6, %v10931_v1, %v6636_v15 }
0x183f   :  { %v6648_v33 = vmul.f32 %v6640_v28, %v13600_v26 }
0x1841   :  { %v6657_v44 = vmul.f32 %v13570_v9, %v6648_v33  ;;  %v13676_v9 = vperm.slane %v13586_v39, 0 }
0x1843   :  { %v13660_v30 = vadd.f32 %v13575_v7, %v6657_v44  ;;  %v13681_v59 = vadd.f32 %v13676_v9, %v13637_v40  ;;  %v13729_v39 = vadd.f32 %v13676_v9, %v13655_v4 }
0x1845   :  { %14988 = vst [vmem:[#allocation20_spill] sm:$0xff] %v13660_v30  ;;  %v6721_v12 = vpop.f32.mrf.mxu2  ;;  %10233 = vmatmul.msk.f32.gmra.mxu2 %vm69_vm0, %v13660_v30 }
0x1846   :  { %v13665_v20 = vadd.f32 %v13632_v27, %v6721_v12  ;;  %v13722_v45 = vadd.f32 %v13676_v9, %v6721_v12 }
0x1848   :  { %6831 = vrot.lane.b32.xlu2 %v13665_v20, %s11168_s24 }
0x1850   :  { %6803 = vrot.lane.b32.xlu2 %v13671_v13, %s11168_s24  ;;  %v6724_v7 = vpop.f32.mrf.mxu2 }
0x1851   :  { %v13696_v35 = vadd.f32 %v13632_v27, %v6724_v7  ;;  %v13750_v16 = vadd.f32 %v13676_v9, %v6724_v7 }
0x1855   :  { %v6776_v26 = vpop.permute.xlu0 %6775 }
0x1856   :  { %10234 = vmatpush.xpose.msk.msrb.mxu3 %vm173_vm1, %v6776_v26 }
0x1859   :  { %10235 = vmatmul.msk.f32.vlgmr.msrb.gmra.mxu3 %vm173_vm1, %v13681_v59 }
0x185c   :  { %v13685_v6 = vpop.f32.mrf.mxu2 }
0x185d   :  { %v13689_v57 = vadd.f32 %v13632_v27, %v13685_v6  ;;  %v13744_v38 = vadd.f32 %v13676_v9, %v13685_v6 }
0x185f   :  { %6887 = vrot.lane.b32.xlu0 %v13689_v57, %s11168_s24 }
0x1864   :  { %v13693_v52 = vpop.f32.mrf.mxu2 }
0x1865   :  { %v13710_v62 = vadd.f32 %v13632_v27, %v13693_v52  ;;  %v13765_v5 = vadd.f32 %v13676_v9, %v13693_v52 }
0x1867   :  { %6859 = vrot.lane.b32.xlu0 %v13696_v35, %s11168_s24 }
0x186c   :  { %v13700_v2 = vpop.f32.mrf.mxu2 }
0x186d   :  { %v13704_v23 = vadd.f32 %v13632_v27, %v13700_v2 }
0x186f   :  { %6943 = vrot.lane.b32.xlu1 %v13704_v23, %s11168_s24 }
0x1877   :  { %6915 = vrot.lane.b32.xlu1 %v13710_v62, %s11168_s24 }
0x187f   :  { %6763 = vrot.lane.b32.xlu1 %v6761_v18, %s11169_s0 }
0x1887   :  { %7444 = vrot.lane.b32.xlu1 %v13671_v13, %s11170_s25 }
0x188f   :  { %7472 = vrot.lane.b32.xlu1 %v13665_v20, %s11170_s25 }
0x18a2   :  { %v6832_v58 = vpop.permute.xlu2 %6831 }
0x18a3   :  { %10238 = vmatpush.xpose.msk.msra.mxu3 %vm173_vm1, %v6832_v58 }
0x18a6   :  { %10239 = vmatmul.msk.f32.vlgmr.msra.gmra.mxu3 %vm173_vm1, %v13722_v45 }
0x18aa   :  { %v6804_v32 = vpop.permute.xlu2 %6803 }
0x18ab   :  { %10236 = vmatpush.xpose.msk.msrb.mxu0 %vm173_vm1, %v6804_v32 }
0x18ae   :  { %10237 = vmatmul.msk.f32.vlgmr.msrb.gmra.mxu0 %vm173_vm1, %v13729_v39 }
0x18c8   :  { %v13733_v24 = vpop.f32.mrf.mxu2 }
0x18c9   :  { %v13737_v51 = vadd.f32 %v13632_v27, %v13733_v24  ;;  %v13758_v27 = vadd.f32 %v13676_v9, %v13700_v2  ;;  %v13800_v15 = vadd.f32 %v13676_v9, %v13733_v24 }
0x18cb   :  { %6971 = vrot.lane.b32.xlu2 %v13737_v51, %s11168_s24 }
0x18d1   :  { %v6888_v49 = vpop.permute.xlu0 %6887 }
0x18d2   :  { %10242 = vmatpush.xpose.msk.msrb.mxu3 %vm173_vm1, %v6888_v49 }
0x18d5   :  { %10243 = vmatmul.msk.f32.vlgmr.msrb.gmra.mxu3 %vm173_vm1, %v13744_v38 }
0x18d9   :  { %v6860_v53 = vpop.permute.xlu0 %6859 }
0x18da   :  { %10240 = vmatpush.xpose.msk.msra.mxu0 %vm173_vm1, %v6860_v53 }
0x18dc   :  { %v6799_v42 = vpop.f32.mrf.mxu3 }
0x18dd   :  { %v6998_v21 = vmul.f32 0.35355338, %v6799_v42  ;;  %10241 = vmatmul.msk.f32.vlgmr.msra.gmra.mxu0 %vm173_vm1, %v13750_v16 }
0x18df   :  { %v7006_v56 = vsel %vm173_vm1, %v6998_v21, -inf }
0x18e0   :  { %7007 = vmax.xlane.f32.xlu0 %v7006_v56 }
0x18e1   :  { %v6944_v19 = vpop.permute.xlu1 %6943 }
0x18e2   :  { %10246 = vmatpush.xpose.msk.msra.mxu3 %vm173_vm1, %v6944_v19 }
0x18e5   :  { %10247 = vmatmul.msk.f32.vlgmr.msra.gmra.mxu3 %vm173_vm1, %v13758_v27 }
0x18e9   :  { %v6916_v29 = vpop.permute.xlu1 %6915 }
0x18ea   :  { %10244 = vmatpush.xpose.msk.msrb.mxu0 %vm173_vm1, %v6916_v29 }
0x18ed   :  { %10245 = vmatmul.msk.f32.vlgmr.msrb.gmra.mxu0 %vm173_vm1, %v13765_v5 }
0x18f1   :  { %v13769_v63 = vpop.permute.xlu1 %6763 }
0x18f2   :  { %v13773_v3 = vadd.f32 %v13769_v63, %v13655_v4  ;;  %v13776_v34 = vadd.f32 %v13769_v63, %v6724_v7  ;;  %v13780_v25 = vadd.f32 %v13769_v63, %v13637_v40  ;;  %v13783_v10 = vadd.f32 %v13769_v63, %v6721_v12 }
0x18f4   :  { %v10518_v1 = vpack.i.bf16 %v13776_v34, %v13773_v3  ;;  %v10508_v26 = vpack.i.bf16 %v13783_v10, %v13780_v25 }
0x18f6   :  { %10519 = vrot.lane.b32.xlu1 %v10518_v1, %s11169_s0 }
0x18f9   :  { %v7445_v60 = vpop.permute.xlu1 %7444 }
0x18fa   :  { %10260 = vmatpush.xpose.msk.msra.mxu2 %vm173_vm1, %v7445_v60 }
0x18fe   :  { %7470 = vrot.lane.b32.xlu1 %v13722_v45, %s11171_s1 }
0x1901   :  { %v13817_v53 = vpop.permute.xlu1 %7472 }
0x1925   :  { %v6972_v40 = vpop.permute.xlu2 %6971 }
0x1926   :  { %10248 = vmatpush.xpose.msk.msra.mxu0 %vm173_vm1, %v6972_v40 }
0x1929   :  { %v6855_v4 = vpop.f32.mrf.mxu3  ;;  %10249 = vmatmul.msk.f32.vlgmr.msra.gmra.mxu0 %vm173_vm1, %v13800_v15 }
0x192a   :  { %v13804_v28 = vmul.f32 0.35355338, %v6855_v4 }
0x192b   :  { %v6827_v33 = vpop.f32.mrf.mxu0 }
0x192c   :  { %v6999_v44 = vmul.f32 0.35355338, %v6827_v33  ;;  %v7012_v12 = vsel %vm173_vm1, %v13804_v28, -inf }
0x192d   :  { %7013 = vmax.xlane.f32.xlu1 %v7012_v12 }
0x192e   :  { %v7009_v7 = vsel %vm173_vm1, %v6999_v44, -inf }
0x192f   :  { %7010 = vmax.xlane.f32.xlu2 %v7009_v7 }
0x1946   :  { %7554 = vrot.lane.b32.xlu1 %v13765_v5, %s11171_s1 }
0x1947   :  { %10509 = vrot.lane.b32.xlu2 %v10508_v26, %s11169_s0 }
0x194f   :  { %7556 = vrot.lane.b32.xlu2 %v13710_v62, %s11170_s25 }
0x1953   :  { %v7008_v9 = vpop.xlane.xlu0 %7007 }
0x1954   :  { %v7030_v18 = vsub.f32 %v6998_v21, %v7008_v9 }
0x1956   :  { %v7038_v58 = vmul.f32 1.442695, %v7030_v18 }
0x1958   :  { %10932 = vpow2.f32 %v7038_v58  ;;  %v6911_v29 = vpop.f32.mrf.mxu3 }
0x1959   :  { %v7002_v60 = vmul.f32 0.35355338, %v6911_v29 }
0x195a   :  { %v6883_v1 = vpop.f32.mrf.mxu0 }
0x195b   :  { %v7018_v40 = vsel %vm173_vm1, %v7002_v60, -inf }
0x195e   :  { %v10933_v32 = vpop.eup %10932 }
0x195f   :  { %v7054_v49 = vsel %vm173_vm1, %v10933_v32, 0.0 }
0x1960   :  { %7055 = vadd.xlane.f32.xlu0 %v7054_v49 }
0x1968   :  { %v10520_v42 = vpop.permute.xlu1 %10519 }
0x1969   :  { %v10522_v56 = vunpack.i.h.bf16 %v10520_v42  ;;  %v10521_v19 = vunpack.i.l.bf16 %v10520_v42 }
0x196a   :  { %v6939_v4 = vpop.f32.mrf.mxu0 }
0x196b   :  { %7247 = vmatpush.msrb.mxu0 %v10521_v19  ;;  %v13820_v21 = vmul.f32 0.35355338, %v6939_v4  ;;  %v13839_v4 = vadd.f32 %v13769_v63, %v13700_v2 }
0x196d   :  { %7301 = vmatpush.msra.mxu0 %v10522_v56  ;;  %v7021_v33 = vsel %vm173_vm1, %v13820_v21, -inf }
0x1970   :  { %v13852_v31 = vpop.permute.xlu1 %7470 }
0x1978   :  { %7019 = vmax.xlane.f32.xlu2 %v7018_v40  ;;  %v13835_v40 = vadd.f32 %v13769_v63, %v13685_v6 }
0x1980   :  { %7022 = vmax.xlane.f32.xlu2 %v7021_v33  ;;  %v13843_v33 = vpack.i.bf16 %v13839_v4, %v13835_v40 }
0x19a0   :  { %v7014_v37 = vpop.xlane.xlu1 %7013 }
0x19a2   :  { %v7011_v12 = vpop.xlane.xlu2 %7010 }
0x19a3   :  { %v7031_v7 = vsub.f32 %v6999_v44, %v7011_v12 }
0x19a5   :  { %v7040_v26 = vmul.f32 1.442695, %v7031_v7 }
0x19a6   :  { %v6995_v9 = vpop.f32.mrf.mxu0 }
0x19a7   :  { %10934 = vpow2.f32 %v7040_v26  ;;  %v13824_v18 = vmul.f32 0.35355338, %v6995_v9 }
0x19a9   :  { %v7027_v58 = vsel %vm173_vm1, %v13824_v18, -inf }
0x19aa   :  { %v10510_v49 = vpop.permute.xlu2 %10509  ;;  %7028 = vmax.xlane.f32.xlu2 %v7027_v58 }
0x19ab   :  { %v10512_v42 = vunpack.i.h.bf16 %v10510_v49  ;;  %v10511_v56 = vunpack.i.l.bf16 %v10510_v49 }
0x19ad   :  { %v13828_v19 = vpop.eup %10934  ;;  %7220 = vmatpush.msrb.mxu3 %v10511_v56 }
0x19ae   :  { %v7057_v29 = vsel %vm173_vm1, %v13828_v19, 0.0 }
0x19af   :  { %7274 = vmatpush.msra.mxu3 %v10512_v42  ;;  %7058 = vadd.xlane.f32.xlu0 %v7057_v29 }
0x19b2   :  { %v7557_v44 = vpop.permute.xlu2 %7556 }
0x19b3   :  { %10268 = vmatpush.xpose.msk.msrb.mxu2 %vm173_vm1, %v7557_v44 }
0x19c2   :  { %7416 = vrot.lane.b32.xlu2 %v13643_v48, %s11170_s25 }
0x19c3   :  { %10514 = vrot.lane.b32.xlu0 %v13843_v33, %s11169_s0 }
0x19cb   :  { %7442 = vrot.lane.b32.xlu0 %v13729_v39, %s11171_s1 }
0x19d3   :  { %v7056_v12 = vpop.xlane.xlu0 %7055 }
0x19d4   :  { %10936 = vrcp.f32 %v7056_v12  ;;  %v7089_v2 = vand.u32 2147483648, %v7056_v12  ;;  %v7087_v58 = vand.u32 2147483647, %v7056_v12  ;;  %vm7083_vm8 = vweird.f32 %v7056_v12 }
0x19d6   :  { %v7090_v42 = vor.u32 1.1754944e-38, %v7089_v2  ;;  %vm7088_vm10 = vcmp.eq.f32.partialorder %v7087_v58, 8.507059e+37 }
0x19da   :  { %v10937_v6 = vpop.eup %10936 }
0x19db   :  { %v7079_v7 = vmul.f32 %v10937_v6, %v7056_v12  ;;  %vm7084_vm7 = vweird.f32 %v10937_v6 }
0x19dc   :  { %vm7085_vm9 = vmor %vm7083_vm8, %vm7084_vm7 }
0x19dd   :  { %v7080_v26 = vsub.f32 1.0, %v7079_v7  ;;  %v7001_v7 = vmul.f32 0.35355338, %v6883_v1 }
0x19df   :  { %v7081_v9 = vmul.f32 %v10937_v6, %v7080_v26  ;;  %v7032_v26 = vsub.f32 %v13804_v28, %v7014_v37  ;;  %v7015_v12 = vsel %vm173_vm1, %v7001_v7, -inf }
0x19e1   :  { %v7082_v49 = vadd.f32 %v10937_v6, %v7081_v9  ;;  %v6967_v9 = vpop.f32.mrf.mxu3  ;;  %v7042_v2 = vmul.f32 1.442695, %v7032_v26 }
0x19e2   :  { %v7004_v58 = vmul.f32 0.35355338, %v6967_v9 }
0x19e3   :  { %v7086_v56 = vsel %vm7085_vm9, %v10937_v6, %v7082_v49 }
0x19e4   :  { %v7091_v29 = vsel %vm7088_vm10, %v7090_v42, %v7086_v56 }
0x19e5   :  { %v7092_v44 = vmul.f32 %v10933_v32, %v7091_v29 }
0x19e7   :  { %10250 = vmatmul.msk.f32.vlgmr.msrb.gmra.mxu3 %vm173_vm1, %v7092_v44 }
0x19eb   :  { %v7020_v11 = vpop.xlane.xlu2 %7019 }
0x19ec   :  { %v7034_v61 = vsub.f32 %v7002_v60, %v7020_v11  ;;  %v7024_v11 = vsel %vm173_vm1, %v7004_v58, -inf }
0x19ee   :  { %v7046_v36 = vmul.f32 1.442695, %v7034_v61 }
0x19f0   :  { %10938 = vpow2.f32 %v7046_v36 }
0x19f1   :  { %10940 = vpow2.f32 %v7042_v2 }
0x19f3   :  { %v7023_v36 = vpop.xlane.xlu2 %7022 }
0x19f4   :  { %v7035_v9 = vsub.f32 %v13820_v21, %v7023_v36 }
0x19f5   :  { %7016 = vmax.xlane.f32.xlu0 %v7015_v12 }
0x19f6   :  { %v13856_v6 = vpop.eup %10938 }
0x19f7   :  { %v7066_v32 = vsel %vm173_vm1, %v13856_v6, 0.0  ;;  %v13861_v61 = vpop.eup %10940 }
0x19f8   :  { %7067 = vadd.xlane.f32.xlu1 %v7066_v32  ;;  %v7060_v37 = vsel %vm173_vm1, %v13861_v61, 0.0 }
0x19fd   :  { %7025 = vmax.xlane.f32.xlu0 %v7024_v11 }
0x1a05   :  { %7061 = vadd.xlane.f32.xlu0 %v7060_v37 }
0x1a11   :  { %7584 = vrot.lane.b32.xlu1 %v13704_v23, %s11170_s25 }
0x1a19   :  { %7528 = vrot.lane.b32.xlu1 %v13689_v57, %s11170_s25  ;;  %7414 = vrot.lane.b32.xlu0 %v13681_v59, %s11171_s1 }
0x1a1d   :  { %v13871_v28 = vpop.xlane.xlu2 %7028 }
0x1a21   :  { %7526 = vrot.lane.b32.xlu1 %v13744_v38, %s11171_s1 }
0x1a22   :  { %v7059_v1 = vpop.xlane.xlu0 %7058 }
0x1a23   :  { %10942 = vrcp.f32 %v7059_v1  ;;  %v7104_v29 = vand.u32 2147483648, %v7059_v1  ;;  %v7102_v26 = vand.u32 2147483647, %v7059_v1  ;;  %vm7098_vm12 = vweird.f32 %v7059_v1 }
0x1a25   :  { %v7417_v60 = vpop.permute.xlu2 %7416  ;;  %v7105_v2 = vor.u32 1.1754944e-38, %v7104_v29  ;;  %vm7103_vm14 = vcmp.eq.f32.partialorder %v7102_v26, 8.507059e+37 }
0x1a26   :  { %10258 = vmatpush.xpose.msk.msrb.mxu1 %vm173_vm1, %v7417_v60  ;;  %v7048_v60 = vmul.f32 1.442695, %v7035_v9 }
0x1a28   :  { %10944 = vpow2.f32 %v7048_v60 }
0x1a29   :  { %v10943_v49 = vpop.eup %10942  ;;  %7498 = vrot.lane.b32.xlu1 %v13750_v16, %s11171_s1 }
0x1a2a   :  { %v7094_v42 = vmul.f32 %v10943_v49, %v7059_v1  ;;  %vm7099_vm11 = vweird.f32 %v10943_v49  ;;  %v7555_v1 = vpop.permute.xlu1 %7554 }
0x1a2b   :  { %vm7100_vm13 = vmor %vm7098_vm12, %vm7099_vm11 }
0x1a2c   :  { %v7095_v56 = vsub.f32 1.0, %v7094_v42 }
0x1a2e   :  { %v7096_v44 = vmul.f32 %v10943_v49, %v7095_v56  ;;  %v13885_v21 = vpop.eup %10944 }
0x1a2f   :  { %v7069_v36 = vsel %vm173_vm1, %v13885_v21, 0.0 }
0x1a30   :  { %v7097_v12 = vadd.f32 %v10943_v49, %v7096_v44 }
0x1a32   :  { %v7101_v32 = vsel %vm7100_vm13, %v10943_v49, %v7097_v12 }
0x1a33   :  { %v7106_v11 = vsel %vm7103_vm14, %v7105_v2, %v7101_v32 }
0x1a34   :  { %v7107_v37 = vmul.f32 %v13828_v19, %v7106_v11 }
0x1a35   :  { %v13880_v30 = vpop.permute.xlu0 %10514 }
0x1a36   :  { %v10516_v42 = vunpack.i.l.bf16 %v13880_v30  ;;  %10251 = vmatmul.msk.f32.vlgmr.msrb.gmra.mxu0 %vm173_vm1, %v7107_v37  ;;  %v10517_v17 = vunpack.i.h.bf16 %v13880_v30 }
0x1a38   :  { %7328 = vmatpush.msrb.mxu3 %v10516_v42 }
0x1a3d   :  { %v7443_v56 = vpop.permute.xlu0 %7442 }
0x1a3e   :  { %10261 = vmatmul.msk.f32.vlgmr.msra.gmra.mxu2 %vm173_vm1, %v7443_v56 }
0x1a43   :  { %7070 = vadd.xlane.f32.xlu0 %v7069_v36 }
0x1a46   :  { %10269 = vmatmul.msk.f32.vlgmr.msrb.gmra.mxu2 %vm173_vm1, %v7555_v1 }
0x1a68   :  { %v7017_v19 = vpop.xlane.xlu0 %7016 }
0x1a69   :  { %v7033_v49 = vsub.f32 %v7001_v7, %v7017_v19 }
0x1a6b   :  { %v7044_v29 = vmul.f32 1.442695, %v7033_v49  ;;  %v7068_v44 = vpop.xlane.xlu1 %7067 }
0x1a6c   :  { %vm7143_vm8 = vweird.f32 %v7068_v44 }
0x1a6d   :  { %10946 = vpow2.f32 %v7044_v29 }
0x1a6e   :  { %10948 = vrcp.f32 %v7068_v44 }
0x1a70   :  { %v7026_v26 = vpop.xlane.xlu0 %7025 }
0x1a71   :  { %v7036_v12 = vsub.f32 %v7004_v58, %v7026_v26 }
0x1a73   :  { %v13890_v9 = vpop.eup %10946  ;;  %v7050_v2 = vmul.f32 1.442695, %v7036_v12 }
0x1a74   :  { %v7063_v32 = vsel %vm173_vm1, %v13890_v9, 0.0  ;;  %v10949_v37 = vpop.eup %10948 }
0x1a75   :  { %10950 = vpow2.f32 %v7050_v2  ;;  %7064 = vadd.xlane.f32.xlu2 %v7063_v32  ;;  %v7139_v7 = vmul.f32 %v10949_v37, %v7068_v44  ;;  %vm7144_vm6 = vweird.f32 %v10949_v37 }
0x1a76   :  { %vm7145_vm9 = vmor %vm7143_vm8, %vm7144_vm6 }
0x1a77   :  { %v7140_v56 = vsub.f32 1.0, %v7139_v7  ;;  %v7147_v7 = vand.u32 2147483647, %v7068_v44 }
0x1a78   :  { %v7062_v11 = vpop.xlane.xlu0 %7061 }
0x1a79   :  { %10952 = vrcp.f32 %v7062_v11  ;;  %v7119_v19 = vand.u32 2147483648, %v7062_v11  ;;  %v7141_v29 = vmul.f32 %v10949_v37, %v7140_v56  ;;  %v7117_v12 = vand.u32 2147483647, %v7062_v11 }
0x1a7a   :  { %vm7113_vm2 = vweird.f32 %v7062_v11  ;;  %vm7148_vm10 = vcmp.eq.f32.partialorder %v7147_v7, 8.507059e+37 }
0x1a7b   :  { %v13894_v60 = vpop.eup %10950  ;;  %v7120_v32 = vor.u32 1.1754944e-38, %v7119_v19  ;;  %v7142_v14 = vadd.f32 %v10949_v37, %v7141_v29  ;;  %vm7118_vm7 = vcmp.eq.f32.partialorder %v7117_v12, 8.507059e+37 }
0x1a7c   :  { %v7072_v42 = vsel %vm173_vm1, %v13894_v60, 0.0 }
0x1a7d   :  { %7073 = vadd.xlane.f32.xlu0 %v7072_v42  ;;  %v7149_v42 = vand.u32 2147483648, %v7068_v44  ;;  %v7146_v22 = vsel %vm7145_vm9, %v10949_v37, %v7142_v14  ;;  %v7037_v14 = vsub.f32 %v13824_v18, %v13871_v28 }
0x1a7f   :  { %v10953_v58 = vpop.eup %10952 }
0x1a80   :  { %v7109_v36 = vmul.f32 %v10953_v58, %v7062_v11  ;;  %vm7114_vm15 = vweird.f32 %v10953_v58  ;;  %v7150_v11 = vor.u32 1.1754944e-38, %v7149_v42 }
0x1a81   :  { %vm7115_vm3 = vmor %vm7113_vm2, %vm7114_vm15 }
0x1a82   :  { %v7110_v1 = vsub.f32 1.0, %v7109_v36 }
0x1a83   :  { %v13898_v49 = vpop.permute.xlu1 %7584 }
0x1a84   :  { %v7111_v26 = vmul.f32 %v10953_v58, %v7110_v1 }
0x1a86   :  { %v7112_v2 = vadd.f32 %v10953_v58, %v7111_v26 }
0x1a88   :  { %v7116_v8 = vsel %vm7115_vm3, %v10953_v58, %v7112_v2 }
0x1a89   :  { %v7121_v50 = vsel %vm7118_vm7, %v7120_v32, %v7116_v8  ;;  %v7151_v8 = vsel %vm7148_vm10, %v7150_v11, %v7146_v22  ;;  %v13922_v22 = vadd.f32 %v13769_v63, %v13733_v24 }
0x1a8a   :  { %v7122_v36 = vmul.f32 %v13861_v61, %v7121_v50  ;;  %v7152_v50 = vmul.f32 %v13856_v6, %v7151_v8 }
0x1a8b   :  { %v7529_v56 = vpop.permute.xlu1 %7528  ;;  %v7415_v1 = vpop.permute.xlu0 %7414 }
0x1a8c   :  { %10252 = vmatmul.msk.f32.vlgmr.msra.gmra.mxu3 %vm173_vm1, %v7122_v36  ;;  %10259 = vmatmul.msk.f32.vlgmr.msrb.gmra.mxu1 %vm173_vm1, %v7415_v1 }
0x1a8d   :  { %7382 = vmatpush.msra.mxu3 %v10517_v17  ;;  %10266 = vmatpush.xpose.msk.msra.mxu1 %vm173_vm1, %v7529_v56  ;;  %v13914_v17 = vadd.f32 %v13769_v63, %v13693_v52  ;;  %v7052_v52 = vmul.f32 1.442695, %v7037_v14 }
0x1a8e   :  { %7582 = vrot.lane.b32.xlu2 %v13758_v27, %s11171_s1 }
0x1a8f   :  { %10954 = vpow2.f32 %v7052_v52 }
0x1a91   :  { %7500 = vrot.lane.b32.xlu0 %v13696_v35, %s11170_s25 }
0x1a93   :  { %v7527_v30 = vpop.permute.xlu1 %7526 }
0x1a94   :  { %10254 = vmatmul.msk.f32.vlgmr.msrb.gmra.mxu3 %vm173_vm1, %v7152_v50  ;;  %10267 = vmatmul.msk.f32.vlgmr.msra.gmra.mxu1 %vm173_vm1, %v7527_v30 }
0x1a95   :  { %10262 = vmatpush.xpose.msk.msrb.mxu3 %vm173_vm1, %v13817_v53  ;;  %v13930_v6 = vpop.eup %10954 }
0x1a96   :  { %7334 = vrot.lane.b32.xlu2 %v13914_v17, %s11169_s0  ;;  %v7075_v53 = vsel %vm173_vm1, %v13930_v6, 0.0 }
0x1a9e   :  { %7388 = vrot.lane.b32.xlu2 %v13922_v22, %s11169_s0 }
0x1aa6   :  { %7612 = vrot.lane.b32.xlu2 %v13737_v51, %s11170_s25 }
0x1ab6   :  { %v7071_v44 = vpop.xlane.xlu0 %7070 }
0x1ab7   :  { %10956 = vrcp.f32 %v7071_v44  ;;  %vm7158_vm2 = vweird.f32 %v7071_v44 }
0x1abb   :  { %7076 = vadd.xlane.f32.xlu0 %v7075_v53 }
0x1abd   :  { %v10957_v18 = vpop.eup %10956 }
0x1abe   :  { %v7154_v37 = vmul.f32 %v10957_v18, %v7071_v44  ;;  %vm7159_vm13 = vweird.f32 %v10957_v18 }
0x1abf   :  { %vm7160_vm3 = vmor %vm7158_vm2, %vm7159_vm13 }
0x1ac0   :  { %v7155_v19 = vsub.f32 1.0, %v7154_v37 }
0x1ac1   :  { %v7467_v61 = vpop.f32.mrf.mxu2 }
0x1ac2   :  { %v13934_v24 = vmul.f32 0.35355338, %v7467_v61  ;;  %v7156_v42 = vmul.f32 %v10957_v18, %v7155_v19  ;;  %v7162_v19 = vand.u32 2147483647, %v7071_v44 }
0x1ac4   :  { %v7649_v63 = vsel %vm173_vm1, %v13934_v24, -inf  ;;  %v7157_v50 = vadd.f32 %v10957_v18, %v7156_v42  ;;  %vm7163_vm7 = vcmp.eq.f32.partialorder %v7162_v19, 8.507059e+37 }
0x1ac5   :  { %7650 = vmax.xlane.f32.xlu1 %v7649_v63  ;;  %v7164_v63 = vand.u32 2147483648, %v7071_v44 }
0x1ac9   :  { %v7579_v2 = vpop.f32.mrf.mxu2 }
0x1aca   :  { %v13942_v36 = vmul.f32 0.35355338, %v7579_v2 }
0x1acc   :  { %v7661_v61 = vsel %vm173_vm1, %v13942_v36, -inf }
0x1acf   :  { %7610 = vrot.lane.b32.xlu0 %v13800_v15, %s11171_s1 }
0x1ae8   :  { %v7065_v28 = vpop.xlane.xlu2 %7064 }
0x1ae9   :  { %10958 = vrcp.f32 %v7065_v28  ;;  %v7134_v7 = vand.u32 2147483648, %v7065_v28  ;;  %v7132_v1 = vand.u32 2147483647, %v7065_v28  ;;  %vm7128_vm12 = vweird.f32 %v7065_v28 }
0x1aeb   :  { %v7135_v30 = vor.u32 1.1754944e-38, %v7134_v7  ;;  %vm7133_vm15 = vcmp.eq.f32.partialorder %v7132_v1, 8.507059e+37  ;;  %v7165_v7 = vor.u32 1.1754944e-38, %v7164_v63  ;;  %v7499_v63 = vpop.permute.xlu1 %7498 }
0x1aef   :  { %v10959_v58 = vpop.eup %10958 }
0x1af0   :  { %v7124_v29 = vmul.f32 %v10959_v58, %v7065_v28  ;;  %v13940_v26 = vpop.permute.xlu2 %7582  ;;  %v7074_v12 = vpop.xlane.xlu0 %7073  ;;  %vm7129_vm11 = vweird.f32 %v10959_v58 }
0x1af1   :  { %10960 = vrcp.f32 %v7074_v12  ;;  %vm7130_vm14 = vmor %vm7128_vm12, %vm7129_vm11  ;;  %v7179_v2 = vand.u32 2147483648, %v7074_v12  ;;  %v7177_v42 = vand.u32 2147483647, %v7074_v12  ;;  %vm7173_vm8 = vweird.f32 %v7074_v12 }
0x1af2   :  { %v7125_v32 = vsub.f32 1.0, %v7124_v29 }
0x1af3   :  { %vm7178_vm10 = vcmp.eq.f32.partialorder %v7177_v42, 8.507059e+37 }
0x1af4   :  { %v7126_v56 = vmul.f32 %v10959_v58, %v7125_v32  ;;  %v7161_v32 = vsel %vm7160_vm3, %v10957_v18, %v7157_v50 }
0x1af5   :  { %v7166_v1 = vsel %vm7163_vm7, %v7165_v7, %v7161_v32 }
0x1af6   :  { %v7127_v11 = vadd.f32 %v10959_v58, %v7126_v56 }
0x1af7   :  { %v10961_v8 = vpop.eup %10960 }
0x1af8   :  { %v7131_v14 = vsel %vm7130_vm14, %v10959_v58, %v7127_v11  ;;  %v7169_v52 = vmul.f32 %v10961_v8, %v7074_v12  ;;  %v7335_v53 = vpop.permute.xlu2 %7334  ;;  %vm7174_vm6 = vweird.f32 %v10961_v8  ;;  %v7180_v11 = vor.u32 1.1754944e-38, %v7179_v2 }
0x1af9   :  { %v7136_v37 = vsel %vm7133_vm15, %v7135_v30, %v7131_v14  ;;  %7355 = vmatpush.msrb.mxu0 %v7335_v53  ;;  %7662 = vmax.xlane.f32.xlu0 %v7661_v61  ;;  %vm7175_vm9 = vmor %vm7173_vm8, %vm7174_vm6  ;;  %v7167_v14 = vmul.f32 %v13885_v21, %v7166_v1  ;;  %v10528_v61 = vpack.i.bf16 %v13780_v25, %v13914_v17 }
0x1afa   :  { %v7137_v28 = vmul.f32 %v13890_v9, %v7136_v37  ;;  %v7170_v29 = vsub.f32 1.0, %v7169_v52 }
0x1afc   :  { %v7171_v58 = vmul.f32 %v10961_v8, %v7170_v29  ;;  %10253 = vmatmul.msk.f32.vlgmr.msra.gmra.mxu0 %vm173_vm1, %v7137_v28 }
0x1afe   :  { %v7172_v56 = vadd.f32 %v10961_v8, %v7171_v58 }
0x1b00   :  { %v7176_v44 = vsel %vm7175_vm9, %v10961_v8, %v7172_v56  ;;  %v7389_v9 = vpop.permute.xlu2 %7388 }
0x1b01   :  { %v7181_v30 = vsel %vm7178_vm10, %v7180_v11, %v7176_v44  ;;  %7409 = vmatpush.msra.mxu0 %v7389_v9 }
0x1b02   :  { %v7182_v18 = vmul.f32 %v13894_v60, %v7181_v30 }
0x1b03   :  { %v7501_v50 = vpop.permute.xlu0 %7500 }
0x1b04   :  { %10255 = vmatmul.msk.f32.vlgmr.msrb.gmra.mxu0 %vm173_vm1, %v7167_v14  ;;  %10256 = vmatmul.msk.f32.vlgmr.msra.gmra.mxu3 %vm173_vm1, %v7182_v18 }
0x1b05   :  { %10264 = vmatpush.xpose.msk.msrb.mxu0 %vm173_vm1, %v7501_v50  ;;  %10270 = vmatpush.xpose.msk.msra.mxu3 %vm173_vm1, %v13898_v49  ;;  %v10533_v49 = vpack.i.bf16 %v13835_v40, %v13839_v4 }
0x1b08   :  { %v7613_v9 = vpop.permute.xlu2 %7612 }
0x1b09   :  { %v7439_v12 = vpop.f32.mrf.mxu1 }
0x1b0a   :  { %v7638_v8 = vmul.f32 0.35355338, %v7439_v12 }
0x1b0c   :  { %10263 = vmatmul.msk.f32.vlgmr.msrb.gmra.mxu3 %vm173_vm1, %v13852_v31  ;;  %v7646_v52 = vsel %vm173_vm1, %v7638_v8, -inf }
0x1b0d   :  { %7647 = vmax.xlane.f32.xlu1 %v7646_v52 }
0x1b11   :  { %v7551_v21 = vpop.f32.mrf.mxu1 }
0x1b12   :  { %v7642_v60 = vmul.f32 0.35355338, %v7551_v21 }
0x1b14   :  { %10271 = vmatmul.msk.f32.vlgmr.msra.gmra.mxu3 %vm173_vm1, %v13940_v26  ;;  %v7658_v53 = vsel %vm173_vm1, %v7642_v60, -inf }
0x1b15   :  { %7659 = vmax.xlane.f32.xlu0 %v7658_v53 }
0x1b26   :  { %10529 = vrot.lane.b32.xlu1 %v10528_v61, %s11172_s27 }
0x1b2e   :  { %10534 = vrot.lane.b32.xlu1 %v10533_v49, %s11172_s27  ;;  %v7077_v31 = vpop.xlane.xlu0 %7076 }
0x1b2f   :  { %10962 = vrcp.f32 %v7077_v31  ;;  %v7194_v29 = vand.u32 2147483648, %v7077_v31  ;;  %v7192_v58 = vand.u32 2147483647, %v7077_v31  ;;  %vm7188_vm12 = vweird.f32 %v7077_v31 }
0x1b31   :  { %v7195_v56 = vor.u32 1.1754944e-38, %v7194_v29  ;;  %vm7193_vm14 = vcmp.eq.f32.partialorder %v7192_v58, 8.507059e+37 }
0x1b35   :  { %v10963_v37 = vpop.eup %10962 }
0x1b36   :  { %v7184_v19 = vmul.f32 %v10963_v37, %v7077_v31  ;;  %vm7189_vm11 = vweird.f32 %v10963_v37 }
0x1b37   :  { %vm7190_vm13 = vmor %vm7188_vm12, %vm7189_vm11 }
0x1b38   :  { %v7185_v28 = vsub.f32 1.0, %v7184_v19  ;;  %v7651_v26 = vpop.xlane.xlu1 %7650 }
0x1b39   :  { %v7671_v2 = vsub.f32 %v13934_v24, %v7651_v26 }
0x1b3a   :  { %v7186_v32 = vmul.f32 %v10963_v37, %v7185_v28 }
0x1b3b   :  { %v7680_v42 = vmul.f32 1.442695, %v7671_v2  ;;  %v14989_v2 = vpack.i.bf16 %v13783_v10, %v13773_v3 }
0x1b3c   :  { %v7187_v7 = vadd.f32 %v10963_v37, %v7186_v32  ;;  %v14001_v32 = vpop.f32.mrf.mxu0 }
0x1b3d   :  { %10964 = vpow2.f32 %v7680_v42  ;;  %14990 = vst [vmem:[#allocation24_spill] sm:$0xff] %v14001_v32  ;;  %v14011_v42 = vpop.f32.mrf.mxu3 }
0x1b3e   :  { %v7191_v1 = vsel %vm7190_vm13, %v10963_v37, %v7187_v7  ;;  %14992 = vst [vmem:[#allocation10_spill] sm:$0xff] %v14011_v42 }
0x1b3f   :  { %v7196_v11 = vsel %vm7193_vm14, %v7195_v56, %v7191_v1 }
0x1b40   :  { %v7197_v44 = vmul.f32 %v13930_v6, %v7196_v11 }
0x1b41   :  { %v7611_v14 = vpop.permute.xlu0 %7610 }
0x1b42   :  { %10257 = vmatmul.msk.f32.vlgmr.msra.gmra.mxu0 %vm173_vm1, %v7197_v44 }
0x1b43   :  { %v13971_v30 = vpop.eup %10964  ;;  %10272 = vmatpush.xpose.msk.msra.mxu0 %vm173_vm1, %v7613_v9 }
0x1b44   :  { %v7697_v24 = vsel %vm173_vm1, %v13971_v30, 0.0 }
0x1b45   :  { %7698 = vadd.xlane.f32.xlu0 %v7697_v24  ;;  %v14017_v56 = vpop.f32.mrf.mxu3 }
0x1b46   :  { %14994 = vst [vmem:[#allocation13_spill] sm:$0xff] %v14017_v56 }
0x1b4a   :  { %10265 = vmatmul.msk.f32.vlgmr.msrb.gmra.mxu0 %vm173_vm1, %v7499_v63 }
0x1b4d   :  { %v14021_v11 = vpop.f32.mrf.mxu3 }
0x1b4e   :  { %14996 = vst [vmem:[#allocation15_spill] sm:$0xff] %v14021_v11 }
0x1b52   :  { %10273 = vmatmul.msk.f32.vlgmr.msra.gmra.mxu0 %vm173_vm1, %v7611_v14 }
0x1b6c   :  { %v7663_v18 = vpop.xlane.xlu0 %7662 }
0x1b6d   :  { %v7675_v50 = vsub.f32 %v13942_v36, %v7663_v18 }
0x1b6f   :  { %v7688_v6 = vmul.f32 1.442695, %v7675_v50 }
0x1b71   :  { %10966 = vpow2.f32 %v7688_v6 }
0x1b77   :  { %v13979_v12 = vpop.eup %10966 }
0x1b78   :  { %v7709_v52 = vsel %vm173_vm1, %v13979_v12, 0.0 }
0x1b79   :  { %7710 = vadd.xlane.f32.xlu2 %v7709_v52  ;;  %v14005_v58 = vpop.f32.mrf.mxu0 }
0x1b7a   :  { %14991 = vst [vmem:[#allocation11_spill] sm:$0xff] %v14005_v58 }
0x1b80   :  { %v7648_v21 = vpop.xlane.xlu1 %7647 }
0x1b81   :  { %v7670_v53 = vsub.f32 %v7638_v8, %v7648_v21  ;;  %v14015_v7 = vpop.f32.mrf.mxu0 }
0x1b82   :  { %14993 = vst [vmem:[#allocation12_spill] sm:$0xff] %v14015_v7 }
0x1b83   :  { %v7678_v61 = vmul.f32 1.442695, %v7670_v53 }
0x1b85   :  { %10968 = vpow2.f32 %v7678_v61 }
0x1b87   :  { %v14027_v14 = vpop.f32.mrf.mxu3 }
0x1b88   :  { %v7660_v49 = vpop.xlane.xlu0 %7659  ;;  %14997 = vst [vmem:[#allocation25_spill] sm:$0xff] %v14027_v14 }
0x1b89   :  { %v7674_v31 = vsub.f32 %v7642_v60, %v7660_v49 }
0x1b8b   :  { %v13983_v63 = vpop.eup %10968  ;;  %v7686_v37 = vmul.f32 1.442695, %v7674_v31 }
0x1b8c   :  { %v7694_v36 = vsel %vm173_vm1, %v13983_v63, 0.0 }
0x1b8d   :  { %10970 = vpow2.f32 %v7686_v37  ;;  %7695 = vadd.xlane.f32.xlu0 %v7694_v36 }
0x1b8f   :  { %v7495_v18 = vpop.f32.mrf.mxu3 }
0x1b90   :  { %v14029_v50 = vmul.f32 0.35355338, %v7495_v18 }
0x1b92   :  { %v7652_v6 = vsel %vm173_vm1, %v14029_v50, -inf }
0x1b93   :  { %v13987_v19 = vpop.eup %10970 }
0x1b94   :  { %v7706_v28 = vsel %vm173_vm1, %v13987_v19, 0.0 }
0x1b95   :  { %7707 = vadd.xlane.f32.xlu2 %v7706_v28 }
0x1b97   :  { %v7607_v61 = vpop.f32.mrf.mxu3 }
0x1b98   :  { %v13991_v26 = vpop.permute.xlu1 %10529  ;;  %v14039_v49 = vmul.f32 0.35355338, %v7607_v61 }
0x1b99   :  { %v10532_v8 = vunpack.i.h.bf16 %v13991_v26 }
0x1b9a   :  { %v7664_v31 = vsel %vm173_vm1, %v14039_v49, -inf }
0x1b9b   :  { %7859 = vmatpush.msrb.mxu1 %v10532_v8 }
0x1ba0   :  { %v13994_v60 = vpop.permute.xlu1 %10534 }
0x1ba1   :  { %v10537_v29 = vunpack.i.h.bf16 %v13994_v60  ;;  %10524 = vrot.lane.b32.xlu0 %v14989_v2, %s11172_s27 }
0x1ba3   :  { %7963 = vmatpush.msra.mxu1 %v10537_v29 }
0x1ba9   :  { %8046 = vrot.lane.b32.xlu0 %v13681_v59, %s11174_s3 }
0x1bad   :  { %8076 = vrot.lane.b32.xlu2 %v13671_v13, %s11173_s28 }
0x1bb1   :  { %8214 = vrot.lane.b32.xlu0 %v13758_v27, %s11174_s3 }
0x1bb5   :  { %8074 = vrot.lane.b32.xlu2 %v13729_v39, %s11174_s3 }
0x1bb8   :  { %v7699_v37 = vpop.xlane.xlu0 %7698 }
0x1bb9   :  { %10972 = vrcp.f32 %v7699_v37  ;;  %v7744_v0 = vand.u32 2147483648, %v7699_v37  ;;  %vm7738_vm3 = vweird.f32 %v7699_v37  ;;  %v7742_v7 = vand.u32 2147483647, %v7699_v37 }
0x1bbb   :  { %v7745_v11 = vor.u32 1.1754944e-38, %v7744_v0  ;;  %vm7743_vm10 = vcmp.eq.f32.partialorder %v7742_v7, 8.507059e+37  ;;  %v10531_v7 = vunpack.i.l.bf16 %v13991_v26 }
0x1bbf   :  { %v14019_v1 = vpop.f32.mrf.mxu0  ;;  %v10973_v28 = vpop.eup %10972 }
0x1bc0   :  { %14995 = vst [vmem:[#allocation14_spill] sm:$0xff] %v14019_v1  ;;  %v7734_v8 = vmul.f32 %v10973_v28, %v7699_v37  ;;  %vm7739_vm15 = vweird.f32 %v10973_v28 }
0x1bc1   :  { %vm14052_vm6 = vmor %vm7738_vm3, %vm7739_vm15 }
0x1bc2   :  { %v7735_v2 = vsub.f32 1.0, %v7734_v8 }
0x1bc4   :  { %v7736_v18 = vmul.f32 %v10973_v28, %v7735_v2 }
0x1bc7   :  { %v7523_v44 = vpop.f32.mrf.mxu0 }
0x1bc8   :  { %v14023_v9 = vmul.f32 0.35355338, %v7523_v44 }
0x1bca   :  { %v7655_v24 = vsel %vm173_vm1, %v14023_v9, -inf }
0x1bcb   :  { %7656 = vmax.xlane.f32.xlu1 %v7655_v24 }
0x1bcf   :  { %v7635_v52 = vpop.f32.mrf.mxu0 }
0x1bd0   :  { %v14033_v21 = vmul.f32 0.35355338, %v7635_v52 }
0x1bd2   :  { %v7667_v53 = vsel %vm173_vm1, %v14033_v21, -inf }
0x1bde   :  { %7653 = vmax.xlane.f32.xlu2 %v7652_v6 }
0x1be4   :  { %8104 = vrot.lane.b32.xlu1 %v13665_v20, %s11173_s28 }
0x1be6   :  { %7668 = vmax.xlane.f32.xlu2 %v7667_v53 }
0x1bec   :  { %v14043_v36 = vpop.xlane.xlu2 %7710 }
0x1bed   :  { %10974 = vrcp.f32 %v14043_v36  ;;  %vm7798_vm13 = vweird.f32 %v14043_v36 }
0x1bee   :  { %7665 = vmax.xlane.f32.xlu2 %v7664_v31  ;;  %v7737_v31 = vadd.f32 %v10973_v28, %v7736_v18 }
0x1bf0   :  { %v7741_v18 = vsel %vm14052_vm6, %v10973_v28, %v7737_v31 }
0x1bf1   :  { %v7746_v32 = vsel %vm7743_vm10, %v7745_v11, %v7741_v18 }
0x1bf3   :  { %v14046_v44 = vpop.eup %10974 }
0x1bf4   :  { %v7794_v6 = vmul.f32 %v14046_v44, %v14043_v36  ;;  %vm7799_vm11 = vweird.f32 %v14046_v44 }
0x1bf5   :  { %vm14071_vm14 = vmor %vm7798_vm13, %vm7799_vm11 }
0x1bf6   :  { %v7795_v47 = vsub.f32 1.0, %v7794_v6 }
0x1bf8   :  { %v7796_v6 = vmul.f32 %v14046_v44, %v7795_v47 }
0x1bfa   :  { %v7797_v54 = vadd.f32 %v14046_v44, %v7796_v6 }
0x1c00   :  { %v7696_v29 = vpop.xlane.xlu0 %7695 }
0x1c01   :  { %10976 = vrcp.f32 %v7696_v29  ;;  %v7729_v1 = vand.u32 2147483648, %v7696_v29  ;;  %v7727_v14 = vand.u32 2147483647, %v7696_v29  ;;  %vm7723_vm7 = vweird.f32 %v7696_v29 }
0x1c03   :  { %vm7728_vm9 = vcmp.eq.f32.partialorder %v7727_v14, 8.507059e+37 }
0x1c06   :  { %8188 = vrot.lane.b32.xlu2 %v13710_v62, %s11173_s28 }
0x1c07   :  { %v10977_v24 = vpop.eup %10976 }
0x1c08   :  { %v7719_v52 = vmul.f32 %v10977_v24, %v7696_v29  ;;  %v7708_v53 = vpop.xlane.xlu2 %7707  ;;  %vm7724_vm2 = vweird.f32 %v10977_v24  ;;  %v7804_v29 = vand.u32 2147483648, %v14043_v36 }
0x1c09   :  { %10978 = vrcp.f32 %v7708_v53  ;;  %vm7725_vm8 = vmor %vm7723_vm7, %vm7724_vm2  ;;  %v7787_v43 = vand.u32 2147483647, %v7708_v53  ;;  %v7789_v47 = vand.u32 2147483648, %v7708_v53  ;;  %vm7783_vm15 = vweird.f32 %v7708_v53 }
0x1c0a   :  { %v7720_v61 = vsub.f32 1.0, %v7719_v52  ;;  %v7805_v26 = vor.u32 1.1754944e-38, %v7804_v29 }
0x1c0b   :  { %vm7788_vm3 = vcmp.eq.f32.partialorder %v7787_v43, 8.507059e+37 }
0x1c0c   :  { %v7721_v8 = vmul.f32 %v10977_v24, %v7720_v61  ;;  %v7730_v61 = vor.u32 1.1754944e-38, %v7729_v1 }
0x1c0e   :  { %v7722_v2 = vadd.f32 %v10977_v24, %v7721_v8  ;;  %8048 = vrot.lane.b32.xlu2 %v13643_v48, %s11173_s28 }
0x1c0f   :  { %v10979_v52 = vpop.eup %10978 }
0x1c10   :  { %v7726_v58 = vsel %vm7725_vm8, %v10977_v24, %v7722_v2  ;;  %v7779_v37 = vmul.f32 %v10979_v52, %v7708_v53  ;;  %vm7784_vm12 = vweird.f32 %v10979_v52 }
0x1c11   :  { %v7731_v56 = vsel %vm7728_vm9, %v7730_v61, %v7726_v58  ;;  %v7747_v58 = vmul.f32 %v13971_v30, %v7746_v32  ;;  %v7801_v30 = vsel %vm14071_vm14, %v14046_v44, %v7797_v54  ;;  %vm7785_vm2 = vmor %vm7783_vm15, %vm7784_vm12  ;;  %v7790_v32 = vor.u32 1.1754944e-38, %v7789_v47 }
0x1c12   :  { %v7732_v8 = vmul.f32 %v13983_v63, %v7731_v56  ;;  %v7780_v42 = vsub.f32 1.0, %v7779_v37  ;;  %v7802_v63 = vand.u32 2147483647, %v14043_v36  ;;  %v10536_v56 = vunpack.i.l.bf16 %v13994_v60  ;;  %v8077_v36 = vpop.permute.xlu2 %8076 }
0x1c13   :  { %v10525_v28 = vpop.permute.xlu0 %10524 }
0x1c14   :  { %v7781_v1 = vmul.f32 %v10979_v52, %v7780_v42  ;;  %v10527_v0 = vunpack.i.h.bf16 %v10525_v28  ;;  %v10526_v14 = vunpack.i.l.bf16 %v10525_v28  ;;  %10274 = vmatmul.msk.f32.vlgmr.msrb.gmra.mxu1 %vm173_vm1, %v7732_v8  ;;  %vm7803_vm6 = vcmp.eq.f32.partialorder %v7802_v63, 8.507059e+37 }
0x1c15   :  { %v7806_v53 = vsel %vm7803_vm6, %v7805_v26, %v7801_v30 }
0x1c16   :  { %v7782_v42 = vadd.f32 %v10979_v52, %v7781_v1  ;;  %7885 = vmatpush.msra.mxu2 %v10526_v14  ;;  %7911 = vmatpush.msrb.mxu3 %v10527_v0  ;;  %v7807_v44 = vmul.f32 %v13979_v12, %v7806_v53 }
0x1c17   :  { %8102 = vrot.lane.b32.xlu2 %v13722_v45, %s11174_s3  ;;  %10275 = vmatmul.msk.f32.vlgmr.msra.gmra.mxu2 %vm173_vm1, %v7747_v58 }
0x1c18   :  { %v7786_v60 = vsel %vm7785_vm2, %v10979_v52, %v7782_v42  ;;  %7989 = vmatpush.msrb.mxu2 %v10531_v7  ;;  %8015 = vmatpush.msra.mxu3 %v10536_v56 }
0x1c19   :  { %v7791_v24 = vsel %vm7788_vm3, %v7790_v32, %v7786_v60 }
0x1c1a   :  { %10284 = vmatpush.xpose.msk.msra.mxu2 %vm173_vm1, %v8077_v36  ;;  %v7792_v54 = vmul.f32 %v13987_v19, %v7791_v24  ;;  %v8075_v31 = vpop.permute.xlu2 %8074 }
0x1c1b   :  { %v8047_v7 = vpop.permute.xlu0 %8046 }
0x1c1c   :  { %10278 = vmatmul.msk.f32.vlgmr.msra.gmra.mxu1 %vm173_vm1, %v7792_v54 }
0x1c1f   :  { %8186 = vrot.lane.b32.xlu2 %v13765_v5, %s11174_s3  ;;  %10279 = vmatmul.msk.f32.vlgmr.msrb.gmra.mxu2 %vm173_vm1, %v7807_v44 }
0x1c23   :  { %v14145_v54 = vpop.permute.xlu0 %8214 }
0x1c27   :  { %8216 = vrot.lane.b32.xlu2 %v13704_v23, %s11173_s28  ;;  %10285 = vmatmul.msk.f32.vlgmr.msra.gmra.mxu2 %vm173_vm1, %v8075_v31 }
0x1c2f   :  { %8160 = vrot.lane.b32.xlu2 %v13689_v57, %s11173_s28 }
0x1c37   :  { %7916 = vrot.lane.b32.xlu2 %v13776_v34, %s11172_s27 }
0x1c3e   :  { %v7657_v19 = vpop.xlane.xlu1 %7656 }
0x1c3f   :  { %v7673_v12 = vsub.f32 %v14023_v9, %v7657_v19  ;;  %8132 = vrot.lane.b32.xlu2 %v13696_v35, %s11173_s28 }
0x1c41   :  { %v7684_v2 = vmul.f32 1.442695, %v7673_v12 }
0x1c43   :  { %10980 = vpow2.f32 %v7684_v2 }
0x1c47   :  { %8244 = vrot.lane.b32.xlu2 %v13737_v51, %s11173_s28 }
0x1c49   :  { %v14101_v52 = vpop.eup %10980 }
0x1c4a   :  { %v7703_v18 = vsel %vm173_vm1, %v14101_v52, 0.0 }
0x1c4b   :  { %7704 = vadd.xlane.f32.xlu0 %v7703_v18 }
0x1c51   :  { %v7654_v6 = vpop.xlane.xlu2 %7653 }
0x1c52   :  { %v7672_v61 = vsub.f32 %v14029_v50, %v7654_v6 }
0x1c54   :  { %v7682_v37 = vmul.f32 1.442695, %v7672_v61 }
0x1c56   :  { %10982 = vpow2.f32 %v7682_v37  ;;  %v8105_v2 = vpop.permute.xlu1 %8104 }
0x1c59   :  { %v7669_v9 = vpop.xlane.xlu2 %7668 }
0x1c5a   :  { %v7677_v29 = vsub.f32 %v14033_v21, %v7669_v9 }
0x1c5c   :  { %v14107_v8 = vpop.eup %10982  ;;  %v7692_v43 = vmul.f32 1.442695, %v7677_v29 }
0x1c5d   :  { %v7700_v47 = vsel %vm173_vm1, %v14107_v8, 0.0 }
0x1c5e   :  { %10984 = vpow2.f32 %v7692_v43  ;;  %7701 = vadd.xlane.f32.xlu1 %v7700_v47 }
0x1c5f   :  { %8020 = vrot.lane.b32.xlu0 %v13922_v22, %s11172_s27 }
0x1c61   :  { %v7666_v28 = vpop.xlane.xlu2 %7665 }
0x1c62   :  { %v7676_v1 = vsub.f32 %v14039_v49, %v7666_v28 }
0x1c64   :  { %v14114_v50 = vpop.eup %10984  ;;  %v7690_v0 = vmul.f32 1.442695, %v7676_v1 }
0x1c65   :  { %v7715_v21 = vsel %vm173_vm1, %v14114_v50, 0.0 }
0x1c66   :  { %10986 = vpow2.f32 %v7690_v0  ;;  %7716 = vadd.xlane.f32.xlu1 %v7715_v21 }
0x1c67   :  { %8130 = vrot.lane.b32.xlu0 %v13750_v16, %s11174_s3 }
0x1c69   :  { %v8189_v14 = vpop.permute.xlu2 %8188 }
0x1c6a   :  { %10292 = vmatpush.xpose.msk.msrb.mxu2 %vm173_vm1, %v8189_v14 }
0x1c6c   :  { %v14121_v58 = vpop.eup %10986 }
0x1c6d   :  { %v7712_v63 = vsel %vm173_vm1, %v14121_v58, 0.0 }
0x1c6e   :  { %7713 = vadd.xlane.f32.xlu1 %v7712_v63 }
0x1c6f   :  { %8242 = vrot.lane.b32.xlu0 %v13800_v15, %s11174_s3 }
0x1c71   :  { %v8049_v49 = vpop.permute.xlu2 %8048 }
0x1c72   :  { %10282 = vmatpush.xpose.msk.msrb.mxu1 %vm173_vm1, %v8049_v49 }
0x1c75   :  { %10283 = vmatmul.msk.f32.vlgmr.msrb.gmra.mxu1 %vm173_vm1, %v8047_v7 }
0x1c79   :  { %v14129_v56 = vpop.permute.xlu2 %8102 }
0x1c81   :  { %v8187_v11 = vpop.permute.xlu2 %8186 }
0x1c82   :  { %10293 = vmatmul.msk.f32.vlgmr.msrb.gmra.mxu2 %vm173_vm1, %v8187_v11 }
0x1c87   :  { %8158 = vrot.lane.b32.xlu1 %v13744_v38, %s11174_s3 }
0x1c89   :  { %v14134_v42 = vpop.permute.xlu2 %8216 }
0x1c91   :  { %v8161_v30 = vpop.permute.xlu2 %8160 }
0x1c92   :  { %10290 = vmatpush.xpose.msk.msra.mxu1 %vm173_vm1, %v8161_v30 }
0x1c99   :  { %v7917_v32 = vpop.permute.xlu2 %7916 }
0x1c9a   :  { %v14137_v26 = vpop.f32.mrf.mxu2  ;;  %7937 = vmatpush.msrb.mxu0 %v7917_v32 }
0x1ca1   :  { %v8133_v0 = vpop.permute.xlu2 %8132 }
0x1ca2   :  { %v14139_v60 = vpop.f32.mrf.mxu2 }
0x1caa   :  { %v8099_v36 = vpop.f32.mrf.mxu2 }
0x1cab   :  { %v14141_v24 = vmul.f32 0.35355338, %v8099_v36  ;;  %v14150_v36 = vpop.f32.mrf.mxu1 }
0x1cad   :  { %v8281_v53 = vsel %vm173_vm1, %v14141_v24, -inf }
0x1cae   :  { %8282 = vmax.xlane.f32.xlu2 %v8281_v53 }
0x1cbe   :  { %v7705_v44 = vpop.xlane.xlu0 %7704 }
0x1cbf   :  { %10988 = vrcp.f32 %v7705_v44  ;;  %v7774_v18 = vand.u32 2147483648, %v7705_v44  ;;  %v7772_v61 = vand.u32 2147483647, %v7705_v44  ;;  %vm7768_vm8 = vweird.f32 %v7705_v44 }
0x1cc1   :  { %v7775_v9 = vor.u32 1.1754944e-38, %v7774_v18  ;;  %vm7773_vm10 = vcmp.eq.f32.partialorder %v7772_v61, 8.507059e+37 }
0x1cc5   :  { %v10989_v31 = vpop.eup %10988 }
0x1cc6   :  { %v7764_v19 = vmul.f32 %v10989_v31, %v7705_v44  ;;  %vm7769_vm7 = vweird.f32 %v10989_v31 }
0x1cc7   :  { %vm7770_vm9 = vmor %vm7768_vm8, %vm7769_vm7 }
0x1cc8   :  { %v7765_v12 = vsub.f32 1.0, %v7764_v19 }
0x1cca   :  { %v7766_v6 = vmul.f32 %v10989_v31, %v7765_v12 }
0x1ccc   :  { %v7767_v37 = vadd.f32 %v10989_v31, %v7766_v6 }
0x1cce   :  { %v7771_v29 = vsel %vm7770_vm9, %v10989_v31, %v7767_v37 }
0x1ccf   :  { %v7776_v43 = vsel %vm7773_vm10, %v7775_v9, %v7771_v29 }
0x1cd0   :  { %v7777_v47 = vmul.f32 %v14101_v52, %v7776_v43 }
0x1cd1   :  { %v8021_v28 = vpop.permute.xlu0 %8020  ;;  %v7702_v1 = vpop.xlane.xlu1 %7701 }
0x1cd2   :  { %10990 = vrcp.f32 %v7702_v1  ;;  %10277 = vmatmul.msk.f32.vlgmr.msrb.gmra.mxu0 %vm173_vm1, %v7777_v47  ;;  %v7759_v7 = vand.u32 2147483648, %v7702_v1  ;;  %v7757_v30 = vand.u32 2147483647, %v7702_v1  ;;  %vm7753_vm12 = vweird.f32 %v7702_v1 }
0x1cd3   :  { %8041 = vmatpush.msra.mxu0 %v8021_v28 }
0x1cd4   :  { %v7760_v53 = vor.u32 1.1754944e-38, %v7759_v7  ;;  %vm7758_vm14 = vcmp.eq.f32.partialorder %v7757_v30, 8.507059e+37  ;;  %v8245_v7 = vpop.permute.xlu2 %8244 }
0x1cd5   :  { %10288 = vmatpush.xpose.msk.msrb.mxu0 %vm173_vm1, %v8133_v0  ;;  %v14155_v0 = vpop.f32.mrf.mxu1 }
0x1cd8   :  { %v10991_v21 = vpop.eup %10990 }
0x1cd9   :  { %v7749_v14 = vmul.f32 %v10991_v21, %v7702_v1  ;;  %v7717_v63 = vpop.xlane.xlu1 %7716  ;;  %vm7754_vm11 = vweird.f32 %v10991_v21 }
0x1cda   :  { %10992 = vrcp.f32 %v7717_v63  ;;  %vm7755_vm13 = vmor %vm7753_vm12, %vm7754_vm11  ;;  %v7834_v61 = vand.u32 2147483648, %v7717_v63  ;;  %v7832_v9 = vand.u32 2147483647, %v7717_v63  ;;  %vm7828_vm2 = vweird.f32 %v7717_v63 }
0x1cdb   :  { %v7750_v49 = vsub.f32 1.0, %v7749_v14 }
0x1cdc   :  { %v7835_v47 = vor.u32 1.1754944e-38, %v7834_v61  ;;  %vm7833_vm6 = vcmp.eq.f32.partialorder %v7832_v9, 8.507059e+37 }
0x1cdd   :  { %v7751_v11 = vmul.f32 %v10991_v21, %v7750_v49 }
0x1cdf   :  { %v7752_v32 = vadd.f32 %v10991_v21, %v7751_v11 }
0x1ce0   :  { %v10993_v52 = vpop.eup %10992 }
0x1ce1   :  { %v7756_v44 = vsel %vm7755_vm13, %v10991_v21, %v7752_v32  ;;  %v7824_v31 = vmul.f32 %v10993_v52, %v7717_v63  ;;  %v7714_v19 = vpop.xlane.xlu1 %7713  ;;  %vm7829_vm15 = vweird.f32 %v10993_v52 }
0x1ce2   :  { %v7761_v12 = vsel %vm7758_vm14, %v7760_v53, %v7756_v44  ;;  %10994 = vrcp.f32 %v7714_v19  ;;  %vm7830_vm3 = vmor %vm7828_vm2, %vm7829_vm15  ;;  %v7819_v49 = vand.u32 2147483648, %v7714_v19  ;;  %v7817_v30 = vand.u32 2147483647, %v7714_v19 }
0x1ce3   :  { %v7762_v18 = vmul.f32 %v14107_v8, %v7761_v12  ;;  %v7825_v6 = vsub.f32 1.0, %v7824_v31  ;;  %vm7813_vm8 = vweird.f32 %v7714_v19 }
0x1ce4   :  { %v7820_v63 = vor.u32 1.1754944e-38, %v7819_v49  ;;  %vm7818_vm10 = vcmp.eq.f32.partialorder %v7817_v30, 8.507059e+37 }
0x1ce5   :  { %v7826_v37 = vmul.f32 %v10993_v52, %v7825_v6  ;;  %10276 = vmatmul.msk.f32.vlgmr.msrb.gmra.mxu3 %vm173_vm1, %v7762_v18 }
0x1ce6   :  { %10286 = vmatpush.xpose.msk.msrb.mxu3 %vm173_vm1, %v8105_v2 }
0x1ce7   :  { %v7827_v29 = vadd.f32 %v10993_v52, %v7826_v37 }
0x1ce8   :  { %v10995_v43 = vpop.eup %10994 }
0x1ce9   :  { %v7831_v28 = vsel %vm7830_vm3, %v10993_v52, %v7827_v29  ;;  %v7809_v1 = vmul.f32 %v10995_v43, %v7714_v19  ;;  %vm7814_vm7 = vweird.f32 %v10995_v43  ;;  %v8131_v52 = vpop.permute.xlu0 %8130 }
0x1cea   :  { %v7836_v8 = vsel %vm7833_vm6, %v7835_v47, %v7831_v28  ;;  %vm7815_vm9 = vmor %vm7813_vm8, %vm7814_vm7 }
0x1ceb   :  { %v7837_v21 = vmul.f32 %v14114_v50, %v7836_v8  ;;  %v7810_v14 = vsub.f32 1.0, %v7809_v1 }
0x1ced   :  { %v7811_v11 = vmul.f32 %v10995_v43, %v7810_v14  ;;  %10281 = vmatmul.msk.f32.vlgmr.msra.gmra.mxu0 %vm173_vm1, %v7837_v21 }
0x1cee   :  { %10296 = vmatpush.xpose.msk.msra.mxu0 %vm173_vm1, %v8245_v7 }
0x1cef   :  { %v7812_v2 = vadd.f32 %v10995_v43, %v7811_v11 }
0x1cf1   :  { %v7816_v32 = vsel %vm7815_vm9, %v10995_v43, %v7812_v2  ;;  %v8243_v18 = vpop.permute.xlu0 %8242 }
0x1cf2   :  { %v7821_v53 = vsel %vm7818_vm10, %v7820_v63, %v7816_v32  ;;  %v8071_v44 = vpop.f32.mrf.mxu1 }
0x1cf3   :  { %v7822_v50 = vmul.f32 %v14121_v58, %v7821_v53  ;;  %v8270_v31 = vmul.f32 0.35355338, %v8071_v44 }
0x1cf5   :  { %10280 = vmatmul.msk.f32.vlgmr.msra.gmra.mxu3 %vm173_vm1, %v7822_v50  ;;  %10289 = vmatmul.msk.f32.vlgmr.msrb.gmra.mxu0 %vm173_vm1, %v8131_v52  ;;  %v8278_v12 = vsel %vm173_vm1, %v8270_v31, -inf }
0x1cf6   :  { %10294 = vmatpush.xpose.msk.msra.mxu3 %vm173_vm1, %v14134_v42  ;;  %8279 = vmax.xlane.f32.xlu1 %v8278_v12 }
0x1cf9   :  { %v8159_v19 = vpop.permute.xlu1 %8158 }
0x1cfa   :  { %10291 = vmatmul.msk.f32.vlgmr.msra.gmra.mxu1 %vm173_vm1, %v8159_v19 }
0x1cfd   :  { %10287 = vmatmul.msk.f32.vlgmr.msrb.gmra.mxu3 %vm173_vm1, %v14129_v56  ;;  %10297 = vmatmul.msk.f32.vlgmr.msra.gmra.mxu0 %vm173_vm1, %v8243_v18 }
0x1d05   :  { %v8211_v58 = vpop.f32.mrf.mxu2  ;;  %10295 = vmatmul.msk.f32.vlgmr.msra.gmra.mxu3 %vm173_vm1, %v14145_v54 }
0x1d06   :  { %v8275_v6 = vmul.f32 0.35355338, %v8211_v58 }
0x1d08   :  { %v8293_v61 = vsel %vm173_vm1, %v8275_v6, -inf }
0x1d09   :  { %8294 = vmax.xlane.f32.xlu2 %v8293_v61 }
0x1d21   :  { %v8283_v37 = vpop.xlane.xlu2 %8282 }
0x1d22   :  { %v8303_v42 = vsub.f32 %v14141_v24, %v8283_v37  ;;  %v15002_v37 = vpack.i.bf16 %v13780_v25, %v13773_v3 }
0x1d24   :  { %v8312_v9 = vmul.f32 1.442695, %v8303_v42 }
0x1d26   :  { %10996 = vpow2.f32 %v8312_v9 }
0x1d2c   :  { %v14174_v29 = vpop.eup %10996 }
0x1d2d   :  { %v8329_v56 = vsel %vm173_vm1, %v14174_v29, 0.0 }
0x1d2e   :  { %8330 = vadd.xlane.f32.xlu0 %v8329_v56 }
0x1d4f   :  { %v14178_v43 = vpop.f32.mrf.mxu0 }
0x1d68   :  { %v14184_v24 = vpop.f32.mrf.mxu3 }
0x1d69   :  { %v8280_v47 = vpop.xlane.xlu1 %8279 }
0x1d6a   :  { %v8302_v28 = vsub.f32 %v8270_v31, %v8280_v47  ;;  %v14180_v54 = vpop.f32.mrf.mxu0 }
0x1d6c   :  { %v8310_v1 = vmul.f32 1.442695, %v8302_v28 }
0x1d6e   :  { %10998 = vpow2.f32 %v8310_v1 }
0x1d72   :  { %v8155_v8 = vpop.f32.mrf.mxu0 }
0x1d74   :  { %v14182_v21 = vpop.eup %10998 }
0x1d75   :  { %v8326_v14 = vsel %vm173_vm1, %v14182_v21, 0.0 }
0x1d76   :  { %8327 = vadd.xlane.f32.xlu2 %v8326_v14 }
0x1d77   :  { %v8183_v49 = vpop.f32.mrf.mxu1 }
0x1d78   :  { %v8274_v7 = vmul.f32 0.35355338, %v8183_v49  ;;  %v14189_v63 = vpop.f32.mrf.mxu3 }
0x1d7a   :  { %v8290_v11 = vsel %vm173_vm1, %v8274_v7, -inf  ;;  %v8267_v30 = vpop.f32.mrf.mxu0 }
0x1d7b   :  { %8291 = vmax.xlane.f32.xlu1 %v8290_v11  ;;  %v14191_v52 = vmul.f32 0.35355338, %v8267_v30 }
0x1d7c   :  { %v8295_v2 = vpop.xlane.xlu2 %8294 }
0x1d7d   :  { %v8307_v32 = vsub.f32 %v8275_v6, %v8295_v2  ;;  %v8299_v44 = vsel %vm173_vm1, %v14191_v52, -inf }
0x1d7f   :  { %v8320_v53 = vmul.f32 1.442695, %v8307_v32 }
0x1d80   :  { %v8127_v31 = vpop.f32.mrf.mxu3 }
0x1d81   :  { %11000 = vpow2.f32 %v8320_v53  ;;  %v14199_v19 = vmul.f32 0.35355338, %v8127_v31  ;;  %v10543_v31 = vpack.i.bf16 %v13914_v17, %v13783_v10 }
0x1d83   :  { %8300 = vmax.xlane.f32.xlu1 %v8299_v44  ;;  %v8284_v18 = vsel %vm173_vm1, %v14199_v19, -inf }
0x1d87   :  { %v14195_v50 = vpop.eup %11000 }
0x1d88   :  { %v8341_v12 = vsel %vm173_vm1, %v14195_v50, 0.0  ;;  %v8239_v58 = vpop.f32.mrf.mxu3 }
0x1d89   :  { %8342 = vadd.xlane.f32.xlu0 %v8341_v12  ;;  %v14203_v6 = vmul.f32 0.35355338, %v8239_v58 }
0x1d8b   :  { %v8296_v61 = vsel %vm173_vm1, %v14203_v6, -inf }
0x1d91   :  { %8285 = vmax.xlane.f32.xlu0 %v8284_v18 }
0x1d99   :  { %8297 = vmax.xlane.f32.xlu0 %v8296_v61 }
0x1d9c   :  { %10549 = vrot.lane.b32.xlu1 %v13843_v33, %s11175_s29 }
0x1da4   :  { %8678 = vrot.lane.b32.xlu1 %v13681_v59, %s11176_s30 }
0x1dac   :  { %8734 = vrot.lane.b32.xlu1 %v13722_v45, %s11176_s30 }
0x1dad   :  { %10539 = vrot.lane.b32.xlu0 %v15002_v37, %s11175_s29 }
0x1db4   :  { %8652 = vrot.lane.b32.xlu1 %v13922_v22, %s11175_s29 }
0x1db5   :  { %8708 = vrot.lane.b32.xlu0 %v13671_v13, %s11177_s5 }
0x1dbd   :  { %8706 = vrot.lane.b32.xlu0 %v13729_v39, %s11176_s30  ;;  %v8331_v39 = vpop.xlane.xlu0 %8330 }
0x1dbe   :  { %vm8370_vm13 = vweird.f32 %v8331_v39  ;;  %v8376_v2 = vand.u32 2147483648, %v8331_v39  ;;  %v8374_v53 = vand.u32 2147483647, %v8331_v39 }
0x1dc0   :  { %v8377_v58 = vor.u32 1.1754944e-38, %v8376_v2  ;;  %vm8375_vm3 = vcmp.eq.f32.partialorder %v8374_v53, 8.507059e+37 }
0x1dc5   :  { %8680 = vrot.lane.b32.xlu0 %v13643_v48, %s11177_s5 }
0x1dcd   :  { %8736 = vrot.lane.b32.xlu0 %v13665_v20, %s11177_s5 }
0x1dd5   :  { %8548 = vrot.lane.b32.xlu0 %v13776_v34, %s11175_s29 }
0x1ddd   :  { %8764 = vrot.lane.b32.xlu0 %v13696_v35, %s11177_s5  ;;  %v14241_v35 = vmul.f32 0.35355338, %v8155_v8 }
0x1de5   :  { %8818 = vrot.lane.b32.xlu0 %v13765_v5, %s11176_s30 }
0x1de9   :  { %v8328_v5 = vpop.xlane.xlu2 %8327 }
0x1dea   :  { %v8361_v32 = vand.u32 2147483648, %v8328_v5  ;;  %vm8355_vm15 = vweird.f32 %v8328_v5  ;;  %v8359_v44 = vand.u32 2147483647, %v8328_v5 }
0x1dec   :  { %v8362_v61 = vor.u32 1.1754944e-38, %v8361_v32  ;;  %vm8360_vm6 = vcmp.eq.f32.partialorder %v8359_v44, 8.507059e+37 }
0x1ded   :  { %8790 = vrot.lane.b32.xlu0 %v13744_v38, %s11176_s30  ;;  %v8287_v38 = vsel %vm173_vm1, %v14241_v35, -inf }
0x1dee   :  { %v8292_v13 = vpop.xlane.xlu1 %8291 }
0x1def   :  { %v8306_v59 = vsub.f32 %v8274_v7, %v8292_v13 }
0x1df1   :  { %v8318_v45 = vmul.f32 1.442695, %v8306_v59 }
0x1df3   :  { %11002 = vpow2.f32 %v8318_v45 }
0x1df4   :  { %11004 = vrcp.f32 %v8331_v39 }
0x1df5   :  { %8846 = vrot.lane.b32.xlu0 %v13758_v27, %s11176_s30  ;;  %11006 = vrcp.f32 %v8328_v5 }
0x1df6   :  { %v8301_v11 = vpop.xlane.xlu1 %8300 }
0x1df9   :  { %v14237_v48 = vpop.eup %11002 }
0x1dfa   :  { %v8338_v20 = vsel %vm173_vm1, %v14237_v48, 0.0  ;;  %v11005_v42 = vpop.eup %11004 }
0x1dfb   :  { %8339 = vadd.xlane.f32.xlu2 %v8338_v20  ;;  %v11007_v27 = vpop.eup %11006  ;;  %v8366_v9 = vmul.f32 %v11005_v42, %v8331_v39  ;;  %vm8371_vm11 = vweird.f32 %v11005_v42 }
0x1dfc   :  { %v14245_v33 = vpop.xlane.xlu0 %8342  ;;  %v8351_v56 = vmul.f32 %v11007_v27, %v8328_v5  ;;  %vm8356_vm12 = vweird.f32 %v11007_v27  ;;  %vm8372_vm14 = vmor %vm8370_vm13, %vm8371_vm11 }
0x1dfd   :  { %v8367_v28 = vsub.f32 1.0, %v8366_v9  ;;  %vm8357_vm2 = vmor %vm8355_vm15, %vm8356_vm12  ;;  %vm8430_vm8 = vweird.f32 %v14245_v33 }
0x1dfe   :  { %v8352_v1 = vsub.f32 1.0, %v8351_v56  ;;  %v8309_v56 = vsub.f32 %v14191_v52, %v8301_v11 }
0x1dff   :  { %v8368_v14 = vmul.f32 %v11005_v42, %v8367_v28 }
0x1e00   :  { %v8353_v8 = vmul.f32 %v11007_v27, %v8352_v1 }
0x1e01   :  { %v8369_v49 = vadd.f32 %v11005_v42, %v8368_v14 }
0x1e02   :  { %v8354_v7 = vadd.f32 %v11007_v27, %v8353_v8 }
0x1e03   :  { %8288 = vmax.xlane.f32.xlu2 %v8287_v38  ;;  %v8373_v12 = vsel %vm8372_vm14, %v11005_v42, %v8369_v49 }
0x1e04   :  { %v14247_v47 = vpop.xlane.xlu0 %8285  ;;  %v8358_v18 = vsel %vm8357_vm2, %v11007_v27, %v8354_v7  ;;  %v8378_v37 = vsel %vm8375_vm3, %v8377_v58, %v8373_v12 }
0x1e05   :  { %v8363_v13 = vsel %vm8360_vm6, %v8362_v61, %v8358_v18  ;;  %v8379_v5 = vmul.f32 %v14174_v29, %v8378_v37  ;;  %v8324_v29 = vmul.f32 1.442695, %v8309_v56  ;;  %v8436_v61 = vand.u32 2147483648, %v14245_v33 }
0x1e06   :  { %v8364_v38 = vmul.f32 %v14182_v21, %v8363_v13  ;;  %v8304_v13 = vsub.f32 %v14199_v19, %v14247_v47 }
0x1e07   :  { %11008 = vpow2.f32 %v8324_v29 }
0x1e08   :  { %11010 = vrcp.f32 %v14245_v33 }
0x1e0c   :  { %v14249_v30 = vpop.xlane.xlu0 %8297 }
0x1e0d   :  { %v14273_v8 = vpop.eup %11008 }
0x1e0e   :  { %v14254_v59 = vpop.permute.xlu1 %10549  ;;  %v8347_v49 = vsel %vm173_vm1, %v14273_v8, 0.0  ;;  %v11011_v52 = vpop.eup %11010 }
0x1e0f   :  { %v10551_v42 = vunpack.i.l.bf16 %v14254_v59  ;;  %v8426_v11 = vmul.f32 %v11011_v52, %v14245_v33  ;;  %vm8431_vm7 = vweird.f32 %v11011_v52 }
0x1e10   :  { %vm8432_vm9 = vmor %vm8430_vm8, %vm8431_vm7 }
0x1e11   :  { %v8427_v32 = vsub.f32 1.0, %v8426_v11 }
0x1e13   :  { %v8428_v44 = vmul.f32 %v11011_v52, %v8427_v32  ;;  %v10552_v32 = vunpack.i.h.bf16 %v14254_v59 }
0x1e15   :  { %v8429_v12 = vadd.f32 %v11011_v52, %v8428_v44 }
0x1e16   :  { %v14266_v28 = vpop.permute.xlu1 %8678 }
0x1e1b   :  { %10544 = vrot.lane.b32.xlu2 %v10543_v31, %s11175_s29 }
0x1e1e   :  { %v14269_v21 = vpop.permute.xlu1 %8734 }
0x1e1f   :  { %v10540_v45 = vpop.permute.xlu0 %10539 }
0x1e20   :  { %v10542_v20 = vunpack.i.h.bf16 %v10540_v45  ;;  %v10541_v39 = vunpack.i.l.bf16 %v10540_v45 }
0x1e22   :  { %8491 = vmatpush.msrb.mxu1 %v10542_v20  ;;  %8517 = vmatpush.msra.mxu2 %v10541_v39  ;;  %v8433_v39 = vsel %vm8432_vm9, %v11011_v52, %v8429_v12 }
0x1e23   :  { %10298 = vmatmul.msk.f32.vlgmr.msrb.gmra.mxu1 %vm173_vm1, %v8364_v38  ;;  %10299 = vmatmul.msk.f32.vlgmr.msra.gmra.mxu2 %vm173_vm1, %v8379_v5 }
0x1e24   :  { %8595 = vmatpush.msra.mxu1 %v10551_v42  ;;  %v8437_v42 = vor.u32 1.1754944e-38, %v8436_v61 }
0x1e26   :  { %v8653_v2 = vpop.permute.xlu1 %8652 }
0x1e27   :  { %v14261_v27 = vpop.permute.xlu0 %8708 }
0x1e2f   :  { %v14263_v9 = vpop.permute.xlu0 %8706 }
0x1e37   :  { %v8681_v1 = vpop.permute.xlu0 %8680 }
0x1e38   :  { %10306 = vmatpush.xpose.msk.msrb.mxu1 %vm173_vm1, %v8681_v1 }
0x1e3f   :  { %v14271_v14 = vpop.permute.xlu0 %8736 }
0x1e44   :  { %8348 = vadd.xlane.f32.xlu2 %v8347_v49 }
0x1e47   :  { %v8549_v7 = vpop.permute.xlu0 %8548 }
0x1e48   :  { %8569 = vmatpush.msrb.mxu0 %v8549_v7 }
0x1e4a   :  { %8673 = vmatpush.msra.mxu0 %v8653_v2 }
0x1e5c   :  { %8820 = vrot.lane.b32.xlu2 %v13710_v62, %s11177_s5 }
0x1e64   :  { %8874 = vrot.lane.b32.xlu2 %v13800_v15, %s11176_s30  ;;  %v8434_v15 = vand.u32 2147483647, %v14245_v33  ;;  %v8314_v33 = vmul.f32 1.442695, %v8304_v13 }
0x1e66   :  { %vm8435_vm11 = vcmp.eq.f32.partialorder %v8434_v15, 8.507059e+37 }
0x1e6e   :  { %v8340_v53 = vpop.xlane.xlu2 %8339 }
0x1e6f   :  { %11012 = vrcp.f32 %v8340_v53  ;;  %v8421_v45 = vand.u32 2147483648, %v8340_v53  ;;  %v8419_v38 = vand.u32 2147483647, %v8340_v53  ;;  %vm8415_vm12 = vweird.f32 %v8340_v53 }
0x1e71   :  { %v8422_v29 = vor.u32 1.1754944e-38, %v8421_v45  ;;  %vm8420_vm14 = vcmp.eq.f32.partialorder %v8419_v38, 8.507059e+37 }
0x1e75   :  { %v11013_v31 = vpop.eup %11012 }
0x1e76   :  { %v8411_v18 = vmul.f32 %v11013_v31, %v8340_v53  ;;  %v8289_v58 = vpop.xlane.xlu2 %8288  ;;  %vm8416_vm10 = vweird.f32 %v11013_v31  ;;  %v8308_v53 = vsub.f32 %v14203_v6, %v14249_v30 }
0x1e77   :  { %v8305_v62 = vsub.f32 %v14241_v35, %v8289_v58  ;;  %v8438_v35 = vsel %vm8435_vm11, %v8437_v42, %v8433_v39  ;;  %vm8417_vm13 = vmor %vm8415_vm12, %vm8416_vm10 }
0x1e78   :  { %v8412_v37 = vsub.f32 1.0, %v8411_v18  ;;  %v8439_v2 = vmul.f32 %v14195_v50, %v8438_v35  ;;  %v8322_v50 = vmul.f32 1.442695, %v8308_v53 }
0x1e79   :  { %v8316_v20 = vmul.f32 1.442695, %v8305_v62 }
0x1e7a   :  { %v8413_v5 = vmul.f32 %v11013_v31, %v8412_v37 }
0x1e7b   :  { %11014 = vpow2.f32 %v8316_v20 }
0x1e7c   :  { %v8414_v56 = vadd.f32 %v11013_v31, %v8413_v5  ;;  %11016 = vpow2.f32 %v8314_v33 }
0x1e7d   :  { %11018 = vpow2.f32 %v8322_v50 }
0x1e7e   :  { %v8418_v1 = vsel %vm8417_vm13, %v11013_v31, %v8414_v56  ;;  %v10545_v49 = vpop.permute.xlu2 %10544 }
0x1e7f   :  { %v8423_v7 = vsel %vm8420_vm14, %v8422_v29, %v8418_v1  ;;  %v10547_v19 = vunpack.i.h.bf16 %v10545_v49  ;;  %v10546_v47 = vunpack.i.l.bf16 %v10545_v49 }
0x1e80   :  { %v8424_v52 = vmul.f32 %v14237_v48, %v8423_v7 }
0x1e81   :  { %v14291_v11 = vpop.eup %11014  ;;  %8543 = vmatpush.msrb.mxu3 %v10546_v47  ;;  %8621 = vmatpush.msrb.mxu2 %v10547_v19 }
0x1e82   :  { %10302 = vmatmul.msk.f32.vlgmr.msra.gmra.mxu1 %vm173_vm1, %v8424_v52  ;;  %10303 = vmatmul.msk.f32.vlgmr.msrb.gmra.mxu2 %vm173_vm1, %v8439_v2  ;;  %v8335_v44 = vsel %vm173_vm1, %v14291_v11, 0.0  ;;  %v14302_v48 = vpop.eup %11016 }
0x1e83   :  { %8647 = vmatpush.msra.mxu3 %v10552_v32  ;;  %10308 = vmatpush.xpose.msk.msra.mxu2 %vm173_vm1, %v14261_v27  ;;  %v8332_v6 = vsel %vm173_vm1, %v14302_v48, 0.0  ;;  %v14310_v30 = vpop.eup %11018 }
0x1e84   :  { %8336 = vadd.xlane.f32.xlu1 %v8335_v44  ;;  %v8344_v59 = vsel %vm173_vm1, %v14310_v30, 0.0 }
0x1e8a   :  { %10307 = vmatmul.msk.f32.vlgmr.msrb.gmra.mxu1 %vm173_vm1, %v14266_v28  ;;  %10309 = vmatmul.msk.f32.vlgmr.msra.gmra.mxu2 %vm173_vm1, %v14263_v9  ;;  %v8765_v28 = vpop.permute.xlu0 %8764 }
0x1e8c   :  { %8333 = vadd.xlane.f32.xlu1 %v8332_v6 }
0x1e92   :  { %v8819_v31 = vpop.permute.xlu0 %8818 }
0x1e94   :  { %8345 = vadd.xlane.f32.xlu1 %v8344_v59 }
0x1ea6   :  { %v14326_v58 = vpop.f32.mrf.mxu2 }
0x1ead   :  { %8762 = vrot.lane.b32.xlu1 %v13750_v16, %s11176_s30  ;;  %v14324_v16 = vpop.f32.mrf.mxu1 }
0x1eb5   :  { %8792 = vrot.lane.b32.xlu1 %v13689_v57, %s11177_s5 }
0x1eb7   :  { %v8349_v27 = vpop.xlane.xlu2 %8348 }
0x1eb8   :  { %11020 = vrcp.f32 %v8349_v27  ;;  %vm8460_vm8 = vweird.f32 %v8349_v27  ;;  %v8466_v7 = vand.u32 2147483648, %v8349_v27  ;;  %v8464_v2 = vand.u32 2147483647, %v8349_v27 }
0x1eba   :  { %vm8465_vm11 = vcmp.eq.f32.partialorder %v8464_v2, 8.507059e+37 }
0x1ebd   :  { %8848 = vrot.lane.b32.xlu1 %v13704_v23, %s11177_s5 }
0x1ebe   :  { %v11021_v12 = vpop.eup %11020 }
0x1ebf   :  { %v8821_v9 = vpop.permute.xlu2 %8820  ;;  %v8456_v57 = vmul.f32 %v11021_v12, %v8349_v27  ;;  %vm8461_vm3 = vweird.f32 %v11021_v12 }
0x1ec0   :  { %10316 = vmatpush.xpose.msk.msrb.mxu2 %vm173_vm1, %v8821_v9  ;;  %vm14332_vm9 = vmor %vm8460_vm8, %vm8461_vm3 }
0x1ec1   :  { %v8457_v23 = vsub.f32 1.0, %v8456_v57 }
0x1ec3   :  { %10317 = vmatmul.msk.f32.vlgmr.msrb.gmra.mxu2 %vm173_vm1, %v8819_v31  ;;  %v8458_v45 = vmul.f32 %v11021_v12, %v8457_v23  ;;  %v8467_v31 = vor.u32 1.1754944e-38, %v8466_v7 }
0x1ec5   :  { %8876 = vrot.lane.b32.xlu1 %v13737_v51, %s11177_s5  ;;  %v8459_v56 = vadd.f32 %v11021_v12, %v8458_v45 }
0x1ec7   :  { %v8463_v44 = vsel %vm14332_vm9, %v11021_v12, %v8459_v56  ;;  %v8875_v7 = vpop.permute.xlu2 %8874 }
0x1ec8   :  { %v8468_v57 = vsel %vm8465_vm11, %v8467_v31, %v8463_v44 }
0x1ef7   :  { %v8337_v18 = vpop.xlane.xlu1 %8336 }
0x1ef8   :  { %11022 = vrcp.f32 %v8337_v18  ;;  %v8406_v20 = vand.u32 2147483648, %v8337_v18  ;;  %v8404_v39 = vand.u32 2147483647, %v8337_v18  ;;  %vm8400_vm2 = vweird.f32 %v8337_v18 }
0x1efa   :  { %v8407_v35 = vor.u32 1.1754944e-38, %v8406_v20  ;;  %vm8405_vm7 = vcmp.eq.f32.partialorder %v8404_v39, 8.507059e+37 }
0x1efe   :  { %v11023_v61 = vpop.eup %11022 }
0x1eff   :  { %v8396_v62 = vmul.f32 %v11023_v61, %v8337_v18  ;;  %v8334_v15 = vpop.xlane.xlu1 %8333  ;;  %v14328_v37 = vpop.f32.mrf.mxu1  ;;  %vm8401_vm15 = vweird.f32 %v11023_v61 }
0x1f00   :  { %11024 = vrcp.f32 %v8334_v15  ;;  %vm8402_vm6 = vmor %vm8400_vm2, %vm8401_vm15  ;;  %v8391_v50 = vand.u32 2147483648, %v8334_v15  ;;  %v8389_v59 = vand.u32 2147483647, %v8334_v15  ;;  %vm8385_vm12 = vweird.f32 %v8334_v15 }
0x1f01   :  { %v8397_v13 = vsub.f32 1.0, %v8396_v62 }
0x1f02   :  { %v8392_v12 = vor.u32 1.1754944e-38, %v8391_v50  ;;  %vm8390_vm14 = vcmp.eq.f32.partialorder %v8389_v59, 8.507059e+37 }
0x1f03   :  { %v8398_v51 = vmul.f32 %v11023_v61, %v8397_v13 }
0x1f05   :  { %v8399_v5 = vadd.f32 %v11023_v61, %v8398_v51  ;;  %v14330_v38 = vpop.f32.mrf.mxu2 }
0x1f06   :  { %v11025_v42 = vpop.eup %11024 }
0x1f07   :  { %v8403_v29 = vsel %vm8402_vm6, %v11023_v61, %v8399_v5  ;;  %v8381_v33 = vmul.f32 %v11025_v42, %v8334_v15  ;;  %v8346_v1 = vpop.xlane.xlu1 %8345  ;;  %v8703_v49 = vpop.f32.mrf.mxu1  ;;  %vm8386_vm10 = vweird.f32 %v11025_v42 }
0x1f08   :  { %v8408_v19 = vsel %vm8405_vm7, %v8407_v35, %v8403_v29  ;;  %11026 = vrcp.f32 %v8346_v1  ;;  %v14337_v53 = vmul.f32 0.35355338, %v8703_v49  ;;  %vm8387_vm13 = vmor %vm8385_vm12, %vm8386_vm10  ;;  %v8451_v15 = vand.u32 2147483648, %v8346_v1  ;;  %v8791_v49 = vpop.permute.xlu0 %8790 }
0x1f09   :  { %v8409_v52 = vmul.f32 %v14291_v11, %v8408_v19  ;;  %v8382_v32 = vsub.f32 1.0, %v8381_v33  ;;  %v8449_v5 = vand.u32 2147483647, %v8346_v1  ;;  %vm8445_vm2 = vweird.f32 %v8346_v1 }
0x1f0a   :  { %v8910_v9 = vsel %vm173_vm1, %v14337_v53, -inf  ;;  %v8452_v56 = vor.u32 1.1754944e-38, %v8451_v15 }
0x1f0b   :  { %v8383_v6 = vmul.f32 %v11025_v42, %v8382_v32  ;;  %10301 = vmatmul.msk.f32.vlgmr.msrb.gmra.mxu0 %vm173_vm1, %v8409_v52  ;;  %8911 = vmax.xlane.f32.xlu0 %v8910_v9  ;;  %vm8450_vm6 = vcmp.eq.f32.partialorder %v8449_v5, 8.507059e+37 }
0x1f0c   :  { %10312 = vmatpush.xpose.msk.msrb.mxu0 %vm173_vm1, %v8765_v28  ;;  %v8469_v28 = vmul.f32 %v14273_v8, %v8468_v57 }
0x1f0d   :  { %v8384_v11 = vadd.f32 %v11025_v42, %v8383_v6  ;;  %v8731_v27 = vpop.f32.mrf.mxu2 }
0x1f0e   :  { %v11027_v18 = vpop.eup %11026  ;;  %v14345_v61 = vmul.f32 0.35355338, %v8731_v27 }
0x1f0f   :  { %v8388_v23 = vsel %vm8387_vm13, %v11025_v42, %v8384_v11  ;;  %v8441_v62 = vmul.f32 %v11027_v18, %v8346_v1  ;;  %vm8446_vm15 = vweird.f32 %v11027_v18 }
0x1f10   :  { %v8393_v13 = vsel %vm8390_vm14, %v8392_v12, %v8388_v23  ;;  %v8913_v45 = vsel %vm173_vm1, %v14345_v61, -inf  ;;  %vm8447_vm3 = vmor %vm8445_vm2, %vm8446_vm15  ;;  %v8847_v1 = vpop.permute.xlu0 %8846 }
0x1f11   :  { %v8394_v20 = vmul.f32 %v14302_v48, %v8393_v13  ;;  %v8442_v51 = vsub.f32 1.0, %v8441_v62  ;;  %8914 = vmax.xlane.f32.xlu1 %v8913_v45 }
0x1f13   :  { %v8443_v39 = vmul.f32 %v11027_v18, %v8442_v51  ;;  %10300 = vmatmul.msk.f32.vlgmr.msrb.gmra.mxu3 %vm173_vm1, %v8394_v20  ;;  %10305 = vmatmul.msk.f32.vlgmr.msra.gmra.mxu0 %vm173_vm1, %v8469_v28 }
0x1f14   :  { %10310 = vmatpush.xpose.msk.msrb.mxu3 %vm173_vm1, %v14271_v14 }
0x1f15   :  { %v8444_v42 = vadd.f32 %v11027_v18, %v8443_v39 }
0x1f17   :  { %v8448_v8 = vsel %vm8447_vm3, %v11027_v18, %v8444_v42 }
0x1f18   :  { %v8453_v48 = vsel %vm8450_vm6, %v8452_v56, %v8448_v8 }
0x1f19   :  { %v8454_v35 = vmul.f32 %v14310_v30, %v8453_v48  ;;  %v15005_v48 = vpack.i.bf16 %v13773_v3, %v13780_v25 }
0x1f1b   :  { %10304 = vmatmul.msk.f32.vlgmr.msra.gmra.mxu3 %vm173_vm1, %v8454_v35 }
0x1f1f   :  { %v8763_v29 = vpop.permute.xlu1 %8762 }
0x1f20   :  { %10313 = vmatmul.msk.f32.vlgmr.msrb.gmra.mxu0 %vm173_vm1, %v8763_v29 }
0x1f23   :  { %10311 = vmatmul.msk.f32.vlgmr.msrb.gmra.mxu3 %vm173_vm1, %v14269_v21 }
0x1f27   :  { %v8793_v33 = vpop.permute.xlu1 %8792 }
0x1f28   :  { %10314 = vmatpush.xpose.msk.msra.mxu1 %vm173_vm1, %v8793_v33 }
0x1f2b   :  { %10315 = vmatmul.msk.f32.vlgmr.msra.gmra.mxu1 %vm173_vm1, %v8791_v49 }
0x1f2f   :  { %v8849_v14 = vpop.permute.xlu1 %8848 }
0x1f30   :  { %10318 = vmatpush.xpose.msk.msra.mxu3 %vm173_vm1, %v8849_v14 }
0x1f33   :  { %10319 = vmatmul.msk.f32.vlgmr.msra.gmra.mxu3 %vm173_vm1, %v8847_v1 }
0x1f37   :  { %v8877_v30 = vpop.permute.xlu1 %8876 }
0x1f38   :  { %10320 = vmatpush.xpose.msk.msra.mxu0 %vm173_vm1, %v8877_v30 }
0x1f3b   :  { %10321 = vmatmul.msk.f32.vlgmr.msra.gmra.mxu0 %vm173_vm1, %v8875_v7 }
0x1f46   :  { %v8843_v23 = vpop.f32.mrf.mxu2 }
0x1f47   :  { %v8907_v45 = vmul.f32 0.35355338, %v8843_v23 }
0x1f7e   :  { %v8912_v44 = vpop.xlane.xlu0 %8911 }
0x1f7f   :  { %v8934_v6 = vsub.f32 %v14337_v53, %v8912_v44  ;;  %v8925_v53 = vsel %vm173_vm1, %v8907_v45, -inf }
0x1f81   :  { %v8942_v9 = vmul.f32 1.442695, %v8934_v6 }
0x1f83   :  { %11028 = vpow2.f32 %v8942_v9 }
0x1f84   :  { %v8915_v59 = vpop.xlane.xlu1 %8914 }
0x1f85   :  { %v8935_v27 = vsub.f32 %v14345_v61, %v8915_v59 }
0x1f87   :  { %v8944_v13 = vmul.f32 1.442695, %v8935_v27 }
0x1f88   :  { %v14366_v19 = vpop.f32.mrf.mxu0 }
0x1f89   :  { %v14379_v28 = vpop.eup %11028  ;;  %11030 = vpow2.f32 %v8944_v13 }
0x1f8a   :  { %v8958_v61 = vsel %vm173_vm1, %v14379_v28, 0.0 }
0x1f8f   :  { %v14384_v20 = vpop.eup %11030 }
0x1f90   :  { %v14368_v21 = vpop.f32.mrf.mxu0  ;;  %v8961_v39 = vsel %vm173_vm1, %v14384_v20, 0.0 }
0x1f96   :  { %v14370_v47 = vpop.f32.mrf.mxu3 }
0x1f9d   :  { %v8787_v2 = vpop.f32.mrf.mxu0 }
0x1f9e   :  { %v8905_v52 = vmul.f32 0.35355338, %v8787_v2  ;;  %v14372_v32 = vpop.f32.mrf.mxu3 }
0x1fa0   :  { %v8919_v50 = vsel %vm173_vm1, %v8905_v52, -inf }
0x1fa1   :  { %8920 = vmax.xlane.f32.xlu0 %v8919_v50 }
0x1fa6   :  { %v8759_v31 = vpop.f32.mrf.mxu3 }
0x1fa7   :  { %v8904_v11 = vmul.f32 0.35355338, %v8759_v31 }
0x1fa8   :  { %v8815_v18 = vpop.f32.mrf.mxu1 }
0x1fa9   :  { %v8906_v57 = vmul.f32 0.35355338, %v8815_v18  ;;  %v8916_v12 = vsel %vm173_vm1, %v8904_v11, -inf }
0x1faa   :  { %8917 = vmax.xlane.f32.xlu2 %v8916_v12 }
0x1fab   :  { %v8922_v62 = vsel %vm173_vm1, %v8906_v57, -inf }
0x1fac   :  { %8923 = vmax.xlane.f32.xlu1 %v8922_v62 }
0x1fb2   :  { %8926 = vmax.xlane.f32.xlu2 %v8925_v53 }
0x1fb4   :  { %8959 = vadd.xlane.f32.xlu1 %v8958_v61 }
0x1fb6   :  { %v8871_v42 = vpop.f32.mrf.mxu3 }
0x1fb7   :  { %v14392_v56 = vmul.f32 0.35355338, %v8871_v42 }
0x1fb8   :  { %v8899_v51 = vpop.f32.mrf.mxu0 }
0x1fb9   :  { %v14386_v15 = vmul.f32 0.35355338, %v8899_v51  ;;  %v8928_v8 = vsel %vm173_vm1, %v14392_v56, -inf }
0x1fba   :  { %8962 = vadd.xlane.f32.xlu2 %v8961_v39 }
0x1fbb   :  { %v8931_v5 = vsel %vm173_vm1, %v14386_v15, -inf }
0x1fbc   :  { %8932 = vmax.xlane.f32.xlu0 %v8931_v5 }
0x1fc4   :  { %8929 = vmax.xlane.f32.xlu0 %v8928_v8 }
0x1fd2   :  { %10554 = vrot.lane.b32.xlu2 %v15005_v48, %s11178_s6 }
0x2014   :  { %v8921_v35 = vpop.xlane.xlu0 %8920 }
0x2015   :  { %v8937_v29 = vsub.f32 %v8905_v52, %v8921_v35 }
0x2017   :  { %v8948_v33 = vmul.f32 1.442695, %v8937_v29 }
0x2019   :  { %11032 = vpow2.f32 %v8948_v33 }
0x201d   :  { %v8918_v49 = vpop.xlane.xlu2 %8917 }
0x201e   :  { %v8936_v14 = vsub.f32 %v8904_v11, %v8918_v49 }
0x201f   :  { %v14400_v1 = vpop.eup %11032  ;;  %v8924_v30 = vpop.xlane.xlu1 %8923 }
0x2020   :  { %v8946_v7 = vmul.f32 1.442695, %v8936_v14  ;;  %v8938_v2 = vsub.f32 %v8906_v57, %v8924_v30  ;;  %v8967_v44 = vsel %vm173_vm1, %v14400_v1, 0.0 }
0x2021   :  { %8968 = vadd.xlane.f32.xlu0 %v8967_v44 }
0x2022   :  { %11034 = vpow2.f32 %v8946_v7  ;;  %v8950_v50 = vmul.f32 1.442695, %v8938_v2 }
0x2024   :  { %11036 = vpow2.f32 %v8950_v50 }
0x2025   :  { %v8927_v3 = vpop.xlane.xlu2 %8926 }
0x2026   :  { %v8939_v25 = vsub.f32 %v8907_v45, %v8927_v3 }
0x2027   :  { %v8960_v6 = vpop.xlane.xlu1 %8959 }
0x2028   :  { %v14404_v52 = vpop.eup %11034  ;;  %v8952_v59 = vmul.f32 1.442695, %v8939_v25  ;;  %11038 = vrcp.f32 %v8960_v6  ;;  %v8993_v13 = vand.u32 2147483648, %v8960_v6  ;;  %v8991_v53 = vand.u32 2147483647, %v8960_v6 }
0x2029   :  { %v8964_v9 = vsel %vm173_vm1, %v14404_v52, 0.0  ;;  %vm8987_vm8 = vweird.f32 %v8960_v6 }
0x202a   :  { %v14408_v31 = vpop.eup %11036  ;;  %11040 = vpow2.f32 %v8952_v59  ;;  %8965 = vadd.xlane.f32.xlu1 %v8964_v9  ;;  %v8994_v8 = vor.u32 1.1754944e-38, %v8993_v13  ;;  %vm8992_vm10 = vcmp.eq.f32.partialorder %v8991_v53, 8.507059e+37 }
0x202b   :  { %v8970_v11 = vsel %vm173_vm1, %v14408_v31, 0.0 }
0x202c   :  { %8971 = vadd.xlane.f32.xlu0 %v8970_v11 }
0x202d   :  { %v8963_v27 = vpop.xlane.xlu2 %8962 }
0x202e   :  { %v11039_v18 = vpop.eup %11038  ;;  %11042 = vrcp.f32 %v8963_v27  ;;  %v9008_v30 = vand.u32 2147483648, %v8963_v27  ;;  %v9006_v50 = vand.u32 2147483647, %v8963_v27  ;;  %vm9002_vm12 = vweird.f32 %v8963_v27 }
0x202f   :  { %v8983_v57 = vmul.f32 %v11039_v18, %v8960_v6  ;;  %v8933_v12 = vpop.xlane.xlu0 %8932  ;;  %vm8988_vm7 = vweird.f32 %v11039_v18 }
0x2030   :  { %v14412_v23 = vpop.eup %11040  ;;  %vm8989_vm9 = vmor %vm8987_vm8, %vm8988_vm7  ;;  %v9009_v6 = vor.u32 1.1754944e-38, %v9008_v30  ;;  %vm9007_vm14 = vcmp.eq.f32.partialorder %v9006_v50, 8.507059e+37 }
0x2031   :  { %v8984_v62 = vsub.f32 1.0, %v8983_v57  ;;  %v8973_v61 = vsel %vm173_vm1, %v14412_v23, 0.0 }
0x2033   :  { %v8985_v45 = vmul.f32 %v11039_v18, %v8984_v62 }
0x2034   :  { %v11043_v51 = vpop.eup %11042  ;;  %8974 = vadd.xlane.f32.xlu0 %v8973_v61 }
0x2035   :  { %v8986_v39 = vadd.f32 %v11039_v18, %v8985_v45  ;;  %v8998_v5 = vmul.f32 %v11043_v51, %v8963_v27  ;;  %v10555_v42 = vpop.permute.xlu2 %10554  ;;  %vm9003_vm11 = vweird.f32 %v11043_v51 }
0x2036   :  { %v10557_v48 = vunpack.i.h.bf16 %v10555_v42  ;;  %v10556_v35 = vunpack.i.l.bf16 %v10555_v42  ;;  %vm9004_vm13 = vmor %vm9002_vm12, %vm9003_vm11 }
0x2037   :  { %v8990_v29 = vsel %vm8989_vm9, %v11039_v18, %v8986_v39  ;;  %v8999_v33 = vsub.f32 1.0, %v8998_v5  ;;  %v8930_v49 = vpop.xlane.xlu0 %8929  ;;  %v10563_v18 = vpack.i.bf16 %v13914_v17, %v13835_v40  ;;  %v15007_v40 = vld [vmem:[#allocation16_spill] sm:$0xff] }
0x2038   :  { %v8995_v14 = vsel %vm8992_vm10, %v8994_v8, %v8990_v29  ;;  %v8940_v7 = vsub.f32 %v14392_v56, %v8930_v49  ;;  %9123 = vmatpush.msrb.mxu1 %v10556_v35  ;;  %9149 = vmatpush.msra.mxu2 %v10557_v48 }
0x2039   :  { %v8996_v2 = vmul.f32 %v14379_v28, %v8995_v14  ;;  %v9000_v44 = vmul.f32 %v11043_v51, %v8999_v33  ;;  %v10558_v28 = vpack.i.bf16 %v13776_v34, %v13783_v10  ;;  %v8941_v34 = vsub.f32 %v14386_v15, %v8933_v12 }
0x203a   :  { %v8954_v3 = vmul.f32 1.442695, %v8940_v7 }
0x203b   :  { %v9001_v25 = vadd.f32 %v11043_v51, %v9000_v44  ;;  %10322 = vmatmul.msk.f32.vlgmr.msrb.gmra.mxu1 %vm173_vm1, %v8996_v2  ;;  %v8956_v10 = vmul.f32 1.442695, %v8941_v34 }
0x203c   :  { %11044 = vpow2.f32 %v8954_v3 }
0x203d   :  { %v9005_v59 = vsel %vm9004_vm13, %v11043_v51, %v9001_v25  ;;  %11046 = vpow2.f32 %v8956_v10 }
0x203e   :  { %v9010_v9 = vsel %vm9007_vm14, %v9009_v6, %v9005_v59 }
0x203f   :  { %v9011_v56 = vmul.f32 %v14384_v20, %v9010_v9  ;;  %v15006_v20 = vpack.i.bf16 %v13530_v46, %v13522_v41 }
0x2041   :  { %10323 = vmatmul.msk.f32.vlgmr.msra.gmra.mxu2 %vm173_vm1, %v9011_v56 }
0x2042   :  { %v14423_v11 = vpop.eup %11044 }
0x2043   :  { %10559 = vrot.lane.b32.xlu1 %v10558_v28, %s11178_s6  ;;  %v8976_v27 = vsel %vm173_vm1, %v14423_v11, 0.0  ;;  %v14448_v17 = vpop.eup %11046 }
0x2044   :  { %8977 = vadd.xlane.f32.xlu2 %v8976_v27 }
0x2048   :  { %10564 = vrot.lane.b32.xlu0 %v10563_v18, %s11178_s6 }
0x2050   :  { %9258 = vrot.lane.b32.xlu0 %v13839_v4, %s11178_s6  ;;  %v15008_v4 = vpack.i.bf16 %v13543_v55, %v15007_v40 }
0x2058   :  { %9284 = vrot.lane.b32.xlu0 %v13922_v22, %s11178_s6  ;;  %v8979_v22 = vsel %vm173_vm1, %v14448_v17, 0.0 }
0x205c   :  { %9318 = vrot.lane.b32.xlu2 %v14150_v36, %s11166_s26 }
0x2060   :  { %10569 = vrot.lane.b32.xlu0 %v15006_v20, %s11167_s9 }
0x2064   :  { %9352 = vrot.lane.b32.xlu2 %v14326_v58, %s11179_s7 }
0x2068   :  { %10574 = vrot.lane.b32.xlu0 %v15008_v4, %s11167_s9 }
0x206c   :  { %9354 = vrot.lane.b32.xlu2 %v14370_v47, %s11179_s7 }
0x206d   :  { %8980 = vadd.xlane.f32.xlu1 %v8979_v22 }
0x2074   :  { %9356 = vrot.lane.b32.xlu2 %v14366_v19, %s11179_s7 }
0x207c   :  { %9358 = vrot.lane.b32.xlu2 %v14328_v37, %s11179_s7 }
0x2084   :  { %9360 = vrot.lane.b32.xlu2 %v14330_v38, %s11179_s7 }
0x2086   :  { %9350 = vrot.lane.b32.xlu1 %v14324_v16, %s11179_s7 }
0x208c   :  { %9362 = vrot.lane.b32.xlu2 %v14372_v32, %s11179_s7 }
0x208e   :  { %9322 = vrot.lane.b32.xlu1 %v14184_v24, %s11166_s26 }
0x2094   :  { %9364 = vrot.lane.b32.xlu2 %v14368_v21, %s11179_s7  ;;  %v8969_v41 = vpop.xlane.xlu0 %8968 }
0x2095   :  { %11048 = vrcp.f32 %v8969_v41  ;;  %v9036_v15 = vand.u32 2147483647, %v8969_v41  ;;  %v9038_v57 = vand.u32 2147483648, %v8969_v41  ;;  %vm9032_vm6 = vweird.f32 %v8969_v41 }
0x2096   :  { %9324 = vrot.lane.b32.xlu1 %v14178_v43, %s11166_s26 }
0x2097   :  { %vm14484_vm7 = vcmp.eq.f32.partialorder %v9036_v15, 8.507059e+37  ;;  %v9039_v5 = vor.u32 1.1754944e-38, %v9038_v57 }
0x209b   :  { %v11049_v55 = vpop.eup %11048 }
0x209c   :  { %v9028_v16 = vmul.f32 %v11049_v55, %v8969_v41  ;;  %vm9033_vm2 = vweird.f32 %v11049_v55 }
0x209d   :  { %v8966_v46 = vpop.xlane.xlu1 %8965  ;;  %vm14488_vm9 = vmor %vm9032_vm6, %vm9033_vm2 }
0x209e   :  { %11050 = vrcp.f32 %v8966_v46  ;;  %9326 = vrot.lane.b32.xlu1 %v14155_v0, %s11166_s26  ;;  %v9029_v38 = vsub.f32 1.0, %v9028_v16  ;;  %v9021_v62 = vand.u32 2147483647, %v8966_v46  ;;  %v9023_v53 = vand.u32 2147483648, %v8966_v46 }
0x209f   :  { %v14472_v36 = vpop.xlane.xlu0 %8971  ;;  %vm9017_vm3 = vweird.f32 %v8966_v46 }
0x20a0   :  { %11052 = vrcp.f32 %v14472_v36  ;;  %v9030_v47 = vmul.f32 %v11049_v55, %v9029_v38  ;;  %vm9022_vm10 = vcmp.eq.f32.partialorder %v9021_v62, 8.507059e+37  ;;  %v9053_v29 = vand.u32 2147483648, %v14472_v36 }
0x20a1   :  { %vm9047_vm13 = vweird.f32 %v14472_v36  ;;  %v9051_v30 = vand.u32 2147483647, %v14472_v36 }
0x20a2   :  { %v9031_v45 = vadd.f32 %v11049_v55, %v9030_v47  ;;  %v9054_v28 = vor.u32 1.1754944e-38, %v9053_v29 }
0x20a4   :  { %v11051_v24 = vpop.eup %11050  ;;  %v9035_v48 = vsel %vm14488_vm9, %v11049_v55, %v9031_v45 }
0x20a5   :  { %v9013_v58 = vmul.f32 %v11051_v24, %v8966_v46  ;;  %vm9018_vm15 = vweird.f32 %v11051_v24  ;;  %v9040_v2 = vsel %vm14484_vm7, %v9039_v5, %v9035_v48 }
0x20a6   :  { %v14475_v37 = vpop.eup %11052  ;;  %9328 = vrot.lane.b32.xlu1 %v14139_v60, %s11166_s26  ;;  %vm9019_vm8 = vmor %vm9017_vm3, %vm9018_vm15  ;;  %v9041_v10 = vmul.f32 %v14400_v1, %v9040_v2  ;;  %vm9052_vm3 = vcmp.eq.f32.partialorder %v9051_v30, 8.507059e+37  ;;  %v15018_v30 = vld [vmem:[#allocation24_spill] sm:$0xff] }
0x20a7   :  { %v9014_v43 = vsub.f32 1.0, %v9013_v58  ;;  %v9043_v19 = vmul.f32 %v14475_v37, %v14472_v36  ;;  %v8975_v21 = vpop.xlane.xlu0 %8974  ;;  %vm9048_vm11 = vweird.f32 %v14475_v37 }
0x20a8   :  { %11054 = vrcp.f32 %v8975_v21  ;;  %v9068_v49 = vand.u32 2147483648, %v8975_v21  ;;  %v9066_v7 = vand.u32 2147483647, %v8975_v21  ;;  %vm14501_vm14 = vmor %vm9047_vm13, %vm9048_vm11  ;;  %vm9062_vm15 = vweird.f32 %v8975_v21 }
0x20a9   :  { %v9015_v0 = vmul.f32 %v11051_v24, %v9014_v43  ;;  %v9044_v32 = vsub.f32 1.0, %v9043_v19 }
0x20aa   :  { %v9069_v18 = vor.u32 1.1754944e-38, %v9068_v49  ;;  %vm9067_vm6 = vcmp.eq.f32.partialorder %v9066_v7, 8.507059e+37 }
0x20ab   :  { %v9016_v12 = vadd.f32 %v11051_v24, %v9015_v0  ;;  %v9045_v60 = vmul.f32 %v14475_v37, %v9044_v32 }
0x20ad   :  { %v9020_v42 = vsel %vm9019_vm8, %v11051_v24, %v9016_v12  ;;  %v9046_v35 = vadd.f32 %v14475_v37, %v9045_v60 }
0x20ae   :  { %v11055_v13 = vpop.eup %11054  ;;  %9330 = vrot.lane.b32.xlu1 %v14189_v63, %s11166_s26  ;;  %v9024_v63 = vor.u32 1.1754944e-38, %v9023_v53 }
0x20af   :  { %v9058_v61 = vmul.f32 %v11055_v13, %v8975_v21  ;;  %vm9063_vm12 = vweird.f32 %v11055_v13  ;;  %v9050_v25 = vsel %vm14501_vm14, %v14475_v37, %v9046_v35  ;;  %v15017_v35 = vld [vmem:[#allocation10_spill] sm:$0xff] }
0x20b0   :  { %v9025_v14 = vsel %vm9022_vm10, %v9024_v63, %v9020_v42  ;;  %vm14508_vm2 = vmor %vm9062_vm15, %vm9063_vm12  ;;  %v9055_v40 = vsel %vm9052_vm3, %v9054_v28, %v9050_v25 }
0x20b1   :  { %v9059_v8 = vsub.f32 1.0, %v9058_v61  ;;  %v9026_v56 = vmul.f32 %v14404_v52, %v9025_v14  ;;  %v9056_v41 = vmul.f32 %v14408_v31, %v9055_v40 }
0x20b3   :  { %v9060_v33 = vmul.f32 %v11055_v13, %v9059_v8 }
0x20b5   :  { %v9061_v50 = vadd.f32 %v11055_v13, %v9060_v33  ;;  %v10560_v3 = vpop.permute.xlu1 %10559 }
0x20b6   :  { %v10562_v59 = vunpack.i.h.bf16 %v10560_v3  ;;  %v10561_v9 = vunpack.i.l.bf16 %v10560_v3  ;;  %9332 = vrot.lane.b32.xlu1 %v14180_v54, %s11166_s26 }
0x20b7   :  { %v9065_v27 = vsel %vm14508_vm2, %v11055_v13, %v9061_v50  ;;  %v8978_v34 = vpop.xlane.xlu2 %8977 }
0x20b8   :  { %11056 = vrcp.f32 %v8978_v34  ;;  %v9125_v20 = vpop.f32.mrf.mxu1  ;;  %9175 = vmatpush.msrb.mxu3 %v10561_v9  ;;  %9201 = vmatpush.msrb.mxu0 %v10562_v59  ;;  %v9070_v4 = vsel %vm9067_vm6, %v9069_v18, %v9065_v27  ;;  %v9083_v16 = vand.u32 2147483648, %v8978_v34  ;;  %v9081_v37 = vand.u32 2147483647, %v8978_v34 }
0x20b9   :  { %10324 = vmatmul.msk.f32.vlgmr.msrb.gmra.mxu3 %vm173_vm1, %v9026_v56  ;;  %9382 = vrot.lane.b32.xlu0 %v9125_v20, %s11180_s8  ;;  %v9071_v1 = vmul.f32 %v14412_v23, %v9070_v4  ;;  %vm9077_vm8 = vweird.f32 %v8978_v34 }
0x20ba   :  { %10325 = vmatmul.msk.f32.vlgmr.msrb.gmra.mxu0 %vm173_vm1, %v9041_v10  ;;  %v10565_v54 = vpop.permute.xlu0 %10564  ;;  %v9084_v23 = vor.u32 1.1754944e-38, %v9083_v16  ;;  %vm9082_vm10 = vcmp.eq.f32.partialorder %v9081_v37, 8.507059e+37 }
0x20bb   :  { %v10567_v52 = vunpack.i.h.bf16 %v10565_v54  ;;  %v10566_v22 = vunpack.i.l.bf16 %v10565_v54  ;;  %v15019_v54 = vld [vmem:[#allocation13_spill] sm:$0xff] }
0x20bd   :  { %9227 = vmatpush.msra.mxu1 %v10566_v22  ;;  %9253 = vmatpush.msrb.mxu2 %v10567_v52 }
0x20be   :  { %v11057_v46 = vpop.eup %11056  ;;  %10326 = vmatmul.msk.f32.vlgmr.msra.gmra.mxu1 %vm173_vm1, %v9056_v41  ;;  %10327 = vmatmul.msk.f32.vlgmr.msrb.gmra.mxu2 %vm173_vm1, %v9071_v1 }
0x20bf   :  { %v9073_v55 = vmul.f32 %v11057_v46, %v8978_v34  ;;  %vm9078_vm7 = vweird.f32 %v11057_v46  ;;  %v9319_v48 = vpop.permute.xlu2 %9318  ;;  %v14548_v34 = vld [vmem:[#allocation4 + $0x10] sm:$0xff] }
0x20c0   :  { %vm9079_vm9 = vmor %vm9077_vm8, %vm9078_vm7  ;;  %v9406_v29 = vsel %vm173_vm1, %v15017_v35, %v9319_v48  ;;  %v14551_v10 = vperm.slane %v14548_v34, 3 }
0x20c1   :  { %v9074_v36 = vsub.f32 1.0, %v9073_v55  ;;  %9320 = vrot.lane.b32.xlu0 %v14137_v26, %s11166_s26 }
0x20c2   :  { %v9259_v24 = vpop.permute.xlu0 %9258 }
0x20c3   :  { %v9075_v58 = vmul.f32 %v11057_v46, %v9074_v36  ;;  %9279 = vmatpush.msra.mxu3 %v9259_v24  ;;  %v15020_v36 = vld [vmem:[#allocation11_spill] sm:$0xff] }
0x20c4   :  { %v9151_v19 = vpop.f32.mrf.mxu2 }
0x20c5   :  { %v9076_v31 = vadd.f32 %v11057_v46, %v9075_v58 }
0x20c7   :  { %v9080_v38 = vsel %vm9079_vm9, %v11057_v46, %v9076_v31  ;;  %v9353_v2 = vpop.permute.xlu2 %9352 }
0x20c8   :  { %v9085_v43 = vsel %vm9082_vm10, %v9084_v23, %v9080_v38 }
0x20c9   :  { %v9086_v21 = vmul.f32 %v14423_v11, %v9085_v43  ;;  %9384 = vrot.lane.b32.xlu0 %v9151_v19, %s11180_s8 }
0x20ca   :  { %v9285_v0 = vpop.permute.xlu0 %9284 }
0x20cb   :  { %10328 = vmatmul.msk.f32.vlgmr.msra.gmra.mxu3 %vm173_vm1, %v9086_v21  ;;  %9305 = vmatpush.msra.mxu0 %v9285_v0 }
0x20cf   :  { %v9355_v18 = vpop.permute.xlu2 %9354 }
0x20d2   :  { %v10570_v61 = vpop.permute.xlu0 %10569 }
0x20d3   :  { %v10572_v51 = vunpack.i.h.bf16 %v10570_v61  ;;  %v10571_v39 = vunpack.i.l.bf16 %v10570_v61 }
0x20d5   :  { %9483 = vmatpush.msrb.mxu1 %v10571_v39 }
0x20d7   :  { %9484 = vmatpush.msrb.mxu1 %v10572_v51  ;;  %v9357_v46 = vpop.permute.xlu2 %9356  ;;  %v15023_v51 = vld [vmem:[#allocation12_spill] sm:$0xff] }
0x20da   :  { %v10575_v5 = vpop.permute.xlu0 %10574 }
0x20db   :  { %v10577_v42 = vunpack.i.h.bf16 %v10575_v5  ;;  %v10576_v8 = vunpack.i.l.bf16 %v10575_v5 }
0x20dd   :  { %9485 = vmatpush.msrb.mxu1 %v10576_v8 }
0x20df   :  { %9486 = vmatpush.msrb.mxu1 %v10577_v42  ;;  %v9359_v19 = vpop.permute.xlu2 %9358 }
0x20e0   :  { %v8981_v26 = vpop.xlane.xlu1 %8980 }
0x20e1   :  { %11058 = vrcp.f32 %v8981_v26  ;;  %v9098_v57 = vand.u32 2147483648, %v8981_v26  ;;  %v9096_v62 = vand.u32 2147483647, %v8981_v26  ;;  %vm9092_vm12 = vweird.f32 %v8981_v26 }
0x20e3   :  { %v9099_v45 = vor.u32 1.1754944e-38, %v9098_v57  ;;  %vm9097_vm14 = vcmp.eq.f32.partialorder %v9096_v62, 8.507059e+37 }
0x20e7   :  { %v11059_v47 = vpop.eup %11058  ;;  %v9361_v61 = vpop.permute.xlu2 %9360 }
0x20e8   :  { %v9088_v32 = vmul.f32 %v11059_v47, %v8981_v26  ;;  %vm9093_vm11 = vweird.f32 %v11059_v47 }
0x20e9   :  { %vm9094_vm13 = vmor %vm9092_vm12, %vm9093_vm11 }
0x20ea   :  { %v9089_v15 = vsub.f32 1.0, %v9088_v32  ;;  %v15021_v32 = vld [vmem:[#allocation15_spill] sm:$0xff] }
0x20ec   :  { %v9090_v12 = vmul.f32 %v11059_v47, %v9089_v15 }
0x20ee   :  { %v9091_v13 = vadd.f32 %v11059_v47, %v9090_v12  ;;  %v15022_v12 = vld [vmem:[#allocation17_spill] sm:$0xff] }
0x20f0   :  { %v9095_v11 = vsel %vm9094_vm13, %v11059_v47, %v9091_v13 }
0x20f1   :  { %v9100_v53 = vsel %vm9097_vm14, %v9099_v45, %v9095_v11 }
0x20f2   :  { %v9101_v60 = vmul.f32 %v14448_v17, %v9100_v53 }
0x20f4   :  { %10329 = vmatmul.msk.f32.vlgmr.msra.gmra.mxu0 %vm173_vm1, %v9101_v60 }
0x20f8   :  { %v9351_v63 = vpop.permute.xlu1 %9350 }
0x20f9   :  { %v9414_v33 = vsel %vm2811_vm4, %v9406_v29, %v9351_v63 }
0x2100   :  { %v9323_v27 = vpop.permute.xlu1 %9322 }
0x2101   :  { %v9408_v52 = vsel %vm173_vm1, %v15019_v54, %v9323_v27 }
0x2102   :  { %v9416_v41 = vsel %vm2811_vm4, %v9408_v52, %v9355_v18 }
0x2108   :  { %v9325_v40 = vpop.permute.xlu1 %9324 }
0x2109   :  { %v9409_v16 = vsel %vm173_vm1, %v15020_v36, %v9325_v40 }
0x210a   :  { %v9417_v31 = vsel %vm2811_vm4, %v9409_v16, %v9357_v46 }
0x2110   :  { %v9327_v58 = vpop.permute.xlu1 %9326 }
0x2111   :  { %v9410_v15 = vsel %vm173_vm1, %v15021_v32, %v9327_v58 }
0x2112   :  { %v9418_v45 = vsel %vm2811_vm4, %v9410_v15, %v9359_v19 }
0x2118   :  { %v9329_v13 = vpop.permute.xlu1 %9328 }
0x2119   :  { %v9411_v39 = vsel %vm173_vm1, %v15023_v51, %v9329_v13 }
0x211a   :  { %v9419_v8 = vsel %vm2811_vm4, %v9411_v39, %v9361_v61 }
0x2120   :  { %v9331_v29 = vpop.permute.xlu1 %9330 }
0x212b   :  { %v9383_v17 = vpop.permute.xlu0 %9382 }
0x212c   :  { %v9422_v49 = vsel %vm2820_vm5, %v9414_v33, %v9383_v17 }
0x212d   :  { %10330 = vmatmul.msk.f32.vlgmr.msrb.gmra.mxu1 %vm69_vm0, %v9422_v49  ;;  %v15024_v49 = vld [vmem:[#allocation25_spill] sm:$0xff] }
0x2133   :  { %v9321_v14 = vpop.permute.xlu0 %9320 }
0x2134   :  { %v9407_v7 = vsel %vm173_vm1, %v15018_v30, %v9321_v14  ;;  %v9412_v14 = vsel %vm173_vm1, %v15024_v49, %v9331_v29  ;;  %v15025_v30 = vld [vmem:[#allocation18_spill] sm:$0xff] }
0x2135   :  { %v9415_v44 = vsel %vm2811_vm4, %v9407_v7, %v9353_v2  ;;  %v9363_v2 = vpop.permute.xlu2 %9362 }
0x2137   :  { %v9203_v6 = vpop.f32.mrf.mxu0 }
0x213b   :  { %v9385_v50 = vpop.permute.xlu0 %9384  ;;  %v9229_v59 = vpop.f32.mrf.mxu1 }
0x213c   :  { %v9423_v3 = vsel %vm2820_vm5, %v9415_v44, %v9385_v50  ;;  %v9177_v25 = vpop.f32.mrf.mxu3  ;;  %v9420_v44 = vsel %vm2811_vm4, %v9412_v14, %v9363_v2  ;;  %v15031_v2 = vld [vmem:[#allocation23_spill] sm:$0xff] }
0x213d   :  { %9386 = vrot.lane.b32.xlu0 %v9177_v25, %s11180_s8  ;;  %10331 = vmatmul.msk.f32.gmra.mxu1 %vm69_vm0, %v9423_v3 }
0x2141   :  { %v9255_v9 = vpop.f32.mrf.mxu2 }
0x2145   :  { %9388 = vrot.lane.b32.xlu0 %v9203_v6, %s11180_s8  ;;  %v9333_v6 = vpop.permute.xlu1 %9332 }
0x214d   :  { %9390 = vrot.lane.b32.xlu0 %v9229_v59, %s11180_s8  ;;  %v15026_v59 = vld [vmem:[#allocation14_spill] sm:$0xff] }
0x214e   :  { %v9281_v56 = vpop.f32.mrf.mxu3 }
0x2155   :  { %9392 = vrot.lane.b32.xlu0 %v9255_v9, %s11180_s8  ;;  %v9413_v9 = vsel %vm173_vm1, %v15026_v59, %v9333_v6 }
0x215d   :  { %9394 = vrot.lane.b32.xlu0 %v9281_v56, %s11180_s8  ;;  %v9365_v56 = vpop.permute.xlu2 %9364 }
0x2171   :  { %v9307_v28 = vpop.f32.mrf.mxu0 }
0x2172   :  { %9396 = vrot.lane.b32.xlu0 %v9307_v28, %s11180_s8  ;;  %v9421_v28 = vsel %vm2811_vm4, %v9413_v9, %v9365_v56 }
0x21aa   :  { %v9488_v20 = vpop.f32.mrf.mxu1 }
0x21ab   :  { %v9489_v4 = vadd.f32 %v9488_v20, %v14551_v10 }
0x21ad   :  { %v9520_v22 = vmul.f32 1.442695, %v9489_v4  ;;  %vm9512_vm15 = vcmp.gt.f32.partialorder %v9489_v4, 0.0 }
0x21af   :  { %11060 = vpow2.f32 %v9520_v22  ;;  %v9387_v1 = vpop.permute.xlu0 %9386 }
0x21b0   :  { %v9424_v55 = vsel %vm2820_vm5, %v9416_v41, %v9387_v1 }
0x21b1   :  { %10332 = vmatmul.msk.f32.gmra.mxu1 %vm69_vm0, %v9424_v55 }
0x21b5   :  { %v11061_v24 = vpop.eup %11060 }
0x21b6   :  { %v10338_v37 = vadd.f32 -1.0, %v11061_v24 }
0x21b7   :  { %v9389_v23 = vpop.permute.xlu0 %9388 }
0x21b8   :  { %v9544_v38 = vmul.f32 1.6732632, %v10338_v37  ;;  %v9425_v43 = vsel %vm2820_vm5, %v9417_v31, %v9389_v23  ;;  %v15027_v31 = vld [vmem:[#allocation19_spill] sm:$0xff] }
0x21b9   :  { %10333 = vmatmul.msk.f32.gmra.mxu1 %vm69_vm0, %v9425_v43 }
0x21ba   :  { %v9552_v21 = vsel %vm9512_vm15, %v9489_v4, %v9544_v38  ;;  %v9491_v0 = vpop.f32.mrf.mxu1 }
0x21bb   :  { %v9560_v26 = vmul.f32 1.050701, %v9552_v21  ;;  %v9492_v47 = vadd.f32 %v9491_v0, %v14551_v10 }
0x21bd   :  { %v9522_v57 = vmul.f32 1.442695, %v9492_v47  ;;  %v14568_v62 = vadd.f32 %v9560_v26, %v15022_v12  ;;  %vm9513_vm2 = vcmp.gt.f32.partialorder %v9492_v47, 0.0 }
0x21bf   :  { %11062 = vpow2.f32 %v9522_v57  ;;  %v9391_v11 = vpop.permute.xlu0 %9390  ;;  %v9576_v53 = vsel %vm69_vm0, %v14568_v62, 0.0  ;;  %v15028_v57 = vld [vmem:[#allocation21_spill] sm:$0xff] }
0x21c0   :  { %v9426_v60 = vsel %vm2820_vm5, %v9418_v45, %v9391_v11  ;;  %9577 = vadd.xlane.f32.xlu1 %v9576_v53 }
0x21c1   :  { %10334 = vmatmul.msk.f32.gmra.mxu1 %vm69_vm0, %v9426_v60 }
0x21c5   :  { %v11063_v5 = vpop.eup %11062 }
0x21c6   :  { %v10339_v42 = vadd.f32 -1.0, %v11063_v5 }
0x21c7   :  { %v9393_v48 = vpop.permute.xlu0 %9392 }
0x21c8   :  { %v9545_v63 = vmul.f32 1.6732632, %v10339_v42  ;;  %v9427_v35 = vsel %vm2820_vm5, %v9419_v8, %v9393_v48  ;;  %v15029_v42 = vld [vmem:[#allocation22_spill] sm:$0xff] }
0x21c9   :  { %10335 = vmatmul.msk.f32.gmra.mxu1 %vm69_vm0, %v9427_v35 }
0x21ca   :  { %v9553_v33 = vsel %vm9513_vm2, %v9492_v47, %v9545_v63 }
0x21cb   :  { %v9561_v17 = vmul.f32 1.050701, %v9553_v33 }
0x21cd   :  { %v14583_v7 = vadd.f32 %v9561_v17, %v15025_v30  ;;  %v15030_v17 = vld [vmem:[#allocation9_spill] sm:$0xff] }
0x21cf   :  { %v9395_v50 = vpop.permute.xlu0 %9394  ;;  %v9579_v3 = vsel %vm69_vm0, %v14583_v7, 0.0 }
0x21d0   :  { %v9428_v25 = vsel %vm2820_vm5, %v9420_v44, %v9395_v50  ;;  %9580 = vadd.xlane.f32.xlu2 %v9579_v3 }
0x21d1   :  { %10336 = vmatmul.msk.f32.gmra.mxu1 %vm69_vm0, %v9428_v25 }
0x21e4   :  { %v9397_v27 = vpop.permute.xlu0 %9396 }
0x21e5   :  { %v9429_v18 = vsel %vm2820_vm5, %v9421_v28, %v9397_v27 }
0x21e6   :  { %10337 = vmatmul.msk.f32.gmra.mxu1 %vm69_vm0, %v9429_v18  ;;  %v15032_v18 = vld [vmem:[#allocation8_spill] sm:$0xff] }
0x222e   :  { %v9494_v20 = vpop.f32.mrf.mxu1 }
0x222f   :  { %v9495_v40 = vadd.f32 %v9494_v20, %v14551_v10 }
0x2231   :  { %v9524_v4 = vmul.f32 1.442695, %v9495_v40  ;;  %vm9514_vm1 = vcmp.gt.f32.partialorder %v9495_v40, 0.0 }
0x2233   :  { %11064 = vpow2.f32 %v9524_v4  ;;  %v9578_v35 = vpop.xlane.xlu1 %9577 }
0x2234   :  { %v9600_v49 = vmul.f32 %v9578_v35, %v15030_v17 }
0x2236   :  { %v9497_v54 = vpop.f32.mrf.mxu1  ;;  %v14615_v3 = vsub.f32 %v14568_v62, %v9600_v49 }
0x2237   :  { %v9498_v52 = vadd.f32 %v9497_v54, %v14551_v10 }
0x2238   :  { %v9616_v27 = vmul.f32 %v14615_v3, %v14615_v3 }
0x2239   :  { %v11065_v22 = vpop.eup %11064  ;;  %v9526_v41 = vmul.f32 1.442695, %v9498_v52  ;;  %vm9515_vm4 = vcmp.gt.f32.partialorder %v9498_v52, 0.0 }
0x223a   :  { %v10340_v1 = vadd.f32 -1.0, %v11065_v22  ;;  %v9624_v54 = vsel %vm69_vm0, %v9616_v27, 0.0 }
0x223b   :  { %11066 = vpow2.f32 %v9526_v41 }
0x223c   :  { %v9546_v46 = vmul.f32 1.6732632, %v10340_v1 }
0x223e   :  { %v9554_v55 = vsel %vm9514_vm1, %v9495_v40, %v9546_v46  ;;  %v9500_v36 = vpop.f32.mrf.mxu1 }
0x223f   :  { %v9562_v16 = vmul.f32 1.050701, %v9554_v55  ;;  %v9501_v24 = vadd.f32 %v9500_v36, %v14551_v10 }
0x2241   :  { %v11067_v58 = vpop.eup %11066  ;;  %v9528_v37 = vmul.f32 1.442695, %v9501_v24  ;;  %v14599_v23 = vadd.f32 %v9562_v16, %v15027_v31  ;;  %vm9516_vm5 = vcmp.gt.f32.partialorder %v9501_v24, 0.0 }
0x2242   :  { %v10341_v38 = vadd.f32 -1.0, %v11067_v58 }
0x2243   :  { %11068 = vpow2.f32 %v9528_v37  ;;  %v9582_v43 = vsel %vm69_vm0, %v14599_v23, 0.0  ;;  %v9581_v6 = vpop.xlane.xlu2 %9580 }
0x2244   :  { %v9547_v19 = vmul.f32 1.6732632, %v10341_v38  ;;  %9583 = vadd.xlane.f32.xlu0 %v9582_v43  ;;  %v9601_v56 = vmul.f32 %v9581_v6, %v15030_v17 }
0x2246   :  { %v9555_v21 = vsel %vm9515_vm4, %v9498_v52, %v9547_v19  ;;  %v9503_v0 = vpop.f32.mrf.mxu1  ;;  %v14623_v40 = vsub.f32 %v14583_v7, %v9601_v56  ;;  %v14668_v56 = vperm.slane %v14548_v34, 4 }
0x2247   :  { %v9563_v26 = vmul.f32 1.050701, %v9555_v21  ;;  %v9504_v47 = vadd.f32 %v9503_v0, %v14551_v10 }
0x2248   :  { %v9617_v41 = vmul.f32 %v14623_v40, %v14623_v40 }
0x2249   :  { %v11069_v32 = vpop.eup %11068  ;;  %v9530_v15 = vmul.f32 1.442695, %v9504_v47  ;;  %v14605_v12 = vadd.f32 %v9563_v26, %v15028_v57  ;;  %vm9517_vm3 = vcmp.gt.f32.partialorder %v9504_v47, 0.0 }
0x224a   :  { %v10342_v13 = vadd.f32 -1.0, %v11069_v32  ;;  %v9627_v1 = vsel %vm69_vm0, %v9617_v41, 0.0 }
0x224b   :  { %11070 = vpow2.f32 %v9530_v15  ;;  %v9585_v45 = vsel %vm69_vm0, %v14605_v12, 0.0 }
0x224c   :  { %v9548_v11 = vmul.f32 1.6732632, %v10342_v13  ;;  %9586 = vadd.xlane.f32.xlu2 %v9585_v45 }
0x224e   :  { %v9556_v53 = vsel %vm9516_vm5, %v9501_v24, %v9548_v11  ;;  %v9506_v60 = vpop.f32.mrf.mxu1  ;;  %v15033_v24 = vld [vmem:[#allocation20_spill] sm:$0xff] }
0x224f   :  { %v9564_v61 = vmul.f32 1.050701, %v9556_v53  ;;  %v9507_v51 = vadd.f32 %v9506_v60, %v14551_v10 }
0x2251   :  { %v11071_v39 = vpop.eup %11070  ;;  %v9532_v5 = vmul.f32 1.442695, %v9507_v51  ;;  %v9572_v8 = vadd.f32 %v9564_v61, %v15029_v42  ;;  %vm9518_vm6 = vcmp.gt.f32.partialorder %v9507_v51, 0.0 }
0x2252   :  { %v10343_v48 = vadd.f32 -1.0, %v11071_v39 }
0x2253   :  { %11072 = vpow2.f32 %v9532_v5  ;;  %v9588_v63 = vsel %vm69_vm0, %v9572_v8, 0.0 }
0x2254   :  { %v9549_v29 = vmul.f32 1.6732632, %v10343_v48  ;;  %9589 = vadd.xlane.f32.xlu1 %v9588_v63 }
0x2256   :  { %v9557_v33 = vsel %vm9517_vm3, %v9504_v47, %v9549_v29 }
0x2257   :  { %v9565_v14 = vmul.f32 1.050701, %v9557_v33 }
0x2259   :  { %v11073_v30 = vpop.eup %11072  ;;  %v9573_v44 = vadd.f32 %v9565_v14, %v15031_v2 }
0x225a   :  { %v10344_v50 = vadd.f32 -1.0, %v11073_v30 }
0x225b   :  { %v9591_v25 = vsel %vm69_vm0, %v9573_v44, 0.0 }
0x225c   :  { %v9550_v59 = vmul.f32 1.6732632, %v10344_v50  ;;  %9592 = vadd.xlane.f32.xlu0 %v9591_v25 }
0x225e   :  { %v9558_v9 = vsel %vm9518_vm6, %v9507_v51, %v9550_v59 }
0x225f   :  { %v9566_v28 = vmul.f32 1.050701, %v9558_v9 }
0x2261   :  { %v9574_v20 = vadd.f32 %v9566_v28, %v15032_v18 }
0x2263   :  { %v9509_v62 = vpop.f32.mrf.mxu1  ;;  %v9594_v4 = vsel %vm69_vm0, %v9574_v20, 0.0 }
0x2264   :  { %v9510_v52 = vadd.f32 %v9509_v62, %v14551_v10  ;;  %9595 = vadd.xlane.f32.xlu2 %v9594_v4  ;;  %9625 = vadd.xlane.f32.xlu0 %v9624_v54  ;;  %v14673_v62 = vperm.slane %v14548_v34, 5 }
0x2266   :  { %v9534_v22 = vmul.f32 1.442695, %v9510_v52  ;;  %vm9519_vm7 = vcmp.gt.f32.partialorder %v9510_v52, 0.0 }
0x2268   :  { %11074 = vpow2.f32 %v9534_v22 }
0x226c   :  { %9628 = vadd.xlane.f32.xlu2 %v9627_v1 }
0x226e   :  { %v11075_v46 = vpop.eup %11074 }
0x226f   :  { %v10345_v7 = vadd.f32 -1.0, %v11075_v46 }
0x2271   :  { %v9551_v55 = vmul.f32 1.6732632, %v10345_v7 }
0x2273   :  { %v9559_v36 = vsel %vm9519_vm7, %v9510_v52, %v9551_v55 }
0x2274   :  { %v9567_v16 = vmul.f32 1.050701, %v9559_v36 }
0x2276   :  { %v9575_v58 = vadd.f32 %v9567_v16, %v15033_v24 }
0x2278   :  { %v9597_v10 = vsel %vm69_vm0, %v9575_v58, 0.0 }
0x2279   :  { %9598 = vadd.xlane.f32.xlu1 %v9597_v10 }
0x22b7   :  { %v9584_v37 = vpop.xlane.xlu0 %9583 }
0x22b8   :  { %v9602_v31 = vmul.f32 %v9584_v37, %v15030_v17 }
0x22ba   :  { %v14635_v38 = vsub.f32 %v14599_v23, %v9602_v31 }
0x22bc   :  { %v9618_v43 = vmul.f32 %v14635_v38, %v14635_v38 }
0x22be   :  { %v9630_v19 = vsel %vm69_vm0, %v9618_v43, 0.0 }
0x22bf   :  { %v9587_v21 = vpop.xlane.xlu2 %9586  ;;  %9631 = vadd.xlane.f32.xlu1 %v9630_v19 }
0x22c0   :  { %v9603_v0 = vmul.f32 %v9587_v21, %v15030_v17 }
0x22c2   :  { %v14642_v26 = vsub.f32 %v14605_v12, %v9603_v0 }
0x22c4   :  { %v9619_v47 = vmul.f32 %v14642_v26, %v14642_v26 }
0x22c6   :  { %v9633_v32 = vsel %vm69_vm0, %v9619_v47, 0.0 }
0x22c7   :  { %9634 = vadd.xlane.f32.xlu0 %v9633_v32  ;;  %v9590_v23 = vpop.xlane.xlu1 %9589 }
0x22c8   :  { %v9604_v15 = vmul.f32 %v9590_v23, %v15030_v17 }
0x22ca   :  { %v14648_v57 = vsub.f32 %v9572_v8, %v9604_v15 }
0x22cc   :  { %v9620_v13 = vmul.f32 %v14648_v57, %v14648_v57 }
0x22ce   :  { %v9636_v45 = vsel %vm69_vm0, %v9620_v13, 0.0 }
0x22cf   :  { %v9593_v11 = vpop.xlane.xlu0 %9592  ;;  %9637 = vadd.xlane.f32.xlu2 %v9636_v45 }
0x22d0   :  { %v9605_v12 = vmul.f32 %v9593_v11, %v15030_v17 }
0x22d2   :  { %v14654_v53 = vsub.f32 %v9573_v44, %v9605_v12 }
0x22d4   :  { %v9621_v60 = vmul.f32 %v14654_v53, %v14654_v53 }
0x22d6   :  { %v9639_v61 = vsel %vm69_vm0, %v9621_v60, 0.0 }
0x22d7   :  { %v9596_v51 = vpop.xlane.xlu2 %9595  ;;  %9640 = vadd.xlane.f32.xlu1 %v9639_v61  ;;  %v9626_v39 = vpop.xlane.xlu0 %9625 }
0x22d8   :  { %v9606_v5 = vmul.f32 %v9596_v51, %v15030_v17  ;;  %v9648_v42 = vmul.f32 %v9626_v39, %v15030_v17 }
0x22da   :  { %v14661_v8 = vsub.f32 %v9574_v20, %v9606_v5  ;;  %v9656_v48 = vadd.f32 1e-05, %v9648_v42 }
0x22dc   :  { %11076 = vrsqrt.f32 %v9656_v48  ;;  %v9622_v63 = vmul.f32 %v14661_v8, %v14661_v8  ;;  %vm9670_vm9 = vweird.f32 %v9656_v48 }
0x22de   :  { %v9642_v35 = vsel %vm69_vm0, %v9622_v63, 0.0 }
0x22df   :  { %v9629_v29 = vpop.xlane.xlu2 %9628  ;;  %9643 = vadd.xlane.f32.xlu0 %v9642_v35 }
0x22e0   :  { %v9649_v33 = vmul.f32 %v9629_v29, %v15030_v17 }
0x22e2   :  { %v11077_v49 = vpop.eup %11076  ;;  %v9657_v14 = vadd.f32 1e-05, %v9649_v33 }
0x22e3   :  { %v9665_v30 = vmul.f32 %v11077_v49, %v9656_v48  ;;  %vm9671_vm8 = vweird.f32 %v11077_v49 }
0x22e4   :  { %11078 = vrsqrt.f32 %v9657_v14  ;;  %vm9672_vm10 = vmor %vm9670_vm9, %vm9671_vm8  ;;  %vm9680_vm12 = vweird.f32 %v9657_v14 }
0x22e5   :  { %v9666_v2 = vmul.f32 %v11077_v49, %v9665_v30 }
0x22e7   :  { %v9667_v44 = vmul.f32 0.5, %v9666_v2 }
0x22e9   :  { %v9668_v50 = vsub.f32 1.5, %v9667_v44 }
0x22ea   :  { %v11079_v25 = vpop.eup %11078 }
0x22eb   :  { %v9669_v6 = vmul.f32 %v11077_v49, %v9668_v50  ;;  %v9675_v59 = vmul.f32 %v11079_v25, %v9657_v14  ;;  %vm9681_vm11 = vweird.f32 %v11079_v25 }
0x22ec   :  { %v9599_v9 = vpop.xlane.xlu1 %9598  ;;  %vm9682_vm13 = vmor %vm9680_vm12, %vm9681_vm11 }
0x22ed   :  { %v9676_v28 = vmul.f32 %v11079_v25, %v9675_v59  ;;  %v9607_v27 = vmul.f32 %v9599_v9, %v15030_v17  ;;  %v9673_v18 = vsel %vm9672_vm10, %v11077_v49, %v9669_v6 }
0x22ee   :  { %v9744_v20 = vmul.f32 %v9673_v18, %v14615_v3 }
0x22ef   :  { %v9677_v4 = vmul.f32 0.5, %v9676_v28  ;;  %v14675_v54 = vsub.f32 %v9575_v58, %v9607_v27 }
0x22f0   :  { %v9753_v52 = vmul.f32 %v14668_v56, %v9744_v20 }
0x22f1   :  { %v9678_v22 = vsub.f32 1.5, %v9677_v4  ;;  %v9623_v41 = vmul.f32 %v14675_v54, %v14675_v54 }
0x22f2   :  { %v14681_v1 = vadd.f32 %v14673_v62, %v9753_v52 }
0x22f3   :  { %v9679_v46 = vmul.f32 %v11079_v25, %v9678_v22  ;;  %v9645_v3 = vsel %vm69_vm0, %v9623_v41, 0.0 }
0x22f4   :  { %9646 = vadd.xlane.f32.xlu2 %v9645_v3  ;;  %v9770_v7 = vsel %vm69_vm0, %v14681_v1, 0.0 }
0x22f5   :  { %9771 = vadd.xlane.f32.xlu1 %v9770_v7  ;;  %v9683_v55 = vsel %vm9682_vm13, %v11079_v25, %v9679_v46 }
0x22f6   :  { %v9745_v36 = vmul.f32 %v9683_v55, %v14623_v40 }
0x22f8   :  { %v9754_v16 = vmul.f32 %v14668_v56, %v9745_v36 }
0x22fa   :  { %v14689_v24 = vadd.f32 %v14673_v62, %v9754_v16 }
0x22fc   :  { %v9773_v58 = vsel %vm69_vm0, %v14689_v24, 0.0 }
0x22fd   :  { %9774 = vadd.xlane.f32.xlu0 %v9773_v58 }
0x2332   :  { %v9632_v10 = vpop.xlane.xlu1 %9631 }
0x2333   :  { %v9650_v37 = vmul.f32 %v9632_v10, %v15030_v17 }
0x2335   :  { %v9658_v31 = vadd.f32 1e-05, %v9650_v37 }
0x2337   :  { %11080 = vrsqrt.f32 %v9658_v31  ;;  %vm9690_vm15 = vweird.f32 %v9658_v31 }
0x233a   :  { %v9635_v43 = vpop.xlane.xlu0 %9634 }
0x233b   :  { %v9651_v19 = vmul.f32 %v9635_v43, %v15030_v17 }
0x233d   :  { %v11081_v21 = vpop.eup %11080  ;;  %v9659_v0 = vadd.f32 1e-05, %v9651_v19 }
0x233e   :  { %v9685_v40 = vmul.f32 %v11081_v21, %v9658_v31  ;;  %vm9691_vm14 = vweird.f32 %v11081_v21 }
0x233f   :  { %11082 = vrsqrt.f32 %v9659_v0  ;;  %vm9692_vm2 = vmor %vm9690_vm15, %vm9691_vm14  ;;  %vm9700_vm4 = vweird.f32 %v9659_v0 }
0x2340   :  { %v9686_v47 = vmul.f32 %v11081_v21, %v9685_v40 }
0x2342   :  { %v9687_v32 = vmul.f32 0.5, %v9686_v47  ;;  %v9638_v23 = vpop.xlane.xlu2 %9637 }
0x2343   :  { %v9652_v15 = vmul.f32 %v9638_v23, %v15030_v17 }
0x2344   :  { %v9688_v13 = vsub.f32 1.5, %v9687_v32 }
0x2345   :  { %v11083_v45 = vpop.eup %11082  ;;  %v9660_v11 = vadd.f32 1e-05, %v9652_v15 }
0x2346   :  { %v9689_v12 = vmul.f32 %v11081_v21, %v9688_v13  ;;  %v9695_v60 = vmul.f32 %v11083_v45, %v9659_v0  ;;  %vm9701_vm1 = vweird.f32 %v11083_v45 }
0x2347   :  { %11084 = vrsqrt.f32 %v9660_v11  ;;  %vm9702_vm5 = vmor %vm9700_vm4, %vm9701_vm1  ;;  %vm9710_vm6 = vweird.f32 %v9660_v11 }
0x2348   :  { %v9696_v61 = vmul.f32 %v11083_v45, %v9695_v60  ;;  %v9693_v51 = vsel %vm9692_vm2, %v11081_v21, %v9689_v12 }
0x2349   :  { %v9746_v39 = vmul.f32 %v9693_v51, %v14635_v38 }
0x234a   :  { %v9697_v5 = vmul.f32 0.5, %v9696_v61  ;;  %v9641_v42 = vpop.xlane.xlu1 %9640 }
0x234b   :  { %v9653_v48 = vmul.f32 %v9641_v42, %v15030_v17  ;;  %v9755_v63 = vmul.f32 %v14668_v56, %v9746_v39 }
0x234c   :  { %v9698_v35 = vsub.f32 1.5, %v9697_v5 }
0x234d   :  { %v11085_v29 = vpop.eup %11084  ;;  %v9661_v33 = vadd.f32 1e-05, %v9653_v48  ;;  %v14700_v49 = vadd.f32 %v14673_v62, %v9755_v63 }
0x234e   :  { %v9699_v14 = vmul.f32 %v11083_v45, %v9698_v35  ;;  %v9705_v30 = vmul.f32 %v11085_v29, %v9660_v11  ;;  %vm9711_vm3 = vweird.f32 %v11085_v29 }
0x234f   :  { %11086 = vrsqrt.f32 %v9661_v33  ;;  %v9776_v38 = vsel %vm69_vm0, %v14700_v49, 0.0  ;;  %vm9712_vm7 = vmor %vm9710_vm6, %vm9711_vm3  ;;  %vm9720_vm9 = vweird.f32 %v9661_v33 }
0x2350   :  { %v9706_v2 = vmul.f32 %v11085_v29, %v9705_v30  ;;  %9777 = vadd.xlane.f32.xlu2 %v9776_v38  ;;  %v9703_v44 = vsel %vm9702_vm5, %v11083_v45, %v9699_v14 }
0x2351   :  { %v9747_v50 = vmul.f32 %v9703_v44, %v14642_v26 }
0x2352   :  { %v9707_v25 = vmul.f32 0.5, %v9706_v2  ;;  %v9644_v6 = vpop.xlane.xlu0 %9643 }
0x2353   :  { %v9654_v59 = vmul.f32 %v9644_v6, %v15030_v17  ;;  %v9756_v9 = vmul.f32 %v14668_v56, %v9747_v50 }
0x2354   :  { %v9708_v28 = vsub.f32 1.5, %v9707_v25 }
0x2355   :  { %v11087_v27 = vpop.eup %11086  ;;  %v9662_v18 = vadd.f32 1e-05, %v9654_v59  ;;  %v14708_v20 = vadd.f32 %v14673_v62, %v9756_v9 }
0x2356   :  { %v9709_v4 = vmul.f32 %v11085_v29, %v9708_v28  ;;  %v9715_v52 = vmul.f32 %v11087_v27, %v9661_v33  ;;  %vm9721_vm8 = vweird.f32 %v11087_v27 }
0x2357   :  { %11088 = vrsqrt.f32 %v9662_v18  ;;  %v9779_v26 = vsel %vm69_vm0, %v14708_v20, 0.0  ;;  %vm9722_vm10 = vmor %vm9720_vm9, %vm9721_vm8  ;;  %vm9730_vm12 = vweird.f32 %v9662_v18 }
0x2358   :  { %v9716_v22 = vmul.f32 %v11087_v27, %v9715_v52  ;;  %9780 = vadd.xlane.f32.xlu1 %v9779_v26  ;;  %v9713_v41 = vsel %vm9712_vm7, %v11085_v29, %v9709_v4 }
0x2359   :  { %v9748_v46 = vmul.f32 %v9713_v41, %v14648_v57 }
0x235a   :  { %v9717_v3 = vmul.f32 0.5, %v9716_v22 }
0x235b   :  { %v9757_v7 = vmul.f32 %v14668_v56, %v9748_v46 }
0x235c   :  { %v9718_v55 = vsub.f32 1.5, %v9717_v3 }
0x235d   :  { %v11089_v36 = vpop.eup %11088  ;;  %v14715_v16 = vadd.f32 %v14673_v62, %v9757_v7 }
0x235e   :  { %v9719_v58 = vmul.f32 %v11087_v27, %v9718_v55  ;;  %v9725_v10 = vmul.f32 %v11089_v36, %v9662_v18  ;;  %vm9731_vm11 = vweird.f32 %v11089_v36 }
0x235f   :  { %v9782_v37 = vsel %vm69_vm0, %v14715_v16, 0.0  ;;  %vm9732_vm13 = vmor %vm9730_vm12, %vm9731_vm11 }
0x2360   :  { %v9726_v31 = vmul.f32 %v11089_v36, %v9725_v10  ;;  %9783 = vadd.xlane.f32.xlu0 %v9782_v37  ;;  %v9723_v43 = vsel %vm9722_vm10, %v11087_v27, %v9719_v58 }
0x2361   :  { %v9749_v57 = vmul.f32 %v9723_v43, %v14654_v53 }
0x2362   :  { %v9727_v19 = vmul.f32 0.5, %v9726_v31 }
0x2363   :  { %v9758_v21 = vmul.f32 %v14668_v56, %v9749_v57 }
0x2364   :  { %v9728_v0 = vsub.f32 1.5, %v9727_v19 }
0x2365   :  { %v14722_v40 = vadd.f32 %v14673_v62, %v9758_v21 }
0x2366   :  { %v9729_v47 = vmul.f32 %v11089_v36, %v9728_v0 }
0x2367   :  { %v9647_v32 = vpop.xlane.xlu2 %9646  ;;  %v9785_v23 = vsel %vm69_vm0, %v14722_v40, 0.0 }
0x2368   :  { %v9655_v15 = vmul.f32 %v9647_v32, %v15030_v17  ;;  %9786 = vadd.xlane.f32.xlu2 %v9785_v23  ;;  %v9772_v13 = vpop.xlane.xlu1 %9771  ;;  %v9733_v53 = vsel %vm9732_vm13, %v11089_v36, %v9729_v47 }
0x2369   :  { %v9794_v45 = vmul.f32 %v9772_v13, %v15030_v17  ;;  %v9750_v11 = vmul.f32 %v9733_v53, %v14661_v8 }
0x236a   :  { %v9663_v12 = vadd.f32 1e-05, %v9655_v15 }
0x236b   :  { %v14730_v60 = vsub.f32 %v14681_v1, %v9794_v45  ;;  %v9759_v61 = vmul.f32 %v14668_v56, %v9750_v11 }
0x236c   :  { %11090 = vrsqrt.f32 %v9663_v12  ;;  %vm9740_vm15 = vweird.f32 %v9663_v12 }
0x236d   :  { %v9768_v51 = vadd.f32 %v14673_v62, %v9759_v61  ;;  %v9810_v39 = vmul.f32 %v14730_v60, %v14730_v60 }
0x236f   :  { %v9788_v5 = vsel %vm69_vm0, %v9768_v51, 0.0  ;;  %v9818_v42 = vsel %vm69_vm0, %v9810_v39, 0.0 }
0x2370   :  { %9789 = vadd.xlane.f32.xlu1 %v9788_v5  ;;  %v9775_v48 = vpop.xlane.xlu0 %9774  ;;  %9819 = vadd.xlane.f32.xlu2 %v9818_v42  ;;  %v14790_v42 = vperm.slane %v14548_v34, 7 }
0x2371   :  { %v9795_v8 = vmul.f32 %v9775_v48, %v15030_v17 }
0x2372   :  { %v11091_v63 = vpop.eup %11090 }
0x2373   :  { %v9735_v1 = vmul.f32 %v11091_v63, %v9663_v12  ;;  %v14740_v35 = vsub.f32 %v14689_v24, %v9795_v8  ;;  %vm9741_vm14 = vweird.f32 %v11091_v63  ;;  %v14786_v12 = vperm.slane %v14548_v34, 6 }
0x2374   :  { %vm9742_vm2 = vmor %vm9740_vm15, %vm9741_vm14 }
0x2375   :  { %v9736_v29 = vmul.f32 %v11091_v63, %v9735_v1  ;;  %v9811_v33 = vmul.f32 %v14740_v35, %v14740_v35 }
0x2377   :  { %v9737_v14 = vmul.f32 0.5, %v9736_v29  ;;  %v9821_v30 = vsel %vm69_vm0, %v9811_v33, 0.0 }
0x2378   :  { %9822 = vadd.xlane.f32.xlu1 %v9821_v30 }
0x2379   :  { %v9738_v38 = vsub.f32 1.5, %v9737_v14 }
0x237b   :  { %v9739_v2 = vmul.f32 %v11091_v63, %v9738_v38 }
0x237d   :  { %v9743_v44 = vsel %vm9742_vm2, %v11091_v63, %v9739_v2 }
0x237e   :  { %v9751_v50 = vmul.f32 %v9743_v44, %v14675_v54 }
0x2380   :  { %v9760_v25 = vmul.f32 %v14668_v56, %v9751_v50 }
0x2382   :  { %v9769_v24 = vadd.f32 %v14673_v62, %v9760_v25 }
0x2384   :  { %v9791_v6 = vsel %vm69_vm0, %v9769_v24, 0.0 }
0x2385   :  { %9792 = vadd.xlane.f32.xlu0 %v9791_v6 }
0x23c3   :  { %v9778_v59 = vpop.xlane.xlu2 %9777 }
0x23c4   :  { %v9796_v9 = vmul.f32 %v9778_v59, %v15030_v17 }
0x23c6   :  { %v14751_v28 = vsub.f32 %v14700_v49, %v9796_v9 }
0x23c8   :  { %v9812_v27 = vmul.f32 %v14751_v28, %v14751_v28 }
0x23ca   :  { %v9824_v18 = vsel %vm69_vm0, %v9812_v27, 0.0 }
0x23cb   :  { %9825 = vadd.xlane.f32.xlu0 %v9824_v18  ;;  %v9781_v54 = vpop.xlane.xlu1 %9780 }
0x23cc   :  { %v9797_v56 = vmul.f32 %v9781_v54, %v15030_v17 }
0x23ce   :  { %v14758_v62 = vsub.f32 %v14708_v20, %v9797_v56 }
0x23d0   :  { %v9813_v4 = vmul.f32 %v14758_v62, %v14758_v62 }
0x23d2   :  { %v9827_v52 = vsel %vm69_vm0, %v9813_v4, 0.0 }
0x23d3   :  { %v9784_v26 = vpop.xlane.xlu0 %9783  ;;  %9828 = vadd.xlane.f32.xlu2 %v9827_v52 }
0x23d4   :  { %v9798_v49 = vmul.f32 %v9784_v26, %v15030_v17 }
0x23d6   :  { %v14765_v22 = vsub.f32 %v14715_v16, %v9798_v49 }
0x23d8   :  { %v9814_v41 = vmul.f32 %v14765_v22, %v14765_v22 }
0x23da   :  { %v9830_v46 = vsel %vm69_vm0, %v9814_v41, 0.0 }
0x23db   :  { %9831 = vadd.xlane.f32.xlu1 %v9830_v46  ;;  %v9787_v20 = vpop.xlane.xlu2 %9786 }
0x23dc   :  { %v9799_v3 = vmul.f32 %v9787_v20, %v15030_v17 }
0x23de   :  { %v14772_v7 = vsub.f32 %v14722_v40, %v9799_v3 }
0x23e0   :  { %v9815_v55 = vmul.f32 %v14772_v7, %v14772_v7 }
0x23e2   :  { %v9833_v36 = vsel %vm69_vm0, %v9815_v55, 0.0 }
0x23e3   :  { %9834 = vadd.xlane.f32.xlu0 %v9833_v36  ;;  %v9820_v16 = vpop.xlane.xlu2 %9819  ;;  %v9790_v58 = vpop.xlane.xlu1 %9789 }
0x23e4   :  { %v9842_v10 = vmul.f32 %v9820_v16, %v15030_v17  ;;  %v9800_v37 = vmul.f32 %v9790_v58, %v15030_v17 }
0x23e6   :  { %v9850_v31 = vadd.f32 1e-05, %v9842_v10  ;;  %v14779_v43 = vsub.f32 %v9768_v51, %v9800_v37 }
0x23e8   :  { %11092 = vrsqrt.f32 %v9850_v31  ;;  %v9816_v57 = vmul.f32 %v14779_v43, %v14779_v43  ;;  %vm9864_vm4 = vweird.f32 %v9850_v31 }
0x23ea   :  { %v9836_v19 = vsel %vm69_vm0, %v9816_v57, 0.0 }
0x23eb   :  { %9837 = vadd.xlane.f32.xlu2 %v9836_v19  ;;  %v9823_v21 = vpop.xlane.xlu1 %9822 }
0x23ec   :  { %v9843_v0 = vmul.f32 %v9823_v21, %v15030_v17 }
0x23ee   :  { %v11093_v40 = vpop.eup %11092  ;;  %v9851_v47 = vadd.f32 1e-05, %v9843_v0 }
0x23ef   :  { %v9859_v32 = vmul.f32 %v11093_v40, %v9850_v31  ;;  %vm9865_vm1 = vweird.f32 %v11093_v40 }
0x23f0   :  { %11094 = vrsqrt.f32 %v9851_v47  ;;  %vm9866_vm5 = vmor %vm9864_vm4, %vm9865_vm1  ;;  %vm9874_vm6 = vweird.f32 %v9851_v47 }
0x23f1   :  { %v9860_v23 = vmul.f32 %v11093_v40, %v9859_v32 }
0x23f3   :  { %v9861_v15 = vmul.f32 0.5, %v9860_v23 }
0x23f5   :  { %v9862_v13 = vsub.f32 1.5, %v9861_v15 }
0x23f6   :  { %v11095_v53 = vpop.eup %11094 }
0x23f7   :  { %v9863_v45 = vmul.f32 %v11093_v40, %v9862_v13  ;;  %v9869_v11 = vmul.f32 %v11095_v53, %v9851_v47  ;;  %vm9875_vm3 = vweird.f32 %v11095_v53 }
0x23f8   :  { %v9793_v61 = vpop.xlane.xlu0 %9792  ;;  %vm9876_vm7 = vmor %vm9874_vm6, %vm9875_vm3 }
0x23f9   :  { %v9867_v51 = vsel %vm9866_vm5, %v11093_v40, %v9863_v45  ;;  %v9870_v39 = vmul.f32 %v11095_v53, %v9869_v11  ;;  %v9801_v5 = vmul.f32 %v9793_v61, %v15030_v17 }
0x23fa   :  { %v9938_v48 = vmul.f32 %v9867_v51, %v14730_v60 }
0x23fb   :  { %v9871_v8 = vmul.f32 0.5, %v9870_v39  ;;  %v14793_v63 = vsub.f32 %v9769_v24, %v9801_v5 }
0x23fc   :  { %v9947_v1 = vmul.f32 %v14786_v12, %v9938_v48 }
0x23fd   :  { %v9872_v29 = vsub.f32 1.5, %v9871_v8  ;;  %v9817_v33 = vmul.f32 %v14793_v63, %v14793_v63 }
0x23fe   :  { %v9956_v14 = vadd.f32 %v14790_v42, %v9947_v1 }
0x23ff   :  { %v9873_v30 = vmul.f32 %v11095_v53, %v9872_v29  ;;  %v9839_v38 = vsel %vm69_vm0, %v9817_v33, 0.0 }
0x2400   :  { %9964 = vst.msk [vmem:[%s14863_s4] sm:$0xff] %vm69_vm0, %v9956_v14  ;;  %9840 = vadd.xlane.f32.xlu1 %v9839_v38 }
0x2401   :  { %v9877_v34 = vsel %vm9876_vm7, %v11095_v53, %v9873_v30 }
0x2402   :  { %v9939_v60 = vmul.f32 %v9877_v34, %v14740_v35 }
0x2404   :  { %v9948_v2 = vmul.f32 %v14786_v12, %v9939_v60 }
0x2406   :  { %v9957_v44 = vadd.f32 %v14790_v42, %v9948_v2 }
0x2408   :  { %9965 = vst.msk [vmem:[%s14863_s4 + $0x8] sm:$0xff] %vm69_vm0, %v9957_v44 }
0x243e   :  { %v9826_v50 = vpop.xlane.xlu0 %9825 }
0x243f   :  { %v9844_v25 = vmul.f32 %v9826_v50, %v15030_v17 }
0x2441   :  { %v9852_v24 = vadd.f32 1e-05, %v9844_v25 }
0x2443   :  { %11096 = vrsqrt.f32 %v9852_v24  ;;  %vm9884_vm9 = vweird.f32 %v9852_v24 }
0x2446   :  { %v9829_v6 = vpop.xlane.xlu2 %9828 }
0x2447   :  { %v9845_v59 = vmul.f32 %v9829_v6, %v15030_v17 }
0x2449   :  { %v11097_v9 = vpop.eup %11096  ;;  %v9853_v27 = vadd.f32 1e-05, %v9845_v59 }
0x244a   :  { %v9879_v35 = vmul.f32 %v11097_v9, %v9852_v24  ;;  %vm9885_vm8 = vweird.f32 %v11097_v9 }
0x244b   :  { %11098 = vrsqrt.f32 %v9853_v27  ;;  %vm9886_vm10 = vmor %vm9884_vm9, %vm9885_vm8  ;;  %vm9894_vm12 = vweird.f32 %v9853_v27 }
0x244c   :  { %v9880_v18 = vmul.f32 %v11097_v9, %v9879_v35 }
0x244e   :  { %v9881_v54 = vmul.f32 0.5, %v9880_v18  ;;  %v9832_v56 = vpop.xlane.xlu1 %9831 }
0x244f   :  { %v9846_v4 = vmul.f32 %v9832_v56, %v15030_v17 }
0x2450   :  { %v9882_v52 = vsub.f32 1.5, %v9881_v54 }
0x2451   :  { %v11099_v26 = vpop.eup %11098  ;;  %v9854_v49 = vadd.f32 1e-05, %v9846_v4 }
0x2452   :  { %v9883_v41 = vmul.f32 %v11097_v9, %v9882_v52  ;;  %v9889_v46 = vmul.f32 %v11099_v26, %v9853_v27  ;;  %vm9895_vm11 = vweird.f32 %v11099_v26 }
0x2453   :  { %11100 = vrsqrt.f32 %v9854_v49  ;;  %vm9896_vm13 = vmor %vm9894_vm12, %vm9895_vm11  ;;  %vm9904_vm15 = vweird.f32 %v9854_v49 }
0x2454   :  { %v9887_v20 = vsel %vm9886_vm10, %v11097_v9, %v9883_v41  ;;  %v9890_v3 = vmul.f32 %v11099_v26, %v9889_v46 }
0x2455   :  { %v9940_v55 = vmul.f32 %v9887_v20, %v14751_v28 }
0x2456   :  { %v9891_v36 = vmul.f32 0.5, %v9890_v3  ;;  %v9835_v16 = vpop.xlane.xlu0 %9834 }
0x2457   :  { %v9949_v58 = vmul.f32 %v14786_v12, %v9940_v55  ;;  %v9847_v10 = vmul.f32 %v9835_v16, %v15030_v17 }
0x2458   :  { %v9892_v37 = vsub.f32 1.5, %v9891_v36 }
0x2459   :  { %v11101_v31 = vpop.eup %11100  ;;  %v9958_v57 = vadd.f32 %v14790_v42, %v9949_v58  ;;  %v9855_v19 = vadd.f32 1e-05, %v9847_v10 }
0x245a   :  { %v9893_v21 = vmul.f32 %v11099_v26, %v9892_v37  ;;  %v9899_v0 = vmul.f32 %v11101_v31, %v9854_v49  ;;  %vm9905_vm14 = vweird.f32 %v11101_v31 }
0x245b   :  { %9966 = vst.msk [vmem:[%s14863_s4 + $0x10] sm:$0xff] %vm69_vm0, %v9958_v57  ;;  %11102 = vrsqrt.f32 %v9855_v19  ;;  %vm9906_vm2 = vmor %vm9904_vm15, %vm9905_vm14  ;;  %vm9914_vm4 = vweird.f32 %v9855_v19 }
0x245c   :  { %v9897_v28 = vsel %vm9896_vm13, %v11099_v26, %v9893_v21  ;;  %v9900_v40 = vmul.f32 %v11101_v31, %v9899_v0 }
0x245d   :  { %v9941_v47 = vmul.f32 %v9897_v28, %v14758_v62 }
0x245e   :  { %v9901_v32 = vmul.f32 0.5, %v9900_v40  ;;  %v9838_v23 = vpop.xlane.xlu2 %9837 }
0x245f   :  { %v9950_v15 = vmul.f32 %v14786_v12, %v9941_v47  ;;  %v9848_v13 = vmul.f32 %v9838_v23, %v15030_v17 }
0x2460   :  { %v9902_v53 = vsub.f32 1.5, %v9901_v32 }
0x2461   :  { %v11103_v45 = vpop.eup %11102  ;;  %v9959_v11 = vadd.f32 %v14790_v42, %v9950_v15  ;;  %v9856_v61 = vadd.f32 1e-05, %v9848_v13 }
0x2462   :  { %v9903_v51 = vmul.f32 %v11101_v31, %v9902_v53  ;;  %v9909_v39 = vmul.f32 %v11103_v45, %v9855_v19  ;;  %vm9915_vm1 = vweird.f32 %v11103_v45 }
0x2463   :  { %9967 = vst.msk [vmem:[%s14863_s4 + $0x18] sm:$0xff] %vm69_vm0, %v9959_v11  ;;  %11104 = vrsqrt.f32 %v9856_v61  ;;  %vm9916_vm5 = vmor %vm9914_vm4, %vm9915_vm1  ;;  %vm9924_vm6 = vweird.f32 %v9856_v61 }
0x2464   :  { %v9907_v62 = vsel %vm9906_vm2, %v11101_v31, %v9903_v51  ;;  %v9910_v5 = vmul.f32 %v11103_v45, %v9909_v39 }
0x2465   :  { %v9942_v48 = vmul.f32 %v9907_v62, %v14765_v22 }
0x2466   :  { %v9911_v8 = vmul.f32 0.5, %v9910_v5 }
0x2467   :  { %v9951_v1 = vmul.f32 %v14786_v12, %v9942_v48 }
0x2468   :  { %v9912_v29 = vsub.f32 1.5, %v9911_v8 }
0x2469   :  { %v11105_v33 = vpop.eup %11104  ;;  %v9960_v14 = vadd.f32 %v14790_v42, %v9951_v1 }
0x246a   :  { %v9913_v30 = vmul.f32 %v11103_v45, %v9912_v29  ;;  %v9919_v38 = vmul.f32 %v11105_v33, %v9856_v61  ;;  %vm9925_vm3 = vweird.f32 %v11105_v33 }
0x246b   :  { %9968 = vst.msk [vmem:[%s14863_s4 + $0x20] sm:$0xff] %vm69_vm0, %v9960_v14  ;;  %vm9926_vm7 = vmor %vm9924_vm6, %vm9925_vm3 }
0x246c   :  { %v9917_v34 = vsel %vm9916_vm5, %v11103_v45, %v9913_v30  ;;  %v9920_v60 = vmul.f32 %v11105_v33, %v9919_v38 }
0x246d   :  { %v9943_v22 = vmul.f32 %v9917_v34, %v14772_v7 }
0x246e   :  { %v9921_v2 = vmul.f32 0.5, %v9920_v60 }
0x246f   :  { %v9952_v44 = vmul.f32 %v14786_v12, %v9943_v22 }
0x2470   :  { %v9922_v50 = vsub.f32 1.5, %v9921_v2 }
0x2471   :  { %v9961_v25 = vadd.f32 %v14790_v42, %v9952_v44 }
0x2472   :  { %v9923_v24 = vmul.f32 %v11105_v33, %v9922_v50 }
0x2473   :  { %9969 = vst.msk [vmem:[%s14863_s4 + $0x28] sm:$0xff] %vm69_vm0, %v9961_v25  ;;  %v9841_v6 = vpop.xlane.xlu1 %9840 }
0x2474   :  { %v9927_v59 = vsel %vm9926_vm7, %v11105_v33, %v9923_v24  ;;  %v9849_v9 = vmul.f32 %v9841_v6, %v15030_v17 }
0x2475   :  { %v9944_v7 = vmul.f32 %v9927_v59, %v14779_v43 }
0x2476   :  { %v9857_v27 = vadd.f32 1e-05, %v9849_v9 }
0x2477   :  { %v9953_v35 = vmul.f32 %v14786_v12, %v9944_v7 }
0x2478   :  { %11106 = vrsqrt.f32 %v9857_v27  ;;  %vm9934_vm9 = vweird.f32 %v9857_v27 }
0x2479   :  { %v9962_v18 = vadd.f32 %v14790_v42, %v9953_v35 }
0x247b   :  { %9970 = vst.msk [vmem:[%s14863_s4 + $0x30] sm:$0xff] %vm69_vm0, %v9962_v18 }
0x247e   :  { %v11107_v54 = vpop.eup %11106 }
0x247f   :  { %v9929_v56 = vmul.f32 %v11107_v54, %v9857_v27  ;;  %vm9935_vm8 = vweird.f32 %v11107_v54 }
0x2480   :  { %vm9936_vm10 = vmor %vm9934_vm9, %vm9935_vm8 }
0x2481   :  { %v9930_v4 = vmul.f32 %v11107_v54, %v9929_v56 }
0x2483   :  { %v9931_v52 = vmul.f32 0.5, %v9930_v4 }
0x2485   :  { %v9932_v26 = vsub.f32 1.5, %v9931_v52 }
0x2487   :  { %v9933_v17 = vmul.f32 %v11107_v54, %v9932_v26 }
0x2489   :  { %v9937_v43 = vsel %vm9936_vm10, %v11107_v54, %v9933_v17 }
0x248a   :  { %v9945_v49 = vmul.f32 %v9937_v43, %v14793_v63 }
0x248c   :  { %v9954_v41 = vmul.f32 %v14786_v12, %v9945_v49 }
0x248e   :  { %v9963_v46 = vadd.f32 %v14790_v42, %v9954_v41 }
0x2490   :  { %9971 = vst.msk [vmem:[%s14863_s4 + $0x38] sm:$0xff] %vm69_vm0, %v9963_v46 }
0x2491   :  { %9976 = vsyncpa [#allocation3], 1 }
0x2492   :  { %9977 = vsyncpa [#allocation5], 1 }

</bundles_post_ra>
